<compile_context>
chip_gen: v6e
topology: v6e:2x2x1
jax: 0.10.0
libtpu: 0.0.40
codegen_flags: <defaults>
</compile_context>

<pallas_src>
import jax
import jax.numpy as jnp
from jax.experimental import pallas as pl
from jax.experimental.pallas import tpu as pltpu


# ---------------------------------------------------------------------------
# batch-tile selection
# ---------------------------------------------------------------------------

def _pick_bt(B, H, W, C, budget_bytes=8 << 20):
    """Batch tile: <= B//2 (keep both v7x TensorCores busy) and within a VMEM budget."""
    # rough f32 per-image footprint: in/out blocks (double-buffered), padded halo
    # scratch, im2col scratch, ~8 live activation values
    per_b = 4 * (4 * H * W * C + (H + 2) * (W + 2) * C
                 + 9 * H * W * C + 8 * H * W * C)
    bt = min(B, max(1, budget_bytes // max(1, per_b)))
    if B >= 2:
        bt = min(bt, B // 2)          # >= 2 grid steps so v7x megacore splits work
    bt = max(1, bt)
    while B % bt:
        bt -= 1
    return bt


# ---------------------------------------------------------------------------
# fused whole-Block_n kernel
# ---------------------------------------------------------------------------

def _make_block_n_kernel(bt, H, W, C):
    rows = bt * H * W

    def kernel(x_ref,
               w11_ref, b11_ref, w12_ref, b12_ref,     # ResidualBlock 1
               w21_ref, b21_ref, w22_ref, b22_ref,     # ResidualBlock 2
               w31_ref, b31_ref, w32_ref, b32_ref,     # ResidualBlock 3
               wc1_ref, bc1_ref,                       # BasicBlock c1 (128 -> 64)
               wc2_ref, bc2_ref,                       # BasicBlock c2 (192 -> 64)
               wc3_ref, bc3_ref,                       # BasicBlock c3 (256 -> 64)
               o_ref,
               pad_ref, col_ref):
        f32 = jnp.float32

        # ---- zero the 1-pixel halo; the interior is always fully overwritten.
        # (done every step, not only at program_id==0, so it stays correct when the
        #  "parallel" batch axis is split across TensorCores)
        pad_ref[:, 0:1, :, :] = jnp.zeros((bt, 1, W + 2, C), f32)
        pad_ref[:, H + 1:H + 2, :, :] = jnp.zeros((bt, 1, W + 2, C), f32)
        pad_ref[:, :, 0:1, :] = jnp.zeros((bt, H + 2, 1, C), f32)
        pad_ref[:, :, W + 1:W + 2, :] = jnp.zeros((bt, H + 2, 1, C), f32)

        def conv3x3(act, w_ref, b_ref):
            # act: (rows, C) f32 pixel-rows value.  One K=9*C matmul on an im2col
            # slab staged once per conv in VMEM scratch.
            pad_ref[:, 1:1 + H, 1:1 + W, :] = act.reshape(bt, H, W, C)
            for k in range(9):
                dy, dx = divmod(k, 3)
                patch = pad_ref[:, dy:dy + H, dx:dx + W, :]        # (bt,H,W,C)
                col_ref[:, k * C:(k + 1) * C] = patch.reshape(rows, C)
            out = jnp.dot(col_ref[...], w_ref[...],
                          preferred_element_type=f32)              # (rows, C)
            return out + b_ref[...]

        def resblock(act, w1_ref, b1_ref, w2_ref, b2_ref):
            h = jnp.maximum(conv3x3(act, w1_ref, b1_ref), 0.0)
            return jnp.maximum(conv3x3(h, w2_ref, b2_ref) + act, 0.0)

        def conv1x1(parts, w_ref, b_ref):
            # channel concat packed side by side -> single K = n*C matmul
            n = len(parts)
            for k, p in enumerate(parts):
                col_ref[:, k * C:(k + 1) * C] = p
            out = jnp.dot(col_ref[:, :n * C], w_ref[...],
                          preferred_element_type=f32)              # (rows, C)
            return jnp.maximum(out + b_ref[...], 0.0)

        x = x_ref[...].reshape(rows, C).astype(f32)
        b1 = resblock(x, w11_ref, b11_ref, w12_ref, b12_ref)
        o1 = conv1x1([x, b1], wc1_ref, bc1_ref)                    # cat[x,b1]
        b2 = resblock(o1, w21_ref, b21_ref, w22_ref, b22_ref)
        o2 = conv1x1([x, b1, b2], wc2_ref, bc2_ref)                # cat[x,b1,b2]
        b3 = resblock(o2, w31_ref, b31_ref, w32_ref, b32_ref)
        o3 = conv1x1([x, b1, b2, b3], wc3_ref, bc3_ref)            # cat[x,b1,b2,b3]
        o_ref[...] = o3.reshape(bt, H, W, C).astype(o_ref.dtype)

    return kernel


# ---------------------------------------------------------------------------
# full Block_n forward (host wrapper)
# ---------------------------------------------------------------------------

def block_n_forward(x, p):
    """x: (B, 64, H, W) NCHW.  p: dict with PyTorch-layout weights (see __main__)."""
    B, C, H, W = x.shape
    x_nhwc = jnp.transpose(x, (0, 2, 3, 1))
    bt = _pick_bt(B, H, W, C)

    # host-side weight re-layout (done once; no in-kernel transposes)
    def prep3x3(w):                  # (Cout,Cin,3,3) -> (9*Cin, Cout), tap-major rows
        co, ci = w.shape[0], w.shape[1]
        return jnp.transpose(w, (2, 3, 1, 0)).reshape(9 * ci, co)

    def prep1x1(w):                  # (Cout,Cin,1,1) -> (Cin, Cout)
        return jnp.transpose(w[:, :, 0, 0], (1, 0))

    def prep_b(b):
        return b.reshape(1, -1)

    weights = []
    for name in ("b1", "b2", "b3"):
        w1, b1, w2, b2 = p[name]
        weights += [prep3x3(w1), prep_b(b1), prep3x3(w2), prep_b(b2)]
    for name in ("c1", "c2", "c3"):
        w, b = p[name]
        weights += [prep1x1(w), prep_b(b)]

    kernel = _make_block_n_kernel(bt, H, W, C)

    in_specs = [pl.BlockSpec((bt, H, W, C), lambda i: (i, 0, 0, 0))]
    for arr in weights:
        nd = arr.ndim
        in_specs.append(pl.BlockSpec(arr.shape, lambda i, nd=nd: (0,) * nd))

    out = pl.pallas_call(
        kernel,
        out_shape=jax.ShapeDtypeStruct((B, H, W, C), x.dtype),
        grid_spec=pltpu.PrefetchScalarGridSpec(
            num_scalar_prefetch=0,
            grid=(B // bt,),
            in_specs=in_specs,
            out_specs=pl.BlockSpec((bt, H, W, C), lambda i: (i, 0, 0, 0)),
            scratch_shapes=[
                pltpu.VMEM((bt, H + 2, W + 2, C), jnp.float32),    # padded halo buf
                pltpu.VMEM((bt * H * W, 9 * C), jnp.float32),      # im2col / concat slab
            ]),
        compiler_params=pltpu.CompilerParams(
            dimension_semantics=("parallel",),
            vmem_limit_bytes=48 * 1024 * 1024),
    )(x_nhwc, *weights)
    return jnp.transpose(out, (0, 3, 1, 2))


# ---------------------------------------------------------------------------
# pure-JAX reference (mirrors the PyTorch module exactly)
# ---------------------------------------------------------------------------

def _conv2d_ref(x, w, b, padding):
    y = jax.lax.conv_general_dilated(
        x, w, window_strides=(1, 1),
        padding=((padding, padding), (padding, padding)),
        dimension_numbers=("NCHW", "OIHW", "NCHW"))
    return y + b[None, :, None, None]


def _block_n_reference(x, p):
    def resblock(t, w1, b1, w2, b2):
        h = jax.nn.relu(_conv2d_ref(t, w1, b1, 1))
        h = _conv2d_ref(h, w2, b2, 1)
        return jax.nn.relu(h + t)

    def basic(t, w, b):
        return jax.nn.relu(_conv2d_ref(t, w, b, 0))

    c0 = o0 = x
    b1 = resblock(o0, *p["b1"])
    c1 = jnp.concatenate([c0, b1], axis=1)
    o1 = basic(c1, *p["c1"])
    b2 = resblock(o1, *p["b2"])
    c2 = jnp.concatenate([c1, b2], axis=1)
    o2 = basic(c2, *p["c2"])
    b3 = resblock(o2, *p["b3"])
    c3 = jnp.concatenate([c2, b3], axis=1)
    o3 = basic(c3, *p["c3"])
    return o3


# ---------------------------------------------------------------------------
# test
# ---------------------------------------------------------------------------

if __name__ == "__main__":
    B, C, H, W = 2, 64, 8, 8          # Block_n hard-codes 64 channels
    key = jax.random.PRNGKey(0)
    ks = iter(jax.random.split(key, 32))

    def conv3x3_params():
        w = jax.random.normal(next(ks), (C, C, 3, 3), jnp.float32) / jnp.sqrt(9.0 * C)
        b = jax.random.normal(next(ks), (C,), jnp.float32) * 0.1
        return w, b

    def conv1x1_params(cin):
        w = jax.random.normal(next(ks), (C, cin, 1, 1), jnp.float32) / jnp.sqrt(1.0 * cin)
        b = jax.random.normal(next(ks), (C,), jnp.float32) * 0.1
        return w, b

    params = {
        "b1": conv3x3_params() + conv3x3_params(),
        "b2": conv3x3_params() + conv3x3_params(),
        "b3": conv3x3_params() + conv3x3_params(),
        "c1": conv1x1_params(2 * C),
        "c2": conv1x1_params(3 * C),
        "c3": conv1x1_params(4 * C),
    }
    x = jax.random.normal(next(ks), (B, C, H, W), jnp.float32)

    fwd = jax.jit(block_n_forward)
    out = jax.block_until_ready(fwd(x, params))

    ref = _block_n_reference(x, params)
    assert out.shape == (B, C, H, W)
    max_err = float(jnp.max(jnp.abs(out - ref)))
    assert jnp.allclose(out, ref, atol=1e-3, rtol=1e-3), f"max abs err = {max_err}"

    print("KERNEL_OK")
</pallas_src>

<mosaic_0001>
module attributes {stable_mosaic.version = 11 : i64} {
  func.func @kernel(%arg0: i32, %arg1: memref<1x8x8x64xf32, #tpu.memory_space<vmem>>, %arg2: memref<576x64xf32, #tpu.memory_space<vmem>>, %arg3: memref<1x64xf32, #tpu.memory_space<vmem>>, %arg4: memref<576x64xf32, #tpu.memory_space<vmem>>, %arg5: memref<1x64xf32, #tpu.memory_space<vmem>>, %arg6: memref<576x64xf32, #tpu.memory_space<vmem>>, %arg7: memref<1x64xf32, #tpu.memory_space<vmem>>, %arg8: memref<576x64xf32, #tpu.memory_space<vmem>>, %arg9: memref<1x64xf32, #tpu.memory_space<vmem>>, %arg10: memref<576x64xf32, #tpu.memory_space<vmem>>, %arg11: memref<1x64xf32, #tpu.memory_space<vmem>>, %arg12: memref<576x64xf32, #tpu.memory_space<vmem>>, %arg13: memref<1x64xf32, #tpu.memory_space<vmem>>, %arg14: memref<128x64xf32, #tpu.memory_space<vmem>>, %arg15: memref<1x64xf32, #tpu.memory_space<vmem>>, %arg16: memref<192x64xf32, #tpu.memory_space<vmem>>, %arg17: memref<1x64xf32, #tpu.memory_space<vmem>>, %arg18: memref<256x64xf32, #tpu.memory_space<vmem>>, %arg19: memref<1x64xf32, #tpu.memory_space<vmem>>, %arg20: memref<1x8x8x64xf32, #tpu.memory_space<vmem>>, %arg21: memref<1x10x10x64xf32, #tpu.memory_space<vmem>>, %arg22: memref<64x576xf32, #tpu.memory_space<vmem>>) attributes {dimension_semantics = [#tpu.dimension_semantics<parallel>], iteration_bounds = array<i64: 2>, scalar_prefetch = 0 : i64, scratch_operands = 2 : i64, tpu.core_type = #tpu.core_type<tc>, window_params = [{transform_indices = @transform_0, window_bounds = array<i64: 1, 8, 8, 64>}, {pipeline_mode = #tpu.pipeline_mode<synchronous>, transform_indices = @transform_1, window_bounds = array<i64: 576, 64>}, {pipeline_mode = #tpu.pipeline_mode<synchronous>, transform_indices = @transform_2, window_bounds = array<i64: 1, 64>}, {pipeline_mode = #tpu.pipeline_mode<synchronous>, transform_indices = @transform_3, window_bounds = array<i64: 576, 64>}, {pipeline_mode = #tpu.pipeline_mode<synchronous>, transform_indices = @transform_4, window_bounds = array<i64: 1, 64>}, {pipeline_mode = #tpu.pipeline_mode<synchronous>, transform_indices = @transform_5, window_bounds = array<i64: 576, 64>}, {pipeline_mode = #tpu.pipeline_mode<synchronous>, transform_indices = @transform_6, window_bounds = array<i64: 1, 64>}, {pipeline_mode = #tpu.pipeline_mode<synchronous>, transform_indices = @transform_7, window_bounds = array<i64: 576, 64>}, {pipeline_mode = #tpu.pipeline_mode<synchronous>, transform_indices = @transform_8, window_bounds = array<i64: 1, 64>}, {pipeline_mode = #tpu.pipeline_mode<synchronous>, transform_indices = @transform_9, window_bounds = array<i64: 576, 64>}, {pipeline_mode = #tpu.pipeline_mode<synchronous>, transform_indices = @transform_10, window_bounds = array<i64: 1, 64>}, {pipeline_mode = #tpu.pipeline_mode<synchronous>, transform_indices = @transform_11, window_bounds = array<i64: 576, 64>}, {pipeline_mode = #tpu.pipeline_mode<synchronous>, transform_indices = @transform_12, window_bounds = array<i64: 1, 64>}, {pipeline_mode = #tpu.pipeline_mode<synchronous>, transform_indices = @transform_13, window_bounds = array<i64: 128, 64>}, {pipeline_mode = #tpu.pipeline_mode<synchronous>, transform_indices = @transform_14, window_bounds = array<i64: 1, 64>}, {pipeline_mode = #tpu.pipeline_mode<synchronous>, transform_indices = @transform_15, window_bounds = array<i64: 192, 64>}, {pipeline_mode = #tpu.pipeline_mode<synchronous>, transform_indices = @transform_16, window_bounds = array<i64: 1, 64>}, {pipeline_mode = #tpu.pipeline_mode<synchronous>, transform_indices = @transform_17, window_bounds = array<i64: 256, 64>}, {pipeline_mode = #tpu.pipeline_mode<synchronous>, transform_indices = @transform_18, window_bounds = array<i64: 1, 64>}, {transform_indices = @transform_19, window_bounds = array<i64: 1, 8, 8, 64>}]} {
    %cst = arith.constant 0.000000e+00 : f32
    %0 = vector.broadcast %cst : f32 to vector<1x1x10x64xf32>
    %c0 = arith.constant 0 : index
    %c0_0 = arith.constant 0 : index
    %c0_1 = arith.constant 0 : index
    %c0_2 = arith.constant 0 : index
    %1 = vector.load %arg21[%c0, %c0_0, %c0_1, %c0_2] : memref<1x10x10x64xf32, #tpu.memory_space<vmem>>, vector<1x1x10x64xf32>
    tpu.vector_store %arg21[%c0, %c0_0, %c0_1, %c0_2], %0 {strides = array<i32>} : memref<1x10x10x64xf32, #tpu.memory_space<vmem>>, vector<1x1x10x64xf32>,
    %cst_3 = arith.constant 0.000000e+00 : f32
    %2 = vector.broadcast %cst_3 : f32 to vector<1x1x10x64xf32>
    %c0_4 = arith.constant 0 : index
    %c9 = arith.constant 9 : index
    %c0_5 = arith.constant 0 : index
    %c0_6 = arith.constant 0 : index
    %3 = vector.load %arg21[%c0_4, %c9, %c0_5, %c0_6] : memref<1x10x10x64xf32, #tpu.memory_space<vmem>>, vector<1x1x10x64xf32>
    tpu.vector_store %arg21[%c0_4, %c9, %c0_5, %c0_6], %2 {strides = array<i32>} : memref<1x10x10x64xf32, #tpu.memory_space<vmem>>, vector<1x1x10x64xf32>,
    %cst_7 = arith.constant 0.000000e+00 : f32
    %4 = vector.broadcast %cst_7 : f32 to vector<1x10x1x64xf32>
    %c0_8 = arith.constant 0 : index
    %c0_9 = arith.constant 0 : index
    %c0_10 = arith.constant 0 : index
    %c0_11 = arith.constant 0 : index
    %5 = vector.load %arg21[%c0_8, %c0_9, %c0_10, %c0_11] : memref<1x10x10x64xf32, #tpu.memory_space<vmem>>, vector<1x10x1x64xf32>
    tpu.vector_store %arg21[%c0_8, %c0_9, %c0_10, %c0_11], %4 {strides = array<i32>} : memref<1x10x10x64xf32, #tpu.memory_space<vmem>>, vector<1x10x1x64xf32>,
    %cst_12 = arith.constant 0.000000e+00 : f32
    %6 = vector.broadcast %cst_12 : f32 to vector<1x10x1x64xf32>
    %c0_13 = arith.constant 0 : index
    %c0_14 = arith.constant 0 : index
    %c9_15 = arith.constant 9 : index
    %c0_16 = arith.constant 0 : index
    %7 = vector.load %arg21[%c0_13, %c0_14, %c9_15, %c0_16] : memref<1x10x10x64xf32, #tpu.memory_space<vmem>>, vector<1x10x1x64xf32>
    tpu.vector_store %arg21[%c0_13, %c0_14, %c9_15, %c0_16], %6 {strides = array<i32>} : memref<1x10x10x64xf32, #tpu.memory_space<vmem>>, vector<1x10x1x64xf32>,
    %c0_17 = arith.constant 0 : index
    %c0_18 = arith.constant 0 : index
    %c0_19 = arith.constant 0 : index
    %c0_20 = arith.constant 0 : index
    %8 = vector.load %arg1[%c0_17, %c0_18, %c0_19, %c0_20] : memref<1x8x8x64xf32, #tpu.memory_space<vmem>>, vector<1x8x8x64xf32>
    %9 = vector.shape_cast %8 : vector<1x8x8x64xf32> to vector<64x64xf32>
    %10 = vector.shape_cast %9 : vector<64x64xf32> to vector<1x8x8x64xf32>
    %c0_21 = arith.constant 0 : index
    %c1 = arith.constant 1 : index
    %c1_22 = arith.constant 1 : index
    %c0_23 = arith.constant 0 : index
    %11 = vector.load %arg21[%c0_21, %c1, %c1_22, %c0_23] : memref<1x10x10x64xf32, #tpu.memory_space<vmem>>, vector<1x8x8x64xf32>
    tpu.vector_store %arg21[%c0_21, %c1, %c1_22, %c0_23], %10 {strides = array<i32>} : memref<1x10x10x64xf32, #tpu.memory_space<vmem>>, vector<1x8x8x64xf32>,
    %c0_24 = arith.constant 0 : index
    %c0_25 = arith.constant 0 : index
    %c0_26 = arith.constant 0 : index
    %c0_27 = arith.constant 0 : index
    %12 = vector.load %arg21[%c0_24, %c0_25, %c0_26, %c0_27] : memref<1x10x10x64xf32, #tpu.memory_space<vmem>>, vector<1x8x8x64xf32>
    %13 = vector.shape_cast %12 : vector<1x8x8x64xf32> to vector<64x64xf32>
    %c0_28 = arith.constant 0 : index
    %c0_29 = arith.constant 0 : index
    %14 = vector.load %arg22[%c0_28, %c0_29] : memref<64x576xf32, #tpu.memory_space<vmem>>, vector<64x64xf32>
    tpu.vector_store %arg22[%c0_28, %c0_29], %13 {strides = array<i32>} : memref<64x576xf32, #tpu.memory_space<vmem>>, vector<64x64xf32>,
    %c0_30 = arith.constant 0 : index
    %c0_31 = arith.constant 0 : index
    %c1_32 = arith.constant 1 : index
    %c0_33 = arith.constant 0 : index
    %15 = vector.load %arg21[%c0_30, %c0_31, %c1_32, %c0_33] : memref<1x10x10x64xf32, #tpu.memory_space<vmem>>, vector<1x8x8x64xf32>
    %16 = vector.shape_cast %15 : vector<1x8x8x64xf32> to vector<64x64xf32>
    %c0_34 = arith.constant 0 : index
    %c64 = arith.constant 64 : index
    %17 = vector.load %arg22[%c0_34, %c64] : memref<64x576xf32, #tpu.memory_space<vmem>>, vector<64x64xf32>
    tpu.vector_store %arg22[%c0_34, %c64], %16 {strides = array<i32>} : memref<64x576xf32, #tpu.memory_space<vmem>>, vector<64x64xf32>,
    %c0_35 = arith.constant 0 : index
    %c0_36 = arith.constant 0 : index
    %c2 = arith.constant 2 : index
    %c0_37 = arith.constant 0 : index
    %18 = vector.load %arg21[%c0_35, %c0_36, %c2, %c0_37] : memref<1x10x10x64xf32, #tpu.memory_space<vmem>>, vector<1x8x8x64xf32>
    %19 = vector.shape_cast %18 : vector<1x8x8x64xf32> to vector<64x64xf32>
    %c0_38 = arith.constant 0 : index
    %c128 = arith.constant 128 : index
    %20 = vector.load %arg22[%c0_38, %c128] : memref<64x576xf32, #tpu.memory_space<vmem>>, vector<64x64xf32>
    tpu.vector_store %arg22[%c0_38, %c128], %19 {strides = array<i32>} : memref<64x576xf32, #tpu.memory_space<vmem>>, vector<64x64xf32>,
    %c0_39 = arith.constant 0 : index
    %c1_40 = arith.constant 1 : index
    %c0_41 = arith.constant 0 : index
    %c0_42 = arith.constant 0 : index
    %21 = vector.load %arg21[%c0_39, %c1_40, %c0_41, %c0_42] : memref<1x10x10x64xf32, #tpu.memory_space<vmem>>, vector<1x8x8x64xf32>
    %22 = vector.shape_cast %21 : vector<1x8x8x64xf32> to vector<64x64xf32>
    %c0_43 = arith.constant 0 : index
    %c192 = arith.constant 192 : index
    %23 = vector.load %arg22[%c0_43, %c192] : memref<64x576xf32, #tpu.memory_space<vmem>>, vector<64x64xf32>
    tpu.vector_store %arg22[%c0_43, %c192], %22 {strides = array<i32>} : memref<64x576xf32, #tpu.memory_space<vmem>>, vector<64x64xf32>,
    %c0_44 = arith.constant 0 : index
    %c1_45 = arith.constant 1 : index
    %c1_46 = arith.constant 1 : index
    %c0_47 = arith.constant 0 : index
    %24 = vector.load %arg21[%c0_44, %c1_45, %c1_46, %c0_47] : memref<1x10x10x64xf32, #tpu.memory_space<vmem>>, vector<1x8x8x64xf32>
    %25 = vector.shape_cast %24 : vector<1x8x8x64xf32> to vector<64x64xf32>
    %c0_48 = arith.constant 0 : index
    %c256 = arith.constant 256 : index
    %26 = vector.load %arg22[%c0_48, %c256] : memref<64x576xf32, #tpu.memory_space<vmem>>, vector<64x64xf32>
    tpu.vector_store %arg22[%c0_48, %c256], %25 {strides = array<i32>} : memref<64x576xf32, #tpu.memory_space<vmem>>, vector<64x64xf32>,
    %c0_49 = arith.constant 0 : index
    %c1_50 = arith.constant 1 : index
    %c2_51 = arith.constant 2 : index
    %c0_52 = arith.constant 0 : index
    %27 = vector.load %arg21[%c0_49, %c1_50, %c2_51, %c0_52] : memref<1x10x10x64xf32, #tpu.memory_space<vmem>>, vector<1x8x8x64xf32>
    %28 = vector.shape_cast %27 : vector<1x8x8x64xf32> to vector<64x64xf32>
    %c0_53 = arith.constant 0 : index
    %c320 = arith.constant 320 : index
    %29 = vector.load %arg22[%c0_53, %c320] : memref<64x576xf32, #tpu.memory_space<vmem>>, vector<64x64xf32>
    tpu.vector_store %arg22[%c0_53, %c320], %28 {strides = array<i32>} : memref<64x576xf32, #tpu.memory_space<vmem>>, vector<64x64xf32>,
    %c0_54 = arith.constant 0 : index
    %c2_55 = arith.constant 2 : index
    %c0_56 = arith.constant 0 : index
    %c0_57 = arith.constant 0 : index
    %30 = vector.load %arg21[%c0_54, %c2_55, %c0_56, %c0_57] : memref<1x10x10x64xf32, #tpu.memory_space<vmem>>, vector<1x8x8x64xf32>
    %31 = vector.shape_cast %30 : vector<1x8x8x64xf32> to vector<64x64xf32>
    %c0_58 = arith.constant 0 : index
    %c384 = arith.constant 384 : index
    %32 = vector.load %arg22[%c0_58, %c384] : memref<64x576xf32, #tpu.memory_space<vmem>>, vector<64x64xf32>
    tpu.vector_store %arg22[%c0_58, %c384], %31 {strides = array<i32>} : memref<64x576xf32, #tpu.memory_space<vmem>>, vector<64x64xf32>,
    %c0_59 = arith.constant 0 : index
    %c2_60 = arith.constant 2 : index
    %c1_61 = arith.constant 1 : index
    %c0_62 = arith.constant 0 : index
    %33 = vector.load %arg21[%c0_59, %c2_60, %c1_61, %c0_62] : memref<1x10x10x64xf32, #tpu.memory_space<vmem>>, vector<1x8x8x64xf32>
    %34 = vector.shape_cast %33 : vector<1x8x8x64xf32> to vector<64x64xf32>
    %c0_63 = arith.constant 0 : index
    %c448 = arith.constant 448 : index
    %35 = vector.load %arg22[%c0_63, %c448] : memref<64x576xf32, #tpu.memory_space<vmem>>, vector<64x64xf32>
    tpu.vector_store %arg22[%c0_63, %c448], %34 {strides = array<i32>} : memref<64x576xf32, #tpu.memory_space<vmem>>, vector<64x64xf32>,
    %c0_64 = arith.constant 0 : index
    %c2_65 = arith.constant 2 : index
    %c2_66 = arith.constant 2 : index
    %c0_67 = arith.constant 0 : index
    %36 = vector.load %arg21[%c0_64, %c2_65, %c2_66, %c0_67] : memref<1x10x10x64xf32, #tpu.memory_space<vmem>>, vector<1x8x8x64xf32>
    %37 = vector.shape_cast %36 : vector<1x8x8x64xf32> to vector<64x64xf32>
    %c0_68 = arith.constant 0 : index
    %c512 = arith.constant 512 : index
    %38 = vector.load %arg22[%c0_68, %c512] : memref<64x576xf32, #tpu.memory_space<vmem>>, vector<64x64xf32>
    tpu.vector_store %arg22[%c0_68, %c512], %37 {strides = array<i32>} : memref<64x576xf32, #tpu.memory_space<vmem>>, vector<64x64xf32>,
    %c0_69 = arith.constant 0 : index
    %c0_70 = arith.constant 0 : index
    %39 = vector.load %arg22[%c0_69, %c0_70] : memref<64x576xf32, #tpu.memory_space<vmem>>, vector<64x576xf32>
    %c0_71 = arith.constant 0 : index
    %c0_72 = arith.constant 0 : index
    %40 = vector.load %arg2[%c0_71, %c0_72] : memref<576x64xf32, #tpu.memory_space<vmem>>, vector<576x64xf32>
    %cst_73 = arith.constant dense<0.000000e+00> : vector<64x64xf32>
    %41 = tpu.matmul %39, %40, %cst_73 {dimension_numbers = #tpu.dot_dimension_numbers<[1], [0], [0], [1], [0, 0, 1, 1], [], []>} : vector<64x576xf32>, vector<576x64xf32>, vector<64x64xf32> -> vector<64x64xf32>
    %c0_74 = arith.constant 0 : index
    %c0_75 = arith.constant 0 : index
    %42 = vector.load %arg3[%c0_74, %c0_75] : memref<1x64xf32, #tpu.memory_space<vmem>>, vector<1x64xf32>
    %43 = vector.broadcast %42 : vector<1x64xf32> to vector<64x64xf32>
    %44 = arith.addf %41, %43 : vector<64x64xf32>
    %cst_76 = arith.constant 0.000000e+00 : f32
    %45 = vector.broadcast %cst_76 : f32 to vector<64x64xf32>
    %46 = arith.maximumf %44, %45 : vector<64x64xf32>
    %47 = vector.shape_cast %46 : vector<64x64xf32> to vector<1x8x8x64xf32>
    %c0_77 = arith.constant 0 : index
    %c1_78 = arith.constant 1 : index
    %c1_79 = arith.constant 1 : index
    %c0_80 = arith.constant 0 : index
    %48 = vector.load %arg21[%c0_77, %c1_78, %c1_79, %c0_80] : memref<1x10x10x64xf32, #tpu.memory_space<vmem>>, vector<1x8x8x64xf32>
    tpu.vector_store %arg21[%c0_77, %c1_78, %c1_79, %c0_80], %47 {strides = array<i32>} : memref<1x10x10x64xf32, #tpu.memory_space<vmem>>, vector<1x8x8x64xf32>,
    %c0_81 = arith.constant 0 : index
    %c0_82 = arith.constant 0 : index
    %c0_83 = arith.constant 0 : index
    %c0_84 = arith.constant 0 : index
    %49 = vector.load %arg21[%c0_81, %c0_82, %c0_83, %c0_84] : memref<1x10x10x64xf32, #tpu.memory_space<vmem>>, vector<1x8x8x64xf32>
    %50 = vector.shape_cast %49 : vector<1x8x8x64xf32> to vector<64x64xf32>
    %c0_85 = arith.constant 0 : index
    %c0_86 = arith.constant 0 : index
    %51 = vector.load %arg22[%c0_85, %c0_86] : memref<64x576xf32, #tpu.memory_space<vmem>>, vector<64x64xf32>
    tpu.vector_store %arg22[%c0_85, %c0_86], %50 {strides = array<i32>} : memref<64x576xf32, #tpu.memory_space<vmem>>, vector<64x64xf32>,
    %c0_87 = arith.constant 0 : index
    %c0_88 = arith.constant 0 : index
    %c1_89 = arith.constant 1 : index
    %c0_90 = arith.constant 0 : index
    %52 = vector.load %arg21[%c0_87, %c0_88, %c1_89, %c0_90] : memref<1x10x10x64xf32, #tpu.memory_space<vmem>>, vector<1x8x8x64xf32>
    %53 = vector.shape_cast %52 : vector<1x8x8x64xf32> to vector<64x64xf32>
    %c0_91 = arith.constant 0 : index
    %c64_92 = arith.constant 64 : index
    %54 = vector.load %arg22[%c0_91, %c64_92] : memref<64x576xf32, #tpu.memory_space<vmem>>, vector<64x64xf32>
    tpu.vector_store %arg22[%c0_91, %c64_92], %53 {strides = array<i32>} : memref<64x576xf32, #tpu.memory_space<vmem>>, vector<64x64xf32>,
    %c0_93 = arith.constant 0 : index
    %c0_94 = arith.constant 0 : index
    %c2_95 = arith.constant 2 : index
    %c0_96 = arith.constant 0 : index
    %55 = vector.load %arg21[%c0_93, %c0_94, %c2_95, %c0_96] : memref<1x10x10x64xf32, #tpu.memory_space<vmem>>, vector<1x8x8x64xf32>
    %56 = vector.shape_cast %55 : vector<1x8x8x64xf32> to vector<64x64xf32>
    %c0_97 = arith.constant 0 : index
    %c128_98 = arith.constant 128 : index
    %57 = vector.load %arg22[%c0_97, %c128_98] : memref<64x576xf32, #tpu.memory_space<vmem>>, vector<64x64xf32>
    tpu.vector_store %arg22[%c0_97, %c128_98], %56 {strides = array<i32>} : memref<64x576xf32, #tpu.memory_space<vmem>>, vector<64x64xf32>,
    %c0_99 = arith.constant 0 : index
    %c1_100 = arith.constant 1 : index
    %c0_101 = arith.constant 0 : index
    %c0_102 = arith.constant 0 : index
    %58 = vector.load %arg21[%c0_99, %c1_100, %c0_101, %c0_102] : memref<1x10x10x64xf32, #tpu.memory_space<vmem>>, vector<1x8x8x64xf32>
    %59 = vector.shape_cast %58 : vector<1x8x8x64xf32> to vector<64x64xf32>
    %c0_103 = arith.constant 0 : index
    %c192_104 = arith.constant 192 : index
    %60 = vector.load %arg22[%c0_103, %c192_104] : memref<64x576xf32, #tpu.memory_space<vmem>>, vector<64x64xf32>
    tpu.vector_store %arg22[%c0_103, %c192_104], %59 {strides = array<i32>} : memref<64x576xf32, #tpu.memory_space<vmem>>, vector<64x64xf32>,
    %c0_105 = arith.constant 0 : index
    %c1_106 = arith.constant 1 : index
    %c1_107 = arith.constant 1 : index
    %c0_108 = arith.constant 0 : index
    %61 = vector.load %arg21[%c0_105, %c1_106, %c1_107, %c0_108] : memref<1x10x10x64xf32, #tpu.memory_space<vmem>>, vector<1x8x8x64xf32>
    %62 = vector.shape_cast %61 : vector<1x8x8x64xf32> to vector<64x64xf32>
    %c0_109 = arith.constant 0 : index
    %c256_110 = arith.constant 256 : index
    %63 = vector.load %arg22[%c0_109, %c256_110] : memref<64x576xf32, #tpu.memory_space<vmem>>, vector<64x64xf32>
    tpu.vector_store %arg22[%c0_109, %c256_110], %62 {strides = array<i32>} : memref<64x576xf32, #tpu.memory_space<vmem>>, vector<64x64xf32>,
    %c0_111 = arith.constant 0 : index
    %c1_112 = arith.constant 1 : index
    %c2_113 = arith.constant 2 : index
    %c0_114 = arith.constant 0 : index
    %64 = vector.load %arg21[%c0_111, %c1_112, %c2_113, %c0_114] : memref<1x10x10x64xf32, #tpu.memory_space<vmem>>, vector<1x8x8x64xf32>
    %65 = vector.shape_cast %64 : vector<1x8x8x64xf32> to vector<64x64xf32>
    %c0_115 = arith.constant 0 : index
    %c320_116 = arith.constant 320 : index
    %66 = vector.load %arg22[%c0_115, %c320_116] : memref<64x576xf32, #tpu.memory_space<vmem>>, vector<64x64xf32>
    tpu.vector_store %arg22[%c0_115, %c320_116], %65 {strides = array<i32>} : memref<64x576xf32, #tpu.memory_space<vmem>>, vector<64x64xf32>,
    %c0_117 = arith.constant 0 : index
    %c2_118 = arith.constant 2 : index
    %c0_119 = arith.constant 0 : index
    %c0_120 = arith.constant 0 : index
    %67 = vector.load %arg21[%c0_117, %c2_118, %c0_119, %c0_120] : memref<1x10x10x64xf32, #tpu.memory_space<vmem>>, vector<1x8x8x64xf32>
    %68 = vector.shape_cast %67 : vector<1x8x8x64xf32> to vector<64x64xf32>
    %c0_121 = arith.constant 0 : index
    %c384_122 = arith.constant 384 : index
    %69 = vector.load %arg22[%c0_121, %c384_122] : memref<64x576xf32, #tpu.memory_space<vmem>>, vector<64x64xf32>
    tpu.vector_store %arg22[%c0_121, %c384_122], %68 {strides = array<i32>} : memref<64x576xf32, #tpu.memory_space<vmem>>, vector<64x64xf32>,
    %c0_123 = arith.constant 0 : index
    %c2_124 = arith.constant 2 : index
    %c1_125 = arith.constant 1 : index
    %c0_126 = arith.constant 0 : index
    %70 = vector.load %arg21[%c0_123, %c2_124, %c1_125, %c0_126] : memref<1x10x10x64xf32, #tpu.memory_space<vmem>>, vector<1x8x8x64xf32>
    %71 = vector.shape_cast %70 : vector<1x8x8x64xf32> to vector<64x64xf32>
    %c0_127 = arith.constant 0 : index
    %c448_128 = arith.constant 448 : index
    %72 = vector.load %arg22[%c0_127, %c448_128] : memref<64x576xf32, #tpu.memory_space<vmem>>, vector<64x64xf32>
    tpu.vector_store %arg22[%c0_127, %c448_128], %71 {strides = array<i32>} : memref<64x576xf32, #tpu.memory_space<vmem>>, vector<64x64xf32>,
    %c0_129 = arith.constant 0 : index
    %c2_130 = arith.constant 2 : index
    %c2_131 = arith.constant 2 : index
    %c0_132 = arith.constant 0 : index
    %73 = vector.load %arg21[%c0_129, %c2_130, %c2_131, %c0_132] : memref<1x10x10x64xf32, #tpu.memory_space<vmem>>, vector<1x8x8x64xf32>
    %74 = vector.shape_cast %73 : vector<1x8x8x64xf32> to vector<64x64xf32>
    %c0_133 = arith.constant 0 : index
    %c512_134 = arith.constant 512 : index
    %75 = vector.load %arg22[%c0_133, %c512_134] : memref<64x576xf32, #tpu.memory_space<vmem>>, vector<64x64xf32>
    tpu.vector_store %arg22[%c0_133, %c512_134], %74 {strides = array<i32>} : memref<64x576xf32, #tpu.memory_space<vmem>>, vector<64x64xf32>,
    %c0_135 = arith.constant 0 : index
    %c0_136 = arith.constant 0 : index
    %76 = vector.load %arg22[%c0_135, %c0_136] : memref<64x576xf32, #tpu.memory_space<vmem>>, vector<64x576xf32>
    %c0_137 = arith.constant 0 : index
    %c0_138 = arith.constant 0 : index
    %77 = vector.load %arg4[%c0_137, %c0_138] : memref<576x64xf32, #tpu.memory_space<vmem>>, vector<576x64xf32>
    %cst_139 = arith.constant dense<0.000000e+00> : vector<64x64xf32>
    %78 = tpu.matmul %76, %77, %cst_139 {dimension_numbers = #tpu.dot_dimension_numbers<[1], [0], [0], [1], [0, 0, 1, 1], [], []>} : vector<64x576xf32>, vector<576x64xf32>, vector<64x64xf32> -> vector<64x64xf32>
    %c0_140 = arith.constant 0 : index
    %c0_141 = arith.constant 0 : index
    %79 = vector.load %arg5[%c0_140, %c0_141] : memref<1x64xf32, #tpu.memory_space<vmem>>, vector<1x64xf32>
    %80 = vector.broadcast %79 : vector<1x64xf32> to vector<64x64xf32>
    %81 = arith.addf %78, %80 : vector<64x64xf32>
    %82 = arith.addf %81, %9 : vector<64x64xf32>
    %cst_142 = arith.constant 0.000000e+00 : f32
    %83 = vector.broadcast %cst_142 : f32 to vector<64x64xf32>
    %84 = arith.maximumf %82, %83 : vector<64x64xf32>
    %c0_143 = arith.constant 0 : index
    %c0_144 = arith.constant 0 : index
    %85 = vector.load %arg22[%c0_143, %c0_144] : memref<64x576xf32, #tpu.memory_space<vmem>>, vector<64x64xf32>
    tpu.vector_store %arg22[%c0_143, %c0_144], %9 {strides = array<i32>} : memref<64x576xf32, #tpu.memory_space<vmem>>, vector<64x64xf32>,
    %c0_145 = arith.constant 0 : index
    %c64_146 = arith.constant 64 : index
    %86 = vector.load %arg22[%c0_145, %c64_146] : memref<64x576xf32, #tpu.memory_space<vmem>>, vector<64x64xf32>
    tpu.vector_store %arg22[%c0_145, %c64_146], %84 {strides = array<i32>} : memref<64x576xf32, #tpu.memory_space<vmem>>, vector<64x64xf32>,
    %c0_147 = arith.constant 0 : index
    %c0_148 = arith.constant 0 : index
    %87 = vector.load %arg22[%c0_147, %c0_148] : memref<64x576xf32, #tpu.memory_space<vmem>>, vector<64x128xf32>
    %c0_149 = arith.constant 0 : index
    %c0_150 = arith.constant 0 : index
    %88 = vector.load %arg14[%c0_149, %c0_150] : memref<128x64xf32, #tpu.memory_space<vmem>>, vector<128x64xf32>
    %cst_151 = arith.constant dense<0.000000e+00> : vector<64x64xf32>
    %89 = tpu.matmul %87, %88, %cst_151 {dimension_numbers = #tpu.dot_dimension_numbers<[1], [0], [0], [1], [0, 0, 1, 1], [], []>} : vector<64x128xf32>, vector<128x64xf32>, vector<64x64xf32> -> vector<64x64xf32>
    %c0_152 = arith.constant 0 : index
    %c0_153 = arith.constant 0 : index
    %90 = vector.load %arg15[%c0_152, %c0_153] : memref<1x64xf32, #tpu.memory_space<vmem>>, vector<1x64xf32>
    %91 = vector.broadcast %90 : vector<1x64xf32> to vector<64x64xf32>
    %92 = arith.addf %89, %91 : vector<64x64xf32>
    %cst_154 = arith.constant 0.000000e+00 : f32
    %93 = vector.broadcast %cst_154 : f32 to vector<64x64xf32>
    %94 = arith.maximumf %92, %93 : vector<64x64xf32>
    %95 = vector.shape_cast %94 : vector<64x64xf32> to vector<1x8x8x64xf32>
    %c0_155 = arith.constant 0 : index
    %c1_156 = arith.constant 1 : index
    %c1_157 = arith.constant 1 : index
    %c0_158 = arith.constant 0 : index
    %96 = vector.load %arg21[%c0_155, %c1_156, %c1_157, %c0_158] : memref<1x10x10x64xf32, #tpu.memory_space<vmem>>, vector<1x8x8x64xf32>
    tpu.vector_store %arg21[%c0_155, %c1_156, %c1_157, %c0_158], %95 {strides = array<i32>} : memref<1x10x10x64xf32, #tpu.memory_space<vmem>>, vector<1x8x8x64xf32>,
    %c0_159 = arith.constant 0 : index
    %c0_160 = arith.constant 0 : index
    %c0_161 = arith.constant 0 : index
    %c0_162 = arith.constant 0 : index
    %97 = vector.load %arg21[%c0_159, %c0_160, %c0_161, %c0_162] : memref<1x10x10x64xf32, #tpu.memory_space<vmem>>, vector<1x8x8x64xf32>
    %98 = vector.shape_cast %97 : vector<1x8x8x64xf32> to vector<64x64xf32>
    %c0_163 = arith.constant 0 : index
    %c0_164 = arith.constant 0 : index
    %99 = vector.load %arg22[%c0_163, %c0_164] : memref<64x576xf32, #tpu.memory_space<vmem>>, vector<64x64xf32>
    tpu.vector_store %arg22[%c0_163, %c0_164], %98 {strides = array<i32>} : memref<64x576xf32, #tpu.memory_space<vmem>>, vector<64x64xf32>,
    %c0_165 = arith.constant 0 : index
    %c0_166 = arith.constant 0 : index
    %c1_167 = arith.constant 1 : index
    %c0_168 = arith.constant 0 : index
    %100 = vector.load %arg21[%c0_165, %c0_166, %c1_167, %c0_168] : memref<1x10x10x64xf32, #tpu.memory_space<vmem>>, vector<1x8x8x64xf32>
    %101 = vector.shape_cast %100 : vector<1x8x8x64xf32> to vector<64x64xf32>
    %c0_169 = arith.constant 0 : index
    %c64_170 = arith.constant 64 : index
    %102 = vector.load %arg22[%c0_169, %c64_170] : memref<64x576xf32, #tpu.memory_space<vmem>>, vector<64x64xf32>
    tpu.vector_store %arg22[%c0_169, %c64_170], %101 {strides = array<i32>} : memref<64x576xf32, #tpu.memory_space<vmem>>, vector<64x64xf32>,
    %c0_171 = arith.constant 0 : index
    %c0_172 = arith.constant 0 : index
    %c2_173 = arith.constant 2 : index
    %c0_174 = arith.constant 0 : index
    %103 = vector.load %arg21[%c0_171, %c0_172, %c2_173, %c0_174] : memref<1x10x10x64xf32, #tpu.memory_space<vmem>>, vector<1x8x8x64xf32>
    %104 = vector.shape_cast %103 : vector<1x8x8x64xf32> to vector<64x64xf32>
    %c0_175 = arith.constant 0 : index
    %c128_176 = arith.constant 128 : index
    %105 = vector.load %arg22[%c0_175, %c128_176] : memref<64x576xf32, #tpu.memory_space<vmem>>, vector<64x64xf32>
    tpu.vector_store %arg22[%c0_175, %c128_176], %104 {strides = array<i32>} : memref<64x576xf32, #tpu.memory_space<vmem>>, vector<64x64xf32>,
    %c0_177 = arith.constant 0 : index
    %c1_178 = arith.constant 1 : index
    %c0_179 = arith.constant 0 : index
    %c0_180 = arith.constant 0 : index
    %106 = vector.load %arg21[%c0_177, %c1_178, %c0_179, %c0_180] : memref<1x10x10x64xf32, #tpu.memory_space<vmem>>, vector<1x8x8x64xf32>
    %107 = vector.shape_cast %106 : vector<1x8x8x64xf32> to vector<64x64xf32>
    %c0_181 = arith.constant 0 : index
    %c192_182 = arith.constant 192 : index
    %108 = vector.load %arg22[%c0_181, %c192_182] : memref<64x576xf32, #tpu.memory_space<vmem>>, vector<64x64xf32>
    tpu.vector_store %arg22[%c0_181, %c192_182], %107 {strides = array<i32>} : memref<64x576xf32, #tpu.memory_space<vmem>>, vector<64x64xf32>,
    %c0_183 = arith.constant 0 : index
    %c1_184 = arith.constant 1 : index
    %c1_185 = arith.constant 1 : index
    %c0_186 = arith.constant 0 : index
    %109 = vector.load %arg21[%c0_183, %c1_184, %c1_185, %c0_186] : memref<1x10x10x64xf32, #tpu.memory_space<vmem>>, vector<1x8x8x64xf32>
    %110 = vector.shape_cast %109 : vector<1x8x8x64xf32> to vector<64x64xf32>
    %c0_187 = arith.constant 0 : index
    %c256_188 = arith.constant 256 : index
    %111 = vector.load %arg22[%c0_187, %c256_188] : memref<64x576xf32, #tpu.memory_space<vmem>>, vector<64x64xf32>
    tpu.vector_store %arg22[%c0_187, %c256_188], %110 {strides = array<i32>} : memref<64x576xf32, #tpu.memory_space<vmem>>, vector<64x64xf32>,
    %c0_189 = arith.constant 0 : index
    %c1_190 = arith.constant 1 : index
    %c2_191 = arith.constant 2 : index
    %c0_192 = arith.constant 0 : index
    %112 = vector.load %arg21[%c0_189, %c1_190, %c2_191, %c0_192] : memref<1x10x10x64xf32, #tpu.memory_space<vmem>>, vector<1x8x8x64xf32>
    %113 = vector.shape_cast %112 : vector<1x8x8x64xf32> to vector<64x64xf32>
    %c0_193 = arith.constant 0 : index
    %c320_194 = arith.constant 320 : index
    %114 = vector.load %arg22[%c0_193, %c320_194] : memref<64x576xf32, #tpu.memory_space<vmem>>, vector<64x64xf32>
    tpu.vector_store %arg22[%c0_193, %c320_194], %113 {strides = array<i32>} : memref<64x576xf32, #tpu.memory_space<vmem>>, vector<64x64xf32>,
    %c0_195 = arith.constant 0 : index
    %c2_196 = arith.constant 2 : index
    %c0_197 = arith.constant 0 : index
    %c0_198 = arith.constant 0 : index
    %115 = vector.load %arg21[%c0_195, %c2_196, %c0_197, %c0_198] : memref<1x10x10x64xf32, #tpu.memory_space<vmem>>, vector<1x8x8x64xf32>
    %116 = vector.shape_cast %115 : vector<1x8x8x64xf32> to vector<64x64xf32>
    %c0_199 = arith.constant 0 : index
    %c384_200 = arith.constant 384 : index
    %117 = vector.load %arg22[%c0_199, %c384_200] : memref<64x576xf32, #tpu.memory_space<vmem>>, vector<64x64xf32>
    tpu.vector_store %arg22[%c0_199, %c384_200], %116 {strides = array<i32>} : memref<64x576xf32, #tpu.memory_space<vmem>>, vector<64x64xf32>,
    %c0_201 = arith.constant 0 : index
    %c2_202 = arith.constant 2 : index
    %c1_203 = arith.constant 1 : index
    %c0_204 = arith.constant 0 : index
    %118 = vector.load %arg21[%c0_201, %c2_202, %c1_203, %c0_204] : memref<1x10x10x64xf32, #tpu.memory_space<vmem>>, vector<1x8x8x64xf32>
    %119 = vector.shape_cast %118 : vector<1x8x8x64xf32> to vector<64x64xf32>
    %c0_205 = arith.constant 0 : index
    %c448_206 = arith.constant 448 : index
    %120 = vector.load %arg22[%c0_205, %c448_206] : memref<64x576xf32, #tpu.memory_space<vmem>>, vector<64x64xf32>
    tpu.vector_store %arg22[%c0_205, %c448_206], %119 {strides = array<i32>} : memref<64x576xf32, #tpu.memory_space<vmem>>, vector<64x64xf32>,
    %c0_207 = arith.constant 0 : index
    %c2_208 = arith.constant 2 : index
    %c2_209 = arith.constant 2 : index
    %c0_210 = arith.constant 0 : index
    %121 = vector.load %arg21[%c0_207, %c2_208, %c2_209, %c0_210] : memref<1x10x10x64xf32, #tpu.memory_space<vmem>>, vector<1x8x8x64xf32>
    %122 = vector.shape_cast %121 : vector<1x8x8x64xf32> to vector<64x64xf32>
    %c0_211 = arith.constant 0 : index
    %c512_212 = arith.constant 512 : index
    %123 = vector.load %arg22[%c0_211, %c512_212] : memref<64x576xf32, #tpu.memory_space<vmem>>, vector<64x64xf32>
    tpu.vector_store %arg22[%c0_211, %c512_212], %122 {strides = array<i32>} : memref<64x576xf32, #tpu.memory_space<vmem>>, vector<64x64xf32>,
    %c0_213 = arith.constant 0 : index
    %c0_214 = arith.constant 0 : index
    %124 = vector.load %arg22[%c0_213, %c0_214] : memref<64x576xf32, #tpu.memory_space<vmem>>, vector<64x576xf32>
    %c0_215 = arith.constant 0 : index
    %c0_216 = arith.constant 0 : index
    %125 = vector.load %arg6[%c0_215, %c0_216] : memref<576x64xf32, #tpu.memory_space<vmem>>, vector<576x64xf32>
    %cst_217 = arith.constant dense<0.000000e+00> : vector<64x64xf32>
    %126 = tpu.matmul %124, %125, %cst_217 {dimension_numbers = #tpu.dot_dimension_numbers<[1], [0], [0], [1], [0, 0, 1, 1], [], []>} : vector<64x576xf32>, vector<576x64xf32>, vector<64x64xf32> -> vector<64x64xf32>
    %c0_218 = arith.constant 0 : index
    %c0_219 = arith.constant 0 : index
    %127 = vector.load %arg7[%c0_218, %c0_219] : memref<1x64xf32, #tpu.memory_space<vmem>>, vector<1x64xf32>
    %128 = vector.broadcast %127 : vector<1x64xf32> to vector<64x64xf32>
    %129 = arith.addf %126, %128 : vector<64x64xf32>
    %cst_220 = arith.constant 0.000000e+00 : f32
    %130 = vector.broadcast %cst_220 : f32 to vector<64x64xf32>
    %131 = arith.maximumf %129, %130 : vector<64x64xf32>
    %132 = vector.shape_cast %131 : vector<64x64xf32> to vector<1x8x8x64xf32>
    %c0_221 = arith.constant 0 : index
    %c1_222 = arith.constant 1 : index
    %c1_223 = arith.constant 1 : index
    %c0_224 = arith.constant 0 : index
    %133 = vector.load %arg21[%c0_221, %c1_222, %c1_223, %c0_224] : memref<1x10x10x64xf32, #tpu.memory_space<vmem>>, vector<1x8x8x64xf32>
    tpu.vector_store %arg21[%c0_221, %c1_222, %c1_223, %c0_224], %132 {strides = array<i32>} : memref<1x10x10x64xf32, #tpu.memory_space<vmem>>, vector<1x8x8x64xf32>,
    %c0_225 = arith.constant 0 : index
    %c0_226 = arith.constant 0 : index
    %c0_227 = arith.constant 0 : index
    %c0_228 = arith.constant 0 : index
    %134 = vector.load %arg21[%c0_225, %c0_226, %c0_227, %c0_228] : memref<1x10x10x64xf32, #tpu.memory_space<vmem>>, vector<1x8x8x64xf32>
    %135 = vector.shape_cast %134 : vector<1x8x8x64xf32> to vector<64x64xf32>
    %c0_229 = arith.constant 0 : index
    %c0_230 = arith.constant 0 : index
    %136 = vector.load %arg22[%c0_229, %c0_230] : memref<64x576xf32, #tpu.memory_space<vmem>>, vector<64x64xf32>
    tpu.vector_store %arg22[%c0_229, %c0_230], %135 {strides = array<i32>} : memref<64x576xf32, #tpu.memory_space<vmem>>, vector<64x64xf32>,
    %c0_231 = arith.constant 0 : index
    %c0_232 = arith.constant 0 : index
    %c1_233 = arith.constant 1 : index
    %c0_234 = arith.constant 0 : index
    %137 = vector.load %arg21[%c0_231, %c0_232, %c1_233, %c0_234] : memref<1x10x10x64xf32, #tpu.memory_space<vmem>>, vector<1x8x8x64xf32>
    %138 = vector.shape_cast %137 : vector<1x8x8x64xf32> to vector<64x64xf32>
    %c0_235 = arith.constant 0 : index
    %c64_236 = arith.constant 64 : index
    %139 = vector.load %arg22[%c0_235, %c64_236] : memref<64x576xf32, #tpu.memory_space<vmem>>, vector<64x64xf32>
    tpu.vector_store %arg22[%c0_235, %c64_236], %138 {strides = array<i32>} : memref<64x576xf32, #tpu.memory_space<vmem>>, vector<64x64xf32>,
    %c0_237 = arith.constant 0 : index
    %c0_238 = arith.constant 0 : index
    %c2_239 = arith.constant 2 : index
    %c0_240 = arith.constant 0 : index
    %140 = vector.load %arg21[%c0_237, %c0_238, %c2_239, %c0_240] : memref<1x10x10x64xf32, #tpu.memory_space<vmem>>, vector<1x8x8x64xf32>
    %141 = vector.shape_cast %140 : vector<1x8x8x64xf32> to vector<64x64xf32>
    %c0_241 = arith.constant 0 : index
    %c128_242 = arith.constant 128 : index
    %142 = vector.load %arg22[%c0_241, %c128_242] : memref<64x576xf32, #tpu.memory_space<vmem>>, vector<64x64xf32>
    tpu.vector_store %arg22[%c0_241, %c128_242], %141 {strides = array<i32>} : memref<64x576xf32, #tpu.memory_space<vmem>>, vector<64x64xf32>,
    %c0_243 = arith.constant 0 : index
    %c1_244 = arith.constant 1 : index
    %c0_245 = arith.constant 0 : index
    %c0_246 = arith.constant 0 : index
    %143 = vector.load %arg21[%c0_243, %c1_244, %c0_245, %c0_246] : memref<1x10x10x64xf32, #tpu.memory_space<vmem>>, vector<1x8x8x64xf32>
    %144 = vector.shape_cast %143 : vector<1x8x8x64xf32> to vector<64x64xf32>
    %c0_247 = arith.constant 0 : index
    %c192_248 = arith.constant 192 : index
    %145 = vector.load %arg22[%c0_247, %c192_248] : memref<64x576xf32, #tpu.memory_space<vmem>>, vector<64x64xf32>
    tpu.vector_store %arg22[%c0_247, %c192_248], %144 {strides = array<i32>} : memref<64x576xf32, #tpu.memory_space<vmem>>, vector<64x64xf32>,
    %c0_249 = arith.constant 0 : index
    %c1_250 = arith.constant 1 : index
    %c1_251 = arith.constant 1 : index
    %c0_252 = arith.constant 0 : index
    %146 = vector.load %arg21[%c0_249, %c1_250, %c1_251, %c0_252] : memref<1x10x10x64xf32, #tpu.memory_space<vmem>>, vector<1x8x8x64xf32>
    %147 = vector.shape_cast %146 : vector<1x8x8x64xf32> to vector<64x64xf32>
    %c0_253 = arith.constant 0 : index
    %c256_254 = arith.constant 256 : index
    %148 = vector.load %arg22[%c0_253, %c256_254] : memref<64x576xf32, #tpu.memory_space<vmem>>, vector<64x64xf32>
    tpu.vector_store %arg22[%c0_253, %c256_254], %147 {strides = array<i32>} : memref<64x576xf32, #tpu.memory_space<vmem>>, vector<64x64xf32>,
    %c0_255 = arith.constant 0 : index
    %c1_256 = arith.constant 1 : index
    %c2_257 = arith.constant 2 : index
    %c0_258 = arith.constant 0 : index
    %149 = vector.load %arg21[%c0_255, %c1_256, %c2_257, %c0_258] : memref<1x10x10x64xf32, #tpu.memory_space<vmem>>, vector<1x8x8x64xf32>
    %150 = vector.shape_cast %149 : vector<1x8x8x64xf32> to vector<64x64xf32>
    %c0_259 = arith.constant 0 : index
    %c320_260 = arith.constant 320 : index
    %151 = vector.load %arg22[%c0_259, %c320_260] : memref<64x576xf32, #tpu.memory_space<vmem>>, vector<64x64xf32>
    tpu.vector_store %arg22[%c0_259, %c320_260], %150 {strides = array<i32>} : memref<64x576xf32, #tpu.memory_space<vmem>>, vector<64x64xf32>,
    %c0_261 = arith.constant 0 : index
    %c2_262 = arith.constant 2 : index
    %c0_263 = arith.constant 0 : index
    %c0_264 = arith.constant 0 : index
    %152 = vector.load %arg21[%c0_261, %c2_262, %c0_263, %c0_264] : memref<1x10x10x64xf32, #tpu.memory_space<vmem>>, vector<1x8x8x64xf32>
    %153 = vector.shape_cast %152 : vector<1x8x8x64xf32> to vector<64x64xf32>
    %c0_265 = arith.constant 0 : index
    %c384_266 = arith.constant 384 : index
    %154 = vector.load %arg22[%c0_265, %c384_266] : memref<64x576xf32, #tpu.memory_space<vmem>>, vector<64x64xf32>
    tpu.vector_store %arg22[%c0_265, %c384_266], %153 {strides = array<i32>} : memref<64x576xf32, #tpu.memory_space<vmem>>, vector<64x64xf32>,
    %c0_267 = arith.constant 0 : index
    %c2_268 = arith.constant 2 : index
    %c1_269 = arith.constant 1 : index
    %c0_270 = arith.constant 0 : index
    %155 = vector.load %arg21[%c0_267, %c2_268, %c1_269, %c0_270] : memref<1x10x10x64xf32, #tpu.memory_space<vmem>>, vector<1x8x8x64xf32>
    %156 = vector.shape_cast %155 : vector<1x8x8x64xf32> to vector<64x64xf32>
    %c0_271 = arith.constant 0 : index
    %c448_272 = arith.constant 448 : index
    %157 = vector.load %arg22[%c0_271, %c448_272] : memref<64x576xf32, #tpu.memory_space<vmem>>, vector<64x64xf32>
    tpu.vector_store %arg22[%c0_271, %c448_272], %156 {strides = array<i32>} : memref<64x576xf32, #tpu.memory_space<vmem>>, vector<64x64xf32>,
    %c0_273 = arith.constant 0 : index
    %c2_274 = arith.constant 2 : index
    %c2_275 = arith.constant 2 : index
    %c0_276 = arith.constant 0 : index
    %158 = vector.load %arg21[%c0_273, %c2_274, %c2_275, %c0_276] : memref<1x10x10x64xf32, #tpu.memory_space<vmem>>, vector<1x8x8x64xf32>
    %159 = vector.shape_cast %158 : vector<1x8x8x64xf32> to vector<64x64xf32>
    %c0_277 = arith.constant 0 : index
    %c512_278 = arith.constant 512 : index
    %160 = vector.load %arg22[%c0_277, %c512_278] : memref<64x576xf32, #tpu.memory_space<vmem>>, vector<64x64xf32>
    tpu.vector_store %arg22[%c0_277, %c512_278], %159 {strides = array<i32>} : memref<64x576xf32, #tpu.memory_space<vmem>>, vector<64x64xf32>,
    %c0_279 = arith.constant 0 : index
    %c0_280 = arith.constant 0 : index
    %161 = vector.load %arg22[%c0_279, %c0_280] : memref<64x576xf32, #tpu.memory_space<vmem>>, vector<64x576xf32>
    %c0_281 = arith.constant 0 : index
    %c0_282 = arith.constant 0 : index
    %162 = vector.load %arg8[%c0_281, %c0_282] : memref<576x64xf32, #tpu.memory_space<vmem>>, vector<576x64xf32>
    %cst_283 = arith.constant dense<0.000000e+00> : vector<64x64xf32>
    %163 = tpu.matmul %161, %162, %cst_283 {dimension_numbers = #tpu.dot_dimension_numbers<[1], [0], [0], [1], [0, 0, 1, 1], [], []>} : vector<64x576xf32>, vector<576x64xf32>, vector<64x64xf32> -> vector<64x64xf32>
    %c0_284 = arith.constant 0 : index
    %c0_285 = arith.constant 0 : index
    %164 = vector.load %arg9[%c0_284, %c0_285] : memref<1x64xf32, #tpu.memory_space<vmem>>, vector<1x64xf32>
    %165 = vector.broadcast %164 : vector<1x64xf32> to vector<64x64xf32>
    %166 = arith.addf %163, %165 : vector<64x64xf32>
    %167 = arith.addf %166, %94 : vector<64x64xf32>
    %cst_286 = arith.constant 0.000000e+00 : f32
    %168 = vector.broadcast %cst_286 : f32 to vector<64x64xf32>
    %169 = arith.maximumf %167, %168 : vector<64x64xf32>
    %c0_287 = arith.constant 0 : index
    %c0_288 = arith.constant 0 : index
    %170 = vector.load %arg22[%c0_287, %c0_288] : memref<64x576xf32, #tpu.memory_space<vmem>>, vector<64x64xf32>
    tpu.vector_store %arg22[%c0_287, %c0_288], %9 {strides = array<i32>} : memref<64x576xf32, #tpu.memory_space<vmem>>, vector<64x64xf32>,
    %c0_289 = arith.constant 0 : index
    %c64_290 = arith.constant 64 : index
    %171 = vector.load %arg22[%c0_289, %c64_290] : memref<64x576xf32, #tpu.memory_space<vmem>>, vector<64x64xf32>
    tpu.vector_store %arg22[%c0_289, %c64_290], %84 {strides = array<i32>} : memref<64x576xf32, #tpu.memory_space<vmem>>, vector<64x64xf32>,
    %c0_291 = arith.constant 0 : index
    %c128_292 = arith.constant 128 : index
    %172 = vector.load %arg22[%c0_291, %c128_292] : memref<64x576xf32, #tpu.memory_space<vmem>>, vector<64x64xf32>
    tpu.vector_store %arg22[%c0_291, %c128_292], %169 {strides = array<i32>} : memref<64x576xf32, #tpu.memory_space<vmem>>, vector<64x64xf32>,
    %c0_293 = arith.constant 0 : index
    %c0_294 = arith.constant 0 : index
    %173 = vector.load %arg22[%c0_293, %c0_294] : memref<64x576xf32, #tpu.memory_space<vmem>>, vector<64x192xf32>
    %c0_295 = arith.constant 0 : index
    %c0_296 = arith.constant 0 : index
    %174 = vector.load %arg16[%c0_295, %c0_296] : memref<192x64xf32, #tpu.memory_space<vmem>>, vector<192x64xf32>
    %cst_297 = arith.constant dense<0.000000e+00> : vector<64x64xf32>
    %175 = tpu.matmul %173, %174, %cst_297 {dimension_numbers = #tpu.dot_dimension_numbers<[1], [0], [0], [1], [0, 0, 1, 1], [], []>} : vector<64x192xf32>, vector<192x64xf32>, vector<64x64xf32> -> vector<64x64xf32>
    %c0_298 = arith.constant 0 : index
    %c0_299 = arith.constant 0 : index
    %176 = vector.load %arg17[%c0_298, %c0_299] : memref<1x64xf32, #tpu.memory_space<vmem>>, vector<1x64xf32>
    %177 = vector.broadcast %176 : vector<1x64xf32> to vector<64x64xf32>
    %178 = arith.addf %175, %177 : vector<64x64xf32>
    %cst_300 = arith.constant 0.000000e+00 : f32
    %179 = vector.broadcast %cst_300 : f32 to vector<64x64xf32>
    %180 = arith.maximumf %178, %179 : vector<64x64xf32>
    %181 = vector.shape_cast %180 : vector<64x64xf32> to vector<1x8x8x64xf32>
    %c0_301 = arith.constant 0 : index
    %c1_302 = arith.constant 1 : index
    %c1_303 = arith.constant 1 : index
    %c0_304 = arith.constant 0 : index
    %182 = vector.load %arg21[%c0_301, %c1_302, %c1_303, %c0_304] : memref<1x10x10x64xf32, #tpu.memory_space<vmem>>, vector<1x8x8x64xf32>
    tpu.vector_store %arg21[%c0_301, %c1_302, %c1_303, %c0_304], %181 {strides = array<i32>} : memref<1x10x10x64xf32, #tpu.memory_space<vmem>>, vector<1x8x8x64xf32>,
    %c0_305 = arith.constant 0 : index
    %c0_306 = arith.constant 0 : index
    %c0_307 = arith.constant 0 : index
    %c0_308 = arith.constant 0 : index
    %183 = vector.load %arg21[%c0_305, %c0_306, %c0_307, %c0_308] : memref<1x10x10x64xf32, #tpu.memory_space<vmem>>, vector<1x8x8x64xf32>
    %184 = vector.shape_cast %183 : vector<1x8x8x64xf32> to vector<64x64xf32>
    %c0_309 = arith.constant 0 : index
    %c0_310 = arith.constant 0 : index
    %185 = vector.load %arg22[%c0_309, %c0_310] : memref<64x576xf32, #tpu.memory_space<vmem>>, vector<64x64xf32>
    tpu.vector_store %arg22[%c0_309, %c0_310], %184 {strides = array<i32>} : memref<64x576xf32, #tpu.memory_space<vmem>>, vector<64x64xf32>,
    %c0_311 = arith.constant 0 : index
    %c0_312 = arith.constant 0 : index
    %c1_313 = arith.constant 1 : index
    %c0_314 = arith.constant 0 : index
    %186 = vector.load %arg21[%c0_311, %c0_312, %c1_313, %c0_314] : memref<1x10x10x64xf32, #tpu.memory_space<vmem>>, vector<1x8x8x64xf32>
    %187 = vector.shape_cast %186 : vector<1x8x8x64xf32> to vector<64x64xf32>
    %c0_315 = arith.constant 0 : index
    %c64_316 = arith.constant 64 : index
    %188 = vector.load %arg22[%c0_315, %c64_316] : memref<64x576xf32, #tpu.memory_space<vmem>>, vector<64x64xf32>
    tpu.vector_store %arg22[%c0_315, %c64_316], %187 {strides = array<i32>} : memref<64x576xf32, #tpu.memory_space<vmem>>, vector<64x64xf32>,
    %c0_317 = arith.constant 0 : index
    %c0_318 = arith.constant 0 : index
    %c2_319 = arith.constant 2 : index
    %c0_320 = arith.constant 0 : index
    %189 = vector.load %arg21[%c0_317, %c0_318, %c2_319, %c0_320] : memref<1x10x10x64xf32, #tpu.memory_space<vmem>>, vector<1x8x8x64xf32>
    %190 = vector.shape_cast %189 : vector<1x8x8x64xf32> to vector<64x64xf32>
    %c0_321 = arith.constant 0 : index
    %c128_322 = arith.constant 128 : index
    %191 = vector.load %arg22[%c0_321, %c128_322] : memref<64x576xf32, #tpu.memory_space<vmem>>, vector<64x64xf32>
    tpu.vector_store %arg22[%c0_321, %c128_322], %190 {strides = array<i32>} : memref<64x576xf32, #tpu.memory_space<vmem>>, vector<64x64xf32>,
    %c0_323 = arith.constant 0 : index
    %c1_324 = arith.constant 1 : index
    %c0_325 = arith.constant 0 : index
    %c0_326 = arith.constant 0 : index
    %192 = vector.load %arg21[%c0_323, %c1_324, %c0_325, %c0_326] : memref<1x10x10x64xf32, #tpu.memory_space<vmem>>, vector<1x8x8x64xf32>
    %193 = vector.shape_cast %192 : vector<1x8x8x64xf32> to vector<64x64xf32>
    %c0_327 = arith.constant 0 : index
    %c192_328 = arith.constant 192 : index
    %194 = vector.load %arg22[%c0_327, %c192_328] : memref<64x576xf32, #tpu.memory_space<vmem>>, vector<64x64xf32>
    tpu.vector_store %arg22[%c0_327, %c192_328], %193 {strides = array<i32>} : memref<64x576xf32, #tpu.memory_space<vmem>>, vector<64x64xf32>,
    %c0_329 = arith.constant 0 : index
    %c1_330 = arith.constant 1 : index
    %c1_331 = arith.constant 1 : index
    %c0_332 = arith.constant 0 : index
    %195 = vector.load %arg21[%c0_329, %c1_330, %c1_331, %c0_332] : memref<1x10x10x64xf32, #tpu.memory_space<vmem>>, vector<1x8x8x64xf32>
    %196 = vector.shape_cast %195 : vector<1x8x8x64xf32> to vector<64x64xf32>
    %c0_333 = arith.constant 0 : index
    %c256_334 = arith.constant 256 : index
    %197 = vector.load %arg22[%c0_333, %c256_334] : memref<64x576xf32, #tpu.memory_space<vmem>>, vector<64x64xf32>
    tpu.vector_store %arg22[%c0_333, %c256_334], %196 {strides = array<i32>} : memref<64x576xf32, #tpu.memory_space<vmem>>, vector<64x64xf32>,
    %c0_335 = arith.constant 0 : index
    %c1_336 = arith.constant 1 : index
    %c2_337 = arith.constant 2 : index
    %c0_338 = arith.constant 0 : index
    %198 = vector.load %arg21[%c0_335, %c1_336, %c2_337, %c0_338] : memref<1x10x10x64xf32, #tpu.memory_space<vmem>>, vector<1x8x8x64xf32>
    %199 = vector.shape_cast %198 : vector<1x8x8x64xf32> to vector<64x64xf32>
    %c0_339 = arith.constant 0 : index
    %c320_340 = arith.constant 320 : index
    %200 = vector.load %arg22[%c0_339, %c320_340] : memref<64x576xf32, #tpu.memory_space<vmem>>, vector<64x64xf32>
    tpu.vector_store %arg22[%c0_339, %c320_340], %199 {strides = array<i32>} : memref<64x576xf32, #tpu.memory_space<vmem>>, vector<64x64xf32>,
    %c0_341 = arith.constant 0 : index
    %c2_342 = arith.constant 2 : index
    %c0_343 = arith.constant 0 : index
    %c0_344 = arith.constant 0 : index
    %201 = vector.load %arg21[%c0_341, %c2_342, %c0_343, %c0_344] : memref<1x10x10x64xf32, #tpu.memory_space<vmem>>, vector<1x8x8x64xf32>
    %202 = vector.shape_cast %201 : vector<1x8x8x64xf32> to vector<64x64xf32>
    %c0_345 = arith.constant 0 : index
    %c384_346 = arith.constant 384 : index
    %203 = vector.load %arg22[%c0_345, %c384_346] : memref<64x576xf32, #tpu.memory_space<vmem>>, vector<64x64xf32>
    tpu.vector_store %arg22[%c0_345, %c384_346], %202 {strides = array<i32>} : memref<64x576xf32, #tpu.memory_space<vmem>>, vector<64x64xf32>,
    %c0_347 = arith.constant 0 : index
    %c2_348 = arith.constant 2 : index
    %c1_349 = arith.constant 1 : index
    %c0_350 = arith.constant 0 : index
    %204 = vector.load %arg21[%c0_347, %c2_348, %c1_349, %c0_350] : memref<1x10x10x64xf32, #tpu.memory_space<vmem>>, vector<1x8x8x64xf32>
    %205 = vector.shape_cast %204 : vector<1x8x8x64xf32> to vector<64x64xf32>
    %c0_351 = arith.constant 0 : index
    %c448_352 = arith.constant 448 : index
    %206 = vector.load %arg22[%c0_351, %c448_352] : memref<64x576xf32, #tpu.memory_space<vmem>>, vector<64x64xf32>
    tpu.vector_store %arg22[%c0_351, %c448_352], %205 {strides = array<i32>} : memref<64x576xf32, #tpu.memory_space<vmem>>, vector<64x64xf32>,
    %c0_353 = arith.constant 0 : index
    %c2_354 = arith.constant 2 : index
    %c2_355 = arith.constant 2 : index
    %c0_356 = arith.constant 0 : index
    %207 = vector.load %arg21[%c0_353, %c2_354, %c2_355, %c0_356] : memref<1x10x10x64xf32, #tpu.memory_space<vmem>>, vector<1x8x8x64xf32>
    %208 = vector.shape_cast %207 : vector<1x8x8x64xf32> to vector<64x64xf32>
    %c0_357 = arith.constant 0 : index
    %c512_358 = arith.constant 512 : index
    %209 = vector.load %arg22[%c0_357, %c512_358] : memref<64x576xf32, #tpu.memory_space<vmem>>, vector<64x64xf32>
    tpu.vector_store %arg22[%c0_357, %c512_358], %208 {strides = array<i32>} : memref<64x576xf32, #tpu.memory_space<vmem>>, vector<64x64xf32>,
    %c0_359 = arith.constant 0 : index
    %c0_360 = arith.constant 0 : index
    %210 = vector.load %arg22[%c0_359, %c0_360] : memref<64x576xf32, #tpu.memory_space<vmem>>, vector<64x576xf32>
    %c0_361 = arith.constant 0 : index
    %c0_362 = arith.constant 0 : index
    %211 = vector.load %arg10[%c0_361, %c0_362] : memref<576x64xf32, #tpu.memory_space<vmem>>, vector<576x64xf32>
    %cst_363 = arith.constant dense<0.000000e+00> : vector<64x64xf32>
    %212 = tpu.matmul %210, %211, %cst_363 {dimension_numbers = #tpu.dot_dimension_numbers<[1], [0], [0], [1], [0, 0, 1, 1], [], []>} : vector<64x576xf32>, vector<576x64xf32>, vector<64x64xf32> -> vector<64x64xf32>
    %c0_364 = arith.constant 0 : index
    %c0_365 = arith.constant 0 : index
    %213 = vector.load %arg11[%c0_364, %c0_365] : memref<1x64xf32, #tpu.memory_space<vmem>>, vector<1x64xf32>
    %214 = vector.broadcast %213 : vector<1x64xf32> to vector<64x64xf32>
    %215 = arith.addf %212, %214 : vector<64x64xf32>
    %cst_366 = arith.constant 0.000000e+00 : f32
    %216 = vector.broadcast %cst_366 : f32 to vector<64x64xf32>
    %217 = arith.maximumf %215, %216 : vector<64x64xf32>
    %218 = vector.shape_cast %217 : vector<64x64xf32> to vector<1x8x8x64xf32>
    %c0_367 = arith.constant 0 : index
    %c1_368 = arith.constant 1 : index
    %c1_369 = arith.constant 1 : index
    %c0_370 = arith.constant 0 : index
    %219 = vector.load %arg21[%c0_367, %c1_368, %c1_369, %c0_370] : memref<1x10x10x64xf32, #tpu.memory_space<vmem>>, vector<1x8x8x64xf32>
    tpu.vector_store %arg21[%c0_367, %c1_368, %c1_369, %c0_370], %218 {strides = array<i32>} : memref<1x10x10x64xf32, #tpu.memory_space<vmem>>, vector<1x8x8x64xf32>,
    %c0_371 = arith.constant 0 : index
    %c0_372 = arith.constant 0 : index
    %c0_373 = arith.constant 0 : index
    %c0_374 = arith.constant 0 : index
    %220 = vector.load %arg21[%c0_371, %c0_372, %c0_373, %c0_374] : memref<1x10x10x64xf32, #tpu.memory_space<vmem>>, vector<1x8x8x64xf32>
    %221 = vector.shape_cast %220 : vector<1x8x8x64xf32> to vector<64x64xf32>
    %c0_375 = arith.constant 0 : index
    %c0_376 = arith.constant 0 : index
    %222 = vector.load %arg22[%c0_375, %c0_376] : memref<64x576xf32, #tpu.memory_space<vmem>>, vector<64x64xf32>
    tpu.vector_store %arg22[%c0_375, %c0_376], %221 {strides = array<i32>} : memref<64x576xf32, #tpu.memory_space<vmem>>, vector<64x64xf32>,
    %c0_377 = arith.constant 0 : index
    %c0_378 = arith.constant 0 : index
    %c1_379 = arith.constant 1 : index
    %c0_380 = arith.constant 0 : index
    %223 = vector.load %arg21[%c0_377, %c0_378, %c1_379, %c0_380] : memref<1x10x10x64xf32, #tpu.memory_space<vmem>>, vector<1x8x8x64xf32>
    %224 = vector.shape_cast %223 : vector<1x8x8x64xf32> to vector<64x64xf32>
    %c0_381 = arith.constant 0 : index
    %c64_382 = arith.constant 64 : index
    %225 = vector.load %arg22[%c0_381, %c64_382] : memref<64x576xf32, #tpu.memory_space<vmem>>, vector<64x64xf32>
    tpu.vector_store %arg22[%c0_381, %c64_382], %224 {strides = array<i32>} : memref<64x576xf32, #tpu.memory_space<vmem>>, vector<64x64xf32>,
    %c0_383 = arith.constant 0 : index
    %c0_384 = arith.constant 0 : index
    %c2_385 = arith.constant 2 : index
    %c0_386 = arith.constant 0 : index
    %226 = vector.load %arg21[%c0_383, %c0_384, %c2_385, %c0_386] : memref<1x10x10x64xf32, #tpu.memory_space<vmem>>, vector<1x8x8x64xf32>
    %227 = vector.shape_cast %226 : vector<1x8x8x64xf32> to vector<64x64xf32>
    %c0_387 = arith.constant 0 : index
    %c128_388 = arith.constant 128 : index
    %228 = vector.load %arg22[%c0_387, %c128_388] : memref<64x576xf32, #tpu.memory_space<vmem>>, vector<64x64xf32>
    tpu.vector_store %arg22[%c0_387, %c128_388], %227 {strides = array<i32>} : memref<64x576xf32, #tpu.memory_space<vmem>>, vector<64x64xf32>,
    %c0_389 = arith.constant 0 : index
    %c1_390 = arith.constant 1 : index
    %c0_391 = arith.constant 0 : index
    %c0_392 = arith.constant 0 : index
    %229 = vector.load %arg21[%c0_389, %c1_390, %c0_391, %c0_392] : memref<1x10x10x64xf32, #tpu.memory_space<vmem>>, vector<1x8x8x64xf32>
    %230 = vector.shape_cast %229 : vector<1x8x8x64xf32> to vector<64x64xf32>
    %c0_393 = arith.constant 0 : index
    %c192_394 = arith.constant 192 : index
    %231 = vector.load %arg22[%c0_393, %c192_394] : memref<64x576xf32, #tpu.memory_space<vmem>>, vector<64x64xf32>
    tpu.vector_store %arg22[%c0_393, %c192_394], %230 {strides = array<i32>} : memref<64x576xf32, #tpu.memory_space<vmem>>, vector<64x64xf32>,
    %c0_395 = arith.constant 0 : index
    %c1_396 = arith.constant 1 : index
    %c1_397 = arith.constant 1 : index
    %c0_398 = arith.constant 0 : index
    %232 = vector.load %arg21[%c0_395, %c1_396, %c1_397, %c0_398] : memref<1x10x10x64xf32, #tpu.memory_space<vmem>>, vector<1x8x8x64xf32>
    %233 = vector.shape_cast %232 : vector<1x8x8x64xf32> to vector<64x64xf32>
    %c0_399 = arith.constant 0 : index
    %c256_400 = arith.constant 256 : index
    %234 = vector.load %arg22[%c0_399, %c256_400] : memref<64x576xf32, #tpu.memory_space<vmem>>, vector<64x64xf32>
    tpu.vector_store %arg22[%c0_399, %c256_400], %233 {strides = array<i32>} : memref<64x576xf32, #tpu.memory_space<vmem>>, vector<64x64xf32>,
    %c0_401 = arith.constant 0 : index
    %c1_402 = arith.constant 1 : index
    %c2_403 = arith.constant 2 : index
    %c0_404 = arith.constant 0 : index
    %235 = vector.load %arg21[%c0_401, %c1_402, %c2_403, %c0_404] : memref<1x10x10x64xf32, #tpu.memory_space<vmem>>, vector<1x8x8x64xf32>
    %236 = vector.shape_cast %235 : vector<1x8x8x64xf32> to vector<64x64xf32>
    %c0_405 = arith.constant 0 : index
    %c320_406 = arith.constant 320 : index
    %237 = vector.load %arg22[%c0_405, %c320_406] : memref<64x576xf32, #tpu.memory_space<vmem>>, vector<64x64xf32>
    tpu.vector_store %arg22[%c0_405, %c320_406], %236 {strides = array<i32>} : memref<64x576xf32, #tpu.memory_space<vmem>>, vector<64x64xf32>,
    %c0_407 = arith.constant 0 : index
    %c2_408 = arith.constant 2 : index
    %c0_409 = arith.constant 0 : index
    %c0_410 = arith.constant 0 : index
    %238 = vector.load %arg21[%c0_407, %c2_408, %c0_409, %c0_410] : memref<1x10x10x64xf32, #tpu.memory_space<vmem>>, vector<1x8x8x64xf32>
    %239 = vector.shape_cast %238 : vector<1x8x8x64xf32> to vector<64x64xf32>
    %c0_411 = arith.constant 0 : index
    %c384_412 = arith.constant 384 : index
    %240 = vector.load %arg22[%c0_411, %c384_412] : memref<64x576xf32, #tpu.memory_space<vmem>>, vector<64x64xf32>
    tpu.vector_store %arg22[%c0_411, %c384_412], %239 {strides = array<i32>} : memref<64x576xf32, #tpu.memory_space<vmem>>, vector<64x64xf32>,
    %c0_413 = arith.constant 0 : index
    %c2_414 = arith.constant 2 : index
    %c1_415 = arith.constant 1 : index
    %c0_416 = arith.constant 0 : index
    %241 = vector.load %arg21[%c0_413, %c2_414, %c1_415, %c0_416] : memref<1x10x10x64xf32, #tpu.memory_space<vmem>>, vector<1x8x8x64xf32>
    %242 = vector.shape_cast %241 : vector<1x8x8x64xf32> to vector<64x64xf32>
    %c0_417 = arith.constant 0 : index
    %c448_418 = arith.constant 448 : index
    %243 = vector.load %arg22[%c0_417, %c448_418] : memref<64x576xf32, #tpu.memory_space<vmem>>, vector<64x64xf32>
    tpu.vector_store %arg22[%c0_417, %c448_418], %242 {strides = array<i32>} : memref<64x576xf32, #tpu.memory_space<vmem>>, vector<64x64xf32>,
    %c0_419 = arith.constant 0 : index
    %c2_420 = arith.constant 2 : index
    %c2_421 = arith.constant 2 : index
    %c0_422 = arith.constant 0 : index
    %244 = vector.load %arg21[%c0_419, %c2_420, %c2_421, %c0_422] : memref<1x10x10x64xf32, #tpu.memory_space<vmem>>, vector<1x8x8x64xf32>
    %245 = vector.shape_cast %244 : vector<1x8x8x64xf32> to vector<64x64xf32>
    %c0_423 = arith.constant 0 : index
    %c512_424 = arith.constant 512 : index
    %246 = vector.load %arg22[%c0_423, %c512_424] : memref<64x576xf32, #tpu.memory_space<vmem>>, vector<64x64xf32>
    tpu.vector_store %arg22[%c0_423, %c512_424], %245 {strides = array<i32>} : memref<64x576xf32, #tpu.memory_space<vmem>>, vector<64x64xf32>,
    %c0_425 = arith.constant 0 : index
    %c0_426 = arith.constant 0 : index
    %247 = vector.load %arg22[%c0_425, %c0_426] : memref<64x576xf32, #tpu.memory_space<vmem>>, vector<64x576xf32>
    %c0_427 = arith.constant 0 : index
    %c0_428 = arith.constant 0 : index
    %248 = vector.load %arg12[%c0_427, %c0_428] : memref<576x64xf32, #tpu.memory_space<vmem>>, vector<576x64xf32>
    %cst_429 = arith.constant dense<0.000000e+00> : vector<64x64xf32>
    %249 = tpu.matmul %247, %248, %cst_429 {dimension_numbers = #tpu.dot_dimension_numbers<[1], [0], [0], [1], [0, 0, 1, 1], [], []>} : vector<64x576xf32>, vector<576x64xf32>, vector<64x64xf32> -> vector<64x64xf32>
    %c0_430 = arith.constant 0 : index
    %c0_431 = arith.constant 0 : index
    %250 = vector.load %arg13[%c0_430, %c0_431] : memref<1x64xf32, #tpu.memory_space<vmem>>, vector<1x64xf32>
    %251 = vector.broadcast %250 : vector<1x64xf32> to vector<64x64xf32>
    %252 = arith.addf %249, %251 : vector<64x64xf32>
    %253 = arith.addf %252, %180 : vector<64x64xf32>
    %cst_432 = arith.constant 0.000000e+00 : f32
    %254 = vector.broadcast %cst_432 : f32 to vector<64x64xf32>
    %255 = arith.maximumf %253, %254 : vector<64x64xf32>
    %c0_433 = arith.constant 0 : index
    %c0_434 = arith.constant 0 : index
    %256 = vector.load %arg22[%c0_433, %c0_434] : memref<64x576xf32, #tpu.memory_space<vmem>>, vector<64x64xf32>
    tpu.vector_store %arg22[%c0_433, %c0_434], %9 {strides = array<i32>} : memref<64x576xf32, #tpu.memory_space<vmem>>, vector<64x64xf32>,
    %c0_435 = arith.constant 0 : index
    %c64_436 = arith.constant 64 : index
    %257 = vector.load %arg22[%c0_435, %c64_436] : memref<64x576xf32, #tpu.memory_space<vmem>>, vector<64x64xf32>
    tpu.vector_store %arg22[%c0_435, %c64_436], %84 {strides = array<i32>} : memref<64x576xf32, #tpu.memory_space<vmem>>, vector<64x64xf32>,
    %c0_437 = arith.constant 0 : index
    %c128_438 = arith.constant 128 : index
    %258 = vector.load %arg22[%c0_437, %c128_438] : memref<64x576xf32, #tpu.memory_space<vmem>>, vector<64x64xf32>
    tpu.vector_store %arg22[%c0_437, %c128_438], %169 {strides = array<i32>} : memref<64x576xf32, #tpu.memory_space<vmem>>, vector<64x64xf32>,
    %c0_439 = arith.constant 0 : index
    %c192_440 = arith.constant 192 : index
    %259 = vector.load %arg22[%c0_439, %c192_440] : memref<64x576xf32, #tpu.memory_space<vmem>>, vector<64x64xf32>
    tpu.vector_store %arg22[%c0_439, %c192_440], %255 {strides = array<i32>} : memref<64x576xf32, #tpu.memory_space<vmem>>, vector<64x64xf32>,
    %c0_441 = arith.constant 0 : index
    %c0_442 = arith.constant 0 : index
    %260 = vector.load %arg22[%c0_441, %c0_442] : memref<64x576xf32, #tpu.memory_space<vmem>>, vector<64x256xf32>
    %c0_443 = arith.constant 0 : index
    %c0_444 = arith.constant 0 : index
    %261 = vector.load %arg18[%c0_443, %c0_444] : memref<256x64xf32, #tpu.memory_space<vmem>>, vector<256x64xf32>
    %cst_445 = arith.constant dense<0.000000e+00> : vector<64x64xf32>
    %262 = tpu.matmul %260, %261, %cst_445 {dimension_numbers = #tpu.dot_dimension_numbers<[1], [0], [0], [1], [0, 0, 1, 1], [], []>} : vector<64x256xf32>, vector<256x64xf32>, vector<64x64xf32> -> vector<64x64xf32>
    %c0_446 = arith.constant 0 : index
    %c0_447 = arith.constant 0 : index
    %263 = vector.load %arg19[%c0_446, %c0_447] : memref<1x64xf32, #tpu.memory_space<vmem>>, vector<1x64xf32>
    %264 = vector.broadcast %263 : vector<1x64xf32> to vector<64x64xf32>
    %265 = arith.addf %262, %264 : vector<64x64xf32>
    %cst_448 = arith.constant 0.000000e+00 : f32
    %266 = vector.broadcast %cst_448 : f32 to vector<64x64xf32>
    %267 = arith.maximumf %265, %266 : vector<64x64xf32>
    %268 = vector.shape_cast %267 : vector<64x64xf32> to vector<1x8x8x64xf32>
    %c0_449 = arith.constant 0 : index
    %c0_450 = arith.constant 0 : index
    %c0_451 = arith.constant 0 : index
    %c0_452 = arith.constant 0 : index
    %269 = vector.load %arg20[%c0_449, %c0_450, %c0_451, %c0_452] : memref<1x8x8x64xf32, #tpu.memory_space<vmem>>, vector<1x8x8x64xf32>
    tpu.vector_store %arg20[%c0_449, %c0_450, %c0_451, %c0_452], %268 {strides = array<i32>} : memref<1x8x8x64xf32, #tpu.memory_space<vmem>>, vector<1x8x8x64xf32>,
    return
  }
  func.func @transform_0(%arg0: i32) -> (i32, i32, i32, i32) {
    %c0_i32 = arith.constant 0 : i32
    %c0_i32_0 = arith.constant 0 : i32
    %c0_i32_1 = arith.constant 0 : i32
    %c0_i32_2 = arith.constant 0 : i32
    return %arg0, %c0_i32, %c0_i32_0, %c0_i32_1 : i32, i32, i32, i32
  }
  func.func @transform_1(%arg0: i32) -> (i32, i32) {
    %c0_i32 = arith.constant 0 : i32
    %c0_i32_0 = arith.constant 0 : i32
    %c0_i32_1 = arith.constant 0 : i32
    return %c0_i32, %c0_i32_0 : i32, i32
  }
  func.func @transform_2(%arg0: i32) -> (i32, i32) {
    %c0_i32 = arith.constant 0 : i32
    %c0_i32_0 = arith.constant 0 : i32
    %c0_i32_1 = arith.constant 0 : i32
    return %c0_i32, %c0_i32_0 : i32, i32
  }
  func.func @transform_3(%arg0: i32) -> (i32, i32) {
    %c0_i32 = arith.constant 0 : i32
    %c0_i32_0 = arith.constant 0 : i32
    %c0_i32_1 = arith.constant 0 : i32
    return %c0_i32, %c0_i32_0 : i32, i32
  }
  func.func @transform_4(%arg0: i32) -> (i32, i32) {
    %c0_i32 = arith.constant 0 : i32
    %c0_i32_0 = arith.constant 0 : i32
    %c0_i32_1 = arith.constant 0 : i32
    return %c0_i32, %c0_i32_0 : i32, i32
  }
  func.func @transform_5(%arg0: i32) -> (i32, i32) {
    %c0_i32 = arith.constant 0 : i32
    %c0_i32_0 = arith.constant 0 : i32
    %c0_i32_1 = arith.constant 0 : i32
    return %c0_i32, %c0_i32_0 : i32, i32
  }
  func.func @transform_6(%arg0: i32) -> (i32, i32) {
    %c0_i32 = arith.constant 0 : i32
    %c0_i32_0 = arith.constant 0 : i32
    %c0_i32_1 = arith.constant 0 : i32
    return %c0_i32, %c0_i32_0 : i32, i32
  }
  func.func @transform_7(%arg0: i32) -> (i32, i32) {
    %c0_i32 = arith.constant 0 : i32
    %c0_i32_0 = arith.constant 0 : i32
    %c0_i32_1 = arith.constant 0 : i32
    return %c0_i32, %c0_i32_0 : i32, i32
  }
  func.func @transform_8(%arg0: i32) -> (i32, i32) {
    %c0_i32 = arith.constant 0 : i32
    %c0_i32_0 = arith.constant 0 : i32
    %c0_i32_1 = arith.constant 0 : i32
    return %c0_i32, %c0_i32_0 : i32, i32
  }
  func.func @transform_9(%arg0: i32) -> (i32, i32) {
    %c0_i32 = arith.constant 0 : i32
    %c0_i32_0 = arith.constant 0 : i32
    %c0_i32_1 = arith.constant 0 : i32
    return %c0_i32, %c0_i32_0 : i32, i32
  }
  func.func @transform_10(%arg0: i32) -> (i32, i32) {
    %c0_i32 = arith.constant 0 : i32
    %c0_i32_0 = arith.constant 0 : i32
    %c0_i32_1 = arith.constant 0 : i32
    return %c0_i32, %c0_i32_0 : i32, i32
  }
  func.func @transform_11(%arg0: i32) -> (i32, i32) {
    %c0_i32 = arith.constant 0 : i32
    %c0_i32_0 = arith.constant 0 : i32
    %c0_i32_1 = arith.constant 0 : i32
    return %c0_i32, %c0_i32_0 : i32, i32
  }
  func.func @transform_12(%arg0: i32) -> (i32, i32) {
    %c0_i32 = arith.constant 0 : i32
    %c0_i32_0 = arith.constant 0 : i32
    %c0_i32_1 = arith.constant 0 : i32
    return %c0_i32, %c0_i32_0 : i32, i32
  }
  func.func @transform_13(%arg0: i32) -> (i32, i32) {
    %c0_i32 = arith.constant 0 : i32
    %c0_i32_0 = arith.constant 0 : i32
    %c0_i32_1 = arith.constant 0 : i32
    return %c0_i32, %c0_i32_0 : i32, i32
  }
  func.func @transform_14(%arg0: i32) -> (i32, i32) {
    %c0_i32 = arith.constant 0 : i32
    %c0_i32_0 = arith.constant 0 : i32
    %c0_i32_1 = arith.constant 0 : i32
    return %c0_i32, %c0_i32_0 : i32, i32
  }
  func.func @transform_15(%arg0: i32) -> (i32, i32) {
    %c0_i32 = arith.constant 0 : i32
    %c0_i32_0 = arith.constant 0 : i32
    %c0_i32_1 = arith.constant 0 : i32
    return %c0_i32, %c0_i32_0 : i32, i32
  }
  func.func @transform_16(%arg0: i32) -> (i32, i32) {
    %c0_i32 = arith.constant 0 : i32
    %c0_i32_0 = arith.constant 0 : i32
    %c0_i32_1 = arith.constant 0 : i32
    return %c0_i32, %c0_i32_0 : i32, i32
  }
  func.func @transform_17(%arg0: i32) -> (i32, i32) {
    %c0_i32 = arith.constant 0 : i32
    %c0_i32_0 = arith.constant 0 : i32
    %c0_i32_1 = arith.constant 0 : i32
    return %c0_i32, %c0_i32_0 : i32, i32
  }
  func.func @transform_18(%arg0: i32) -> (i32, i32) {
    %c0_i32 = arith.constant 0 : i32
    %c0_i32_0 = arith.constant 0 : i32
    %c0_i32_1 = arith.constant 0 : i32
    return %c0_i32, %c0_i32_0 : i32, i32
  }
  func.func @transform_19(%arg0: i32) -> (i32, i32, i32, i32) {
    %c0_i32 = arith.constant 0 : i32
    %c0_i32_0 = arith.constant 0 : i32
    %c0_i32_1 = arith.constant 0 : i32
    %c0_i32_2 = arith.constant 0 : i32
    return %arg0, %c0_i32, %c0_i32_0, %c0_i32_1 : i32, i32, i32, i32
  }
}

</mosaic_0001>

<bundles_post_ra>
// kernel: block_n_forward.1
= control target key start
LH: loop header
LB: loop body
LE: loop exit
PB: predicated region body
PF: predicated region fallthrough
CT: control target
= control target key end

     0   :  { %s10656_s0 = inlined_call_operand.vmem [shape: f32[2,8,8,64], index: 0, kind: input, shape index: {}]   ;;  %s10657_s1 = inlined_call_operand.vmem [shape: f32[576,64], index: 1, kind: input, shape index: {}]   ;;  %s10658_s2 = inlined_call_operand.vmem [shape: f32[1,64], index: 2, kind: input, shape index: {}]   ;;  %s10659_s3 = inlined_call_operand.vmem [shape: f32[576,64], index: 3, kind: input, shape index: {}]   ;;  %s10660_s4 = inlined_call_operand.vmem [shape: f32[1,64], index: 4, kind: input, shape index: {}]   ;;  %s10661_s5 = inlined_call_operand.vmem [shape: f32[576,64], index: 5, kind: input, shape index: {}]   ;;  %s10662_s6 = inlined_call_operand.vmem [shape: f32[1,64], index: 6, kind: input, shape index: {}]   ;;  %s10663_s7 = inlined_call_operand.vmem [shape: f32[576,64], index: 7, kind: input, shape index: {}]   ;;  %s10664_s8 = inlined_call_operand.vmem [shape: f32[1,64], index: 8, kind: input, shape index: {}]   ;;  %s10665_s9 = inlined_call_operand.vmem [shape: f32[576,64], index: 9, kind: input, shape index: {}]   ;;  %s10666_s10 = inlined_call_operand.vmem [shape: f32[1,64], index: 10, kind: input, shape index: {}]   ;;  %s10667_s11 = inlined_call_operand.vmem [shape: f32[576,64], index: 11, kind: input, shape index: {}]   ;;  %s10668_s12 = inlined_call_operand.vmem [shape: f32[1,64], index: 12, kind: input, shape index: {}]   ;;  %s10669_s13 = inlined_call_operand.vmem [shape: f32[128,64], index: 13, kind: input, shape index: {}]   ;;  %s10670_s14 = inlined_call_operand.vmem [shape: f32[1,64], index: 14, kind: input, shape index: {}]   ;;  %s10671_s15 = inlined_call_operand.vmem [shape: f32[192,64], index: 15, kind: input, shape index: {}]   ;;  %s10672_s16 = inlined_call_operand.vmem [shape: f32[1,64], index: 16, kind: input, shape index: {}]   ;;  %s10673_s17 = inlined_call_operand.vmem [shape: f32[256,64], index: 17, kind: input, shape index: {}]   ;;  %s10674_s18 = inlined_call_operand.vmem [shape: f32[1,64], index: 18, kind: input, shape index: {}]   ;;  %s10675_s19 = inlined_call_operand.hbm [shape: f32[2,8,8,64], index: 19, kind: output, shape index: {}]  }
   0x1   :  { %10709 = sst [smem:[#allocation16_spill]] %s10656_s0 }
   0x2   :  { %10710 = sst [smem:[#allocation17_spill]] %s10657_s1 }
   0x3   :  { %10711 = sst [smem:[#allocation18_spill]] %s10658_s2 }
   0x4   :  { %10712 = sst [smem:[#allocation19_spill]] %s10659_s3 }
   0x5   :  { %10713 = sst [smem:[#allocation20_spill]] %s10660_s4 }
   0x6   :  { %10714 = sst [smem:[#allocation21_spill]] %s10661_s5 }
   0x7   :  { %10715 = sst [smem:[#allocation22_spill]] %s10675_s19 }
   0x8   :  { %24 = vsyncpa [#allocation5], 0 }
   0x9   :  { %26 = vsyncpa [#allocation5 + $0x1], 0  ;;  %s7237_s0 = smov 0   ;;  %s7239_s30 = smov 0  }
   0xa   :  { %s7241_s20 = smov 0   ;;  %s7243_s21 = smov 0  }
   0xb LB: > { %10716 = sst [smem:[#allocation7_spill]] %s7118_s0  ;;  %s7258_s1 = sadd.s32 4294967295, %s7130_s21   ;;  %s7130_s21 = sphi %s7243_s21, %s10761_s21   ;;  %s7126_s20 = sphi %s7241_s20, %s10763_s20   ;;  %s7122_s30 = sphi %s7239_s30, %s10765_s30   ;;  %s7118_s0 = sphi %s7237_s0, %s10764_s0  }
   0xc   : > { %10717 = sst [smem:[#allocation8_spill]] %s7126_s20  ;;  %s5856_s22 = sadd.s32 4294967294, %s7130_s21  }
   0xd   : > { %10718 = sst [smem:[#allocation9_spill]] %s7130_s21  ;;  %s7262_s2 = sadd.s32 1, %s7130_s21  }
   0xe   : > { %10719 = sst [smem:[#allocation10_spill]] %s7258_s1  ;;  %s443_s23 = sadd.s32 1, %s7126_s20 }
   0xf   : > { %10720 = sst [smem:[#allocation11_spill]] %s7262_s2  ;;  %s440_s24 = ssub.s32 %s7130_s21, %s7262_s2 }
  0x10   : > { %p453_p0 = scmp.ne.s32.totalorder %s7126_s20, %s7122_s30  ;;  %p441_p1 = scmp.eq.s32.totalorder %s440_s24, 0 }
  0x11   : > { %p454_p2 = scmp.eq.s32.totalorder %s7258_s1, 1  ;;  %p459_p3 = scmp.ne.s32.totalorder %s7122_s30, %s7118_s0 }
  0x12   : > { %p460_p4 = scmp.eq.s32.totalorder %s5856_s22, 1  ;;  %p5859_p7 = scmp.ge.s32.totalorder %s7130_s21, 1 }
  0x13   : > { %s7273_s25 = scalar_select %p441_p1, %s7126_s20, %s443_s23  }
  0x14   : > { %p7275_p5 = por %p454_p2, %p453_p0  ;;  %p7279_p6 = por %p460_p4, %p459_p3 }
  0x15   : > { %10721 = sst [smem:[#allocation12_spill]] %s7273_s25  ;;  %p540_p8 = scmp.lt.s32.totalorder %s7130_s21, 3 }
  0x16   : > { %s10722_s3 = scalar_select %p7275_p5, 1, 0 }
  0x17   : > { %s10724_s26 = scalar_select %p7279_p6, 1, 0 }
  0x18   : > { %10723 = sst [smem:[#allocation13_spill]] %s10722_s3  ;;  %p541_p9 = pnand %p5859_p7, %p540_p8 }
  0x19   : > { %10725 = sst [smem:[#allocation14_spill]] %s10724_s26 }
  0x1a   : > { %544 = sbr.rel (%p541_p9) target bundleno = 3162 (0xc5a), region = 96 }
  0x1f   : > { %vm601_vm0 = vcmask 523264   ;;  %vm603_vm1 = vcmask 517120   ;;  %p596_p10 = scmp.lt.s32.totalorder %s7258_s1, 1  ;;  %vm608_vm2 = vcmask 516096   ;;  %v7132_v0 = vmov 0.0   ;;  %s10726_s29 = sld [smem:[#allocation17_spill]] }
  0x20   : > { %602 = vst.msk [vmem:[#allocation2] sm:$0xff] %vm601_vm0, %v7132_v0  ;;  %606 = vst.msk [vmem:[#allocation2 + $0x90] sm:$0xff] %vm601_vm0, %v7132_v0  ;;  %s10727_s21 = sld [smem:[#allocation16_spill]]  ;;  %vm702_vm3 = vcmask 1048064  }
  0x21   : > { %604 = vst.msk [vmem:[#allocation2 + $0x8] sm:$0x3] %vm603_vm1, %v7132_v0  ;;  %607 = vst.msk [vmem:[#allocation2 + $0x98] sm:$0x3] %vm603_vm1, %v7132_v0  ;;  %s597_s20 = scalar_select %p596_p10, %s7258_s1, 1 }
  0x22   : > { %611 = vst.msk [vmem:[#allocation2 + $0x20] sm:$0x1] %vm608_vm2, %v7132_v0  ;;  %610 = vst.msk [vmem:[#allocation2 + $0x10] sm:$0x1] %vm608_vm2, %v7132_v0  ;;  %s7133_s1 = smov 64   ;;  %s10728_s25 = sld [smem:[#allocation19_spill]] }
  0x23   : > { %612 = vst.msk [vmem:[#allocation2 + $0x30] sm:$0x1] %vm608_vm2, %v7132_v0  ;;  %613 = vst.msk [vmem:[#allocation2 + $0x40] sm:$0x1] %vm608_vm2, %v7132_v0  ;;  %s5933_s23 = sshll.u32 %s597_s20, 6  ;;  %s10730_s4 = sld [smem:[#allocation20_spill]] }
  0x24   : > { %614 = vst.msk [vmem:[#allocation2 + $0x50] sm:$0x1] %vm608_vm2, %v7132_v0  ;;  %615 = vst.msk [vmem:[#allocation2 + $0x60] sm:$0x1] %vm608_vm2, %v7132_v0  ;;  %s10731_s5 = sld [smem:[#allocation21_spill]] }
  0x25   : > { %616 = vst.msk [vmem:[#allocation2 + $0x70] sm:$0x1] %vm608_vm2, %v7132_v0  ;;  %617 = vst.msk [vmem:[#allocation2 + $0x80] sm:$0x1] %vm608_vm2, %v7132_v0  ;;  %v991_v1 = vld [vmem:[%s10726_s29 + $0xf8] sm:$0xff]  ;;  %v990_v3 = vld [vmem:[%s10726_s29 + $0xf0] sm:$0xff] }
  0x26   : > { %620 = vst.msk [vmem:[#allocation2 + $0x19] sm:$0x1] %vm608_vm2, %v7132_v0  ;;  %621 = vst.msk [vmem:[#allocation2 + $0x29] sm:$0x1] %vm608_vm2, %v7132_v0  ;;  %v975_v2 = vld [vmem:[%s10726_s29 + $0x78] sm:$0xff]  ;;  %5935 = vmatprep.subr.mxu0 %v991_v1  ;;  %v974_v4 = vld [vmem:[%s10726_s29 + $0x70] sm:$0xff]  ;;  %s600_s19 = scalar_lea.vmem %s10727_s21, %s5933_s23 }
  0x27   : > { %622 = vst.msk [vmem:[#allocation2 + $0x39] sm:$0x1] %vm608_vm2, %v7132_v0  ;;  %623 = vst.msk [vmem:[#allocation2 + $0x49] sm:$0x1] %vm608_vm2, %v7132_v0  ;;  %5936 = vmatpush3.msra.mxu0 %v975_v2  ;;  %v989_v5 = vld [vmem:[%s10726_s29 + $0xe8] sm:$0xff]  ;;  %v988_v7 = vld [vmem:[%s10726_s29 + $0xe0] sm:$0xff] }
  0x28   : > { %624 = vst.msk [vmem:[#allocation2 + $0x59] sm:$0x1] %vm608_vm2, %v7132_v0  ;;  %625 = vst.msk [vmem:[#allocation2 + $0x69] sm:$0x1] %vm608_vm2, %v7132_v0  ;;  %5937 = vmatprep.subr.mxu0 %v990_v3  ;;  %v973_v6 = vld [vmem:[%s10726_s29 + $0x68] sm:$0xff]  ;;  %v972_v8 = vld [vmem:[%s10726_s29 + $0x60] sm:$0xff] }
  0x29   : > { %626 = vst.msk [vmem:[#allocation2 + $0x79] sm:$0x1] %vm608_vm2, %v7132_v0  ;;  %627 = vst.msk [vmem:[#allocation2 + $0x89] sm:$0x1] %vm608_vm2, %v7132_v0  ;;  %5938 = vmatpush3.msra.mxu0 %v974_v4  ;;  %v987_v9 = vld [vmem:[%s10726_s29 + $0xd8] sm:$0xff]  ;;  %v7365_v10 = vld [vmem:[%s600_s19 + $0x8] sm:$0xff] }
  0x2a   : > { %609 = vst.msk [vmem:[#allocation2] sm:$0x1] %vm608_vm2, %v7132_v0  ;;  %618 = vst.msk [vmem:[#allocation2 + $0x90] sm:$0x1] %vm608_vm2, %v7132_v0  ;;  %v7367_v11 = vld [vmem:[%s600_s19] sm:$0xff]  ;;  %v7369_v12 = vld [vmem:[%s600_s19 + $0x10] sm:$0xff]  ;;  %5939 = vmatprep.subr.mxu0 %v989_v5 }
  0x2b   : > { %619 = vst.msk [vmem:[#allocation2 + $0x9] sm:$0x1] %vm608_vm2, %v7132_v0  ;;  %628 = vst.msk [vmem:[#allocation2 + $0x99] sm:$0x1] %vm608_vm2, %v7132_v0  ;;  %v971_v13 = vld [vmem:[%s10726_s29 + $0x58] sm:$0xff]  ;;  %v7382_v15 = vld [vmem:[%s600_s19 + $0x20] sm:$0xff]  ;;  %5940 = vmatpush3.msra.mxu0 %v973_v6 }
  0x2c   : > { %639 = vst.msk [vmem:[#allocation2 + $0x21] sm:$0xff] %vm601_vm0, %v7365_v10  ;;  %638 = vst.msk [vmem:[#allocation2 + $0x11] sm:$0xff] %vm601_vm0, %v7367_v11  ;;  %v7380_v14 = vld [vmem:[%s600_s19 + $0x18] sm:$0xff]  ;;  %v7384_v16 = vld [vmem:[%s600_s19 + $0x28] sm:$0xff]  ;;  %5941 = vmatprep.subr.mxu0 %v988_v7  ;;  %s10729_s21 = sld [smem:[#allocation18_spill]] }
  0x2d   : > { %640 = vst.msk [vmem:[#allocation2 + $0x31] sm:$0xff] %vm601_vm0, %v7369_v12  ;;  %v662_v17 = vld [vmem:[#allocation2 + $0x1] sm:$0xff]  ;;  %641 = vst.msk [vmem:[#allocation2 + $0x41] sm:$0xff] %vm601_vm0, %v7380_v14  ;;  %v7392_v18 = vld [vmem:[%s600_s19 + $0x30] sm:$0xff]  ;;  %5942 = vmatpush3.msra.mxu0 %v972_v8  ;;  %s10756_s0 = sld [smem:[#allocation22_spill]] }
  0x2e   : > { %642 = vst.msk [vmem:[#allocation2 + $0x51] sm:$0xff] %vm601_vm0, %v7382_v15  ;;  %643 = vst.msk [vmem:[#allocation2 + $0x61] sm:$0xff] %vm601_vm0, %v7384_v16  ;;  %v7394_v19 = vld [vmem:[%s600_s19 + $0x38] sm:$0xff]  ;;  %678 = vrot.lane.b32.xlu0 %v662_v17, %s7133_s1  ;;  %v986_v20 = vld [vmem:[%s10726_s29 + $0xd0] sm:$0xff]  ;;  %5943 = vmatprep.subr.mxu0 %v987_v9  ;;  %s10754_s19 = sld [smem:[#allocation10_spill]] }
  0x2f   : > { %644 = vst.msk [vmem:[#allocation2 + $0x71] sm:$0xff] %vm601_vm0, %v7392_v18  ;;  %645 = vst.msk [vmem:[#allocation2 + $0x81] sm:$0xff] %vm601_vm0, %v7394_v19  ;;  %v970_v21 = vld [vmem:[%s10726_s29 + $0x50] sm:$0xff]  ;;  %5944 = vmatpush3.msra.mxu0 %v971_v13  ;;  %v985_v23 = vld [vmem:[%s10726_s29 + $0xc8] sm:$0xff] }
  0x30   : > { %5945 = vmatprep.subr.mxu0 %v986_v20  ;;  %v969_v25 = vld [vmem:[%s10726_s29 + $0x48] sm:$0xff]  ;;  %v984_v26 = vld [vmem:[%s10726_s29 + $0xc0] sm:$0xff]  ;;  %v983_v34 = vld [vmem:[%s10726_s29 + $0xb8] sm:$0xff] }
  0x31   : > { %v646_v22 = vld [vmem:[#allocation2] sm:$0xff]  ;;  %5946 = vmatpush3.msra.mxu0 %v970_v21  ;;  %v967_v38 = vld [vmem:[%s10726_s29 + $0x38] sm:$0xff]  ;;  %v982_v42 = vld [vmem:[%s10726_s29 + $0xb0] sm:$0xff] }
  0x32   : > { %654 = vst.msk [vmem:[#allocation3] sm:$0xff] %vm601_vm0, %v646_v22  ;;  %v711_v24 = vld [vmem:[#allocation2 + $0x2] sm:$0xff]  ;;  %5947 = vmatprep.subr.mxu0 %v985_v23  ;;  %v966_v49 = vld [vmem:[%s10726_s29 + $0x30] sm:$0xff]  ;;  %v1023_v58 = vld [vmem:[%s10726_s29 + $0x1f8] sm:$0xff] }
  0x33   : > { %v968_v27 = vld [vmem:[%s10726_s29 + $0x40] sm:$0xff]  ;;  %719 = vst.msk [vmem:[#allocation3 + $0x8] sm:$0xff] %vm601_vm0, %v711_v24  ;;  %v727_v29 = vld [vmem:[#allocation2 + $0x10] sm:$0xff]  ;;  %5948 = vmatpush3.msra.mxu0 %v969_v25  ;;  %v981_v56 = vld [vmem:[%s10726_s29 + $0xa8] sm:$0xff]  ;;  %5991 = vmatprep.subr.mxu1 %v1023_v58  ;;  %s10757_s2 = smov %s10756_s0 }
  0x34   : > { %v728_v28 = vld [vmem:[#allocation2 + $0x20] sm:$0xff]  ;;  %v663_v30 = vld [vmem:[#allocation2 + $0x11] sm:$0xff]  ;;  %743 = vrot.lane.b32.xlu0 %v727_v29, %s7133_s1  ;;  %655 = vst.msk [vmem:[#allocation3 + $0x28] sm:$0xff] %vm601_vm0, %v727_v29  ;;  %5949 = vmatprep.subr.mxu0 %v984_v26  ;;  %v965_v57 = vld [vmem:[%s10726_s29 + $0x28] sm:$0xff]  ;;  %s5934_s24 = sshll.u32 %s10754_s19, 10  ;;  %s7134_s19 = smov [#allocation4]  }
  0x35   : > { %745 = vrot.lane.b32.xlu1 %v728_v28, %s7133_s1  ;;  %v729_v31 = vld [vmem:[#allocation2 + $0x30] sm:$0xff]  ;;  %v7423_v32 = vld [vmem:[#allocation2 + $0x21] sm:$0xff]  ;;  %656 = vst.msk [vmem:[#allocation3 + $0x50] sm:$0xff] %vm601_vm0, %v728_v28  ;;  %848 = vst.msk [vmem:[#allocation3 + $0x18] sm:$0xff] %vm601_vm0, %v728_v28  ;;  %5950 = vmatpush3.msra.mxu0 %v968_v27 }
  0x36   : > { %v7425_v33 = vld [vmem:[#allocation2 + $0x40] sm:$0xff]  ;;  %783 = vst.msk [vmem:[#allocation3 + $0x10] sm:$0xff] %vm601_vm0, %v663_v30  ;;  %v7434_v35 = vld [vmem:[#allocation2 + $0x31] sm:$0xff]  ;;  %657 = vst.msk [vmem:[#allocation3 + $0x78] sm:$0xff] %vm601_vm0, %v729_v31  ;;  %5951 = vmatprep.subr.mxu0 %v983_v34 }
  0x37   : > { %v7436_v36 = vld [vmem:[#allocation2 + $0x50] sm:$0xff]  ;;  %v7438_v37 = vld [vmem:[#allocation2 + $0x41] sm:$0xff]  ;;  %658 = vst.msk [vmem:[#allocation3 + $0xa0] sm:$0xff] %vm601_vm0, %v7425_v33  ;;  %849 = vst.msk [vmem:[#allocation3 + $0x40] sm:$0xff] %vm601_vm0, %v729_v31  ;;  %5952 = vmatpush3.msra.mxu0 %v967_v38 }
  0x38   : > { %784 = vst.msk [vmem:[#allocation3 + $0x38] sm:$0xff] %vm601_vm0, %v7423_v32  ;;  %850 = vst.msk [vmem:[#allocation3 + $0x68] sm:$0xff] %vm601_vm0, %v7425_v33  ;;  %v7451_v39 = vld [vmem:[#allocation2 + $0x60] sm:$0xff]  ;;  %v7453_v40 = vld [vmem:[#allocation2 + $0x51] sm:$0xff]  ;;  %747 = vrot.lane.b32.xlu0 %v729_v31, %s7133_s1  ;;  %5953 = vmatprep.subr.mxu0 %v982_v42 }
  0x39   : > { %v7455_v41 = vld [vmem:[#allocation2 + $0x70] sm:$0xff]  ;;  %659 = vst.msk [vmem:[#allocation3 + $0xc8] sm:$0xff] %vm601_vm0, %v7436_v36  ;;  %785 = vst.msk [vmem:[#allocation3 + $0x60] sm:$0xff] %vm601_vm0, %v7434_v35  ;;  %v7468_v43 = vld [vmem:[#allocation2 + $0x61] sm:$0xff]  ;;  %680 = vrot.lane.b32.xlu1 %v663_v30, %s7133_s1  ;;  %5954 = vmatpush3.msra.mxu0 %v966_v49 }
  0x3a   : > { %851 = vst.msk [vmem:[#allocation3 + $0x90] sm:$0xff] %vm601_vm0, %v7436_v36  ;;  %786 = vst.msk [vmem:[#allocation3 + $0x88] sm:$0xff] %vm601_vm0, %v7438_v37  ;;  %v7470_v44 = vld [vmem:[#allocation2 + $0x80] sm:$0xff]  ;;  %v7472_v45 = vld [vmem:[#allocation2 + $0x71] sm:$0xff]  ;;  %5955 = vmatprep.subr.mxu0 %v981_v56 }
  0x3b   : > { %660 = vst.msk [vmem:[#allocation3 + $0xf0] sm:$0xff] %vm601_vm0, %v7451_v39  ;;  %661 = vst.msk [vmem:[#allocation3 + $0x118] sm:$0xff] %vm601_vm0, %v7455_v41  ;;  %v7486_v46 = vld [vmem:[#allocation2 + $0x12] sm:$0xff]  ;;  %v7488_v47 = vld [vmem:[#allocation2 + $0x22] sm:$0xff]  ;;  %5956 = vmatpush3.msra.mxu0 %v965_v57 }
  0x3c   : > { %852 = vst.msk [vmem:[#allocation3 + $0xb8] sm:$0xff] %vm601_vm0, %v7451_v39  ;;  %787 = vst.msk [vmem:[#allocation3 + $0xb0] sm:$0xff] %vm601_vm0, %v7453_v40  ;;  %v7490_v48 = vld [vmem:[#allocation2 + $0x32] sm:$0xff]  ;;  %v7501_v50 = vld [vmem:[#allocation2 + $0x42] sm:$0xff]  ;;  %749 = vrot.lane.b32.xlu0 %v7425_v33, %s7133_s1 }
  0x3d   : > { %853 = vst.msk [vmem:[#allocation3 + $0xe0] sm:$0xff] %vm601_vm0, %v7455_v41  ;;  %788 = vst.msk [vmem:[#allocation3 + $0xd8] sm:$0xff] %vm601_vm0, %v7468_v43  ;;  %v7503_v51 = vld [vmem:[#allocation2 + $0x52] sm:$0xff]  ;;  %v7505_v52 = vld [vmem:[#allocation2 + $0x62] sm:$0xff]  ;;  %682 = vrot.lane.b32.xlu1 %v7423_v32, %s7133_s1 }
  0x3e   : > { %854 = vst.msk [vmem:[#allocation3 + $0x108] sm:$0xff] %vm601_vm0, %v7470_v44  ;;  %789 = vst.msk [vmem:[#allocation3 + $0x100] sm:$0xff] %vm601_vm0, %v7472_v45  ;;  %v7517_v53 = vld [vmem:[#allocation2 + $0x81] sm:$0xff]  ;;  %v7519_v54 = vld [vmem:[#allocation2 + $0x72] sm:$0xff] }
  0x3f   : > { %720 = vst.msk [vmem:[#allocation3 + $0x30] sm:$0xff] %vm601_vm0, %v7486_v46  ;;  %721 = vst.msk [vmem:[#allocation3 + $0x58] sm:$0xff] %vm601_vm0, %v7488_v47  ;;  %v7521_v55 = vld [vmem:[#allocation2 + $0x82] sm:$0xff]  ;;  %v1007_v59 = vld [vmem:[%s10726_s29 + $0x178] sm:$0xff] }
  0x40   : > { %722 = vst.msk [vmem:[#allocation3 + $0x80] sm:$0xff] %vm601_vm0, %v7490_v48  ;;  %912 = vst.msk [vmem:[#allocation3 + $0x20] sm:$0xff] %vm601_vm0, %v7488_v47  ;;  %v980_v60 = vld [vmem:[%s10726_s29 + $0xa0] sm:$0xff]  ;;  %v1022_v61 = vld [vmem:[%s10726_s29 + $0x1f0] sm:$0xff]  ;;  %5992 = vmatpush3.msra.mxu1 %v1007_v59  ;;  %751 = vrot.lane.b32.xlu0 %v7436_v36, %s7133_s1 }
  0x41   : > { %913 = vst.msk [vmem:[#allocation3 + $0x48] sm:$0xff] %vm601_vm0, %v7490_v48  ;;  %723 = vst.msk [vmem:[#allocation3 + $0xa8] sm:$0xff] %vm601_vm0, %v7501_v50  ;;  %v964_v62 = vld [vmem:[%s10726_s29 + $0x20] sm:$0xff]  ;;  %v1006_v63 = vld [vmem:[%s10726_s29 + $0x170] sm:$0xff]  ;;  %684 = vrot.lane.b32.xlu1 %v7434_v35, %s7133_s1  ;;  %5957 = vmatprep.subr.mxu0 %v980_v60 }
  0x42   : > { %724 = vst.msk [vmem:[#allocation3 + $0xd0] sm:$0xff] %vm601_vm0, %v7503_v51  ;;  %725 = vst.msk [vmem:[#allocation3 + $0xf8] sm:$0xff] %vm601_vm0, %v7505_v52  ;;  %v979_v1 = vld [vmem:[%s10726_s29 + $0x98] sm:$0xff]  ;;  %v1021_v2 = vld [vmem:[%s10726_s29 + $0x1e8] sm:$0xff]  ;;  %5993 = vmatprep.subr.mxu1 %v1022_v61  ;;  %5958 = vmatpush3.msra.mxu0 %v964_v62 }
  0x43   : > { %914 = vst.msk [vmem:[#allocation3 + $0x70] sm:$0xff] %vm601_vm0, %v7501_v50  ;;  %915 = vst.msk [vmem:[#allocation3 + $0x98] sm:$0xff] %vm601_vm0, %v7503_v51  ;;  %v963_v3 = vld [vmem:[%s10726_s29 + $0x18] sm:$0xff]  ;;  %5994 = vmatpush3.msra.mxu1 %v1006_v63  ;;  %v1005_v4 = vld [vmem:[%s10726_s29 + $0x168] sm:$0xff]  ;;  %5959 = vmatprep.subr.mxu0 %v979_v1 }
  0x44   : > { %916 = vst.msk [vmem:[#allocation3 + $0xc0] sm:$0xff] %vm601_vm0, %v7505_v52  ;;  %726 = vst.msk [vmem:[#allocation3 + $0x120] sm:$0xff] %vm601_vm0, %v7519_v54  ;;  %v978_v5 = vld [vmem:[%s10726_s29 + $0x90] sm:$0xff]  ;;  %5995 = vmatprep.subr.mxu1 %v1021_v2  ;;  %v1020_v6 = vld [vmem:[%s10726_s29 + $0x1e0] sm:$0xff]  ;;  %753 = vrot.lane.b32.xlu0 %v7451_v39, %s7133_s1 }
  0x45   : > { %790 = vst.msk [vmem:[#allocation3 + $0x128] sm:$0xff] %vm601_vm0, %v7517_v53  ;;  %917 = vst.msk [vmem:[#allocation3 + $0xe8] sm:$0xff] %vm601_vm0, %v7519_v54  ;;  %686 = vrot.lane.b32.xlu1 %v7438_v37, %s7133_s1  ;;  %v962_v7 = vld [vmem:[%s10726_s29 + $0x10] sm:$0xff]  ;;  %v1004_v8 = vld [vmem:[%s10726_s29 + $0x160] sm:$0xff]  ;;  %5960 = vmatpush3.msra.mxu0 %v963_v3 }
  0x46   : > { %918 = vst.msk [vmem:[#allocation3 + $0x110] sm:$0xff] %vm601_vm0, %v7521_v55  ;;  %5996 = vmatpush3.msra.mxu1 %v1005_v4  ;;  %5961 = vmatprep.subr.mxu0 %v978_v5  ;;  %v977_v9 = vld [vmem:[%s10726_s29 + $0x88] sm:$0xff]  ;;  %v1019_v13 = vld [vmem:[%s10726_s29 + $0x1d8] sm:$0xff]  ;;  %v976_v21 = vld [vmem:[%s10726_s29 + $0x80] sm:$0xff] }
  0x47   : > { %5997 = vmatprep.subr.mxu1 %v1020_v6  ;;  %5962 = vmatpush3.msra.mxu0 %v962_v7  ;;  %v961_v17 = vld [vmem:[%s10726_s29 + $0x8] sm:$0xff]  ;;  %v1003_v20 = vld [vmem:[%s10726_s29 + $0x158] sm:$0xff]  ;;  %v1018_v22 = vld [vmem:[%s10726_s29 + $0x1d0] sm:$0xff] }
  0x48   : > { %5998 = vmatpush3.msra.mxu1 %v1004_v8  ;;  %755 = vrot.lane.b32.xlu0 %v7455_v41, %s7133_s1  ;;  %v960_v23 = vld [vmem:[%s10726_s29] sm:$0xff]  ;;  %v1002_v24 = vld [vmem:[%s10726_s29 + $0x150] sm:$0xff]  ;;  %v7634_v25 = vld [vmem:[%s10726_s29 + $0x238] sm:$0xff] }
  0x49   : > { %688 = vrot.lane.b32.xlu1 %v7453_v40, %s7133_s1  ;;  %5963 = vmatprep.subr.mxu0 %v977_v9  ;;  %v1017_v26 = vld [vmem:[%s10726_s29 + $0x1c8] sm:$0xff]  ;;  %v1016_v28 = vld [vmem:[%s10726_s29 + $0x1c0] sm:$0xff]  ;;  %v1015_v30 = vld [vmem:[%s10726_s29 + $0x1b8] sm:$0xff] }
  0x4a   : > { %5999 = vmatprep.subr.mxu1 %v1019_v13  ;;  %5964 = vmatpush3.msra.mxu0 %v961_v17  ;;  %v1001_v27 = vld [vmem:[%s10726_s29 + $0x148] sm:$0xff]  ;;  %v1000_v29 = vld [vmem:[%s10726_s29 + $0x140] sm:$0xff]  ;;  %v999_v31 = vld [vmem:[%s10726_s29 + $0x138] sm:$0xff] }
  0x4b   : > { %6000 = vmatpush3.msra.mxu1 %v1003_v20  ;;  %5965 = vmatprep.subr.mxu0 %v976_v21  ;;  %v1014_v33 = vld [vmem:[%s10726_s29 + $0x1b0] sm:$0xff]  ;;  %v1013_v34 = vld [vmem:[%s10726_s29 + $0x1a8] sm:$0xff]  ;;  %v996_v38 = vld [vmem:[%s10726_s29 + $0x120] sm:$0xff] }
  0x4c   : > { %6001 = vmatprep.subr.mxu1 %v1018_v22  ;;  %757 = vrot.lane.b32.xlu0 %v7470_v44, %s7133_s1  ;;  %v997_v36 = vld [vmem:[%s10726_s29 + $0x128] sm:$0xff]  ;;  %v1011_v39 = vld [vmem:[%s10726_s29 + $0x198] sm:$0xff]  ;;  %v1010_v41 = vld [vmem:[%s10726_s29 + $0x190] sm:$0xff] }
  0x4d   : > { %690 = vrot.lane.b32.xlu1 %v7468_v43, %s7133_s1  ;;  %5966 = vmatpush3.msra.mxu0 %v960_v23  ;;  %v994_v42 = vld [vmem:[%s10726_s29 + $0x110] sm:$0xff]  ;;  %v1029_v61 = vld [vmem:[%s10726_s29 + $0x228] sm:$0xff]  ;;  %v1028_v3 = vld [vmem:[%s10726_s29 + $0x220] sm:$0xff] }
  0x4e   : > { %6002 = vmatpush3.msra.mxu1 %v1002_v24  ;;  %6783 = vmatprep.subr.mxu0 %v7634_v25  ;;  %v847_v44 = vld [vmem:[#allocation2 + $0x90] sm:$0xff]  ;;  %v1027_v4 = vld [vmem:[%s10726_s29 + $0x218] sm:$0xff]  ;;  %v1025_v13 = vld [vmem:[%s10726_s29 + $0x208] sm:$0xff] }
  0x4f   : > { %6003 = vmatprep.subr.mxu1 %v1017_v26  ;;  %855 = vst.msk [vmem:[#allocation3 + $0x130] sm:$0xff] %vm601_vm0, %v847_v44  ;;  %v863_v49 = vld [vmem:[#allocation2 + $0x91] sm:$0xff]  ;;  %v1024_v23 = vld [vmem:[%s10726_s29 + $0x200] sm:$0xff] }
  0x50   : > { %6004 = vmatpush3.msra.mxu1 %v1001_v27  ;;  %692 = vrot.lane.b32.xlu0 %v7472_v45, %s7133_s1  ;;  %v1030_v59 = vld [vmem:[%s10726_s29 + $0x230] sm:$0xff] }
  0x51   : > { %872 = vrot.lane.b32.xlu1 %v7423_v32, %s7133_s1  ;;  %6005 = vmatprep.subr.mxu1 %v1016_v28  ;;  %v998_v32 = vld [vmem:[%s10726_s29 + $0x130] sm:$0xff] }
  0x52   : > { %6006 = vmatpush3.msra.mxu1 %v1000_v29  ;;  %v1026_v9 = vld [vmem:[%s10726_s29 + $0x210] sm:$0xff] }
  0x53   : > { %6007 = vmatprep.subr.mxu1 %v1015_v30 }
  0x54   : > { %874 = vrot.lane.b32.xlu0 %v7434_v35, %s7133_s1  ;;  %6008 = vmatpush3.msra.mxu1 %v999_v31  ;;  %v1012_v35 = vld [vmem:[%s10726_s29 + $0x1a0] sm:$0xff] }
  0x55   : > { %807 = vrot.lane.b32.xlu1 %v7486_v46, %s7133_s1  ;;  %6009 = vmatprep.subr.mxu1 %v1014_v33  ;;  %v993_v46 = vld [vmem:[%s10726_s29 + $0x108] sm:$0xff] }
  0x56   : > { %6010 = vmatpush3.msra.mxu1 %v998_v32 }
  0x57   : > { %6011 = vmatprep.subr.mxu1 %v1013_v34 }
  0x58   : > { %876 = vrot.lane.b32.xlu0 %v7438_v37, %s7133_s1  ;;  %6012 = vmatpush3.msra.mxu1 %v997_v36  ;;  %v995_v37 = vld [vmem:[%s10726_s29 + $0x118] sm:$0xff] }
  0x59   : > { %809 = vrot.lane.b32.xlu1 %v7488_v47, %s7133_s1  ;;  %6013 = vmatprep.subr.mxu1 %v1012_v35  ;;  %v911_v47 = vld [vmem:[#allocation2 + $0x92] sm:$0xff] }
  0x5a   : > { %6014 = vmatpush3.msra.mxu1 %v996_v38  ;;  %919 = vst.msk [vmem:[#allocation3 + $0x138] sm:$0xff] %vm601_vm0, %v911_v47 }
  0x5b   : > { %6015 = vmatprep.subr.mxu1 %v1011_v39 }
  0x5c   : > { %878 = vrot.lane.b32.xlu0 %v7453_v40, %s7133_s1  ;;  %6016 = vmatpush3.msra.mxu1 %v995_v37  ;;  %v1009_v40 = vld [vmem:[%s10726_s29 + $0x188] sm:$0xff] }
  0x5d   : > { %811 = vrot.lane.b32.xlu1 %v7490_v48, %s7133_s1  ;;  %6017 = vmatprep.subr.mxu1 %v1010_v41  ;;  %v1008_v48 = vld [vmem:[%s10726_s29 + $0x180] sm:$0xff] }
  0x5e   : > { %6018 = vmatpush3.msra.mxu1 %v994_v42  ;;  %v924_v41 = vld [vmem:[#allocation3 + $0x20] sm:$0xff]  ;;  %v929_v42 = vld [vmem:[#allocation3 + $0x48] sm:$0xff] }
  0x5f   : > { %6019 = vmatprep.subr.mxu1 %v1009_v40 }
  0x60   : > { %880 = vrot.lane.b32.xlu0 %v7468_v43, %s7133_s1  ;;  %v992_v43 = vld [vmem:[%s10726_s29 + $0x100] sm:$0xff]  ;;  %6020 = vmatpush3.msra.mxu1 %v993_v46 }
  0x61   : > { %813 = vrot.lane.b32.xlu1 %v7501_v50, %s7133_s1  ;;  %6021 = vmatprep.subr.mxu1 %v1008_v48  ;;  %v7731_v50 = vld [vmem:[#allocation3 + $0x138] sm:$0xff]  ;;  %v934_v48 = vld [vmem:[#allocation3 + $0x70] sm:$0xff] }
  0x62   : > { %6022 = vmatpush3.msra.mxu1 %v992_v43  ;;  %1665 = vst.msk [vmem:[#allocation3 + $0x138] sm:$0xff] %vm601_vm0, %v911_v47  ;;  %v939_v43 = vld [vmem:[#allocation3 + $0x98] sm:$0xff] }
  0x64   : > { %882 = vrot.lane.b32.xlu0 %v7472_v45, %s7133_s1 }
  0x65   : > { %815 = vrot.lane.b32.xlu1 %v7503_v51, %s7133_s1 }
  0x68   : > { %884 = vrot.lane.b32.xlu0 %v7517_v53, %s7133_s1 }
  0x69   : > { %817 = vrot.lane.b32.xlu1 %v7505_v52, %s7133_s1 }
  0x6c   : > { %886 = vrot.lane.b32.xlu0 %v863_v49, %s7133_s1 }
  0x6d   : > { %819 = vrot.lane.b32.xlu1 %v7519_v54, %s7133_s1 }
  0x71   : > { %821 = vrot.lane.b32.xlu1 %v7521_v55, %s7133_s1 }
  0xa0   : > { %v679_v45 = vpop.permute.xlu0 %678 }
  0xa1   : > { %703 = vst.msk [vmem:[#allocation3] sm:$0xff] %vm702_vm3, %v679_v45 }
  0xa6   : > { %v744_v52 = vpop.permute.xlu0 %743 }
  0xa7   : > { %v746_v51 = vpop.permute.xlu1 %745  ;;  %767 = vst.msk [vmem:[#allocation3 + $0x8] sm:$0xff] %vm702_vm3, %v744_v52 }
  0xa8   : > { %768 = vst.msk [vmem:[#allocation3 + $0x30] sm:$0xff] %vm702_vm3, %v746_v51  ;;  %v920_v55 = vld [vmem:[#allocation3] sm:$0xff] }
  0xaa   : > { %v748_v56 = vpop.permute.xlu0 %747 }
  0xab   : > { %v681_v53 = vpop.permute.xlu1 %680  ;;  %769 = vst.msk [vmem:[#allocation3 + $0x58] sm:$0xff] %vm702_vm3, %v748_v56  ;;  %v949_v56 = vld [vmem:[#allocation3 + $0xe8] sm:$0xff] }
  0xac   : > { %704 = vst.msk [vmem:[#allocation3 + $0x28] sm:$0xff] %vm702_vm3, %v681_v53  ;;  %v944_v53 = vld [vmem:[#allocation3 + $0xc0] sm:$0xff] }
  0xae   : > { %v921_v57 = vld [vmem:[#allocation3 + $0x8] sm:$0xff]  ;;  %v750_v58 = vpop.permute.xlu0 %749 }
  0xaf   : > { %v683_v54 = vpop.permute.xlu1 %682  ;;  %1127 = vmatprep.mubr.f32.mxu0 %v921_v57  ;;  %770 = vst.msk [vmem:[#allocation3 + $0x80] sm:$0xff] %vm702_vm3, %v750_v58  ;;  %v926_v60 = vld [vmem:[#allocation3 + $0x30] sm:$0xff] }
  0xb0   : > { %705 = vst.msk [vmem:[#allocation3 + $0x50] sm:$0xff] %vm702_vm3, %v683_v54  ;;  %1128 = vmatmul.mubr.f32.vlgmr.msra.gmra.mxu0 %v920_v55 }
  0xb1   : > { %1132 = vmatprep.mubr.f32.mxu0 %v926_v60  ;;  %6784 = vmatpush3.msra.mxu0 %v7634_v25 }
  0xb2   : > { %v752_v63 = vpop.permute.xlu0 %751  ;;  %v931_v2 = vld [vmem:[#allocation3 + $0x58] sm:$0xff]  ;;  %6785 = vmatprep.subr.mxu0 %v1030_v59 }
  0xb3   : > { %v685_v62 = vpop.permute.xlu1 %684  ;;  %v925_v1 = vld [vmem:[#allocation3 + $0x28] sm:$0xff]  ;;  %771 = vst.msk [vmem:[#allocation3 + $0xa8] sm:$0xff] %vm702_vm3, %v752_v63  ;;  %6786 = vmatpush3.msra.mxu0 %v1030_v59  ;;  %v954_v59 = vld [vmem:[#allocation3 + $0x110] sm:$0xff] }
  0xb4   : > { %706 = vst.msk [vmem:[#allocation3 + $0x78] sm:$0xff] %vm702_vm3, %v685_v62  ;;  %1133 = vmatmul.mubr.f32.gmra.mxu0 %v925_v1  ;;  %6787 = vmatprep.subr.mxu0 %v1029_v61 }
  0xb5   : > { %1137 = vmatprep.mubr.f32.mxu0 %v931_v2  ;;  %6788 = vmatpush3.msra.mxu0 %v1029_v61 }
  0xb6   : > { %v754_v6 = vpop.permute.xlu0 %753  ;;  %v936_v8 = vld [vmem:[#allocation3 + $0x80] sm:$0xff]  ;;  %6789 = vmatprep.subr.mxu0 %v1028_v3 }
  0xb7   : > { %v687_v5 = vpop.permute.xlu1 %686  ;;  %v930_v7 = vld [vmem:[#allocation3 + $0x50] sm:$0xff]  ;;  %772 = vst.msk [vmem:[#allocation3 + $0xd0] sm:$0xff] %vm702_vm3, %v754_v6  ;;  %6790 = vmatpush3.msra.mxu0 %v1028_v3 }
  0xb8   : > { %707 = vst.msk [vmem:[#allocation3 + $0xa0] sm:$0xff] %vm702_vm3, %v687_v5  ;;  %1138 = vmatmul.mubr.f32.gmra.mxu0 %v930_v7  ;;  %6791 = vmatprep.subr.mxu0 %v1027_v4 }
  0xb9   : > { %1142 = vmatprep.mubr.f32.mxu0 %v936_v8  ;;  %6792 = vmatpush3.msra.mxu0 %v1027_v4 }
  0xba   : > { %v756_v20 = vpop.permute.xlu0 %755  ;;  %v941_v22 = vld [vmem:[#allocation3 + $0xa8] sm:$0xff]  ;;  %6793 = vmatprep.subr.mxu0 %v1026_v9 }
  0xbb   : > { %v689_v17 = vpop.permute.xlu1 %688  ;;  %v935_v21 = vld [vmem:[#allocation3 + $0x78] sm:$0xff]  ;;  %773 = vst.msk [vmem:[#allocation3 + $0xf8] sm:$0xff] %vm702_vm3, %v756_v20  ;;  %6794 = vmatpush3.msra.mxu0 %v1026_v9 }
  0xbc   : > { %708 = vst.msk [vmem:[#allocation3 + $0xc8] sm:$0xff] %vm702_vm3, %v689_v17  ;;  %1143 = vmatmul.mubr.f32.gmra.mxu0 %v935_v21  ;;  %6795 = vmatprep.subr.mxu0 %v1025_v13  ;;  %v1737_v17 = vld [vmem:[%s10728_s25 + $0xf8] sm:$0xff]  ;;  %v1736_v21 = vld [vmem:[%s10728_s25 + $0xf0] sm:$0xff] }
  0xbd   : > { %1147 = vmatprep.mubr.f32.mxu0 %v941_v22  ;;  %6796 = vmatpush3.msra.mxu0 %v1025_v13  ;;  %v1410_v13 = vld [vmem:[#allocation2 + $0x1] sm:$0xff]  ;;  %v1721_v20 = vld [vmem:[%s10728_s25 + $0x78] sm:$0xff]  ;;  %v1720_v22 = vld [vmem:[%s10728_s25 + $0x70] sm:$0xff] }
  0xbe   : > { %v758_v25 = vpop.permute.xlu0 %757  ;;  %v946_v27 = vld [vmem:[#allocation3 + $0xd0] sm:$0xff]  ;;  %6797 = vmatprep.subr.mxu0 %v1024_v23  ;;  %1426 = vrot.lane.b32.xlu1 %v1410_v13, %s7133_s1 }
  0xbf   : > { %v691_v24 = vpop.permute.xlu1 %690  ;;  %v940_v26 = vld [vmem:[#allocation3 + $0xa0] sm:$0xff]  ;;  %774 = vst.msk [vmem:[#allocation3 + $0x120] sm:$0xff] %vm702_vm3, %v758_v25  ;;  %6798 = vmatpush3.msra.mxu0 %v1024_v23  ;;  %6063 = vmatprep.subr.mxu1 %v1737_v17  ;;  %v1735_v23 = vld [vmem:[%s10728_s25 + $0xe8] sm:$0xff] }
  0xc0   : > { %709 = vst.msk [vmem:[#allocation3 + $0xf0] sm:$0xff] %vm702_vm3, %v691_v24  ;;  %1148 = vmatmul.mubr.f32.gmra.mxu0 %v940_v26  ;;  %v1719_v24 = vld [vmem:[%s10728_s25 + $0x68] sm:$0xff]  ;;  %v1734_v25 = vld [vmem:[%s10728_s25 + $0xe0] sm:$0xff] }
  0xc1   : > { %1152 = vmatprep.mubr.f32.mxu0 %v946_v27  ;;  %v1718_v26 = vld [vmem:[%s10728_s25 + $0x60] sm:$0xff] }
  0xc2   : > { %v693_v29 = vpop.permute.xlu0 %692  ;;  %v951_v31 = vld [vmem:[#allocation3 + $0xf8] sm:$0xff]  ;;  %v1394_v27 = vld [vmem:[#allocation2] sm:$0xff] }
  0xc3   : > { %v873_v28 = vpop.permute.xlu1 %872  ;;  %v945_v30 = vld [vmem:[#allocation3 + $0xc8] sm:$0xff]  ;;  %710 = vst.msk [vmem:[#allocation3 + $0x118] sm:$0xff] %vm702_vm3, %v693_v29  ;;  %v1717_v29 = vld [vmem:[%s10728_s25 + $0x58] sm:$0xff] }
  0xc4   : > { %896 = vst.msk [vmem:[#allocation3 + $0x18] sm:$0xff] %vm702_vm3, %v873_v28  ;;  %1153 = vmatmul.mubr.f32.gmra.mxu0 %v945_v30  ;;  %v1733_v28 = vld [vmem:[%s10728_s25 + $0xd8] sm:$0xff]  ;;  %v1732_v30 = vld [vmem:[%s10728_s25 + $0xd0] sm:$0xff] }
  0xc5   : > { %1157 = vmatprep.mubr.f32.mxu0 %v951_v31  ;;  %1402 = vst.msk [vmem:[#allocation3] sm:$0xff] %vm601_vm0, %v1394_v27  ;;  %v1716_v31 = vld [vmem:[%s10728_s25 + $0x50] sm:$0xff] }
  0xc6   : > { %v875_v34 = vpop.permute.xlu0 %874  ;;  %v956_v36 = vld [vmem:[#allocation3 + $0x120] sm:$0xff] }
  0xc7   : > { %v808_v33 = vpop.permute.xlu1 %807  ;;  %v950_v32 = vld [vmem:[#allocation3 + $0xf0] sm:$0xff]  ;;  %897 = vst.msk [vmem:[#allocation3 + $0x40] sm:$0xff] %vm702_vm3, %v875_v34  ;;  %v1730_v34 = vld [vmem:[%s10728_s25 + $0xc0] sm:$0xff] }
  0xc8   : > { %831 = vst.msk [vmem:[#allocation3 + $0x10] sm:$0xff] %vm702_vm3, %v808_v33  ;;  %1158 = vmatmul.mubr.f32.gmra.mxu0 %v950_v32  ;;  %v1731_v33 = vld [vmem:[%s10728_s25 + $0xc8] sm:$0xff] }
  0xc9   : > { %1162 = vmatprep.mubr.f32.mxu0 %v956_v36  ;;  %v1715_v32 = vld [vmem:[%s10728_s25 + $0x48] sm:$0xff]  ;;  %v1714_v36 = vld [vmem:[%s10728_s25 + $0x40] sm:$0xff] }
  0xca   : > { %v955_v39 = vld [vmem:[#allocation3 + $0x118] sm:$0xff]  ;;  %v877_v37 = vpop.permute.xlu0 %876 }
  0xcb   : > { %v810_v35 = vpop.permute.xlu1 %809  ;;  %v923_v38 = vld [vmem:[#allocation3 + $0x18] sm:$0xff]  ;;  %898 = vst.msk [vmem:[#allocation3 + $0x68] sm:$0xff] %vm702_vm3, %v877_v37 }
  0xcc   : > { %832 = vst.msk [vmem:[#allocation3 + $0x38] sm:$0xff] %vm702_vm3, %v810_v35  ;;  %1232 = vmatprep.mubr.f32.mxu1 %v923_v38  ;;  %1163 = vmatmul.mubr.f32.gmra.mxu0 %v955_v39  ;;  %v1729_v38 = vld [vmem:[%s10728_s25 + $0xb8] sm:$0xff] }
  0xcd   : > { %6799 = vmatprep.mubr.msk.f32.mxu0 %vm601_vm0, %v924_v41  ;;  %v1713_v39 = vld [vmem:[%s10728_s25 + $0x38] sm:$0xff]  ;;  %v1728_v41 = vld [vmem:[%s10728_s25 + $0xb0] sm:$0xff] }
  0xce   : > { %v879_v46 = vpop.permute.xlu0 %878  ;;  %v928_v47 = vld [vmem:[#allocation3 + $0x40] sm:$0xff] }
  0xcf   : > { %v812_v44 = vpop.permute.xlu1 %811  ;;  %v922_v40 = vld [vmem:[#allocation3 + $0x10] sm:$0xff]  ;;  %899 = vst.msk [vmem:[#allocation3 + $0x90] sm:$0xff] %vm702_vm3, %v879_v46 }
  0xd0   : > { %833 = vst.msk [vmem:[#allocation3 + $0x60] sm:$0xff] %vm702_vm3, %v812_v44  ;;  %1233 = vmatmul.mubr.f32.vlgmr.msra.gmra.mxu1 %v922_v40  ;;  %6800 = vmatmul.mubr.msk.f32.vlgmr.msra.gmra.mxu0 %vm601_vm0, %v929_v42 }
  0xd1   : > { %1237 = vmatprep.mubr.f32.mxu1 %v928_v47  ;;  %6802 = vmatprep.mubr.msk.f32.mxu0 %vm601_vm0, %v934_v48 }
  0xd2   : > { %v881_v51 = vpop.permute.xlu0 %880  ;;  %v933_v52 = vld [vmem:[#allocation3 + $0x68] sm:$0xff]  ;;  %6064 = vmatpush3.msra.mxu1 %v1721_v20 }
  0xd3   : > { %v814_v49 = vpop.permute.xlu1 %813  ;;  %v927_v45 = vld [vmem:[#allocation3 + $0x38] sm:$0xff]  ;;  %900 = vst.msk [vmem:[#allocation3 + $0xb8] sm:$0xff] %vm702_vm3, %v881_v51  ;;  %6065 = vmatprep.subr.mxu1 %v1736_v21  ;;  %v1712_v21 = vld [vmem:[%s10728_s25 + $0x30] sm:$0xff] }
  0xd4   : > { %834 = vst.msk [vmem:[#allocation3 + $0x88] sm:$0xff] %vm702_vm3, %v814_v49  ;;  %1238 = vmatmul.mubr.f32.gmra.mxu1 %v927_v45  ;;  %6803 = vmatmul.mubr.msk.f32.gmra.mxu0 %vm601_vm0, %v939_v43 }
  0xd5   : > { %1242 = vmatprep.mubr.f32.mxu1 %v933_v52  ;;  %6805 = vmatprep.mubr.msk.f32.mxu0 %vm601_vm0, %v944_v53 }
  0xd6   : > { %v883_v58 = vpop.permute.xlu0 %882  ;;  %v938_v55 = vld [vmem:[#allocation3 + $0x90] sm:$0xff]  ;;  %6066 = vmatpush3.msra.mxu1 %v1720_v22 }
  0xd7   : > { %v816_v54 = vpop.permute.xlu1 %815  ;;  %v932_v57 = vld [vmem:[#allocation3 + $0x60] sm:$0xff]  ;;  %901 = vst.msk [vmem:[#allocation3 + $0xe0] sm:$0xff] %vm702_vm3, %v883_v58  ;;  %6067 = vmatprep.subr.mxu1 %v1735_v23 }
  0xd8   : > { %835 = vst.msk [vmem:[#allocation3 + $0xb0] sm:$0xff] %vm702_vm3, %v816_v54  ;;  %1243 = vmatmul.mubr.f32.gmra.mxu1 %v932_v57  ;;  %6806 = vmatmul.mubr.msk.f32.gmra.mxu0 %vm601_vm0, %v949_v56  ;;  %v7880_v58 = vld [vmem:[%s10729_s21] ss:$0 sm:$0xff]  ;;  %s10606_s21 = scalar_lea.hbm %s10756_s0, %s5934_s24  ;;  %s7074_s24 = sshll.u32 %s7134_s19, 4  ;;  %s7075_s24 = int_to_ptr.vmem [resolvable:$false] %s7074_s24 }
  0xd9   : > { %1247 = vmatprep.mubr.f32.mxu1 %v938_v55  ;;  %6808 = vmatprep.mubr.msk.f32.mxu0 %vm601_vm0, %v954_v59  ;;  %s7076_s28 = scalar_lea.vmem %s7075_s24, 2048 }
  0xda   : > { %v885_v62 = vpop.permute.xlu0 %884  ;;  %v943_v63 = vld [vmem:[#allocation3 + $0xb8] sm:$0xff]  ;;  %6068 = vmatpush3.msra.mxu1 %v1719_v24  ;;  %v1727_v24 = vld [vmem:[%s10728_s25 + $0xa8] sm:$0xff] }
  0xdb   : > { %v818_v60 = vpop.permute.xlu1 %817  ;;  %v937_v61 = vld [vmem:[#allocation3 + $0x88] sm:$0xff]  ;;  %902 = vst.msk [vmem:[#allocation3 + $0x108] sm:$0xff] %vm702_vm3, %v885_v62  ;;  %6069 = vmatprep.subr.mxu1 %v1734_v25  ;;  %v1769_v25 = vld [vmem:[%s10728_s25 + $0x1f8] sm:$0xff] }
  0xdc   : > { %836 = vst.msk [vmem:[#allocation3 + $0xd8] sm:$0xff] %vm702_vm3, %v818_v60  ;;  %1248 = vmatmul.mubr.f32.gmra.mxu1 %v937_v61  ;;  %6809 = vmatmul.mubr.msk.f32.gmra.mxu0 %vm601_vm0, %v7731_v50 }
  0xdd   : > { %1252 = vmatprep.mubr.f32.mxu1 %v943_v63  ;;  %6070 = vmatpush3.msra.mxu1 %v1718_v26  ;;  %v1711_v26 = vld [vmem:[%s10728_s25 + $0x28] sm:$0xff] }
  0xde   : > { %v887_v3 = vpop.permute.xlu0 %886  ;;  %v948_v4 = vld [vmem:[#allocation3 + $0xe0] sm:$0xff]  ;;  %6071 = vmatprep.subr.mxu1 %v1733_v28  ;;  %6119 = vmatprep.subr.mxu0 %v1769_v25 }
  0xdf   : > { %v820_v1 = vpop.permute.xlu1 %819  ;;  %v942_v2 = vld [vmem:[#allocation3 + $0xb0] sm:$0xff]  ;;  %903 = vst.msk [vmem:[#allocation3 + $0x130] sm:$0xff] %vm702_vm3, %v887_v3  ;;  %6072 = vmatpush3.msra.mxu1 %v1717_v29 }
  0xe0   : > { %837 = vst.msk [vmem:[#allocation3 + $0x100] sm:$0xff] %vm702_vm3, %v820_v1  ;;  %1253 = vmatmul.mubr.f32.gmra.mxu1 %v942_v2  ;;  %6073 = vmatprep.subr.mxu1 %v1732_v30  ;;  %v1753_v30 = vld [vmem:[%s10728_s25 + $0x178] sm:$0xff] }
  0xe1   : > { %1257 = vmatprep.mubr.f32.mxu1 %v948_v4  ;;  %6074 = vmatpush3.msra.mxu1 %v1716_v31  ;;  %v1726_v31 = vld [vmem:[%s10728_s25 + $0xa0] sm:$0xff] }
  0xe2   : > { %v953_v7 = vld [vmem:[#allocation3 + $0x108] sm:$0xff]  ;;  %6075 = vmatprep.subr.mxu1 %v1731_v33  ;;  %v1768_v33 = vld [vmem:[%s10728_s25 + $0x1f0] sm:$0xff]  ;;  %6120 = vmatpush3.msra.mxu0 %v1753_v30 }
  0xe3   : > { %v822_v5 = vpop.permute.xlu1 %821  ;;  %v947_v6 = vld [vmem:[#allocation3 + $0xd8] sm:$0xff]  ;;  %6076 = vmatpush3.msra.mxu1 %v1715_v32  ;;  %6121 = vmatprep.subr.mxu0 %v1768_v33 }
  0xe4   : > { %838 = vst.msk [vmem:[#allocation3 + $0x128] sm:$0xff] %vm702_vm3, %v822_v5  ;;  %1258 = vmatmul.mubr.f32.gmra.mxu1 %v947_v6  ;;  %6077 = vmatprep.subr.mxu1 %v1730_v34 }
  0xe5   : > { %1262 = vmatprep.mubr.f32.mxu1 %v953_v7  ;;  %6078 = vmatpush3.msra.mxu1 %v1714_v36  ;;  %v1458_v36 = vld [vmem:[#allocation2 + $0x2] sm:$0xff] }
  0xe6   : > { %v958_v9 = vld [vmem:[#allocation3 + $0x130] sm:$0xff]  ;;  %6079 = vmatprep.subr.mxu1 %v1729_v38  ;;  %1466 = vst.msk [vmem:[#allocation3 + $0x8] sm:$0xff] %vm601_vm0, %v1458_v36 }
  0xe7   : > { %v952_v8 = vld [vmem:[#allocation3 + $0x100] sm:$0xff]  ;;  %6080 = vmatpush3.msra.mxu1 %v1713_v39 }
  0xe8   : > { %1263 = vmatmul.mubr.f32.gmra.mxu1 %v952_v8  ;;  %6081 = vmatprep.subr.mxu1 %v1728_v41  ;;  %v1752_v41 = vld [vmem:[%s10728_s25 + $0x170] sm:$0xff] }
  0xe9   : > { %1267 = vmatprep.mubr.f32.mxu1 %v958_v9  ;;  %6082 = vmatpush3.msra.mxu1 %v1712_v21  ;;  %v1749_v21 = vld [vmem:[%s10728_s25 + $0x158] sm:$0xff] }
  0xea   : > { %6083 = vmatprep.subr.mxu1 %v1727_v24  ;;  %6122 = vmatpush3.msra.mxu0 %v1752_v41 }
  0xeb   : > { %v957_v50 = vld [vmem:[#allocation3 + $0x128] sm:$0xff]  ;;  %6084 = vmatpush3.msra.mxu1 %v1711_v26  ;;  %v1706_v26 = vld [vmem:[%s10728_s25] sm:$0xff] }
  0xec   : > { %1268 = vmatmul.mubr.f32.gmra.mxu1 %v957_v50  ;;  %6085 = vmatprep.subr.mxu1 %v1726_v31 }
 0x130   : > { %v1427_v4 = vpop.permute.xlu1 %1426 }
 0x131   : > { %1450 = vst.msk [vmem:[#allocation3] sm:$0xff] %vm702_vm3, %v1427_v4 }
 0x138   : > { %v7910_v39 = vld [vmem:[#allocation3] sm:$0xff] }
 0x139   : > { %2140 = vst.msk [vmem:[#allocation3] sm:$0xff] %vm601_vm0, %v7367_v11 }
 0x170   : > { %v5967_v35 = vpop.f32.mrf.mxu0 }
 0x172   : > { %v5968_v37 = vpop.f32.mrf.mxu0 }
 0x173   : > { %v5969_v54 = vadd.f32 %v5968_v37, %v5967_v35  ;;  %v1710_v37 = vld [vmem:[%s10728_s25 + $0x20] sm:$0xff] }
 0x174   : > { %v5970_v42 = vpop.f32.mrf.mxu0  ;;  %6086 = vmatpush3.msra.mxu1 %v1710_v37  ;;  %v8022_v37 = vld [vmem:[%s10728_s25 + $0x238] sm:$0xff] }
 0x175   : > { %v1130_v61 = vadd.f32 %v5969_v54, %v7880_v58 }
 0x176   : > { %v5971_v44 = vpop.f32.mrf.mxu0 }
 0x177   : > { %v5972_v62 = vadd.f32 %v5971_v44, %v5970_v42 }
 0x178   : > { %v5973_v40 = vpop.f32.mrf.mxu0 }
 0x179   : > { %v1135_v6 = vadd.f32 %v5972_v62, %v7880_v58 }
 0x17a   : > { %v5974_v46 = vpop.f32.mrf.mxu0 }
 0x17b   : > { %v5975_v7 = vadd.f32 %v5974_v46, %v5973_v40  ;;  %v1725_v40 = vld [vmem:[%s10728_s25 + $0x98] sm:$0xff]  ;;  %v1767_v46 = vld [vmem:[%s10728_s25 + $0x1e8] sm:$0xff] }
 0x17c   : > { %v5976_v47 = vpop.f32.mrf.mxu0  ;;  %6087 = vmatprep.subr.mxu1 %v1725_v40  ;;  %6123 = vmatprep.subr.mxu0 %v1767_v46  ;;  %v1746_v40 = vld [vmem:[%s10728_s25 + $0x140] sm:$0xff] }
 0x17d   : > { %v1140_v27 = vadd.f32 %v5975_v7, %v7880_v58 }
 0x17e   : > { %v5977_v48 = vpop.f32.mrf.mxu0 }
 0x17f   : > { %v5978_v22 = vadd.f32 %v5977_v48, %v5976_v47  ;;  %v1709_v47 = vld [vmem:[%s10728_s25 + $0x18] sm:$0xff] }
 0x180   : > { %v7861_v43 = vpop.f32.mrf.mxu0  ;;  %6088 = vmatpush3.msra.mxu1 %v1709_v47 }
 0x181   : > { %v1145_v42 = vadd.f32 %v5978_v22, %v7880_v58  ;;  %v1722_v22 = vld [vmem:[%s10728_s25 + $0x80] sm:$0xff] }
 0x182   : > { %v7863_v49 = vpop.f32.mrf.mxu0 }
 0x183   : > { %v5981_v48 = vadd.f32 %v7863_v49, %v7861_v43 }
 0x184   : > { %v7865_v45 = vpop.f32.mrf.mxu0 }
 0x185   : > { %v1150_v7 = vadd.f32 %v5981_v48, %v7880_v58 }
 0x186   : > { %v7867_v51 = vpop.f32.mrf.mxu0 }
 0x188   : > { %v7869_v52 = vpop.f32.mrf.mxu0 }
 0x18a   : > { %v7871_v53 = vpop.f32.mrf.mxu0 }
 0x18c   : > { %v7873_v56 = vpop.f32.mrf.mxu0 }
 0x18e   : > { %v7875_v57 = vpop.f32.mrf.mxu0 }
 0x190   : > { %v6023_v55 = vpop.f32.mrf.mxu1  ;;  %v6801_v59 = vpop.f32.mrf.mxu0 }
 0x192   : > { %v6024_v60 = vpop.f32.mrf.mxu1  ;;  %v1339_v2 = vpop.f32.mrf.mxu0 }
 0x193   : > { %v6025_v63 = vadd.f32 %v6024_v60, %v6023_v55  ;;  %v1724_v60 = vld [vmem:[%s10728_s25 + $0x90] sm:$0xff] }
 0x194   : > { %v6026_v1 = vpop.f32.mrf.mxu1  ;;  %v7885_v13 = vpop.f32.mrf.mxu0  ;;  %6089 = vmatprep.subr.mxu1 %v1724_v60 }
 0x195   : > { %v1235_v3 = vadd.f32 %v6025_v63, %v1130_v61  ;;  %v1766_v61 = vld [vmem:[%s10728_s25 + $0x1e0] sm:$0xff] }
 0x196   : > { %v6027_v5 = vpop.f32.mrf.mxu1  ;;  %v1349_v34 = vpop.f32.mrf.mxu0 }
 0x197   : > { %v6028_v8 = vadd.f32 %v6027_v5, %v6026_v1  ;;  %v1340_v9 = vadd.f32 %v1339_v2, %v1235_v3  ;;  %v1708_v1 = vld [vmem:[%s10728_s25 + $0x10] sm:$0xff]  ;;  %v1750_v2 = vld [vmem:[%s10728_s25 + $0x160] sm:$0xff] }
 0x198   : > { %v6029_v50 = vpop.f32.mrf.mxu1  ;;  %v7943_v43 = vpop.f32.mrf.mxu0  ;;  %6090 = vmatpush3.msra.mxu1 %v1708_v1  ;;  %v1760_v1 = vld [vmem:[%s10728_s25 + $0x1b0] sm:$0xff] }
 0x199   : > { %v1240_v17 = vadd.f32 %v6028_v8, %v1135_v6  ;;  %v1378_v20 = vmax.f32 %v1340_v9, 0.0  ;;  %v5984_v8 = vadd.f32 %v7867_v51, %v7865_v45  ;;  %v1707_v45 = vld [vmem:[%s10728_s25 + $0x8] sm:$0xff] }
 0x19a   : > { %v6030_v23 = vpop.f32.mrf.mxu1 }
 0x19b   : > { %v1345_v28 = vadd.f32 %v6801_v59, %v1240_v17  ;;  %1386 = vst.msk [vmem:[#allocation2 + $0x11] sm:$0xff] %vm601_vm0, %v1378_v20  ;;  %v6031_v29 = vadd.f32 %v6030_v23, %v6029_v50  ;;  %v1751_v59 = vld [vmem:[%s10728_s25 + $0x168] sm:$0xff]  ;;  %v1765_v20 = vld [vmem:[%s10728_s25 + $0x1d8] sm:$0xff]  ;;  %v1764_v23 = vld [vmem:[%s10728_s25 + $0x1d0] sm:$0xff] }
 0x19c   : > { %v6032_v32 = vpop.f32.mrf.mxu1  ;;  %6124 = vmatpush3.msra.mxu0 %v1751_v59  ;;  %v1723_v17 = vld [vmem:[%s10728_s25 + $0x88] sm:$0xff]  ;;  %v5990_v59 = vadd.f32 %v7875_v57, %v7873_v56  ;;  %v1761_v56 = vld [vmem:[%s10728_s25 + $0x1b8] sm:$0xff] }
 0x19d   : > { %v1379_v35 = vmax.f32 %v1345_v28, 0.0  ;;  %v1245_v38 = vadd.f32 %v6031_v29, %v1140_v27  ;;  %6125 = vmatprep.subr.mxu0 %v1766_v61  ;;  %6091 = vmatprep.subr.mxu1 %v1723_v17  ;;  %v1748_v27 = vld [vmem:[%s10728_s25 + $0x150] sm:$0xff]  ;;  %v5987_v28 = vadd.f32 %v7871_v53, %v7869_v52  ;;  %v1763_v52 = vld [vmem:[%s10728_s25 + $0x1c8] sm:$0xff] }
 0x19e   : > { %v6033_v44 = vpop.f32.mrf.mxu1  ;;  %6126 = vmatpush3.msra.mxu0 %v1750_v2  ;;  %6092 = vmatpush3.msra.mxu1 %v1707_v45  ;;  %v1747_v53 = vld [vmem:[%s10728_s25 + $0x148] sm:$0xff] }
 0x19f   : > { %1387 = vst.msk [vmem:[#allocation2 + $0x21] sm:$0xff] %vm601_vm0, %v1379_v35  ;;  %v6034_v54 = vadd.f32 %v6033_v44, %v6032_v32  ;;  %v1350_v55 = vadd.f32 %v1349_v34, %v1245_v38  ;;  %6127 = vmatprep.subr.mxu0 %v1765_v20  ;;  %6093 = vmatprep.subr.mxu1 %v1722_v22  ;;  %v1762_v44 = vld [vmem:[%s10728_s25 + $0x1c0] sm:$0xff]  ;;  %v1759_v20 = vld [vmem:[%s10728_s25 + $0x1a8] sm:$0xff] }
 0x1a0   : > { %v6035_v62 = vpop.f32.mrf.mxu1  ;;  %6128 = vmatpush3.msra.mxu0 %v1749_v21  ;;  %v1155_v32 = vadd.f32 %v5984_v8, %v7880_v58  ;;  %6094 = vmatpush3.msra.mxu1 %v1706_v26  ;;  %v1160_v46 = vadd.f32 %v5987_v28, %v7880_v58  ;;  %v1743_v45 = vld [vmem:[%s10728_s25 + $0x128] sm:$0xff]  ;;  %v1757_v26 = vld [vmem:[%s10728_s25 + $0x198] sm:$0xff] }
 0x1a1   : > { %v1250_v49 = vadd.f32 %v6034_v54, %v1145_v42  ;;  %v1380_v63 = vmax.f32 %v1350_v55, 0.0  ;;  %6129 = vmatprep.subr.mxu0 %v1764_v23  ;;  %6811 = vmatprep.subr.mxu1 %v8022_v37  ;;  %v1758_v23 = vld [vmem:[%s10728_s25 + $0x1a0] sm:$0xff] }
 0x1a2   : > { %v6036_v3 = vpop.f32.mrf.mxu1  ;;  %v7951_v4 = vld [vmem:[#allocation2 + $0x10] sm:$0xff]  ;;  %6130 = vmatpush3.msra.mxu0 %v1748_v27 }
 0x1a3   : > { %v7953_v5 = vld [vmem:[#allocation2 + $0x11] sm:$0xff]  ;;  %v1355_v9 = vadd.f32 %v7885_v13, %v1250_v49  ;;  %1388 = vst.msk [vmem:[#allocation2 + $0x31] sm:$0xff] %vm601_vm0, %v1380_v63  ;;  %v6037_v50 = vadd.f32 %v6036_v3, %v6035_v62  ;;  %1403 = vst.msk [vmem:[#allocation3 + $0x28] sm:$0xff] %vm601_vm0, %v7951_v4  ;;  %v1359_v13 = vpop.f32.mrf.mxu0  ;;  %6131 = vmatprep.subr.mxu0 %v1763_v52 }
 0x1a4   : > { %v7955_v6 = vld [vmem:[#allocation2 + $0x12] sm:$0xff]  ;;  %1530 = vst.msk [vmem:[#allocation3 + $0x10] sm:$0xff] %vm601_vm0, %v7953_v5  ;;  %v6038_v51 = vpop.f32.mrf.mxu1  ;;  %6132 = vmatpush3.msra.mxu0 %v1747_v53 }
 0x1a5   : > { %1467 = vst.msk [vmem:[#allocation3 + $0x30] sm:$0xff] %vm601_vm0, %v7955_v6  ;;  %v1381_v24 = vmax.f32 %v1355_v9, 0.0  ;;  %v1255_v25 = vadd.f32 %v6037_v50, %v1150_v7  ;;  %v8017_v38 = vpop.f32.mrf.mxu0  ;;  %6133 = vmatprep.subr.mxu0 %v1762_v44  ;;  %v1745_v63 = vld [vmem:[%s10728_s25 + $0x138] sm:$0xff]  ;;  %v1165_v7 = vadd.f32 %v5990_v59, %v7880_v58  ;;  %v1744_v50 = vld [vmem:[%s10728_s25 + $0x130] sm:$0xff] }
 0x1a6   : > { %v6039_v29 = vpop.f32.mrf.mxu1  ;;  %v1475_v30 = vld [vmem:[#allocation2 + $0x20] sm:$0xff]  ;;  %6134 = vmatpush3.msra.mxu0 %v1746_v40 }
 0x1a7   : > { %v7994_v31 = vld [vmem:[#allocation2 + $0x21] sm:$0xff]  ;;  %1389 = vst.msk [vmem:[#allocation2 + $0x41] sm:$0xff] %vm601_vm0, %v1381_v24  ;;  %v6040_v34 = vadd.f32 %v6039_v29, %v6038_v51  ;;  %v1360_v36 = vadd.f32 %v1359_v13, %v1255_v25  ;;  %1492 = vrot.lane.b32.xlu0 %v1475_v30, %s7133_s1  ;;  %1404 = vst.msk [vmem:[#allocation3 + $0x50] sm:$0xff] %vm601_vm0, %v1475_v30  ;;  %v1369_v62 = vpop.f32.mrf.mxu0  ;;  %6135 = vmatprep.subr.mxu0 %v1761_v56 }
 0x1a8   : > { %v7996_v33 = vld [vmem:[#allocation2 + $0x22] sm:$0xff]  ;;  %1430 = vrot.lane.b32.xlu1 %v7994_v31, %s7133_s1  ;;  %1594 = vst.msk [vmem:[#allocation3 + $0x18] sm:$0xff] %vm601_vm0, %v1475_v30  ;;  %1531 = vst.msk [vmem:[#allocation3 + $0x38] sm:$0xff] %vm601_vm0, %v7994_v31  ;;  %v6041_v35 = vpop.f32.mrf.mxu1  ;;  %6136 = vmatpush3.msra.mxu0 %v1745_v63  ;;  %v1741_v30 = vld [vmem:[%s10728_s25 + $0x118] sm:$0xff] }
 0x1a9   : > { %1468 = vst.msk [vmem:[#allocation3 + $0x58] sm:$0xff] %vm601_vm0, %v7996_v33  ;;  %1658 = vst.msk [vmem:[#allocation3 + $0x20] sm:$0xff] %vm601_vm0, %v7996_v33  ;;  %v1260_v41 = vadd.f32 %v6040_v34, %v1155_v32  ;;  %v1382_v42 = vmax.f32 %v1360_v36, 0.0  ;;  %6137 = vmatprep.subr.mxu0 %v1760_v1  ;;  %v1742_v25 = vld [vmem:[%s10728_s25 + $0x120] sm:$0xff]  ;;  %v1756_v32 = vld [vmem:[%s10728_s25 + $0x190] sm:$0xff] }
 0x1aa   : > { %v6042_v47 = vpop.f32.mrf.mxu1  ;;  %v1476_v48 = vld [vmem:[#allocation2 + $0x30] sm:$0xff]  ;;  %6138 = vmatpush3.msra.mxu0 %v1744_v50 }
 0x1ab   : > { %v8032_v54 = vld [vmem:[#allocation2 + $0x31] sm:$0xff]  ;;  %v1365_v60 = vadd.f32 %v7943_v43, %v1260_v41  ;;  %1390 = vst.msk [vmem:[#allocation2 + $0x51] sm:$0xff] %vm601_vm0, %v1382_v42  ;;  %v6043_v61 = vadd.f32 %v6042_v47, %v6041_v35  ;;  %1490 = vrot.lane.b32.xlu0 %v7951_v4, %s7133_s1  ;;  %1405 = vst.msk [vmem:[#allocation3 + $0x78] sm:$0xff] %vm601_vm0, %v1476_v48  ;;  %6139 = vmatprep.subr.mxu0 %v1759_v20  ;;  %v1755_v35 = vld [vmem:[%s10728_s25 + $0x188] sm:$0xff] }
 0x1ac   : > { %v8034_v55 = vld [vmem:[#allocation2 + $0x32] sm:$0xff]  ;;  %1428 = vrot.lane.b32.xlu1 %v7953_v5, %s7133_s1  ;;  %1595 = vst.msk [vmem:[#allocation3 + $0x40] sm:$0xff] %vm601_vm0, %v1476_v48  ;;  %1532 = vst.msk [vmem:[#allocation3 + $0x60] sm:$0xff] %vm601_vm0, %v8032_v54  ;;  %v6044_v57 = vpop.f32.mrf.mxu1  ;;  %6140 = vmatpush3.msra.mxu0 %v1743_v45  ;;  %v1754_v41 = vld [vmem:[%s10728_s25 + $0x180] sm:$0xff] }
 0x1ad   : > { %1469 = vst.msk [vmem:[#allocation3 + $0x80] sm:$0xff] %vm601_vm0, %v8034_v55  ;;  %1659 = vst.msk [vmem:[#allocation3 + $0x48] sm:$0xff] %vm601_vm0, %v8034_v55  ;;  %v1383_v43 = vmax.f32 %v1365_v60, 0.0  ;;  %v1265_v49 = vadd.f32 %v6043_v61, %v1160_v46  ;;  %6141 = vmatprep.subr.mxu0 %v1758_v23  ;;  %v1740_v34 = vld [vmem:[%s10728_s25 + $0x110] sm:$0xff]  ;;  %v1738_v46 = vld [vmem:[%s10728_s25 + $0x100] sm:$0xff] }
 0x1ae   : > { %v6045_v2 = vpop.f32.mrf.mxu1  ;;  %v1477_v3 = vld [vmem:[#allocation2 + $0x40] sm:$0xff]  ;;  %6142 = vmatpush3.msra.mxu0 %v1742_v25  ;;  %v1609_v47 = vld [vmem:[#allocation2 + $0x91] sm:$0xff]  ;;  %v1771_v20 = vld [vmem:[%s10728_s25 + $0x208] sm:$0xff] }
 0x1af   : > { %v8061_v4 = vld [vmem:[#allocation2 + $0x41] sm:$0xff]  ;;  %1391 = vst.msk [vmem:[#allocation2 + $0x61] sm:$0xff] %vm601_vm0, %v1383_v43  ;;  %v6046_v8 = vadd.f32 %v6045_v2, %v6044_v57  ;;  %v1370_v9 = vadd.f32 %v1369_v62, %v1265_v49  ;;  %1496 = vrot.lane.b32.xlu0 %v1477_v3, %s7133_s1  ;;  %1406 = vst.msk [vmem:[#allocation3 + $0xa0] sm:$0xff] %vm601_vm0, %v1477_v3  ;;  %6143 = vmatprep.subr.mxu0 %v1757_v26  ;;  %v1776_v63 = vld [vmem:[%s10728_s25 + $0x230] sm:$0xff] }
 0x1b0   : > { %v8063_v5 = vld [vmem:[#allocation2 + $0x42] sm:$0xff]  ;;  %1434 = vrot.lane.b32.xlu1 %v8061_v4, %s7133_s1  ;;  %1596 = vst.msk [vmem:[#allocation3 + $0x68] sm:$0xff] %vm601_vm0, %v1477_v3  ;;  %1533 = vst.msk [vmem:[#allocation3 + $0x88] sm:$0xff] %vm601_vm0, %v8061_v4  ;;  %6144 = vmatpush3.msra.mxu0 %v1741_v30 }
 0x1b1   : > { %1470 = vst.msk [vmem:[#allocation3 + $0xa8] sm:$0xff] %vm601_vm0, %v8063_v5  ;;  %1660 = vst.msk [vmem:[#allocation3 + $0x70] sm:$0xff] %vm601_vm0, %v8063_v5  ;;  %v1270_v58 = vadd.f32 %v6046_v8, %v1165_v7  ;;  %v1384_v17 = vmax.f32 %v1370_v9, 0.0  ;;  %6145 = vmatprep.subr.mxu0 %v1756_v32  ;;  %v1775_v2 = vld [vmem:[%s10728_s25 + $0x228] sm:$0xff] }
 0x1b2   : > { %v1478_v51 = vld [vmem:[#allocation2 + $0x50] sm:$0xff]  ;;  %6146 = vmatpush3.msra.mxu0 %v1740_v34 }
 0x1b3   : > { %v8087_v13 = vld [vmem:[#allocation2 + $0x51] sm:$0xff]  ;;  %v1375_v22 = vadd.f32 %v8017_v38, %v1270_v58  ;;  %1392 = vst.msk [vmem:[#allocation2 + $0x71] sm:$0xff] %vm601_vm0, %v1384_v17  ;;  %1494 = vrot.lane.b32.xlu0 %v1476_v48, %s7133_s1  ;;  %1407 = vst.msk [vmem:[#allocation3 + $0xc8] sm:$0xff] %vm601_vm0, %v1478_v51  ;;  %v1739_v38 = vld [vmem:[%s10728_s25 + $0x108] sm:$0xff]  ;;  %6147 = vmatprep.subr.mxu0 %v1755_v35 }
 0x1b4   : > { %v8089_v21 = vld [vmem:[#allocation2 + $0x52] sm:$0xff]  ;;  %1432 = vrot.lane.b32.xlu1 %v8032_v54, %s7133_s1  ;;  %1597 = vst.msk [vmem:[#allocation3 + $0x90] sm:$0xff] %vm601_vm0, %v1478_v51  ;;  %1534 = vst.msk [vmem:[#allocation3 + $0xb0] sm:$0xff] %vm601_vm0, %v8087_v13  ;;  %6148 = vmatpush3.msra.mxu0 %v1739_v38 }
 0x1b5   : > { %1471 = vst.msk [vmem:[#allocation3 + $0xd0] sm:$0xff] %vm601_vm0, %v8089_v21  ;;  %1661 = vst.msk [vmem:[#allocation3 + $0x98] sm:$0xff] %vm601_vm0, %v8089_v21  ;;  %v1385_v24 = vmax.f32 %v1375_v22, 0.0  ;;  %6149 = vmatprep.subr.mxu0 %v1754_v41  ;;  %v1772_v58 = vld [vmem:[%s10728_s25 + $0x210] sm:$0xff]  ;;  %v1670_v41 = vld [vmem:[#allocation3 + $0x20] sm:$0xff] }
 0x1b6   : > { %v1479_v27 = vld [vmem:[#allocation2 + $0x60] sm:$0xff]  ;;  %6150 = vmatpush3.msra.mxu0 %v1738_v46 }
 0x1b7   : > { %v1416_v28 = vld [vmem:[#allocation2 + $0x61] sm:$0xff]  ;;  %1393 = vst.msk [vmem:[#allocation2 + $0x81] sm:$0xff] %vm601_vm0, %v1385_v24  ;;  %1500 = vrot.lane.b32.xlu0 %v1479_v27, %s7133_s1  ;;  %1408 = vst.msk [vmem:[#allocation3 + $0xf0] sm:$0xff] %vm601_vm0, %v1479_v27 }
 0x1b8   : > { %v1543_v29 = vld [vmem:[#allocation2 + $0x62] sm:$0xff]  ;;  %1438 = vrot.lane.b32.xlu1 %v1416_v28, %s7133_s1  ;;  %1598 = vst.msk [vmem:[#allocation3 + $0xb8] sm:$0xff] %vm601_vm0, %v1479_v27  ;;  %1535 = vst.msk [vmem:[#allocation3 + $0xd8] sm:$0xff] %vm601_vm0, %v1416_v28 }
 0x1b9   : > { %1472 = vst.msk [vmem:[#allocation3 + $0xf8] sm:$0xff] %vm601_vm0, %v1543_v29  ;;  %1662 = vst.msk [vmem:[#allocation3 + $0xc0] sm:$0xff] %vm601_vm0, %v1543_v29 }
 0x1ba   : > { %v1480_v36 = vld [vmem:[#allocation2 + $0x70] sm:$0xff] }
 0x1bb   : > { %v1417_v52 = vld [vmem:[#allocation2 + $0x71] sm:$0xff]  ;;  %1498 = vrot.lane.b32.xlu0 %v1478_v51, %s7133_s1  ;;  %1409 = vst.msk [vmem:[#allocation3 + $0x118] sm:$0xff] %vm601_vm0, %v1480_v36  ;;  %1599 = vst.msk [vmem:[#allocation3 + $0xe0] sm:$0xff] %vm601_vm0, %v1480_v36 }
 0x1bc   : > { %v1544_v53 = vld [vmem:[#allocation2 + $0x72] sm:$0xff]  ;;  %1436 = vrot.lane.b32.xlu1 %v8087_v13, %s7133_s1  ;;  %1536 = vst.msk [vmem:[#allocation3 + $0x100] sm:$0xff] %vm601_vm0, %v1417_v52 }
 0x1bd   : > { %1473 = vst.msk [vmem:[#allocation3 + $0x120] sm:$0xff] %vm601_vm0, %v1544_v53  ;;  %1663 = vst.msk [vmem:[#allocation3 + $0xe8] sm:$0xff] %vm601_vm0, %v1544_v53 }
 0x1be   : > { %v1481_v42 = vld [vmem:[#allocation2 + $0x80] sm:$0xff] }
 0x1bf   : > { %v1608_v44 = vld [vmem:[#allocation2 + $0x81] sm:$0xff]  ;;  %1618 = vrot.lane.b32.xlu0 %v7994_v31, %s7133_s1  ;;  %1600 = vst.msk [vmem:[#allocation3 + $0x108] sm:$0xff] %vm601_vm0, %v1481_v42  ;;  %v8181_v31 = vld [vmem:[#allocation3 + $0x138] sm:$0xff] }
 0x1c0   : > { %v1545_v40 = vld [vmem:[#allocation2 + $0x82] sm:$0xff]  ;;  %1554 = vrot.lane.b32.xlu1 %v7955_v6, %s7133_s1  ;;  %1537 = vst.msk [vmem:[#allocation3 + $0x128] sm:$0xff] %vm601_vm0, %v1608_v44  ;;  %v1593_v6 = vld [vmem:[#allocation2 + $0x90] sm:$0xff] }
 0x1c1   : > { %1664 = vst.msk [vmem:[#allocation3 + $0x110] sm:$0xff] %vm601_vm0, %v1545_v40  ;;  %1601 = vst.msk [vmem:[#allocation3 + $0x130] sm:$0xff] %vm601_vm0, %v1593_v6  ;;  %v1675_v6 = vld [vmem:[#allocation3 + $0x48] sm:$0xff] }
 0x1c3   : > { %1502 = vrot.lane.b32.xlu0 %v1480_v36, %s7133_s1 }
 0x1c4   : > { %1440 = vrot.lane.b32.xlu1 %v1417_v52, %s7133_s1 }
 0x1c7   : > { %1504 = vrot.lane.b32.xlu0 %v1481_v42, %s7133_s1 }
 0x1c8   : > { %1556 = vrot.lane.b32.xlu1 %v7996_v33, %s7133_s1  ;;  %v2603_v33 = vld [vmem:[#allocation2 + $0x92] sm:$0xff] }
 0x1c9   : > { %2611 = vst.msk [vmem:[#allocation3 + $0x138] sm:$0xff] %vm601_vm0, %v2603_v33  ;;  %v1680_v33 = vld [vmem:[#allocation3 + $0x70] sm:$0xff] }
 0x1cb   : > { %1620 = vrot.lane.b32.xlu0 %v8032_v54, %s7133_s1 }
 0x1cc   : > { %1558 = vrot.lane.b32.xlu1 %v8034_v55, %s7133_s1 }
 0x1cf   : > { %1622 = vrot.lane.b32.xlu0 %v8061_v4, %s7133_s1 }
 0x1d0   : > { %1560 = vrot.lane.b32.xlu1 %v8063_v5, %s7133_s1 }
 0x1d3   : > { %1624 = vrot.lane.b32.xlu0 %v8087_v13, %s7133_s1 }
 0x1d4   : > { %1562 = vrot.lane.b32.xlu1 %v8089_v21, %s7133_s1  ;;  %v1770_v21 = vld [vmem:[%s10728_s25 + $0x200] sm:$0xff] }
 0x1d7   : > { %1626 = vrot.lane.b32.xlu0 %v1416_v28, %s7133_s1 }
 0x1d8   : > { %1564 = vrot.lane.b32.xlu1 %v1543_v29, %s7133_s1 }
 0x1db   : > { %1628 = vrot.lane.b32.xlu0 %v1417_v52, %s7133_s1 }
 0x1dc   : > { %1566 = vrot.lane.b32.xlu1 %v1544_v53, %s7133_s1 }
 0x1df   : > { %1630 = vrot.lane.b32.xlu0 %v1608_v44, %s7133_s1 }
 0x1e0   : > { %1568 = vrot.lane.b32.xlu1 %v1545_v40, %s7133_s1 }
 0x1e3   : > { %1632 = vrot.lane.b32.xlu0 %v1609_v47, %s7133_s1 }
 0x219   : > { %v1493_v48 = vpop.permute.xlu0 %1492 }
 0x21a   : > { %v1431_v54 = vpop.permute.xlu1 %1430  ;;  %1515 = vst.msk [vmem:[#allocation3 + $0x30] sm:$0xff] %vm702_vm3, %v1493_v48 }
 0x21b   : > { %1452 = vst.msk [vmem:[#allocation3 + $0x50] sm:$0xff] %vm702_vm3, %v1431_v54 }
 0x21d   : > { %v1491_v55 = vpop.permute.xlu0 %1490 }
 0x21e   : > { %v1429_v59 = vpop.permute.xlu1 %1428  ;;  %1514 = vst.msk [vmem:[#allocation3 + $0x8] sm:$0xff] %vm702_vm3, %v1491_v55 }
 0x21f   : > { %1451 = vst.msk [vmem:[#allocation3 + $0x28] sm:$0xff] %vm702_vm3, %v1429_v59  ;;  %v1685_v59 = vld [vmem:[#allocation3 + $0x98] sm:$0xff] }
 0x221   : > { %v1497_v60 = vpop.permute.xlu0 %1496  ;;  %v1672_v1 = vld [vmem:[#allocation3 + $0x30] sm:$0xff] }
 0x222   : > { %v1435_v61 = vpop.permute.xlu1 %1434  ;;  %v1676_v56 = vld [vmem:[#allocation3 + $0x50] sm:$0xff]  ;;  %1517 = vst.msk [vmem:[#allocation3 + $0x80] sm:$0xff] %vm702_vm3, %v1497_v60  ;;  %v1690_v60 = vld [vmem:[#allocation3 + $0xc0] sm:$0xff] }
 0x223   : > { %1454 = vst.msk [vmem:[#allocation3 + $0xa0] sm:$0xff] %vm702_vm3, %v1435_v61 }
 0x224   : > { %2142 = vst.msk [vmem:[#allocation3 + $0x50] sm:$0xff] %vm601_vm0, %v7369_v12 }
 0x225   : > { %v1495_v57 = vpop.permute.xlu0 %1494  ;;  %v1667_v43 = vld [vmem:[#allocation3 + $0x8] sm:$0xff] }
 0x226   : > { %v1433_v62 = vpop.permute.xlu1 %1432  ;;  %v1671_v49 = vld [vmem:[#allocation3 + $0x28] sm:$0xff]  ;;  %1516 = vst.msk [vmem:[#allocation3 + $0x58] sm:$0xff] %vm702_vm3, %v1495_v57  ;;  %1873 = vmatprep.mubr.f32.mxu1 %v1667_v43 }
 0x227   : > { %1453 = vst.msk [vmem:[#allocation3 + $0x78] sm:$0xff] %vm702_vm3, %v1433_v62  ;;  %1874 = vmatmul.mubr.f32.vlgmr.msra.gmra.mxu1 %v7910_v39  ;;  %v1774_v39 = vld [vmem:[%s10728_s25 + $0x220] sm:$0xff]  ;;  %v1695_v43 = vld [vmem:[#allocation3 + $0xe8] sm:$0xff] }
 0x228   : > { %2141 = vst.msk [vmem:[#allocation3 + $0x28] sm:$0xff] %vm601_vm0, %v7365_v10  ;;  %1878 = vmatprep.mubr.f32.mxu1 %v1672_v1  ;;  %6812 = vmatpush3.msra.mxu1 %v8022_v37  ;;  %v1773_v37 = vld [vmem:[%s10728_s25 + $0x218] sm:$0xff] }
 0x229   : > { %v1501_v3 = vpop.permute.xlu0 %1500  ;;  %6813 = vmatprep.subr.mxu1 %v1776_v63  ;;  %v1682_v17 = vld [vmem:[#allocation3 + $0x80] sm:$0xff] }
 0x22a   : > { %v1439_v4 = vpop.permute.xlu1 %1438  ;;  %v1686_v5 = vld [vmem:[#allocation3 + $0xa0] sm:$0xff]  ;;  %1519 = vst.msk [vmem:[#allocation3 + $0xd0] sm:$0xff] %vm702_vm3, %v1501_v3  ;;  %6814 = vmatpush3.msra.mxu1 %v1776_v63 }
 0x22b   : > { %1456 = vst.msk [vmem:[#allocation3 + $0xf0] sm:$0xff] %vm702_vm3, %v1439_v4  ;;  %1879 = vmatmul.mubr.f32.gmra.mxu1 %v1671_v49  ;;  %6815 = vmatprep.subr.mxu1 %v1775_v2  ;;  %v1700_v49 = vld [vmem:[#allocation3 + $0x110] sm:$0xff] }
 0x22c   : > { %2144 = vst.msk [vmem:[#allocation3 + $0xa0] sm:$0xff] %vm601_vm0, %v7382_v15  ;;  %6816 = vmatpush3.msra.mxu1 %v1775_v2 }
 0x22d   : > { %v1499_v7 = vpop.permute.xlu0 %1498  ;;  %v1677_v9 = vld [vmem:[#allocation3 + $0x58] sm:$0xff]  ;;  %6817 = vmatprep.subr.mxu1 %v1774_v39 }
 0x22e   : > { %v1437_v8 = vpop.permute.xlu1 %1436  ;;  %v1681_v50 = vld [vmem:[#allocation3 + $0x78] sm:$0xff]  ;;  %1518 = vst.msk [vmem:[#allocation3 + $0xa8] sm:$0xff] %vm702_vm3, %v1499_v7  ;;  %1883 = vmatprep.mubr.f32.mxu1 %v1677_v9  ;;  %6818 = vmatpush3.msra.mxu1 %v1774_v39 }
 0x22f   : > { %1455 = vst.msk [vmem:[#allocation3 + $0xc8] sm:$0xff] %vm702_vm3, %v1437_v8  ;;  %1884 = vmatmul.mubr.f32.gmra.mxu1 %v1676_v56  ;;  %6819 = vmatprep.subr.mxu1 %v1773_v37 }
 0x230   : > { %2143 = vst.msk [vmem:[#allocation3 + $0x78] sm:$0xff] %vm601_vm0, %v7380_v14  ;;  %1888 = vmatprep.mubr.f32.mxu1 %v1682_v17  ;;  %6820 = vmatpush3.msra.mxu1 %v1773_v37  ;;  %v2208_v17 = vld [vmem:[%s10669_s13 + $0x60] sm:$0xff] }
 0x231   : > { %v1619_v45 = vpop.permute.xlu0 %1618  ;;  %6821 = vmatprep.subr.mxu1 %v1772_v58  ;;  %v1692_v26 = vld [vmem:[#allocation3 + $0xd0] sm:$0xff] }
 0x232   : > { %v1555_v51 = vpop.permute.xlu1 %1554  ;;  %v1696_v13 = vld [vmem:[#allocation3 + $0xf0] sm:$0xff]  ;;  %1642 = vst.msk [vmem:[#allocation3 + $0x18] sm:$0xff] %vm702_vm3, %v1619_v45  ;;  %6822 = vmatpush3.msra.mxu1 %v1772_v58  ;;  %v2209_v58 = vld [vmem:[%s10669_s13 + $0x68] sm:$0xff] }
 0x233   : > { %1578 = vst.msk [vmem:[#allocation3 + $0x10] sm:$0xff] %vm702_vm3, %v1555_v51  ;;  %1889 = vmatmul.mubr.f32.gmra.mxu1 %v1681_v50  ;;  %6823 = vmatprep.subr.mxu1 %v1771_v20  ;;  %v2211_v50 = vld [vmem:[%s10669_s13 + $0x78] sm:$0xff]  ;;  %v2206_v45 = vld [vmem:[%s10669_s13 + $0x50] sm:$0xff]  ;;  %v2205_v51 = vld [vmem:[%s10669_s13 + $0x48] sm:$0xff] }
 0x234   : > { %2146 = vst.msk [vmem:[#allocation3 + $0xf0] sm:$0xff] %vm601_vm0, %v7392_v18  ;;  %6824 = vmatpush3.msra.mxu1 %v1771_v20  ;;  %6839 = vmatprep.subr.mxu0 %v2211_v50  ;;  %v2207_v20 = vld [vmem:[%s10669_s13 + $0x58] sm:$0xff] }
 0x235   : > { %v1503_v22 = vpop.permute.xlu0 %1502  ;;  %v1687_v24 = vld [vmem:[#allocation3 + $0xa8] sm:$0xff]  ;;  %6825 = vmatprep.subr.mxu1 %v1770_v21 }
 0x236   : > { %v1441_v23 = vpop.permute.xlu1 %1440  ;;  %v1691_v25 = vld [vmem:[#allocation3 + $0xc8] sm:$0xff]  ;;  %1520 = vst.msk [vmem:[#allocation3 + $0xf8] sm:$0xff] %vm702_vm3, %v1503_v22  ;;  %1893 = vmatprep.mubr.f32.mxu1 %v1687_v24  ;;  %6826 = vmatpush3.msra.mxu1 %v1770_v21  ;;  %v2203_v21 = vld [vmem:[%s10669_s13 + $0x38] sm:$0xff]  ;;  %v2202_v22 = vld [vmem:[%s10669_s13 + $0x30] sm:$0xff] }
 0x237   : > { %1457 = vst.msk [vmem:[#allocation3 + $0x118] sm:$0xff] %vm702_vm3, %v1441_v23  ;;  %1894 = vmatmul.mubr.f32.gmra.mxu1 %v1686_v5  ;;  %v2201_v23 = vld [vmem:[%s10669_s13 + $0x28] sm:$0xff] }
 0x238   : > { %2145 = vst.msk [vmem:[#allocation3 + $0xc8] sm:$0xff] %vm601_vm0, %v7384_v16  ;;  %1898 = vmatprep.mubr.f32.mxu1 %v1692_v26 }
 0x239   : > { %v1505_v27 = vpop.permute.xlu0 %1504  ;;  %v1669_v29 = vld [vmem:[#allocation3 + $0x18] sm:$0xff] }
 0x23a   : > { %v1557_v28 = vpop.permute.xlu1 %1556  ;;  %v1668_v30 = vld [vmem:[#allocation3 + $0x10] sm:$0xff]  ;;  %1521 = vst.msk [vmem:[#allocation3 + $0x120] sm:$0xff] %vm702_vm3, %v1505_v27  ;;  %1978 = vmatprep.mubr.f32.mxu0 %v1669_v29 }
 0x23b   : > { %1579 = vst.msk [vmem:[#allocation3 + $0x38] sm:$0xff] %vm702_vm3, %v1557_v28  ;;  %1899 = vmatmul.mubr.f32.gmra.mxu1 %v1691_v25  ;;  %1979 = vmatmul.mubr.f32.vlgmr.msra.gmra.mxu0 %v1668_v30 }
 0x23c   : > { %6840 = vmatpush3.msra.mxu0 %v2211_v50 }
 0x23d   : > { %v1621_v32 = vpop.permute.xlu0 %1620  ;;  %v1697_v36 = vld [vmem:[#allocation3 + $0xf8] sm:$0xff] }
 0x23e   : > { %v1559_v34 = vpop.permute.xlu1 %1558  ;;  %v1701_v52 = vld [vmem:[#allocation3 + $0x118] sm:$0xff]  ;;  %1643 = vst.msk [vmem:[#allocation3 + $0x40] sm:$0xff] %vm702_vm3, %v1621_v32  ;;  %1903 = vmatprep.mubr.f32.mxu1 %v1697_v36 }
 0x23f   : > { %1580 = vst.msk [vmem:[#allocation3 + $0x60] sm:$0xff] %vm702_vm3, %v1559_v34  ;;  %1904 = vmatmul.mubr.f32.gmra.mxu1 %v1696_v13  ;;  %v2204_v13 = vld [vmem:[%s10669_s13 + $0x40] sm:$0xff] }
 0x240   : > { %2147 = vst.msk [vmem:[#allocation3 + $0x118] sm:$0xff] %vm601_vm0, %v7394_v19 }
 0x241   : > { %v1623_v53 = vpop.permute.xlu0 %1622  ;;  %v1702_v38 = vld [vmem:[#allocation3 + $0x120] sm:$0xff] }
 0x242   : > { %v1561_v35 = vpop.permute.xlu1 %1560  ;;  %1644 = vst.msk [vmem:[#allocation3 + $0x68] sm:$0xff] %vm702_vm3, %v1623_v53  ;;  %1908 = vmatprep.mubr.f32.mxu1 %v1702_v38  ;;  %v1673_v46 = vld [vmem:[#allocation3 + $0x38] sm:$0xff] }
 0x243   : > { %1581 = vst.msk [vmem:[#allocation3 + $0x88] sm:$0xff] %vm702_vm3, %v1561_v35  ;;  %1909 = vmatmul.mubr.f32.gmra.mxu1 %v1701_v52 }
 0x244   : > { %6827 = vmatprep.mubr.msk.f32.mxu1 %vm601_vm0, %v1670_v41 }
 0x245   : > { %v1625_v42 = vpop.permute.xlu0 %1624  ;;  %v1674_v40 = vld [vmem:[#allocation3 + $0x40] sm:$0xff] }
 0x246   : > { %v1563_v44 = vpop.permute.xlu1 %1562  ;;  %1645 = vst.msk [vmem:[#allocation3 + $0x90] sm:$0xff] %vm702_vm3, %v1625_v42  ;;  %1983 = vmatprep.mubr.f32.mxu0 %v1674_v40  ;;  %v1678_v55 = vld [vmem:[#allocation3 + $0x60] sm:$0xff] }
 0x247   : > { %1582 = vst.msk [vmem:[#allocation3 + $0xb0] sm:$0xff] %vm702_vm3, %v1563_v44  ;;  %1984 = vmatmul.mubr.f32.gmra.mxu0 %v1673_v46  ;;  %6828 = vmatmul.mubr.msk.f32.vlgmr.msra.gmra.mxu1 %vm601_vm0, %v1675_v6  ;;  %v8306_v40 = vld [vmem:[%s10730_s4] ss:$0 sm:$0xff] }
 0x248   : > { %6830 = vmatprep.mubr.msk.f32.mxu1 %vm601_vm0, %v1680_v33  ;;  %v2200_v6 = vld [vmem:[%s10669_s13 + $0x20] sm:$0xff]  ;;  %v2199_v33 = vld [vmem:[%s10669_s13 + $0x18] sm:$0xff] }
 0x249   : > { %v1627_v47 = vpop.permute.xlu0 %1626  ;;  %v1679_v54 = vld [vmem:[#allocation3 + $0x68] sm:$0xff] }
 0x24a   : > { %v1565_v48 = vpop.permute.xlu1 %1564  ;;  %1646 = vst.msk [vmem:[#allocation3 + $0xb8] sm:$0xff] %vm702_vm3, %v1627_v47  ;;  %1988 = vmatprep.mubr.f32.mxu0 %v1679_v54  ;;  %v1683_v62 = vld [vmem:[#allocation3 + $0x88] sm:$0xff] }
 0x24b   : > { %1583 = vst.msk [vmem:[#allocation3 + $0xd8] sm:$0xff] %vm702_vm3, %v1565_v48  ;;  %1989 = vmatmul.mubr.f32.gmra.mxu0 %v1678_v55  ;;  %6831 = vmatmul.mubr.msk.f32.gmra.mxu1 %vm601_vm0, %v1685_v59 }
 0x24c   : > { %6833 = vmatprep.mubr.msk.f32.mxu1 %vm601_vm0, %v1690_v60 }
 0x24d   : > { %v1629_v61 = vpop.permute.xlu0 %1628  ;;  %v1684_v57 = vld [vmem:[#allocation3 + $0x90] sm:$0xff] }
 0x24e   : > { %v1567_v56 = vpop.permute.xlu1 %1566  ;;  %1647 = vst.msk [vmem:[#allocation3 + $0xe0] sm:$0xff] %vm702_vm3, %v1629_v61  ;;  %1993 = vmatprep.mubr.f32.mxu0 %v1684_v57  ;;  %v1688_v3 = vld [vmem:[#allocation3 + $0xb0] sm:$0xff] }
 0x24f   : > { %1584 = vst.msk [vmem:[#allocation3 + $0x100] sm:$0xff] %vm702_vm3, %v1567_v56  ;;  %1994 = vmatmul.mubr.f32.gmra.mxu0 %v1683_v62  ;;  %6834 = vmatmul.mubr.msk.f32.gmra.mxu1 %vm601_vm0, %v1695_v43  ;;  %v2198_v61 = vld [vmem:[%s10669_s13 + $0x10] sm:$0xff]  ;;  %v2197_v56 = vld [vmem:[%s10669_s13 + $0x8] sm:$0xff] }
 0x250   : > { %6836 = vmatprep.mubr.msk.f32.mxu1 %vm601_vm0, %v1700_v49 }
 0x251   : > { %v1631_v63 = vpop.permute.xlu0 %1630  ;;  %v1689_v2 = vld [vmem:[#allocation3 + $0xb8] sm:$0xff] }
 0x252   : > { %v1569_v1 = vpop.permute.xlu1 %1568  ;;  %1648 = vst.msk [vmem:[#allocation3 + $0x108] sm:$0xff] %vm702_vm3, %v1631_v63  ;;  %1998 = vmatprep.mubr.f32.mxu0 %v1689_v2  ;;  %v1693_v39 = vld [vmem:[#allocation3 + $0xd8] sm:$0xff] }
 0x253   : > { %1585 = vst.msk [vmem:[#allocation3 + $0x128] sm:$0xff] %vm702_vm3, %v1569_v1  ;;  %1999 = vmatmul.mubr.f32.gmra.mxu0 %v1688_v3  ;;  %6837 = vmatmul.mubr.msk.f32.gmra.mxu1 %vm601_vm0, %v8181_v31  ;;  %v2210_v31 = vld [vmem:[%s10669_s13 + $0x70] sm:$0xff] }
 0x254   : > { %6841 = vmatprep.subr.mxu0 %v2210_v31 }
 0x255   : > { %v1633_v4 = vpop.permute.xlu0 %1632  ;;  %v1694_v5 = vld [vmem:[#allocation3 + $0xe0] sm:$0xff]  ;;  %6842 = vmatpush3.msra.mxu0 %v2210_v31 }
 0x256   : > { %1649 = vst.msk [vmem:[#allocation3 + $0x130] sm:$0xff] %vm702_vm3, %v1633_v4  ;;  %2003 = vmatprep.mubr.f32.mxu0 %v1694_v5  ;;  %v1698_v7 = vld [vmem:[#allocation3 + $0x100] sm:$0xff]  ;;  %6843 = vmatprep.subr.mxu0 %v2209_v58 }
 0x257   : > { %2004 = vmatmul.mubr.f32.gmra.mxu0 %v1693_v39  ;;  %v2196_v4 = vld [vmem:[%s10669_s13] sm:$0xff] }
 0x258   : > { %6844 = vmatpush3.msra.mxu0 %v2209_v58 }
 0x259   : > { %v1699_v37 = vld [vmem:[#allocation3 + $0x108] sm:$0xff]  ;;  %6845 = vmatprep.subr.mxu0 %v2208_v17 }
 0x25a   : > { %2008 = vmatprep.mubr.f32.mxu0 %v1699_v37  ;;  %v1703_v9 = vld [vmem:[#allocation3 + $0x128] sm:$0xff]  ;;  %6846 = vmatpush3.msra.mxu0 %v2208_v17 }
 0x25b   : > { %2009 = vmatmul.mubr.f32.gmra.mxu0 %v1698_v7  ;;  %6847 = vmatprep.subr.mxu0 %v2207_v20 }
 0x25c   : > { %6848 = vmatpush3.msra.mxu0 %v2207_v20 }
 0x25d   : > { %v1704_v8 = vld [vmem:[#allocation3 + $0x130] sm:$0xff]  ;;  %6849 = vmatprep.subr.mxu0 %v2206_v45 }
 0x25e   : > { %2013 = vmatprep.mubr.f32.mxu0 %v1704_v8  ;;  %6850 = vmatpush3.msra.mxu0 %v2206_v45 }
 0x25f   : > { %2014 = vmatmul.mubr.f32.gmra.mxu0 %v1703_v9  ;;  %6851 = vmatprep.subr.mxu0 %v2205_v51 }
 0x260   : > { %6852 = vmatpush3.msra.mxu0 %v2205_v51 }
 0x261   : > { %6853 = vmatprep.subr.mxu0 %v2204_v13 }
 0x262   : > { %6854 = vmatpush3.msra.mxu0 %v2204_v13 }
 0x263   : > { %6855 = vmatprep.subr.mxu0 %v2203_v21 }
 0x264   : > { %6856 = vmatpush3.msra.mxu0 %v2203_v21 }
 0x265   : > { %6857 = vmatprep.subr.mxu0 %v2202_v22 }
 0x266   : > { %6858 = vmatpush3.msra.mxu0 %v2202_v22 }
 0x267   : > { %6859 = vmatprep.subr.mxu0 %v2201_v23 }
 0x268   : > { %6860 = vmatpush3.msra.mxu0 %v2201_v23 }
 0x269   : > { %6861 = vmatprep.subr.mxu0 %v2200_v6 }
 0x26a   : > { %6862 = vmatpush3.msra.mxu0 %v2200_v6 }
 0x26b   : > { %6863 = vmatprep.subr.mxu0 %v2199_v33 }
 0x26c   : > { %6864 = vmatpush3.msra.mxu0 %v2199_v33 }
 0x26d   : > { %6865 = vmatprep.subr.mxu0 %v2198_v61 }
 0x26e   : > { %6866 = vmatpush3.msra.mxu0 %v2198_v61 }
 0x26f   : > { %6867 = vmatprep.subr.mxu0 %v2197_v56 }
 0x270   : > { %6868 = vmatpush3.msra.mxu0 %v2197_v56 }
 0x271   : > { %6869 = vmatprep.subr.mxu0 %v2196_v4 }
 0x272   : > { %6870 = vmatpush3.msra.mxu0 %v2196_v4 }
 0x2e7   : > { %v6095_v24 = vpop.f32.mrf.mxu1 }
 0x2e9   : > { %v6096_v25 = vpop.f32.mrf.mxu1 }
 0x2ea   : > { %v6097_v44 = vadd.f32 %v6096_v25, %v6095_v24 }
 0x2eb   : > { %v6098_v26 = vpop.f32.mrf.mxu1 }
 0x2ec   : > { %v1876_v54 = vadd.f32 %v6097_v44, %v8306_v40 }
 0x2ed   : > { %v6099_v27 = vpop.f32.mrf.mxu1 }
 0x2ee   : > { %v6100_v55 = vadd.f32 %v6099_v27, %v6098_v26 }
 0x2ef   : > { %v6101_v28 = vpop.f32.mrf.mxu1 }
 0x2f0   : > { %v1881_v63 = vadd.f32 %v6100_v55, %v8306_v40 }
 0x2f1   : > { %v6102_v29 = vpop.f32.mrf.mxu1 }
 0x2f2   : > { %v6103_v62 = vadd.f32 %v6102_v29, %v6101_v28 }
 0x2f3   : > { %v6104_v30 = vpop.f32.mrf.mxu1 }
 0x2f4   : > { %v1886_v37 = vadd.f32 %v6103_v62, %v8306_v40 }
 0x2f5   : > { %v6105_v32 = vpop.f32.mrf.mxu1 }
 0x2f6   : > { %v6106_v9 = vadd.f32 %v6105_v32, %v6104_v30 }
 0x2f7   : > { %v6107_v34 = vpop.f32.mrf.mxu1 }
 0x2f8   : > { %v1891_v22 = vadd.f32 %v6106_v9, %v8306_v40 }
 0x2f9   : > { %v6108_v36 = vpop.f32.mrf.mxu1 }
 0x2fa   : > { %v6109_v51 = vadd.f32 %v6108_v36, %v6107_v34 }
 0x2fb   : > { %v8295_v52 = vpop.f32.mrf.mxu1  ;;  %v6151_v53 = vpop.f32.mrf.mxu0 }
 0x2fc   : > { %v1896_v29 = vadd.f32 %v6109_v51, %v8306_v40 }
 0x2fd   : > { %v8297_v35 = vpop.f32.mrf.mxu1  ;;  %v6152_v41 = vpop.f32.mrf.mxu0 }
 0x2fe   : > { %v6153_v47 = vadd.f32 %v6152_v41, %v6151_v53  ;;  %v6112_v34 = vadd.f32 %v8297_v35, %v8295_v52 }
 0x2ff   : > { %v8299_v38 = vpop.f32.mrf.mxu1 }
 0x300   : > { %v1981_v57 = vadd.f32 %v6153_v47, %v1876_v54 }
 0x301   : > { %v8301_v42 = vpop.f32.mrf.mxu1 }
 0x302   : > { %v6115_v47 = vadd.f32 %v8301_v42, %v8299_v38 }
 0x303   : > { %v8308_v46 = vpop.f32.mrf.mxu1 }
 0x305   : > { %v8316_v48 = vpop.f32.mrf.mxu1 }
 0x306   : > { %v6118_v38 = vadd.f32 %v8316_v48, %v8308_v46 }
 0x307   : > { %v6154_v59 = vpop.f32.mrf.mxu0  ;;  %v6829_v60 = vpop.f32.mrf.mxu1 }
 0x309   : > { %v6155_v43 = vpop.f32.mrf.mxu0  ;;  %v2085_v49 = vpop.f32.mrf.mxu1 }
 0x30a   : > { %v6156_v1 = vadd.f32 %v6155_v43, %v6154_v59  ;;  %v2086_v2 = vadd.f32 %v2085_v49, %v1981_v57  ;;  %v1901_v59 = vadd.f32 %v6112_v34, %v8306_v40  ;;  %v1906_v43 = vadd.f32 %v6115_v47, %v8306_v40  ;;  %v8389_v34 = vld [vmem:[#allocation2 + $0x1] sm:$0xff] }
 0x30b   : > { %v6157_v3 = vpop.f32.mrf.mxu0  ;;  %v6832_v7 = vpop.f32.mrf.mxu1  ;;  %v2680_v47 = vld [vmem:[%s10731_s5 + $0xe0] sm:$0xff] }
 0x30c   : > { %v1986_v5 = vadd.f32 %v6156_v1, %v1881_v63  ;;  %v2124_v39 = vadd.f32 %v2086_v2, %v7367_v11 }
 0x30d   : > { %v6158_v8 = vpop.f32.mrf.mxu0  ;;  %v2095_v13 = vpop.f32.mrf.mxu1 }
 0x30e   : > { %v2091_v50 = vadd.f32 %v6829_v60, %v1986_v5  ;;  %v2132_v31 = vmax.f32 %v2124_v39, 0.0  ;;  %v6159_v58 = vadd.f32 %v6158_v8, %v6157_v3 }
 0x30f   : > { %v6160_v17 = vpop.f32.mrf.mxu0  ;;  %v6835_v30 = vpop.f32.mrf.mxu1 }
 0x310   : > { %v1991_v20 = vadd.f32 %v6159_v58, %v1886_v37  ;;  %2156 = vrot.lane.b32.xlu0 %v2132_v31, %s7133_s1  ;;  %v2125_v45 = vadd.f32 %v2091_v50, %v7365_v10  ;;  %v1911_v37 = vadd.f32 %v6118_v38, %v8306_v40  ;;  %v2674_v38 = vld [vmem:[%s10731_s5 + $0xb0] sm:$0xff] }
 0x311   : > { %v6161_v21 = vpop.f32.mrf.mxu0  ;;  %v2105_v54 = vpop.f32.mrf.mxu1 }
 0x312   : > { %v2096_v23 = vadd.f32 %v2095_v13, %v1991_v20  ;;  %v6162_v24 = vadd.f32 %v6161_v21, %v6160_v17  ;;  %v2133_v25 = vmax.f32 %v2125_v45, 0.0 }
 0x313   : > { %v6163_v26 = vpop.f32.mrf.mxu0  ;;  %v6838_v35 = vpop.f32.mrf.mxu1 }
 0x314   : > { %v2126_v27 = vadd.f32 %v2096_v23, %v7369_v12  ;;  %v1996_v28 = vadd.f32 %v6162_v24, %v1891_v22  ;;  %2158 = vrot.lane.b32.xlu1 %v2133_v25, %s7133_s1 }
 0x315   : > { %v6164_v32 = vpop.f32.mrf.mxu0  ;;  %v2115_v3 = vpop.f32.mrf.mxu1 }
 0x316   : > { %v2134_v36 = vmax.f32 %v2126_v27, 0.0  ;;  %v2101_v53 = vadd.f32 %v6832_v7, %v1996_v28  ;;  %v6165_v41 = vadd.f32 %v6164_v32, %v6163_v26 }
 0x317   : > { %v6166_v44 = vpop.f32.mrf.mxu0 }
 0x318   : > { %v2001_v6 = vadd.f32 %v6165_v41, %v1896_v29  ;;  %2160 = vrot.lane.b32.xlu0 %v2134_v36, %s7133_s1  ;;  %v2127_v33 = vadd.f32 %v2101_v53, %v7380_v14  ;;  %v2683_v36 = vld [vmem:[%s10731_s5 + $0xf8] sm:$0xff]  ;;  %v2682_v41 = vld [vmem:[%s10731_s5 + $0xf0] sm:$0xff] }
 0x319   : > { %v6167_v55 = vpop.f32.mrf.mxu0  ;;  %v2667_v53 = vld [vmem:[%s10731_s5 + $0x78] sm:$0xff]  ;;  %6215 = vmatprep.subr.mxu1 %v2683_v36  ;;  %v2697_v36 = vld [vmem:[%s10731_s5 + $0x168] sm:$0xff] }
 0x31a   : > { %v2106_v60 = vadd.f32 %v2105_v54, %v2001_v6  ;;  %v6168_v61 = vadd.f32 %v6167_v55, %v6166_v44  ;;  %v2135_v56 = vmax.f32 %v2127_v33, 0.0  ;;  %v2666_v44 = vld [vmem:[%s10731_s5 + $0x70] sm:$0xff]  ;;  %6216 = vmatpush3.msra.mxu1 %v2667_v53  ;;  %v2681_v6 = vld [vmem:[%s10731_s5 + $0xe8] sm:$0xff]  ;;  %v2664_v54 = vld [vmem:[%s10731_s5 + $0x60] sm:$0xff] }
 0x31b   : > { %v6169_v52 = vpop.f32.mrf.mxu0  ;;  %6217 = vmatprep.subr.mxu1 %v2682_v41  ;;  %v2665_v33 = vld [vmem:[%s10731_s5 + $0x68] sm:$0xff]  ;;  %v8417_v55 = vld [vmem:[#allocation2] sm:$0xff] }
 0x31c   : > { %v2006_v57 = vadd.f32 %v6168_v61, %v1901_v59  ;;  %2162 = vrot.lane.b32.xlu1 %v2135_v56, %s7133_s1  ;;  %v2128_v62 = vadd.f32 %v2106_v60, %v7382_v15  ;;  %6218 = vmatpush3.msra.mxu1 %v2666_v44  ;;  %v2679_v59 = vld [vmem:[%s10731_s5 + $0xd8] sm:$0xff]  ;;  %v2678_v61 = vld [vmem:[%s10731_s5 + $0xd0] sm:$0xff]  ;;  %v2653_v53 = vld [vmem:[%s10731_s5 + $0x8] sm:$0xff] }
 0x31d   : > { %v6170_v49 = vpop.f32.mrf.mxu0  ;;  %6219 = vmatprep.subr.mxu1 %v2681_v6  ;;  %v2663_v60 = vld [vmem:[%s10731_s5 + $0x58] sm:$0xff]  ;;  %v2662_v56 = vld [vmem:[%s10731_s5 + $0x50] sm:$0xff]  ;;  %v2712_v41 = vld [vmem:[%s10731_s5 + $0x1e0] sm:$0xff] }
 0x31e   : > { %v2111_v42 = vadd.f32 %v6835_v30, %v2006_v57  ;;  %v6171_v63 = vadd.f32 %v6170_v49, %v6169_v52  ;;  %v2136_v1 = vmax.f32 %v2128_v62, 0.0  ;;  %6220 = vmatpush3.msra.mxu1 %v2665_v33  ;;  %v2677_v52 = vld [vmem:[%s10731_s5 + $0xc8] sm:$0xff]  ;;  %v2676_v57 = vld [vmem:[%s10731_s5 + $0xc0] sm:$0xff]  ;;  %v2659_v49 = vld [vmem:[%s10731_s5 + $0x38] sm:$0xff] }
 0x31f   : > { %v6172_v2 = vpop.f32.mrf.mxu0  ;;  %6221 = vmatprep.subr.mxu1 %v2680_v47  ;;  %v2660_v62 = vld [vmem:[%s10731_s5 + $0x40] sm:$0xff] }
 0x320   : > { %2164 = vrot.lane.b32.xlu0 %v2136_v1, %s7133_s1  ;;  %v2011_v4 = vadd.f32 %v6171_v63, %v1906_v43  ;;  %v2129_v5 = vadd.f32 %v2111_v42, %v7384_v16  ;;  %6222 = vmatpush3.msra.mxu1 %v2664_v54  ;;  %v2675_v43 = vld [vmem:[%s10731_s5 + $0xb8] sm:$0xff]  ;;  %v8458_v63 = vld [vmem:[%s10670_s14] ss:$0 sm:$0xff] }
 0x321   : > { %v6173_v39 = vpop.f32.mrf.mxu0  ;;  %6223 = vmatprep.subr.mxu1 %v2679_v59  ;;  %v2668_v6 = vld [vmem:[%s10731_s5 + $0x80] sm:$0xff] }
 0x322   : > { %v6174_v7 = vadd.f32 %v6173_v39, %v6172_v2  ;;  %v2116_v8 = vadd.f32 %v2115_v3, %v2011_v4  ;;  %v2137_v9 = vmax.f32 %v2129_v5, 0.0  ;;  %6224 = vmatpush3.msra.mxu1 %v2663_v60  ;;  %v2658_v2 = vld [vmem:[%s10731_s5 + $0x30] sm:$0xff]  ;;  %v2673_v3 = vld [vmem:[%s10731_s5 + $0xa8] sm:$0xff]  ;;  %v2672_v39 = vld [vmem:[%s10731_s5 + $0xa0] sm:$0xff] }
 0x323   : > { %6225 = vmatprep.subr.mxu1 %v2678_v61  ;;  %v2657_v4 = vld [vmem:[%s10731_s5 + $0x28] sm:$0xff]  ;;  %v2696_v33 = vld [vmem:[%s10731_s5 + $0x160] sm:$0xff] }
 0x324   : > { %v2016_v50 = vadd.f32 %v6174_v7, %v1911_v37  ;;  %v2130_v31 = vadd.f32 %v2116_v8, %v7392_v18  ;;  %2166 = vrot.lane.b32.xlu1 %v2137_v9, %s7133_s1  ;;  %6226 = vmatpush3.msra.mxu1 %v2662_v56  ;;  %v2404_v9 = vld [vmem:[#allocation2 + $0x2] sm:$0xff] }
 0x325   : > { %6227 = vmatprep.subr.mxu1 %v2677_v52  ;;  %2412 = vst.msk [vmem:[#allocation3 + $0x8] sm:$0xff] %vm601_vm0, %v2404_v9 }
 0x326   : > { %v2121_v46 = vadd.f32 %v6838_v35, %v2016_v50  ;;  %v2138_v48 = vmax.f32 %v2130_v31, 0.0  ;;  %v2661_v35 = vld [vmem:[%s10731_s5 + $0x48] sm:$0xff]  ;;  %v2656_v50 = vld [vmem:[%s10731_s5 + $0x20] sm:$0xff]  ;;  %v2715_v31 = vld [vmem:[%s10731_s5 + $0x1f8] sm:$0xff] }
 0x327   : > { %6228 = vmatpush3.msra.mxu1 %v2661_v35  ;;  %6271 = vmatprep.subr.mxu0 %v2715_v31  ;;  %v2711_v35 = vld [vmem:[%s10731_s5 + $0x1d8] sm:$0xff]  ;;  %v2708_v31 = vld [vmem:[%s10731_s5 + $0x1c0] sm:$0xff] }
 0x328   : > { %2168 = vrot.lane.b32.xlu0 %v2138_v48, %s7133_s1  ;;  %v2131_v58 = vadd.f32 %v2121_v46, %v7394_v19  ;;  %6229 = vmatprep.subr.mxu1 %v2676_v57  ;;  %v2671_v46 = vld [vmem:[%s10731_s5 + $0x98] sm:$0xff] }
 0x329   : > { %6230 = vmatpush3.msra.mxu1 %v2660_v62 }
 0x32a   : > { %v2139_v17 = vmax.f32 %v2131_v58, 0.0  ;;  %6231 = vmatprep.subr.mxu1 %v2675_v43  ;;  %v2699_v58 = vld [vmem:[%s10731_s5 + $0x178] sm:$0xff] }
 0x32b   : > { %6232 = vmatpush3.msra.mxu1 %v2659_v49  ;;  %v2695_v49 = vld [vmem:[%s10731_s5 + $0x158] sm:$0xff] }
 0x32c   : > { %2170 = vrot.lane.b32.xlu1 %v2139_v17, %s7133_s1  ;;  %6233 = vmatprep.subr.mxu1 %v2674_v38  ;;  %v2655_v17 = vld [vmem:[%s10731_s5 + $0x18] sm:$0xff]  ;;  %v2710_v38 = vld [vmem:[%s10731_s5 + $0x1d0] sm:$0xff] }
 0x32d   : > { %6234 = vmatpush3.msra.mxu1 %v2658_v2 }
 0x32e   : > { %6235 = vmatprep.subr.mxu1 %v2673_v3  ;;  %v2709_v3 = vld [vmem:[%s10731_s5 + $0x1c8] sm:$0xff] }
 0x32f   : > { %6236 = vmatpush3.msra.mxu1 %v2657_v4 }
 0x330   : > { %2372 = vrot.lane.b32.xlu1 %v8389_v34, %s7133_s1  ;;  %6237 = vmatprep.subr.mxu1 %v2672_v39  ;;  %v8600_v39 = vld [vmem:[%s10731_s5 + $0x238] sm:$0xff] }
 0x331   : > { %6238 = vmatpush3.msra.mxu1 %v2656_v50  ;;  %v2693_v50 = vld [vmem:[%s10731_s5 + $0x148] sm:$0xff] }
 0x332   : > { %6239 = vmatprep.subr.mxu1 %v2671_v46 }
 0x333   : > { %6240 = vmatpush3.msra.mxu1 %v2655_v17 }
 0x382   : > { %v8357_v20 = vpop.permute.xlu0 %2156 }
 0x383   : > { %2180 = vst.msk [vmem:[#allocation3] sm:$0xff] %vm702_vm3, %v8357_v20 }
 0x386   : > { %v8361_v40 = vpop.permute.xlu1 %2158 }
 0x387   : > { %2181 = vst.msk [vmem:[#allocation3 + $0x28] sm:$0xff] %vm702_vm3, %v8361_v40 }
 0x38a   : > { %v8365_v45 = vpop.permute.xlu0 %2160  ;;  %v2188_v51 = vld [vmem:[#allocation3] sm:$0xff] }
 0x38b   : > { %2182 = vst.msk [vmem:[#allocation3 + $0x50] sm:$0xff] %vm702_vm3, %v8365_v45  ;;  %6871 = vmatprep.mubr.f32.mxu0 %v2188_v51  ;;  %v2714_v51 = vld [vmem:[%s10731_s5 + $0x1f0] sm:$0xff] }
 0x38c   : > { %2348 = vst.msk [vmem:[#allocation3] sm:$0xff] %vm601_vm0, %v8417_v55 }
 0x38e   : > { %v8369_v13 = vpop.permute.xlu1 %2162  ;;  %v2189_v21 = vld [vmem:[#allocation3 + $0x28] sm:$0xff] }
 0x38f   : > { %2183 = vst.msk [vmem:[#allocation3 + $0x78] sm:$0xff] %vm702_vm3, %v8369_v13  ;;  %6872 = vmatmul.mubr.f32.vlgmr.msra.gmra.mxu0 %v2189_v21  ;;  %v2670_v21 = vld [vmem:[%s10731_s5 + $0x90] sm:$0xff] }
 0x390   : > { %6272 = vmatpush3.msra.mxu0 %v2699_v58  ;;  %6241 = vmatprep.subr.mxu1 %v2670_v21  ;;  %v2692_v21 = vld [vmem:[%s10731_s5 + $0x140] sm:$0xff] }
 0x391   : > { %6273 = vmatprep.subr.mxu0 %v2714_v51 }
 0x392   : > { %v8373_v22 = vpop.permute.xlu0 %2164  ;;  %v2190_v23 = vld [vmem:[#allocation3 + $0x50] sm:$0xff] }
 0x393   : > { %2184 = vst.msk [vmem:[#allocation3 + $0xa0] sm:$0xff] %vm702_vm3, %v8373_v22  ;;  %6874 = vmatprep.mubr.f32.mxu0 %v2190_v23  ;;  %v2698_v23 = vld [vmem:[%s10731_s5 + $0x170] sm:$0xff] }
 0x394   : > { %6274 = vmatpush3.msra.mxu0 %v2698_v23 }
 0x396   : > { %v8377_v24 = vpop.permute.xlu1 %2166  ;;  %v2191_v25 = vld [vmem:[#allocation3 + $0x78] sm:$0xff] }
 0x397   : > { %2185 = vst.msk [vmem:[#allocation3 + $0xc8] sm:$0xff] %vm702_vm3, %v8377_v24  ;;  %6875 = vmatmul.mubr.f32.gmra.mxu0 %v2191_v25 }
 0x39a   : > { %v8381_v26 = vpop.permute.xlu0 %2168  ;;  %v2192_v27 = vld [vmem:[#allocation3 + $0xa0] sm:$0xff] }
 0x39b   : > { %2186 = vst.msk [vmem:[#allocation3 + $0xf0] sm:$0xff] %vm702_vm3, %v8381_v26  ;;  %6877 = vmatprep.mubr.f32.mxu0 %v2192_v27  ;;  %v2654_v27 = vld [vmem:[%s10731_s5 + $0x10] sm:$0xff] }
 0x39c   : > { %6242 = vmatpush3.msra.mxu1 %v2654_v27 }
 0x39e   : > { %v8385_v28 = vpop.permute.xlu1 %2170  ;;  %v2193_v29 = vld [vmem:[#allocation3 + $0xc8] sm:$0xff] }
 0x39f   : > { %2187 = vst.msk [vmem:[#allocation3 + $0x118] sm:$0xff] %vm702_vm3, %v8385_v28  ;;  %6878 = vmatmul.mubr.f32.gmra.mxu0 %v2193_v29  ;;  %v2713_v29 = vld [vmem:[%s10731_s5 + $0x1e8] sm:$0xff] }
 0x3a0   : > { %6275 = vmatprep.subr.mxu0 %v2713_v29  ;;  %v2707_v29 = vld [vmem:[%s10731_s5 + $0x1b8] sm:$0xff] }
 0x3a1   : > { %6276 = vmatpush3.msra.mxu0 %v2697_v36  ;;  %v2691_v36 = vld [vmem:[%s10731_s5 + $0x138] sm:$0xff] }
 0x3a2   : > { %v2194_v30 = vld [vmem:[#allocation3 + $0xf0] sm:$0xff]  ;;  %v2373_v42 = vpop.permute.xlu1 %2372  ;;  %6277 = vmatprep.subr.mxu0 %v2712_v41 }
 0x3a3   : > { %6880 = vmatprep.mubr.f32.mxu0 %v2194_v30  ;;  %2396 = vst.msk [vmem:[#allocation3] sm:$0xff] %vm702_vm3, %v2373_v42  ;;  %v2669_v30 = vld [vmem:[%s10731_s5 + $0x88] sm:$0xff]  ;;  %6278 = vmatpush3.msra.mxu0 %v2696_v33  ;;  %v2706_v41 = vld [vmem:[%s10731_s5 + $0x1b0] sm:$0xff] }
 0x3a4   : > { %6243 = vmatprep.subr.mxu1 %v2669_v30  ;;  %6279 = vmatprep.subr.mxu0 %v2711_v35 }
 0x3a5   : > { %6244 = vmatpush3.msra.mxu1 %v2653_v53  ;;  %6280 = vmatpush3.msra.mxu0 %v2695_v49  ;;  %v2689_v49 = vld [vmem:[%s10731_s5 + $0x128] sm:$0xff] }
 0x3a6   : > { %v2195_v32 = vld [vmem:[#allocation3 + $0x118] sm:$0xff]  ;;  %6245 = vmatprep.subr.mxu1 %v2668_v6  ;;  %6281 = vmatprep.subr.mxu0 %v2710_v38 }
 0x3a7   : > { %6881 = vmatmul.mubr.f32.gmra.mxu0 %v2195_v32 }
 0x3aa   : > { %v8538_v47 = vld [vmem:[#allocation3] sm:$0xff] }
 0x3ab   : > { %3094 = vst.msk [vmem:[#allocation3] sm:$0xff] %vm601_vm0, %v8417_v55  ;;  %v2652_v55 = vld [vmem:[%s10731_s5] sm:$0xff] }
 0x3ac   : > { %6246 = vmatpush3.msra.mxu1 %v2652_v55  ;;  %v2705_v55 = vld [vmem:[%s10731_s5 + $0x1a8] sm:$0xff] }
 0x3ad   : > { %6883 = vmatprep.subr.mxu1 %v8600_v39 }
 0x44f   : > { %v6873_v1 = vpop.f32.mrf.mxu0 }
 0x450   : > { %v8470_v5 = vadd.f32 %v6873_v1, %v8458_v63  ;;  %v2694_v1 = vld [vmem:[%s10731_s5 + $0x150] sm:$0xff] }
 0x451   : > { %v2285_v37 = vpop.f32.mrf.mxu0  ;;  %6282 = vmatpush3.msra.mxu0 %v2694_v1 }
 0x452   : > { %v2325_v7 = vmax.f32 %v8470_v5, 0.0  ;;  %v8477_v8 = vadd.f32 %v8458_v63, %v2285_v37  ;;  %6283 = vmatprep.subr.mxu0 %v2709_v3  ;;  %v2704_v3 = vld [vmem:[%s10731_s5 + $0x1a0] sm:$0xff] }
 0x453   : > { %6284 = vmatpush3.msra.mxu0 %v2693_v50  ;;  %v2703_v50 = vld [vmem:[%s10731_s5 + $0x198] sm:$0xff] }
 0x454   : > { %2333 = vst.msk [vmem:[#allocation2 + $0x21] sm:$0xff] %vm601_vm0, %v2325_v7  ;;  %v2324_v48 = vmax.f32 %v8477_v8, 0.0  ;;  %6285 = vmatprep.subr.mxu0 %v2708_v31  ;;  %v2687_v31 = vld [vmem:[%s10731_s5 + $0x118] sm:$0xff] }
 0x455   : > { %6286 = vmatpush3.msra.mxu0 %v2692_v21 }
 0x456   : > { %2332 = vst.msk [vmem:[#allocation2 + $0x11] sm:$0xff] %vm601_vm0, %v2324_v48  ;;  %6287 = vmatprep.subr.mxu0 %v2707_v29 }
 0x457   : > { %v6876_v25 = vpop.f32.mrf.mxu0  ;;  %6288 = vmatpush3.msra.mxu0 %v2691_v36 }
 0x458   : > { %v8521_v32 = vadd.f32 %v6876_v25, %v8458_v63  ;;  %6289 = vmatprep.subr.mxu0 %v2706_v41 }
 0x459   : > { %v2295_v44 = vpop.f32.mrf.mxu0 }
 0x45a   : > { %v2327_v54 = vmax.f32 %v8521_v32, 0.0  ;;  %v8542_v59 = vadd.f32 %v8458_v63, %v2295_v44 }
 0x45b   : > { %v8546_v60 = vld [vmem:[#allocation2 + $0x21] sm:$0xff] }
 0x45c   : > { %v2421_v61 = vld [vmem:[#allocation2 + $0x20] sm:$0xff]  ;;  %2335 = vst.msk [vmem:[#allocation2 + $0x41] sm:$0xff] %vm601_vm0, %v2327_v54  ;;  %v2326_v52 = vmax.f32 %v8542_v59, 0.0  ;;  %2376 = vrot.lane.b32.xlu1 %v8546_v60, %s7133_s1  ;;  %2477 = vst.msk [vmem:[#allocation3 + $0x38] sm:$0xff] %vm601_vm0, %v8546_v60 }
 0x45d   : > { %v8548_v56 = vld [vmem:[#allocation2 + $0x22] sm:$0xff]  ;;  %2438 = vrot.lane.b32.xlu0 %v2421_v61, %s7133_s1  ;;  %2350 = vst.msk [vmem:[#allocation3 + $0x50] sm:$0xff] %vm601_vm0, %v2421_v61  ;;  %2540 = vst.msk [vmem:[#allocation3 + $0x18] sm:$0xff] %vm601_vm0, %v2421_v61  ;;  %v2357_v57 = vld [vmem:[#allocation2 + $0x11] sm:$0xff] }
 0x45e   : > { %2414 = vst.msk [vmem:[#allocation3 + $0x58] sm:$0xff] %vm601_vm0, %v8548_v56  ;;  %2604 = vst.msk [vmem:[#allocation3 + $0x20] sm:$0xff] %vm601_vm0, %v8548_v56  ;;  %v2420_v62 = vld [vmem:[#allocation2 + $0x10] sm:$0xff] }
 0x45f   : > { %v8571_v43 = vld [vmem:[#allocation2 + $0x12] sm:$0xff]  ;;  %2334 = vst.msk [vmem:[#allocation2 + $0x31] sm:$0xff] %vm601_vm0, %v2326_v52  ;;  %2349 = vst.msk [vmem:[#allocation3 + $0x28] sm:$0xff] %vm601_vm0, %v2420_v62  ;;  %v6879_v42 = vpop.f32.mrf.mxu0 }
 0x460   : > { %2413 = vst.msk [vmem:[#allocation3 + $0x30] sm:$0xff] %vm601_vm0, %v8571_v43  ;;  %2476 = vst.msk [vmem:[#allocation3 + $0x10] sm:$0xff] %vm601_vm0, %v2357_v57  ;;  %v8590_v2 = vadd.f32 %v6879_v42, %v8458_v63  ;;  %2374 = vrot.lane.b32.xlu1 %v2357_v57, %s7133_s1  ;;  %v2690_v61 = vld [vmem:[%s10731_s5 + $0x130] sm:$0xff] }
 0x461   : > { %2436 = vrot.lane.b32.xlu0 %v2420_v62, %s7133_s1  ;;  %v2305_v4 = vpop.f32.mrf.mxu0  ;;  %6290 = vmatpush3.msra.mxu0 %v2690_v61  ;;  %v2685_v61 = vld [vmem:[%s10731_s5 + $0x108] sm:$0xff] }
 0x462   : > { %v10690_v37 = vmax.f32 %v8590_v2, 0.0  ;;  %v8604_v9 = vadd.f32 %v8458_v63, %v2305_v4  ;;  %6291 = vmatprep.subr.mxu0 %v2705_v55  ;;  %v2688_v4 = vld [vmem:[%s10731_s5 + $0x120] sm:$0xff] }
 0x463   : > { %v2423_v46 = vld [vmem:[#allocation2 + $0x40] sm:$0xff]  ;;  %6292 = vmatpush3.msra.mxu0 %v2689_v49 }
 0x464   : > { %v8613_v58 = vld [vmem:[#allocation2 + $0x41] sm:$0xff]  ;;  %2337 = vst.msk [vmem:[#allocation2 + $0x61] sm:$0xff] %vm601_vm0, %v10690_v37  ;;  %v10691_v51 = vmax.f32 %v8604_v9, 0.0  ;;  %2352 = vst.msk [vmem:[#allocation3 + $0xa0] sm:$0xff] %vm601_vm0, %v2423_v46  ;;  %6293 = vmatprep.subr.mxu0 %v2704_v3  ;;  %v2722_v3 = vld [vmem:[%s10731_s5 + $0x230] sm:$0xff]  ;;  %v10732_v32 = vmax.f32 %v8604_v9, 0.0 }
 0x465   : > { %v8615_v17 = vld [vmem:[#allocation2 + $0x42] sm:$0xff]  ;;  %2442 = vrot.lane.b32.xlu0 %v2423_v46, %s7133_s1  ;;  %2380 = vrot.lane.b32.xlu1 %v8613_v58, %s7133_s1  ;;  %2479 = vst.msk [vmem:[#allocation3 + $0x88] sm:$0xff] %vm601_vm0, %v8613_v58  ;;  %2542 = vst.msk [vmem:[#allocation3 + $0x68] sm:$0xff] %vm601_vm0, %v2423_v46  ;;  %v2702_v46 = vld [vmem:[%s10731_s5 + $0x190] sm:$0xff] }
 0x466   : > { %2416 = vst.msk [vmem:[#allocation3 + $0xa8] sm:$0xff] %vm601_vm0, %v8615_v17  ;;  %2606 = vst.msk [vmem:[#allocation3 + $0x70] sm:$0xff] %vm601_vm0, %v8615_v17  ;;  %v2422_v23 = vld [vmem:[#allocation2 + $0x30] sm:$0xff]  ;;  %6294 = vmatpush3.msra.mxu0 %v2688_v4  ;;  %v2700_v55 = vld [vmem:[%s10731_s5 + $0x180] sm:$0xff] }
 0x467   : > { %v8635_v25 = vld [vmem:[#allocation2 + $0x31] sm:$0xff]  ;;  %2336 = vst.msk [vmem:[#allocation2 + $0x51] sm:$0xff] %vm601_vm0, %v10691_v51  ;;  %2351 = vst.msk [vmem:[#allocation3 + $0x78] sm:$0xff] %vm601_vm0, %v2422_v23  ;;  %v6882_v30 = vpop.f32.mrf.mxu0  ;;  %6295 = vmatprep.subr.mxu0 %v2703_v50  ;;  %v2721_v50 = vld [vmem:[%s10731_s5 + $0x228] sm:$0xff] }
 0x468   : > { %v8637_v27 = vld [vmem:[#allocation2 + $0x32] sm:$0xff]  ;;  %2478 = vst.msk [vmem:[#allocation3 + $0x60] sm:$0xff] %vm601_vm0, %v8635_v25  ;;  %2541 = vst.msk [vmem:[#allocation3 + $0x40] sm:$0xff] %vm601_vm0, %v2422_v23  ;;  %v8657_v53 = vadd.f32 %v6882_v30, %v8458_v63  ;;  %6296 = vmatpush3.msra.mxu0 %v2687_v31 }
 0x469   : > { %2415 = vst.msk [vmem:[#allocation3 + $0x80] sm:$0xff] %vm601_vm0, %v8637_v27  ;;  %2605 = vst.msk [vmem:[#allocation3 + $0x48] sm:$0xff] %vm601_vm0, %v8637_v27  ;;  %2440 = vrot.lane.b32.xlu0 %v2422_v23, %s7133_s1  ;;  %2378 = vrot.lane.b32.xlu1 %v8635_v25, %s7133_s1  ;;  %v2315_v44 = vpop.f32.mrf.mxu0  ;;  %v2686_v30 = vld [vmem:[%s10731_s5 + $0x110] sm:$0xff] }
 0x46a   : > { %v10688_v6 = vmax.f32 %v8657_v53, 0.0  ;;  %v8667_v33 = vadd.f32 %v8458_v63, %v2315_v44  ;;  %6297 = vmatprep.subr.mxu0 %v2702_v46 }
 0x46b   : > { %v2425_v35 = vld [vmem:[#allocation2 + $0x60] sm:$0xff]  ;;  %6298 = vmatpush3.msra.mxu0 %v2686_v30 }
 0x46c   : > { %v8675_v57 = vld [vmem:[#allocation2 + $0x61] sm:$0xff]  ;;  %2339 = vst.msk [vmem:[#allocation2 + $0x81] sm:$0xff] %vm601_vm0, %v10688_v6  ;;  %v10689_v63 = vmax.f32 %v8667_v33, 0.0  ;;  %2354 = vst.msk [vmem:[#allocation3 + $0xf0] sm:$0xff] %vm601_vm0, %v2425_v35 }
 0x46d   : > { %v8677_v62 = vld [vmem:[#allocation2 + $0x62] sm:$0xff]  ;;  %2446 = vrot.lane.b32.xlu0 %v2425_v35, %s7133_s1  ;;  %2384 = vrot.lane.b32.xlu1 %v8675_v57, %s7133_s1  ;;  %2481 = vst.msk [vmem:[#allocation3 + $0xd8] sm:$0xff] %vm601_vm0, %v8675_v57  ;;  %2544 = vst.msk [vmem:[#allocation3 + $0xb8] sm:$0xff] %vm601_vm0, %v2425_v35 }
 0x46e   : > { %2418 = vst.msk [vmem:[#allocation3 + $0xf8] sm:$0xff] %vm601_vm0, %v8677_v62  ;;  %2608 = vst.msk [vmem:[#allocation3 + $0xc0] sm:$0xff] %vm601_vm0, %v8677_v62  ;;  %v2424_v38 = vld [vmem:[#allocation2 + $0x50] sm:$0xff]  ;;  %v2684_v35 = vld [vmem:[%s10731_s5 + $0x100] sm:$0xff] }
 0x46f   : > { %v2361_v42 = vld [vmem:[#allocation2 + $0x51] sm:$0xff]  ;;  %2338 = vst.msk [vmem:[#allocation2 + $0x71] sm:$0xff] %vm601_vm0, %v10689_v63  ;;  %2353 = vst.msk [vmem:[#allocation3 + $0xc8] sm:$0xff] %vm601_vm0, %v2424_v38 }
 0x470   : > { %v2488_v1 = vld [vmem:[#allocation2 + $0x52] sm:$0xff]  ;;  %2480 = vst.msk [vmem:[#allocation3 + $0xb0] sm:$0xff] %vm601_vm0, %v2361_v42  ;;  %2543 = vst.msk [vmem:[#allocation3 + $0x90] sm:$0xff] %vm601_vm0, %v2424_v38 }
 0x471   : > { %2417 = vst.msk [vmem:[#allocation3 + $0xd0] sm:$0xff] %vm601_vm0, %v2488_v1  ;;  %2607 = vst.msk [vmem:[#allocation3 + $0x98] sm:$0xff] %vm601_vm0, %v2488_v1  ;;  %2444 = vrot.lane.b32.xlu0 %v2424_v38, %s7133_s1  ;;  %2382 = vrot.lane.b32.xlu1 %v2361_v42, %s7133_s1 }
 0x473   : > { %v2427_v21 = vld [vmem:[#allocation2 + $0x80] sm:$0xff] }
 0x474   : > { %v2491_v23 = vld [vmem:[#allocation2 + $0x82] sm:$0xff]  ;;  %2546 = vst.msk [vmem:[#allocation3 + $0x108] sm:$0xff] %vm601_vm0, %v2427_v21 }
 0x475   : > { %v2554_v29 = vld [vmem:[#allocation2 + $0x81] sm:$0xff]  ;;  %2564 = vrot.lane.b32.xlu1 %v8546_v60, %s7133_s1  ;;  %2450 = vrot.lane.b32.xlu0 %v2427_v21, %s7133_s1  ;;  %2610 = vst.msk [vmem:[#allocation3 + $0x110] sm:$0xff] %vm601_vm0, %v2491_v23 }
 0x476   : > { %2483 = vst.msk [vmem:[#allocation3 + $0x128] sm:$0xff] %vm601_vm0, %v2554_v29  ;;  %v2426_v36 = vld [vmem:[#allocation2 + $0x70] sm:$0xff]  ;;  %v2701_v60 = vld [vmem:[%s10731_s5 + $0x188] sm:$0xff] }
 0x477   : > { %v2363_v41 = vld [vmem:[#allocation2 + $0x71] sm:$0xff]  ;;  %2355 = vst.msk [vmem:[#allocation3 + $0x118] sm:$0xff] %vm601_vm0, %v2426_v36  ;;  %2545 = vst.msk [vmem:[#allocation3 + $0xe0] sm:$0xff] %vm601_vm0, %v2426_v36  ;;  %6299 = vmatprep.subr.mxu0 %v2701_v60  ;;  %v2717_v60 = vld [vmem:[%s10731_s5 + $0x208] sm:$0xff] }
 0x478   : > { %v2490_v44 = vld [vmem:[#allocation2 + $0x72] sm:$0xff]  ;;  %2482 = vst.msk [vmem:[#allocation3 + $0x100] sm:$0xff] %vm601_vm0, %v2363_v41  ;;  %6300 = vmatpush3.msra.mxu0 %v2685_v61 }
 0x479   : > { %2419 = vst.msk [vmem:[#allocation3 + $0x120] sm:$0xff] %vm601_vm0, %v2490_v44  ;;  %2609 = vst.msk [vmem:[#allocation3 + $0xe8] sm:$0xff] %vm601_vm0, %v2490_v44  ;;  %2500 = vrot.lane.b32.xlu1 %v8571_v43, %s7133_s1  ;;  %2448 = vrot.lane.b32.xlu0 %v2426_v36, %s7133_s1  ;;  %v8773_v43 = vld [vmem:[#allocation3 + $0x138] sm:$0xff] }
 0x47a   : > { %6301 = vmatprep.subr.mxu0 %v2700_v55 }
 0x47b   : > { %6302 = vmatpush3.msra.mxu0 %v2684_v35 }
 0x47d   : > { %2502 = vrot.lane.b32.xlu1 %v8548_v56, %s7133_s1  ;;  %2386 = vrot.lane.b32.xlu0 %v2363_v41, %s7133_s1  ;;  %v2539_v56 = vld [vmem:[#allocation2 + $0x90] sm:$0xff] }
 0x47e   : > { %2547 = vst.msk [vmem:[#allocation3 + $0x130] sm:$0xff] %vm601_vm0, %v2539_v56  ;;  %v2716_v56 = vld [vmem:[%s10731_s5 + $0x200] sm:$0xff] }
 0x481   : > { %2504 = vrot.lane.b32.xlu1 %v8637_v27, %s7133_s1  ;;  %2566 = vrot.lane.b32.xlu0 %v8635_v25, %s7133_s1 }
 0x485   : > { %2506 = vrot.lane.b32.xlu1 %v8615_v17, %s7133_s1  ;;  %2568 = vrot.lane.b32.xlu0 %v8613_v58, %s7133_s1  ;;  %v3349_v58 = vld [vmem:[#allocation2 + $0x92] sm:$0xff] }
 0x486   : > { %v2555_v17 = vld [vmem:[#allocation2 + $0x91] sm:$0xff]  ;;  %3357 = vst.msk [vmem:[#allocation3 + $0x138] sm:$0xff] %vm601_vm0, %v3349_v58 }
 0x489   : > { %2508 = vrot.lane.b32.xlu1 %v2488_v1, %s7133_s1  ;;  %2570 = vrot.lane.b32.xlu0 %v2361_v42, %s7133_s1 }
 0x48d   : > { %2510 = vrot.lane.b32.xlu1 %v8677_v62, %s7133_s1  ;;  %2572 = vrot.lane.b32.xlu0 %v8675_v57, %s7133_s1 }
 0x491   : > { %2512 = vrot.lane.b32.xlu1 %v2490_v44, %s7133_s1  ;;  %2574 = vrot.lane.b32.xlu0 %v2363_v41, %s7133_s1  ;;  %v2718_v41 = vld [vmem:[%s10731_s5 + $0x210] sm:$0xff] }
 0x495   : > { %2514 = vrot.lane.b32.xlu1 %v2491_v23, %s7133_s1  ;;  %2576 = vrot.lane.b32.xlu0 %v2554_v29, %s7133_s1 }
 0x499   : > { %3118 = vrot.lane.b32.xlu1 %v8389_v34, %s7133_s1  ;;  %2578 = vrot.lane.b32.xlu0 %v2555_v17, %s7133_s1 }
 0x4ce   : > { %v2377_v25 = vpop.permute.xlu1 %2376 }
 0x4cf   : > { %v2439_v27 = vpop.permute.xlu0 %2438  ;;  %2398 = vst.msk [vmem:[#allocation3 + $0x50] sm:$0xff] %vm702_vm3, %v2377_v25 }
 0x4d0   : > { %2461 = vst.msk [vmem:[#allocation3 + $0x30] sm:$0xff] %vm702_vm3, %v2439_v27 }
 0x4d2   : > { %v2375_v57 = vpop.permute.xlu1 %2374 }
 0x4d3   : > { %v2437_v62 = vpop.permute.xlu0 %2436  ;;  %2397 = vst.msk [vmem:[#allocation3 + $0x28] sm:$0xff] %vm702_vm3, %v2375_v57 }
 0x4d4   : > { %2460 = vst.msk [vmem:[#allocation3 + $0x8] sm:$0xff] %vm702_vm3, %v2437_v62 }
 0x4d6   : > { %v2622_v36 = vld [vmem:[#allocation3 + $0x50] sm:$0xff] }
 0x4d7   : > { %v2381_v49 = vpop.permute.xlu1 %2380  ;;  %v2443_v38 = vpop.permute.xlu0 %2442  ;;  %v2618_v4 = vld [vmem:[#allocation3 + $0x30] sm:$0xff] }
 0x4d8   : > { %2400 = vst.msk [vmem:[#allocation3 + $0xa0] sm:$0xff] %vm702_vm3, %v2381_v49  ;;  %2463 = vst.msk [vmem:[#allocation3 + $0x80] sm:$0xff] %vm702_vm3, %v2443_v38 }
 0x4da   : > { %v2617_v21 = vld [vmem:[#allocation3 + $0x28] sm:$0xff] }
 0x4db   : > { %v2379_v34 = vpop.permute.xlu1 %2378  ;;  %v2441_v42 = vpop.permute.xlu0 %2440  ;;  %v2613_v1 = vld [vmem:[#allocation3 + $0x8] sm:$0xff] }
 0x4dc   : > { %2399 = vst.msk [vmem:[#allocation3 + $0x78] sm:$0xff] %vm702_vm3, %v2379_v34  ;;  %2462 = vst.msk [vmem:[#allocation3 + $0x58] sm:$0xff] %vm702_vm3, %v2441_v42  ;;  %2819 = vmatprep.mubr.f32.mxu1 %v2613_v1 }
 0x4dd   : > { %2820 = vmatmul.mubr.f32.vlgmr.msra.gmra.mxu1 %v8538_v47  ;;  %v2720_v47 = vld [vmem:[%s10731_s5 + $0x220] sm:$0xff] }
 0x4de   : > { %2824 = vmatprep.mubr.f32.mxu1 %v2618_v4  ;;  %6884 = vmatpush3.msra.mxu1 %v8600_v39  ;;  %v2719_v39 = vld [vmem:[%s10731_s5 + $0x218] sm:$0xff] }
 0x4df   : > { %v2385_v31 = vpop.permute.xlu1 %2384  ;;  %v2447_v46 = vpop.permute.xlu0 %2446  ;;  %6885 = vmatprep.subr.mxu1 %v2722_v3  ;;  %v2628_v44 = vld [vmem:[#allocation3 + $0x80] sm:$0xff] }
 0x4e0   : > { %2402 = vst.msk [vmem:[#allocation3 + $0xf0] sm:$0xff] %vm702_vm3, %v2385_v31  ;;  %2465 = vst.msk [vmem:[#allocation3 + $0xd0] sm:$0xff] %vm702_vm3, %v2447_v46  ;;  %6886 = vmatpush3.msra.mxu1 %v2722_v3  ;;  %v2632_v27 = vld [vmem:[#allocation3 + $0xa0] sm:$0xff] }
 0x4e1   : > { %2825 = vmatmul.mubr.f32.gmra.mxu1 %v2617_v21  ;;  %6887 = vmatprep.subr.mxu1 %v2721_v50 }
 0x4e2   : > { %6888 = vmatpush3.msra.mxu1 %v2721_v50 }
 0x4e3   : > { %v2383_v23 = vpop.permute.xlu1 %2382  ;;  %v2445_v29 = vpop.permute.xlu0 %2444  ;;  %v2623_v30 = vld [vmem:[#allocation3 + $0x58] sm:$0xff]  ;;  %6889 = vmatprep.subr.mxu1 %v2720_v47 }
 0x4e4   : > { %2401 = vst.msk [vmem:[#allocation3 + $0xc8] sm:$0xff] %vm702_vm3, %v2383_v23  ;;  %2464 = vst.msk [vmem:[#allocation3 + $0xa8] sm:$0xff] %vm702_vm3, %v2445_v29  ;;  %2829 = vmatprep.mubr.f32.mxu1 %v2623_v30  ;;  %6890 = vmatpush3.msra.mxu1 %v2720_v47  ;;  %v2627_v35 = vld [vmem:[#allocation3 + $0x78] sm:$0xff] }
 0x4e5   : > { %2830 = vmatmul.mubr.f32.gmra.mxu1 %v2622_v36  ;;  %6891 = vmatprep.subr.mxu1 %v2719_v39 }
 0x4e6   : > { %2834 = vmatprep.mubr.f32.mxu1 %v2628_v44  ;;  %6892 = vmatpush3.msra.mxu1 %v2719_v39  ;;  %v2616_v39 = vld [vmem:[#allocation3 + $0x20] sm:$0xff]  ;;  %v2626_v44 = vld [vmem:[#allocation3 + $0x70] sm:$0xff] }
 0x4e7   : > { %v2565_v61 = vpop.permute.xlu1 %2564  ;;  %v2451_v55 = vpop.permute.xlu0 %2450  ;;  %6893 = vmatprep.subr.mxu1 %v2718_v41  ;;  %v2638_v57 = vld [vmem:[#allocation3 + $0xd0] sm:$0xff] }
 0x4e8   : > { %2588 = vst.msk [vmem:[#allocation3 + $0x18] sm:$0xff] %vm702_vm3, %v2565_v61  ;;  %2467 = vst.msk [vmem:[#allocation3 + $0x120] sm:$0xff] %vm702_vm3, %v2451_v55  ;;  %6894 = vmatpush3.msra.mxu1 %v2718_v41  ;;  %v2642_v50 = vld [vmem:[#allocation3 + $0xf0] sm:$0xff]  ;;  %v2621_v41 = vld [vmem:[#allocation3 + $0x48] sm:$0xff] }
 0x4e9   : > { %2835 = vmatmul.mubr.f32.gmra.mxu1 %v2627_v35  ;;  %6895 = vmatprep.subr.mxu1 %v2717_v60 }
 0x4ea   : > { %6896 = vmatpush3.msra.mxu1 %v2717_v60 }
 0x4eb   : > { %v2501_v58 = vpop.permute.xlu1 %2500  ;;  %v2449_v17 = vpop.permute.xlu0 %2448  ;;  %v2633_v25 = vld [vmem:[#allocation3 + $0xa8] sm:$0xff]  ;;  %6897 = vmatprep.subr.mxu1 %v2716_v56 }
 0x4ec   : > { %2524 = vst.msk [vmem:[#allocation3 + $0x10] sm:$0xff] %vm702_vm3, %v2501_v58  ;;  %2466 = vst.msk [vmem:[#allocation3 + $0xf8] sm:$0xff] %vm702_vm3, %v2449_v17  ;;  %2839 = vmatprep.mubr.f32.mxu1 %v2633_v25  ;;  %6898 = vmatpush3.msra.mxu1 %v2716_v56  ;;  %v2637_v34 = vld [vmem:[#allocation3 + $0xc8] sm:$0xff]  ;;  %v2631_v56 = vld [vmem:[#allocation3 + $0x98] sm:$0xff] }
 0x4ed   : > { %2840 = vmatmul.mubr.f32.gmra.mxu1 %v2632_v27  ;;  %v2636_v58 = vld [vmem:[#allocation3 + $0xc0] sm:$0xff] }
 0x4ee   : > { %2844 = vmatprep.mubr.f32.mxu1 %v2638_v57 }
 0x4ef   : > { %v2503_v62 = vpop.permute.xlu1 %2502  ;;  %v2387_v49 = vpop.permute.xlu0 %2386  ;;  %v2615_v38 = vld [vmem:[#allocation3 + $0x18] sm:$0xff]  ;;  %v2648_v31 = vld [vmem:[#allocation3 + $0x120] sm:$0xff] }
 0x4f0   : > { %2525 = vst.msk [vmem:[#allocation3 + $0x38] sm:$0xff] %vm702_vm3, %v2503_v62  ;;  %2403 = vst.msk [vmem:[#allocation3 + $0x118] sm:$0xff] %vm702_vm3, %v2387_v49  ;;  %2924 = vmatprep.mubr.f32.mxu0 %v2615_v38  ;;  %v2641_v62 = vld [vmem:[#allocation3 + $0xe8] sm:$0xff]  ;;  %v2646_v49 = vld [vmem:[#allocation3 + $0x110] sm:$0xff] }
 0x4f1   : > { %2845 = vmatmul.mubr.f32.gmra.mxu1 %v2637_v34 }
 0x4f3   : > { %v2505_v42 = vpop.permute.xlu1 %2504  ;;  %v2567_v1 = vpop.permute.xlu0 %2566  ;;  %v2643_v3 = vld [vmem:[#allocation3 + $0xf8] sm:$0xff]  ;;  %v2614_v4 = vld [vmem:[#allocation3 + $0x10] sm:$0xff] }
 0x4f4   : > { %2526 = vst.msk [vmem:[#allocation3 + $0x60] sm:$0xff] %vm702_vm3, %v2505_v42  ;;  %2589 = vst.msk [vmem:[#allocation3 + $0x40] sm:$0xff] %vm702_vm3, %v2567_v1  ;;  %2849 = vmatprep.mubr.f32.mxu1 %v2643_v3  ;;  %2925 = vmatmul.mubr.f32.vlgmr.msra.gmra.mxu0 %v2614_v4 }
 0x4f5   : > { %2850 = vmatmul.mubr.f32.gmra.mxu1 %v2642_v50 }
 0x4f6   : > { %2854 = vmatprep.mubr.f32.mxu1 %v2648_v31 }
 0x4f7   : > { %v2507_v46 = vpop.permute.xlu1 %2506  ;;  %v2569_v21 = vpop.permute.xlu0 %2568  ;;  %v2647_v47 = vld [vmem:[#allocation3 + $0x118] sm:$0xff] }
 0x4f8   : > { %2527 = vst.msk [vmem:[#allocation3 + $0x88] sm:$0xff] %vm702_vm3, %v2507_v46  ;;  %2590 = vst.msk [vmem:[#allocation3 + $0x68] sm:$0xff] %vm702_vm3, %v2569_v21  ;;  %v2619_v36 = vld [vmem:[#allocation3 + $0x38] sm:$0xff] }
 0x4f9   : > { %2855 = vmatmul.mubr.f32.gmra.mxu1 %v2647_v47 }
 0x4fa   : > { %6899 = vmatprep.mubr.msk.f32.mxu1 %vm601_vm0, %v2616_v39 }
 0x4fb   : > { %v2509_v23 = vpop.permute.xlu1 %2508  ;;  %v2571_v29 = vpop.permute.xlu0 %2570  ;;  %v2620_v30 = vld [vmem:[#allocation3 + $0x40] sm:$0xff] }
 0x4fc   : > { %2528 = vst.msk [vmem:[#allocation3 + $0xb0] sm:$0xff] %vm702_vm3, %v2509_v23  ;;  %2591 = vst.msk [vmem:[#allocation3 + $0x90] sm:$0xff] %vm702_vm3, %v2571_v29  ;;  %2929 = vmatprep.mubr.f32.mxu0 %v2620_v30  ;;  %v2624_v35 = vld [vmem:[#allocation3 + $0x60] sm:$0xff]  ;;  %v3429_v23 = vld [vmem:[%s10663_s7 + $0xf8] sm:$0xff] }
 0x4fd   : > { %2930 = vmatmul.mubr.f32.gmra.mxu0 %v2619_v36  ;;  %6900 = vmatmul.mubr.msk.f32.vlgmr.msra.gmra.mxu1 %vm601_vm0, %v2621_v41  ;;  %v3413_v29 = vld [vmem:[%s10663_s7 + $0x78] sm:$0xff]  ;;  %v3428_v30 = vld [vmem:[%s10663_s7 + $0xf0] sm:$0xff]  ;;  %v3427_v41 = vld [vmem:[%s10663_s7 + $0xe8] sm:$0xff] }
 0x4fe   : > { %6902 = vmatprep.mubr.msk.f32.mxu1 %vm601_vm0, %v2626_v44  ;;  %6343 = vmatprep.subr.mxu0 %v3429_v23  ;;  %v3412_v36 = vld [vmem:[%s10663_s7 + $0x70] sm:$0xff]  ;;  %v3411_v44 = vld [vmem:[%s10663_s7 + $0x68] sm:$0xff] }
 0x4ff   : > { %v2511_v60 = vpop.permute.xlu1 %2510  ;;  %v2573_v61 = vpop.permute.xlu0 %2572  ;;  %v2625_v55 = vld [vmem:[#allocation3 + $0x68] sm:$0xff]  ;;  %6344 = vmatpush3.msra.mxu0 %v3413_v29 }
 0x500   : > { %2529 = vst.msk [vmem:[#allocation3 + $0xd8] sm:$0xff] %vm702_vm3, %v2511_v60  ;;  %2592 = vst.msk [vmem:[#allocation3 + $0xb8] sm:$0xff] %vm702_vm3, %v2573_v61  ;;  %2934 = vmatprep.mubr.f32.mxu0 %v2625_v55  ;;  %v2629_v57 = vld [vmem:[#allocation3 + $0x88] sm:$0xff]  ;;  %6345 = vmatprep.subr.mxu0 %v3428_v30  ;;  %v3426_v60 = vld [vmem:[%s10663_s7 + $0xe0] sm:$0xff] }
 0x501   : > { %2935 = vmatmul.mubr.f32.gmra.mxu0 %v2624_v35  ;;  %6903 = vmatmul.mubr.msk.f32.gmra.mxu1 %vm601_vm0, %v2631_v56  ;;  %v3410_v61 = vld [vmem:[%s10663_s7 + $0x60] sm:$0xff]  ;;  %v3425_v55 = vld [vmem:[%s10663_s7 + $0xd8] sm:$0xff]  ;;  %v3424_v56 = vld [vmem:[%s10663_s7 + $0xd0] sm:$0xff] }
 0x502   : > { %6905 = vmatprep.mubr.msk.f32.mxu1 %vm601_vm0, %v2636_v58  ;;  %6346 = vmatpush3.msra.mxu0 %v3412_v36  ;;  %v3409_v35 = vld [vmem:[%s10663_s7 + $0x58] sm:$0xff]  ;;  %v3408_v58 = vld [vmem:[%s10663_s7 + $0x50] sm:$0xff] }
 0x503   : > { %v2513_v17 = vpop.permute.xlu1 %2512  ;;  %v2575_v25 = vpop.permute.xlu0 %2574  ;;  %v2630_v27 = vld [vmem:[#allocation3 + $0x90] sm:$0xff]  ;;  %6347 = vmatprep.subr.mxu0 %v3427_v41 }
 0x504   : > { %2530 = vst.msk [vmem:[#allocation3 + $0x100] sm:$0xff] %vm702_vm3, %v2513_v17  ;;  %2593 = vst.msk [vmem:[#allocation3 + $0xe0] sm:$0xff] %vm702_vm3, %v2575_v25  ;;  %2939 = vmatprep.mubr.f32.mxu0 %v2630_v27  ;;  %v2634_v1 = vld [vmem:[#allocation3 + $0xb0] sm:$0xff]  ;;  %6348 = vmatpush3.msra.mxu0 %v3411_v44  ;;  %v3423_v17 = vld [vmem:[%s10663_s7 + $0xc8] sm:$0xff] }
 0x505   : > { %2940 = vmatmul.mubr.f32.gmra.mxu0 %v2629_v57  ;;  %6906 = vmatmul.mubr.msk.f32.gmra.mxu1 %vm601_vm0, %v2641_v62  ;;  %v3407_v25 = vld [vmem:[%s10663_s7 + $0x48] sm:$0xff]  ;;  %v3422_v27 = vld [vmem:[%s10663_s7 + $0xc0] sm:$0xff]  ;;  %v3421_v62 = vld [vmem:[%s10663_s7 + $0xb8] sm:$0xff] }
 0x506   : > { %6908 = vmatprep.mubr.msk.f32.mxu1 %vm601_vm0, %v2646_v49  ;;  %6349 = vmatprep.subr.mxu0 %v3426_v60  ;;  %v3406_v57 = vld [vmem:[%s10663_s7 + $0x40] sm:$0xff]  ;;  %v3405_v49 = vld [vmem:[%s10663_s7 + $0x38] sm:$0xff] }
 0x507   : > { %v2515_v38 = vpop.permute.xlu1 %2514  ;;  %v2577_v34 = vpop.permute.xlu0 %2576  ;;  %v2635_v42 = vld [vmem:[#allocation3 + $0xb8] sm:$0xff]  ;;  %6350 = vmatpush3.msra.mxu0 %v3410_v61  ;;  %v8920_v61 = vld [vmem:[%s10662_s6] ss:$0 sm:$0xff] }
 0x508   : > { %2531 = vst.msk [vmem:[#allocation3 + $0x128] sm:$0xff] %vm702_vm3, %v2515_v38  ;;  %2594 = vst.msk [vmem:[#allocation3 + $0x108] sm:$0xff] %vm702_vm3, %v2577_v34  ;;  %2944 = vmatprep.mubr.f32.mxu0 %v2635_v42  ;;  %v2639_v31 = vld [vmem:[#allocation3 + $0xd8] sm:$0xff]  ;;  %6351 = vmatprep.subr.mxu0 %v3425_v55  ;;  %v3420_v38 = vld [vmem:[%s10663_s7 + $0xb0] sm:$0xff] }
 0x509   : > { %2945 = vmatmul.mubr.f32.gmra.mxu0 %v2634_v1  ;;  %6909 = vmatmul.mubr.msk.f32.gmra.mxu1 %vm601_vm0, %v8773_v43  ;;  %v3404_v42 = vld [vmem:[%s10663_s7 + $0x30] sm:$0xff] }
 0x50a   : > { %6352 = vmatpush3.msra.mxu0 %v3409_v35 }
 0x50b   : > { %v3119_v3 = vpop.permute.xlu1 %3118  ;;  %v2579_v4 = vpop.permute.xlu0 %2578  ;;  %v2640_v50 = vld [vmem:[#allocation3 + $0xe0] sm:$0xff]  ;;  %6353 = vmatprep.subr.mxu0 %v3424_v56 }
 0x50c   : > { %3142 = vst.msk [vmem:[#allocation3] sm:$0xff] %vm702_vm3, %v3119_v3  ;;  %2595 = vst.msk [vmem:[#allocation3 + $0x130] sm:$0xff] %vm702_vm3, %v2579_v4  ;;  %2949 = vmatprep.mubr.f32.mxu0 %v2640_v50  ;;  %v2644_v21 = vld [vmem:[#allocation3 + $0x100] sm:$0xff]  ;;  %6354 = vmatpush3.msra.mxu0 %v3408_v58 }
 0x50d   : > { %2950 = vmatmul.mubr.f32.gmra.mxu0 %v2639_v31  ;;  %6355 = vmatprep.subr.mxu0 %v3423_v17 }
 0x50e   : > { %6356 = vmatpush3.msra.mxu0 %v3407_v25 }
 0x50f   : > { %v2645_v46 = vld [vmem:[#allocation3 + $0x108] sm:$0xff]  ;;  %6357 = vmatprep.subr.mxu0 %v3422_v27 }
 0x510   : > { %2954 = vmatprep.mubr.f32.mxu0 %v2645_v46  ;;  %v2649_v43 = vld [vmem:[#allocation3 + $0x128] sm:$0xff]  ;;  %6358 = vmatpush3.msra.mxu0 %v3406_v57 }
 0x511   : > { %2955 = vmatmul.mubr.f32.gmra.mxu0 %v2644_v21  ;;  %6359 = vmatprep.subr.mxu0 %v3421_v62 }
 0x512   : > { %6360 = vmatpush3.msra.mxu0 %v3405_v49 }
 0x513   : > { %v8843_v47 = vld [vmem:[#allocation3] sm:$0xff]  ;;  %v2650_v39 = vld [vmem:[#allocation3 + $0x130] sm:$0xff]  ;;  %6361 = vmatprep.subr.mxu0 %v3420_v38 }
 0x514   : > { %3832 = vst.msk [vmem:[#allocation3] sm:$0xff] %vm601_vm0, %v7367_v11  ;;  %2959 = vmatprep.mubr.f32.mxu0 %v2650_v39  ;;  %6362 = vmatpush3.msra.mxu0 %v3404_v42 }
 0x515   : > { %3840 = vst.msk [vmem:[#allocation3] sm:$0xff] %vm702_vm3, %v8357_v20  ;;  %2960 = vmatmul.mubr.f32.gmra.mxu0 %v2649_v43 }
 0x59d   : > { %v6247_v34 = vpop.f32.mrf.mxu1 }
 0x59f   : > { %v6248_v1 = vpop.f32.mrf.mxu1 }
 0x5a0   : > { %v6249_v60 = vadd.f32 %v6248_v1, %v6247_v34 }
 0x5a1   : > { %v6250_v3 = vpop.f32.mrf.mxu1 }
 0x5a2   : > { %v2822_v58 = vadd.f32 %v6249_v60, %v8920_v61 }
 0x5a3   : > { %v6251_v4 = vpop.f32.mrf.mxu1 }
 0x5a4   : > { %v6252_v17 = vadd.f32 %v6251_v4, %v6250_v3  ;;  %v3419_v3 = vld [vmem:[%s10663_s7 + $0xa8] sm:$0xff] }
 0x5a5   : > { %v6253_v50 = vpop.f32.mrf.mxu1  ;;  %v3403_v4 = vld [vmem:[%s10663_s7 + $0x28] sm:$0xff]  ;;  %6363 = vmatprep.subr.mxu0 %v3419_v3 }
 0x5a6   : > { %v2827_v38 = vadd.f32 %v6252_v17, %v8920_v61  ;;  %6364 = vmatpush3.msra.mxu0 %v3403_v4 }
 0x5a7   : > { %v6254_v31 = vpop.f32.mrf.mxu1 }
 0x5a8   : > { %v6255_v34 = vadd.f32 %v6254_v31, %v6253_v50  ;;  %v3418_v50 = vld [vmem:[%s10663_s7 + $0xa0] sm:$0xff] }
 0x5a9   : > { %v6256_v46 = vpop.f32.mrf.mxu1  ;;  %6365 = vmatprep.subr.mxu0 %v3418_v50 }
 0x5aa   : > { %v2832_v31 = vadd.f32 %v6255_v34, %v8920_v61  ;;  %v3445_v34 = vld [vmem:[%s10663_s7 + $0x178] sm:$0xff] }
 0x5ab   : > { %v6257_v21 = vpop.f32.mrf.mxu1 }
 0x5ac   : > { %v6258_v51 = vadd.f32 %v6257_v21, %v6256_v46  ;;  %v3402_v21 = vld [vmem:[%s10663_s7 + $0x20] sm:$0xff] }
 0x5ad   : > { %v6259_v39 = vpop.f32.mrf.mxu1  ;;  %6366 = vmatpush3.msra.mxu0 %v3402_v21 }
 0x5af   : > { %v6260_v43 = vpop.f32.mrf.mxu1 }
 0x5b1   : > { %v8909_v23 = vpop.f32.mrf.mxu1 }
 0x5b3   : > { %v8911_v29 = vpop.f32.mrf.mxu1 }
 0x5b4   : > { %v6303_v30 = vpop.f32.mrf.mxu0 }
 0x5b5   : > { %v8913_v36 = vpop.f32.mrf.mxu1 }
 0x5b6   : > { %v6304_v41 = vpop.f32.mrf.mxu0 }
 0x5b7   : > { %v8915_v44 = vpop.f32.mrf.mxu1  ;;  %v6305_v35 = vadd.f32 %v6304_v41, %v6303_v30 }
 0x5b9   : > { %v8922_v55 = vpop.f32.mrf.mxu1  ;;  %v2927_v57 = vadd.f32 %v6305_v35, %v2822_v58 }
 0x5bb   : > { %v8924_v56 = vpop.f32.mrf.mxu1 }
 0x5bd   : > { %v6306_v25 = vpop.f32.mrf.mxu0  ;;  %v6901_v27 = vpop.f32.mrf.mxu1 }
 0x5bf   : > { %v6307_v62 = vpop.f32.mrf.mxu0  ;;  %v3031_v49 = vpop.f32.mrf.mxu1 }
 0x5c0   : > { %v6308_v42 = vadd.f32 %v6307_v62, %v6306_v25  ;;  %v3032_v1 = vadd.f32 %v3031_v49, %v2927_v57  ;;  %v2837_v25 = vadd.f32 %v6258_v51, %v8920_v61  ;;  %v3150_v49 = vld [vmem:[#allocation2 + $0x2] sm:$0xff]  ;;  %v3401_v51 = vld [vmem:[%s10663_s7 + $0x18] sm:$0xff] }
 0x5c1   : > { %v6309_v6 = vpop.f32.mrf.mxu0  ;;  %v6904_v30 = vpop.f32.mrf.mxu1  ;;  %3158 = vst.msk [vmem:[#allocation3 + $0x8] sm:$0xff] %vm601_vm0, %v3150_v49  ;;  %v3414_v49 = vld [vmem:[%s10663_s7 + $0x80] sm:$0xff] }
 0x5c2   : > { %v2932_v63 = vadd.f32 %v6308_v42, %v2827_v38  ;;  %v3070_v37 = vmax.f32 %v3032_v1, 0.0  ;;  %v3460_v42 = vld [vmem:[%s10663_s7 + $0x1f0] sm:$0xff] }
 0x5c3   : > { %v6310_v41 = vpop.f32.mrf.mxu0  ;;  %v3041_v57 = vpop.f32.mrf.mxu1  ;;  %v3400_v1 = vld [vmem:[%s10663_s7 + $0x10] sm:$0xff] }
 0x5c4   : > { %v3037_v60 = vadd.f32 %v6901_v27, %v2932_v63  ;;  %3078 = vst.msk [vmem:[#allocation2 + $0x11] sm:$0xff] %vm601_vm0, %v3070_v37  ;;  %v6311_v46 = vadd.f32 %v6310_v41, %v6309_v6  ;;  %v3417_v37 = vld [vmem:[%s10663_s7 + $0x98] sm:$0xff]  ;;  %v6261_v63 = vadd.f32 %v6260_v43, %v6259_v39  ;;  %v3416_v39 = vld [vmem:[%s10663_s7 + $0x90] sm:$0xff] }
 0x5c5   : > { %v6312_v35 = vpop.f32.mrf.mxu0  ;;  %v3461_v6 = vld [vmem:[%s10663_s7 + $0x1f8] sm:$0xff]  ;;  %6367 = vmatprep.subr.mxu0 %v3417_v37  ;;  %v3444_v41 = vld [vmem:[%s10663_s7 + $0x170] sm:$0xff]  ;;  %v8969_v50 = vpop.f32.mrf.mxu1  ;;  %v3458_v37 = vld [vmem:[%s10663_s7 + $0x1e0] sm:$0xff] }
 0x5c6   : > { %v3071_v58 = vmax.f32 %v3037_v60, 0.0  ;;  %v2937_v17 = vadd.f32 %v6311_v46, %v2832_v31  ;;  %6399 = vmatprep.subr.mxu1 %v3461_v6  ;;  %6368 = vmatpush3.msra.mxu0 %v3401_v51  ;;  %v6267_v51 = vadd.f32 %v8915_v44, %v8913_v36  ;;  %v3457_v36 = vld [vmem:[%s10663_s7 + $0x1d8] sm:$0xff] }
 0x5c7   : > { %v6313_v62 = vpop.f32.mrf.mxu0  ;;  %6400 = vmatpush3.msra.mxu1 %v3445_v34  ;;  %6369 = vmatprep.subr.mxu0 %v3416_v39  ;;  %v3051_v34 = vpop.f32.mrf.mxu1  ;;  %v9031_v44 = vld [vmem:[%s10663_s7 + $0x238] sm:$0xff] }
 0x5c8   : > { %3079 = vst.msk [vmem:[#allocation2 + $0x21] sm:$0xff] %vm601_vm0, %v3071_v58  ;;  %v3042_v27 = vadd.f32 %v3041_v57, %v2937_v17  ;;  %v6314_v38 = vadd.f32 %v6313_v62, %v6312_v35  ;;  %6401 = vmatprep.subr.mxu1 %v3460_v42  ;;  %6370 = vmatpush3.msra.mxu0 %v3400_v1  ;;  %v3415_v57 = vld [vmem:[%s10663_s7 + $0x88] sm:$0xff] }
 0x5c9   : > { %v6315_v43 = vpop.f32.mrf.mxu0  ;;  %6402 = vmatpush3.msra.mxu1 %v3444_v41  ;;  %v2842_v35 = vadd.f32 %v6261_v63, %v8920_v61  ;;  %v6264_v58 = vadd.f32 %v8911_v29, %v8909_v23  ;;  %v3459_v62 = vld [vmem:[%s10663_s7 + $0x1e8] sm:$0xff]  ;;  %6371 = vmatprep.subr.mxu0 %v3415_v57  ;;  %v3456_v57 = vld [vmem:[%s10663_s7 + $0x1d0] sm:$0xff] }
 0x5ca   : > { %v3072_v3 = vmax.f32 %v3042_v27, 0.0  ;;  %v2942_v4 = vadd.f32 %v6314_v38, %v2837_v25  ;;  %v3399_v23 = vld [vmem:[%s10663_s7 + $0x8] sm:$0xff]  ;;  %6403 = vmatprep.subr.mxu1 %v3459_v62  ;;  %v3398_v27 = vld [vmem:[%s10663_s7] sm:$0xff]  ;;  %v3440_v62 = vld [vmem:[%s10663_s7 + $0x150] sm:$0xff] }
 0x5cb   : > { %v6316_v31 = vpop.f32.mrf.mxu0  ;;  %v8971_v60 = vld [vmem:[#allocation2 + $0x10] sm:$0xff]  ;;  %6372 = vmatpush3.msra.mxu0 %v3399_v23  ;;  %v3442_v38 = vld [vmem:[%s10663_s7 + $0x160] sm:$0xff]  ;;  %v2847_v41 = vadd.f32 %v6264_v58, %v8920_v61  ;;  %v3441_v58 = vld [vmem:[%s10663_s7 + $0x158] sm:$0xff]  ;;  %v2852_v23 = vadd.f32 %v6267_v51, %v8920_v61 }
 0x5cc   : > { %v8973_v46 = vld [vmem:[#allocation2 + $0x11] sm:$0xff]  ;;  %3080 = vst.msk [vmem:[#allocation2 + $0x31] sm:$0xff] %vm601_vm0, %v3072_v3  ;;  %v3047_v17 = vadd.f32 %v6904_v30, %v2942_v4  ;;  %v6317_v25 = vadd.f32 %v6316_v31, %v6315_v43  ;;  %3095 = vst.msk [vmem:[#allocation3 + $0x28] sm:$0xff] %vm601_vm0, %v8971_v60  ;;  %v3443_v30 = vld [vmem:[%s10663_s7 + $0x168] sm:$0xff]  ;;  %6373 = vmatprep.subr.mxu0 %v3414_v49 }
 0x5cd   : > { %v8975_v21 = vld [vmem:[#allocation2 + $0x12] sm:$0xff]  ;;  %3222 = vst.msk [vmem:[#allocation3 + $0x10] sm:$0xff] %vm601_vm0, %v8973_v46  ;;  %v6318_v29 = vpop.f32.mrf.mxu0  ;;  %6404 = vmatpush3.msra.mxu1 %v3443_v30  ;;  %6374 = vmatpush3.msra.mxu0 %v3398_v27  ;;  %v3454_v51 = vld [vmem:[%s10663_s7 + $0x1c0] sm:$0xff] }
 0x5ce   : > { %3159 = vst.msk [vmem:[#allocation3 + $0x30] sm:$0xff] %vm601_vm0, %v8975_v21  ;;  %v3073_v6 = vmax.f32 %v3047_v17, 0.0  ;;  %v2947_v63 = vadd.f32 %v6317_v25, %v2842_v35  ;;  %6405 = vmatprep.subr.mxu1 %v3458_v37  ;;  %v9038_v35 = vpop.f32.mrf.mxu1  ;;  %6911 = vmatprep.subr.mxu0 %v9031_v44 }
 0x5cf   : > { %v6319_v39 = vpop.f32.mrf.mxu0  ;;  %v3167_v43 = vld [vmem:[#allocation2 + $0x20] sm:$0xff]  ;;  %6406 = vmatpush3.msra.mxu1 %v3442_v38  ;;  %v3439_v38 = vld [vmem:[%s10663_s7 + $0x148] sm:$0xff] }
 0x5d0   : > { %v9013_v42 = vld [vmem:[#allocation2 + $0x21] sm:$0xff]  ;;  %3081 = vst.msk [vmem:[#allocation2 + $0x41] sm:$0xff] %vm601_vm0, %v3073_v6  ;;  %v3052_v3 = vadd.f32 %v3051_v34, %v2947_v63  ;;  %v6320_v4 = vadd.f32 %v6319_v39, %v6318_v29  ;;  %3184 = vrot.lane.b32.xlu0 %v3167_v43, %s7133_s1  ;;  %3096 = vst.msk [vmem:[#allocation3 + $0x50] sm:$0xff] %vm601_vm0, %v3167_v43  ;;  %6407 = vmatprep.subr.mxu1 %v3457_v36 }
 0x5d1   : > { %v9015_v1 = vld [vmem:[#allocation2 + $0x22] sm:$0xff]  ;;  %3122 = vrot.lane.b32.xlu1 %v9013_v42, %s7133_s1  ;;  %3286 = vst.msk [vmem:[#allocation3 + $0x18] sm:$0xff] %vm601_vm0, %v3167_v43  ;;  %3223 = vst.msk [vmem:[#allocation3 + $0x38] sm:$0xff] %vm601_vm0, %v9013_v42  ;;  %v6321_v31 = vpop.f32.mrf.mxu0  ;;  %6408 = vmatpush3.msra.mxu1 %v3441_v58  ;;  %v6270_v6 = vadd.f32 %v8924_v56, %v8922_v55 }
 0x5d2   : > { %3160 = vst.msk [vmem:[#allocation3 + $0x58] sm:$0xff] %vm601_vm0, %v9015_v1  ;;  %3350 = vst.msk [vmem:[#allocation3 + $0x20] sm:$0xff] %vm601_vm0, %v9015_v1  ;;  %v3074_v17 = vmax.f32 %v3052_v3, 0.0  ;;  %v2952_v25 = vadd.f32 %v6320_v4, %v2847_v41  ;;  %v3455_v55 = vld [vmem:[%s10663_s7 + $0x1c8] sm:$0xff]  ;;  %6409 = vmatprep.subr.mxu1 %v3456_v57 }
 0x5d3   : > { %v6322_v29 = vpop.f32.mrf.mxu0  ;;  %v3168_v30 = vld [vmem:[#allocation2 + $0x30] sm:$0xff]  ;;  %6410 = vmatpush3.msra.mxu1 %v3440_v62  ;;  %v2857_v3 = vadd.f32 %v6270_v6, %v8920_v61 }
 0x5d4   : > { %v9051_v49 = vld [vmem:[#allocation2 + $0x31] sm:$0xff]  ;;  %3082 = vst.msk [vmem:[#allocation2 + $0x51] sm:$0xff] %vm601_vm0, %v3074_v17  ;;  %v3057_v63 = vadd.f32 %v8969_v50, %v2952_v25  ;;  %v6323_v27 = vadd.f32 %v6322_v29, %v6321_v31  ;;  %3182 = vrot.lane.b32.xlu0 %v8971_v60, %s7133_s1  ;;  %3097 = vst.msk [vmem:[#allocation3 + $0x78] sm:$0xff] %vm601_vm0, %v3168_v30  ;;  %v3061_v50 = vpop.f32.mrf.mxu1  ;;  %6411 = vmatprep.subr.mxu1 %v3455_v55  ;;  %v3438_v31 = vld [vmem:[%s10663_s7 + $0x140] sm:$0xff] }
 0x5d5   : > { %v9053_v37 = vld [vmem:[#allocation2 + $0x32] sm:$0xff]  ;;  %3120 = vrot.lane.b32.xlu1 %v8973_v46, %s7133_s1  ;;  %3224 = vst.msk [vmem:[#allocation3 + $0x60] sm:$0xff] %vm601_vm0, %v9051_v49  ;;  %3287 = vst.msk [vmem:[#allocation3 + $0x40] sm:$0xff] %vm601_vm0, %v3168_v30  ;;  %v6324_v56 = vpop.f32.mrf.mxu0  ;;  %6412 = vmatpush3.msra.mxu1 %v3439_v38 }
 0x5d6   : > { %3161 = vst.msk [vmem:[#allocation3 + $0x80] sm:$0xff] %vm601_vm0, %v9053_v37  ;;  %3351 = vst.msk [vmem:[#allocation3 + $0x48] sm:$0xff] %vm601_vm0, %v9053_v37  ;;  %v3075_v60 = vmax.f32 %v3057_v63, 0.0  ;;  %v2957_v46 = vadd.f32 %v6323_v27, %v2852_v23  ;;  %6413 = vmatprep.subr.mxu1 %v3454_v51  ;;  %v3453_v17 = vld [vmem:[%s10663_s7 + $0x1b8] sm:$0xff]  ;;  %v3452_v6 = vld [vmem:[%s10663_s7 + $0x1b0] sm:$0xff] }
 0x5d7   : > { %v6325_v34 = vpop.f32.mrf.mxu0  ;;  %v3169_v39 = vld [vmem:[#allocation2 + $0x40] sm:$0xff]  ;;  %v3437_v25 = vld [vmem:[%s10663_s7 + $0x138] sm:$0xff]  ;;  %6414 = vmatpush3.msra.mxu1 %v3438_v31  ;;  %v3451_v63 = vld [vmem:[%s10663_s7 + $0x1a8] sm:$0xff] }
 0x5d8   : > { %v9080_v43 = vld [vmem:[#allocation2 + $0x41] sm:$0xff]  ;;  %3083 = vst.msk [vmem:[#allocation2 + $0x61] sm:$0xff] %vm601_vm0, %v3075_v60  ;;  %v6326_v4 = vadd.f32 %v6325_v34, %v6324_v56  ;;  %v3062_v36 = vadd.f32 %v3061_v50, %v2957_v46  ;;  %3188 = vrot.lane.b32.xlu0 %v3169_v39, %s7133_s1  ;;  %3098 = vst.msk [vmem:[#allocation3 + $0xa0] sm:$0xff] %vm601_vm0, %v3169_v39  ;;  %6415 = vmatprep.subr.mxu1 %v3453_v17 }
 0x5d9   : > { %v9082_v41 = vld [vmem:[#allocation2 + $0x42] sm:$0xff]  ;;  %3126 = vrot.lane.b32.xlu1 %v9080_v43, %s7133_s1  ;;  %3225 = vst.msk [vmem:[#allocation3 + $0x88] sm:$0xff] %vm601_vm0, %v9080_v43  ;;  %3288 = vst.msk [vmem:[#allocation3 + $0x68] sm:$0xff] %vm601_vm0, %v3169_v39  ;;  %6416 = vmatpush3.msra.mxu1 %v3437_v25  ;;  %v3449_v39 = vld [vmem:[%s10663_s7 + $0x198] sm:$0xff] }
 0x5da   : > { %3162 = vst.msk [vmem:[#allocation3 + $0xa8] sm:$0xff] %vm601_vm0, %v9082_v41  ;;  %3352 = vst.msk [vmem:[#allocation3 + $0x70] sm:$0xff] %vm601_vm0, %v9082_v41  ;;  %v2962_v61 = vadd.f32 %v6326_v4, %v2857_v3  ;;  %v3076_v58 = vmax.f32 %v3062_v36, 0.0  ;;  %6417 = vmatprep.subr.mxu1 %v3452_v6  ;;  %v3435_v50 = vld [vmem:[%s10663_s7 + $0x128] sm:$0xff]  ;;  %v3450_v60 = vld [vmem:[%s10663_s7 + $0x1a0] sm:$0xff] }
 0x5db   : > { %v3170_v57 = vld [vmem:[#allocation2 + $0x50] sm:$0xff]  ;;  %v3434_v46 = vld [vmem:[%s10663_s7 + $0x120] sm:$0xff]  ;;  %v3433_v3 = vld [vmem:[%s10663_s7 + $0x118] sm:$0xff] }
 0x5dc   : > { %v9106_v62 = vld [vmem:[#allocation2 + $0x51] sm:$0xff]  ;;  %v3067_v29 = vadd.f32 %v9038_v35, %v2962_v61  ;;  %3084 = vst.msk [vmem:[#allocation2 + $0x71] sm:$0xff] %vm601_vm0, %v3076_v58  ;;  %3186 = vrot.lane.b32.xlu0 %v3168_v30, %s7133_s1  ;;  %3099 = vst.msk [vmem:[#allocation3 + $0xc8] sm:$0xff] %vm601_vm0, %v3170_v57  ;;  %v3447_v17 = vld [vmem:[%s10663_s7 + $0x188] sm:$0xff] }
 0x5dd   : > { %v9108_v23 = vld [vmem:[#allocation2 + $0x52] sm:$0xff]  ;;  %3124 = vrot.lane.b32.xlu1 %v9051_v49, %s7133_s1  ;;  %3226 = vst.msk [vmem:[#allocation3 + $0xb0] sm:$0xff] %vm601_vm0, %v9106_v62  ;;  %3289 = vst.msk [vmem:[#allocation3 + $0x90] sm:$0xff] %vm601_vm0, %v3170_v57  ;;  %v3446_v25 = vld [vmem:[%s10663_s7 + $0x180] sm:$0xff] }
 0x5de   : > { %3163 = vst.msk [vmem:[#allocation3 + $0xd0] sm:$0xff] %vm601_vm0, %v9108_v23  ;;  %3353 = vst.msk [vmem:[#allocation3 + $0x98] sm:$0xff] %vm601_vm0, %v9108_v23  ;;  %v3077_v35 = vmax.f32 %v3067_v29, 0.0  ;;  %v3436_v30 = vld [vmem:[%s10663_s7 + $0x130] sm:$0xff] }
 0x5df   : > { %v3171_v27 = vld [vmem:[#allocation2 + $0x60] sm:$0xff]  ;;  %6418 = vmatpush3.msra.mxu1 %v3436_v30  ;;  %v3448_v4 = vld [vmem:[%s10663_s7 + $0x190] sm:$0xff] }
 0x5e0   : > { %v9132_v55 = vld [vmem:[#allocation2 + $0x61] sm:$0xff]  ;;  %3085 = vst.msk [vmem:[#allocation2 + $0x81] sm:$0xff] %vm601_vm0, %v3077_v35  ;;  %3192 = vrot.lane.b32.xlu0 %v3171_v27, %s7133_s1  ;;  %3100 = vst.msk [vmem:[#allocation3 + $0xf0] sm:$0xff] %vm601_vm0, %v3171_v27  ;;  %6419 = vmatprep.subr.mxu1 %v3451_v63  ;;  %v3432_v58 = vld [vmem:[%s10663_s7 + $0x110] sm:$0xff] }
 0x5e1   : > { %v9134_v56 = vld [vmem:[#allocation2 + $0x62] sm:$0xff]  ;;  %3130 = vrot.lane.b32.xlu1 %v9132_v55, %s7133_s1  ;;  %3227 = vst.msk [vmem:[#allocation3 + $0xd8] sm:$0xff] %vm601_vm0, %v9132_v55  ;;  %3290 = vst.msk [vmem:[#allocation3 + $0xb8] sm:$0xff] %vm601_vm0, %v3171_v27  ;;  %6420 = vmatpush3.msra.mxu1 %v3435_v50 }
 0x5e2   : > { %3164 = vst.msk [vmem:[#allocation3 + $0xf8] sm:$0xff] %vm601_vm0, %v9134_v56  ;;  %3354 = vst.msk [vmem:[#allocation3 + $0xc0] sm:$0xff] %vm601_vm0, %v9134_v56  ;;  %6421 = vmatprep.subr.mxu1 %v3450_v60  ;;  %v3467_v60 = vld [vmem:[%s10663_s7 + $0x228] sm:$0xff] }
 0x5e3   : > { %v3172_v38 = vld [vmem:[#allocation2 + $0x70] sm:$0xff]  ;;  %6422 = vmatpush3.msra.mxu1 %v3434_v46 }
 0x5e4   : > { %v3109_v51 = vld [vmem:[#allocation2 + $0x71] sm:$0xff]  ;;  %3190 = vrot.lane.b32.xlu0 %v3170_v57, %s7133_s1  ;;  %3101 = vst.msk [vmem:[#allocation3 + $0x118] sm:$0xff] %vm601_vm0, %v3172_v38  ;;  %3291 = vst.msk [vmem:[#allocation3 + $0xe0] sm:$0xff] %vm601_vm0, %v3172_v38  ;;  %6423 = vmatprep.subr.mxu1 %v3449_v39  ;;  %v3430_v57 = vld [vmem:[%s10663_s7 + $0x100] sm:$0xff] }
 0x5e5   : > { %v3236_v34 = vld [vmem:[#allocation2 + $0x72] sm:$0xff]  ;;  %3128 = vrot.lane.b32.xlu1 %v9106_v62, %s7133_s1  ;;  %3228 = vst.msk [vmem:[#allocation3 + $0x100] sm:$0xff] %vm601_vm0, %v3109_v51  ;;  %6424 = vmatpush3.msra.mxu1 %v3433_v3 }
 0x5e6   : > { %3165 = vst.msk [vmem:[#allocation3 + $0x120] sm:$0xff] %vm601_vm0, %v3236_v34  ;;  %3355 = vst.msk [vmem:[#allocation3 + $0xe8] sm:$0xff] %vm601_vm0, %v3236_v34  ;;  %6425 = vmatprep.subr.mxu1 %v3448_v4 }
 0x5e7   : > { %v3173_v36 = vld [vmem:[#allocation2 + $0x80] sm:$0xff]  ;;  %6426 = vmatpush3.msra.mxu1 %v3432_v58 }
 0x5e8   : > { %v3237_v31 = vld [vmem:[#allocation2 + $0x82] sm:$0xff]  ;;  %3196 = vrot.lane.b32.xlu0 %v3173_v36, %s7133_s1  ;;  %3292 = vst.msk [vmem:[#allocation3 + $0x108] sm:$0xff] %vm601_vm0, %v3173_v36  ;;  %6427 = vmatprep.subr.mxu1 %v3447_v17  ;;  %v3464_v36 = vld [vmem:[%s10663_s7 + $0x210] sm:$0xff] }
 0x5e9   : > { %v3300_v61 = vld [vmem:[#allocation2 + $0x81] sm:$0xff]  ;;  %3310 = vrot.lane.b32.xlu1 %v9013_v42, %s7133_s1  ;;  %3356 = vst.msk [vmem:[#allocation3 + $0x110] sm:$0xff] %vm601_vm0, %v3237_v31 }
 0x5ea   : > { %3229 = vst.msk [vmem:[#allocation3 + $0x128] sm:$0xff] %vm601_vm0, %v3300_v61  ;;  %v3431_v42 = vld [vmem:[%s10663_s7 + $0x108] sm:$0xff] }
 0x5eb   : > { %6428 = vmatpush3.msra.mxu1 %v3431_v42 }
 0x5ec   : > { %3194 = vrot.lane.b32.xlu0 %v3172_v38, %s7133_s1  ;;  %6429 = vmatprep.subr.mxu1 %v3446_v25  ;;  %v3462_v25 = vld [vmem:[%s10663_s7 + $0x200] sm:$0xff] }
 0x5ed   : > { %3246 = vrot.lane.b32.xlu1 %v8975_v21, %s7133_s1  ;;  %6430 = vmatpush3.msra.mxu1 %v3430_v57  ;;  %v3285_v21 = vld [vmem:[#allocation2 + $0x90] sm:$0xff] }
 0x5ee   : > { %3927 = vmatprep.subr.mxu1 %v7132_v0  ;;  %3293 = vst.msk [vmem:[#allocation3 + $0x130] sm:$0xff] %vm601_vm0, %v3285_v21 }
 0x5f0   : > { %3132 = vrot.lane.b32.xlu0 %v3109_v51, %s7133_s1 }
 0x5f1   : > { %3248 = vrot.lane.b32.xlu1 %v9015_v1, %s7133_s1  ;;  %v9221_v1 = vld [vmem:[#allocation3 + $0x138] sm:$0xff] }
 0x5f4   : > { %3312 = vrot.lane.b32.xlu0 %v9051_v49, %s7133_s1  ;;  %v4311_v49 = vld [vmem:[#allocation2 + $0x92] sm:$0xff] }
 0x5f5   : > { %3250 = vrot.lane.b32.xlu1 %v9053_v37, %s7133_s1  ;;  %4319 = vst.msk [vmem:[#allocation3 + $0x138] sm:$0xff] %vm601_vm0, %v4311_v49  ;;  %v3301_v37 = vld [vmem:[#allocation2 + $0x91] sm:$0xff] }
 0x5f8   : > { %3314 = vrot.lane.b32.xlu0 %v9080_v43, %s7133_s1 }
 0x5f9   : > { %3252 = vrot.lane.b32.xlu1 %v9082_v41, %s7133_s1 }
 0x5fc   : > { %3316 = vrot.lane.b32.xlu0 %v9106_v62, %s7133_s1 }
 0x5fd   : > { %3254 = vrot.lane.b32.xlu1 %v9108_v23, %s7133_s1 }
 0x600   : > { %3318 = vrot.lane.b32.xlu0 %v9132_v55, %s7133_s1 }
 0x601   : > { %3256 = vrot.lane.b32.xlu1 %v9134_v56, %s7133_s1  ;;  %v3468_v56 = vld [vmem:[%s10663_s7 + $0x230] sm:$0xff] }
 0x604   : > { %3320 = vrot.lane.b32.xlu0 %v3109_v51, %s7133_s1 }
 0x605   : > { %3258 = vrot.lane.b32.xlu1 %v3236_v34, %s7133_s1 }
 0x608   : > { %3322 = vrot.lane.b32.xlu0 %v3300_v61, %s7133_s1  ;;  %v3463_v61 = vld [vmem:[%s10663_s7 + $0x208] sm:$0xff] }
 0x609   : > { %3260 = vrot.lane.b32.xlu1 %v3237_v31, %s7133_s1 }
 0x60c   : > { %3324 = vrot.lane.b32.xlu0 %v3301_v37, %s7133_s1 }
 0x642   : > { %v3185_v41 = vpop.permute.xlu0 %3184 }
 0x643   : > { %v3123_v43 = vpop.permute.xlu1 %3122  ;;  %3207 = vst.msk [vmem:[#allocation3 + $0x30] sm:$0xff] %vm702_vm3, %v3185_v41 }
 0x644   : > { %3144 = vst.msk [vmem:[#allocation3 + $0x50] sm:$0xff] %vm702_vm3, %v3123_v43 }
 0x646   : > { %v3183_v23 = vpop.permute.xlu0 %3182 }
 0x647   : > { %v3121_v62 = vpop.permute.xlu1 %3120  ;;  %3206 = vst.msk [vmem:[#allocation3 + $0x8] sm:$0xff] %vm702_vm3, %v3183_v23 }
 0x648   : > { %3143 = vst.msk [vmem:[#allocation3 + $0x28] sm:$0xff] %vm702_vm3, %v3121_v62 }
 0x64a   : > { %v3189_v6 = vpop.permute.xlu0 %3188  ;;  %v3364_v50 = vld [vmem:[#allocation3 + $0x30] sm:$0xff] }
 0x64b   : > { %v3127_v29 = vpop.permute.xlu1 %3126  ;;  %v3368_v35 = vld [vmem:[#allocation3 + $0x50] sm:$0xff]  ;;  %3209 = vst.msk [vmem:[#allocation3 + $0x80] sm:$0xff] %vm702_vm3, %v3189_v6 }
 0x64c   : > { %3146 = vst.msk [vmem:[#allocation3 + $0xa0] sm:$0xff] %vm702_vm3, %v3127_v29 }
 0x64d   : > { %3834 = vst.msk [vmem:[#allocation3 + $0x50] sm:$0xff] %vm601_vm0, %v7369_v12 }
 0x64e   : > { %3842 = vst.msk [vmem:[#allocation3 + $0x50] sm:$0xff] %vm702_vm3, %v8365_v45  ;;  %v3187_v63 = vpop.permute.xlu0 %3186  ;;  %v3359_v27 = vld [vmem:[#allocation3 + $0x8] sm:$0xff] }
 0x64f   : > { %v3125_v30 = vpop.permute.xlu1 %3124  ;;  %v3363_v55 = vld [vmem:[#allocation3 + $0x28] sm:$0xff]  ;;  %3208 = vst.msk [vmem:[#allocation3 + $0x58] sm:$0xff] %vm702_vm3, %v3187_v63  ;;  %3565 = vmatprep.mubr.f32.mxu0 %v3359_v27 }
 0x650   : > { %3145 = vst.msk [vmem:[#allocation3 + $0x78] sm:$0xff] %vm702_vm3, %v3125_v30  ;;  %3566 = vmatmul.mubr.f32.vlgmr.msra.gmra.mxu0 %v8843_v47  ;;  %v3466_v47 = vld [vmem:[%s10663_s7 + $0x220] sm:$0xff] }
 0x651   : > { %3833 = vst.msk [vmem:[#allocation3 + $0x28] sm:$0xff] %vm601_vm0, %v7365_v10  ;;  %6912 = vmatpush3.msra.mxu0 %v9031_v44  ;;  %3570 = vmatprep.mubr.f32.mxu0 %v3364_v50  ;;  %v3465_v44 = vld [vmem:[%s10663_s7 + $0x218] sm:$0xff]  ;;  %v3362_v50 = vld [vmem:[#allocation3 + $0x20] sm:$0xff] }
 0x652   : > { %3841 = vst.msk [vmem:[#allocation3 + $0x28] sm:$0xff] %vm702_vm3, %v8361_v40  ;;  %v3193_v38 = vpop.permute.xlu0 %3192  ;;  %6913 = vmatprep.subr.mxu0 %v3468_v56  ;;  %v3374_v31 = vld [vmem:[#allocation3 + $0x80] sm:$0xff] }
 0x653   : > { %v3131_v46 = vpop.permute.xlu1 %3130  ;;  %v3378_v51 = vld [vmem:[#allocation3 + $0xa0] sm:$0xff]  ;;  %3211 = vst.msk [vmem:[#allocation3 + $0xd0] sm:$0xff] %vm702_vm3, %v3193_v38  ;;  %6914 = vmatpush3.msra.mxu0 %v3468_v56 }
 0x654   : > { %3148 = vst.msk [vmem:[#allocation3 + $0xf0] sm:$0xff] %vm702_vm3, %v3131_v46  ;;  %3571 = vmatmul.mubr.f32.gmra.mxu0 %v3363_v55  ;;  %6915 = vmatprep.subr.mxu0 %v3467_v60 }
 0x655   : > { %3836 = vst.msk [vmem:[#allocation3 + $0xa0] sm:$0xff] %vm601_vm0, %v7382_v15  ;;  %6916 = vmatpush3.msra.mxu0 %v3467_v60 }
 0x656   : > { %3844 = vst.msk [vmem:[#allocation3 + $0xa0] sm:$0xff] %vm702_vm3, %v8373_v22  ;;  %v3191_v39 = vpop.permute.xlu0 %3190  ;;  %v3369_v3 = vld [vmem:[#allocation3 + $0x58] sm:$0xff]  ;;  %6917 = vmatprep.subr.mxu0 %v3466_v47 }
 0x657   : > { %v3129_v34 = vpop.permute.xlu1 %3128  ;;  %v3373_v4 = vld [vmem:[#allocation3 + $0x78] sm:$0xff]  ;;  %3210 = vst.msk [vmem:[#allocation3 + $0xa8] sm:$0xff] %vm702_vm3, %v3191_v39  ;;  %3575 = vmatprep.mubr.f32.mxu0 %v3369_v3  ;;  %6918 = vmatpush3.msra.mxu0 %v3466_v47  ;;  %v3367_v47 = vld [vmem:[#allocation3 + $0x48] sm:$0xff] }
 0x658   : > { %3147 = vst.msk [vmem:[#allocation3 + $0xc8] sm:$0xff] %vm702_vm3, %v3129_v34  ;;  %3576 = vmatmul.mubr.f32.gmra.mxu0 %v3368_v35  ;;  %6919 = vmatprep.subr.mxu0 %v3465_v44 }
 0x659   : > { %3835 = vst.msk [vmem:[#allocation3 + $0x78] sm:$0xff] %vm601_vm0, %v7380_v14  ;;  %3580 = vmatprep.mubr.f32.mxu0 %v3374_v31  ;;  %6920 = vmatpush3.msra.mxu0 %v3465_v44  ;;  %v3372_v44 = vld [vmem:[#allocation3 + $0x70] sm:$0xff]  ;;  %v3382_v31 = vld [vmem:[#allocation3 + $0xc0] sm:$0xff] }
 0x65a   : > { %3843 = vst.msk [vmem:[#allocation3 + $0x78] sm:$0xff] %vm702_vm3, %v8369_v13  ;;  %v3197_v17 = vpop.permute.xlu0 %3196  ;;  %6921 = vmatprep.subr.mxu0 %v3464_v36  ;;  %v3384_v43 = vld [vmem:[#allocation3 + $0xd0] sm:$0xff] }
 0x65b   : > { %v3311_v58 = vpop.permute.xlu1 %3310  ;;  %v3388_v42 = vld [vmem:[#allocation3 + $0xf0] sm:$0xff]  ;;  %3213 = vst.msk [vmem:[#allocation3 + $0x120] sm:$0xff] %vm702_vm3, %v3197_v17  ;;  %6922 = vmatpush3.msra.mxu0 %v3464_v36  ;;  %v3377_v36 = vld [vmem:[#allocation3 + $0x98] sm:$0xff] }
 0x65c   : > { %3334 = vst.msk [vmem:[#allocation3 + $0x18] sm:$0xff] %vm702_vm3, %v3311_v58  ;;  %3581 = vmatmul.mubr.f32.gmra.mxu0 %v3373_v4  ;;  %6923 = vmatprep.subr.mxu0 %v3463_v61 }
 0x65d   : > { %3838 = vst.msk [vmem:[#allocation3 + $0xf0] sm:$0xff] %vm601_vm0, %v7392_v18  ;;  %6924 = vmatpush3.msra.mxu0 %v3463_v61 }
 0x65e   : > { %3846 = vst.msk [vmem:[#allocation3 + $0xf0] sm:$0xff] %vm702_vm3, %v8381_v26  ;;  %v3195_v21 = vpop.permute.xlu0 %3194  ;;  %v3379_v49 = vld [vmem:[#allocation3 + $0xa8] sm:$0xff]  ;;  %6925 = vmatprep.subr.mxu0 %v3462_v25 }
 0x65f   : > { %v3247_v57 = vpop.permute.xlu1 %3246  ;;  %v3383_v37 = vld [vmem:[#allocation3 + $0xc8] sm:$0xff]  ;;  %3212 = vst.msk [vmem:[#allocation3 + $0xf8] sm:$0xff] %vm702_vm3, %v3195_v21  ;;  %3585 = vmatprep.mubr.f32.mxu0 %v3379_v49  ;;  %6926 = vmatpush3.msra.mxu0 %v3462_v25 }
 0x660   : > { %3270 = vst.msk [vmem:[#allocation3 + $0x10] sm:$0xff] %vm702_vm3, %v3247_v57  ;;  %3586 = vmatmul.mubr.f32.gmra.mxu0 %v3378_v51  ;;  %v3387_v25 = vld [vmem:[#allocation3 + $0xe8] sm:$0xff]  ;;  %v3392_v57 = vld [vmem:[#allocation3 + $0x110] sm:$0xff] }
 0x661   : > { %3837 = vst.msk [vmem:[#allocation3 + $0xc8] sm:$0xff] %vm601_vm0, %v7384_v16  ;;  %3590 = vmatprep.mubr.f32.mxu0 %v3384_v43 }
 0x662   : > { %3845 = vst.msk [vmem:[#allocation3 + $0xc8] sm:$0xff] %vm702_vm3, %v8377_v24  ;;  %v3133_v62 = vpop.permute.xlu0 %3132  ;;  %v3394_v63 = vld [vmem:[#allocation3 + $0x120] sm:$0xff] }
 0x663   : > { %v3249_v41 = vpop.permute.xlu1 %3248  ;;  %v3361_v23 = vld [vmem:[#allocation3 + $0x18] sm:$0xff]  ;;  %3149 = vst.msk [vmem:[#allocation3 + $0x118] sm:$0xff] %vm702_vm3, %v3133_v62 }
 0x664   : > { %3271 = vst.msk [vmem:[#allocation3 + $0x38] sm:$0xff] %vm702_vm3, %v3249_v41  ;;  %3670 = vmatprep.mubr.f32.mxu1 %v3361_v23  ;;  %3591 = vmatmul.mubr.f32.gmra.mxu0 %v3383_v37 }
 0x666   : > { %v3313_v6 = vpop.permute.xlu0 %3312  ;;  %v3389_v35 = vld [vmem:[#allocation3 + $0xf8] sm:$0xff] }
 0x667   : > { %v3251_v29 = vpop.permute.xlu1 %3250  ;;  %v3360_v30 = vld [vmem:[#allocation3 + $0x10] sm:$0xff]  ;;  %3335 = vst.msk [vmem:[#allocation3 + $0x40] sm:$0xff] %vm702_vm3, %v3313_v6  ;;  %3595 = vmatprep.mubr.f32.mxu0 %v3389_v35 }
 0x668   : > { %3272 = vst.msk [vmem:[#allocation3 + $0x60] sm:$0xff] %vm702_vm3, %v3251_v29  ;;  %3671 = vmatmul.mubr.f32.vlgmr.msra.gmra.mxu1 %v3360_v30  ;;  %3596 = vmatmul.mubr.f32.gmra.mxu0 %v3388_v42 }
 0x669   : > { %3600 = vmatprep.mubr.f32.mxu0 %v3394_v63  ;;  %v3887_v63 = vld [vmem:[%s10671_s15 + $0x78] sm:$0xff] }
 0x66a   : > { %v3315_v55 = vpop.permute.xlu0 %3314  ;;  %v3393_v56 = vld [vmem:[#allocation3 + $0x118] sm:$0xff]  ;;  %3928 = vmatpush1.msra.mxu1 %v3887_v63 }
 0x66b   : > { %v3253_v27 = vpop.permute.xlu1 %3252  ;;  %3336 = vst.msk [vmem:[#allocation3 + $0x68] sm:$0xff] %vm702_vm3, %v3315_v55  ;;  %v3365_v51 = vld [vmem:[#allocation3 + $0x38] sm:$0xff]  ;;  %3929 = vmatprep.subr.mxu1 %v7132_v0  ;;  %v3884_v55 = vld [vmem:[%s10671_s15 + $0x60] sm:$0xff] }
 0x66c   : > { %3273 = vst.msk [vmem:[#allocation3 + $0x88] sm:$0xff] %vm702_vm3, %v3253_v27  ;;  %3601 = vmatmul.mubr.f32.gmra.mxu0 %v3393_v56  ;;  %v3885_v27 = vld [vmem:[%s10671_s15 + $0x68] sm:$0xff]  ;;  %v3883_v56 = vld [vmem:[%s10671_s15 + $0x58] sm:$0xff] }
 0x66d   : > { %3839 = vst.msk [vmem:[#allocation3 + $0x118] sm:$0xff] %vm601_vm0, %v7394_v19  ;;  %6927 = vmatprep.mubr.msk.f32.mxu0 %vm601_vm0, %v3362_v50  ;;  %v3882_v50 = vld [vmem:[%s10671_s15 + $0x50] sm:$0xff] }
 0x66e   : > { %3847 = vst.msk [vmem:[#allocation3 + $0x118] sm:$0xff] %vm702_vm3, %v8385_v28  ;;  %v3317_v46 = vpop.permute.xlu0 %3316  ;;  %v3366_v38 = vld [vmem:[#allocation3 + $0x40] sm:$0xff] }
 0x66f   : > { %v3255_v60 = vpop.permute.xlu1 %3254  ;;  %3337 = vst.msk [vmem:[#allocation3 + $0x90] sm:$0xff] %vm702_vm3, %v3317_v46  ;;  %3675 = vmatprep.mubr.f32.mxu1 %v3366_v38  ;;  %v3370_v4 = vld [vmem:[#allocation3 + $0x60] sm:$0xff]  ;;  %v3879_v38 = vld [vmem:[%s10671_s15 + $0x38] sm:$0xff] }
 0x670   : > { %3274 = vst.msk [vmem:[#allocation3 + $0xb0] sm:$0xff] %vm702_vm3, %v3255_v60  ;;  %3676 = vmatmul.mubr.f32.gmra.mxu1 %v3365_v51  ;;  %6928 = vmatmul.mubr.msk.f32.vlgmr.msra.gmra.mxu0 %vm601_vm0, %v3367_v47  ;;  %v3881_v60 = vld [vmem:[%s10671_s15 + $0x48] sm:$0xff]  ;;  %v3880_v46 = vld [vmem:[%s10671_s15 + $0x40] sm:$0xff]  ;;  %v3878_v51 = vld [vmem:[%s10671_s15 + $0x30] sm:$0xff] }
 0x671   : > { %6930 = vmatprep.mubr.msk.f32.mxu0 %vm601_vm0, %v3372_v44  ;;  %v3877_v47 = vld [vmem:[%s10671_s15 + $0x28] sm:$0xff]  ;;  %v3876_v44 = vld [vmem:[%s10671_s15 + $0x20] sm:$0xff] }
 0x672   : > { %v3319_v39 = vpop.permute.xlu0 %3318  ;;  %v3371_v3 = vld [vmem:[#allocation3 + $0x68] sm:$0xff] }
 0x673   : > { %v3257_v34 = vpop.permute.xlu1 %3256  ;;  %3338 = vst.msk [vmem:[#allocation3 + $0xb8] sm:$0xff] %vm702_vm3, %v3319_v39  ;;  %3680 = vmatprep.mubr.f32.mxu1 %v3371_v3  ;;  %v3375_v42 = vld [vmem:[#allocation3 + $0x88] sm:$0xff]  ;;  %v3874_v39 = vld [vmem:[%s10671_s15 + $0x10] sm:$0xff] }
 0x674   : > { %3275 = vst.msk [vmem:[#allocation3 + $0xd8] sm:$0xff] %vm702_vm3, %v3257_v34  ;;  %3681 = vmatmul.mubr.f32.gmra.mxu1 %v3370_v4  ;;  %6931 = vmatmul.mubr.msk.f32.gmra.mxu0 %vm601_vm0, %v3377_v36  ;;  %v3875_v34 = vld [vmem:[%s10671_s15 + $0x18] sm:$0xff]  ;;  %v3873_v3 = vld [vmem:[%s10671_s15 + $0x8] sm:$0xff]  ;;  %v3872_v4 = vld [vmem:[%s10671_s15] sm:$0xff] }
 0x675   : > { %6933 = vmatprep.mubr.msk.f32.mxu0 %vm601_vm0, %v3382_v31  ;;  %v3895_v36 = vld [vmem:[%s10671_s15 + $0xb8] sm:$0xff]  ;;  %v3894_v31 = vld [vmem:[%s10671_s15 + $0xb0] sm:$0xff] }
 0x676   : > { %v3321_v58 = vpop.permute.xlu0 %3320  ;;  %v3376_v17 = vld [vmem:[#allocation3 + $0x90] sm:$0xff] }
 0x677   : > { %v3259_v61 = vpop.permute.xlu1 %3258  ;;  %3339 = vst.msk [vmem:[#allocation3 + $0xe0] sm:$0xff] %vm702_vm3, %v3321_v58  ;;  %3685 = vmatprep.mubr.f32.mxu1 %v3376_v17  ;;  %v3380_v43 = vld [vmem:[#allocation3 + $0xb0] sm:$0xff]  ;;  %v3892_v58 = vld [vmem:[%s10671_s15 + $0xa0] sm:$0xff]  ;;  %v3891_v17 = vld [vmem:[%s10671_s15 + $0x98] sm:$0xff] }
 0x678   : > { %3276 = vst.msk [vmem:[#allocation3 + $0x100] sm:$0xff] %vm702_vm3, %v3259_v61  ;;  %3686 = vmatmul.mubr.f32.gmra.mxu1 %v3375_v42  ;;  %6934 = vmatmul.mubr.msk.f32.gmra.mxu0 %vm601_vm0, %v3387_v25  ;;  %v3893_v61 = vld [vmem:[%s10671_s15 + $0xa8] sm:$0xff]  ;;  %v3890_v42 = vld [vmem:[%s10671_s15 + $0x90] sm:$0xff] }
 0x679   : > { %6936 = vmatprep.mubr.msk.f32.mxu0 %vm601_vm0, %v3392_v57  ;;  %v3889_v25 = vld [vmem:[%s10671_s15 + $0x88] sm:$0xff]  ;;  %v3888_v57 = vld [vmem:[%s10671_s15 + $0x80] sm:$0xff] }
 0x67a   : > { %v3323_v49 = vpop.permute.xlu0 %3322  ;;  %v3381_v37 = vld [vmem:[#allocation3 + $0xb8] sm:$0xff] }
 0x67b   : > { %v3261_v21 = vpop.permute.xlu1 %3260  ;;  %3340 = vst.msk [vmem:[#allocation3 + $0x108] sm:$0xff] %vm702_vm3, %v3323_v49  ;;  %3690 = vmatprep.mubr.f32.mxu1 %v3381_v37  ;;  %v3385_v23 = vld [vmem:[#allocation3 + $0xd8] sm:$0xff] }
 0x67c   : > { %3277 = vst.msk [vmem:[#allocation3 + $0x128] sm:$0xff] %vm702_vm3, %v3261_v21  ;;  %3691 = vmatmul.mubr.f32.gmra.mxu1 %v3380_v43  ;;  %6937 = vmatmul.mubr.msk.f32.gmra.mxu0 %vm601_vm0, %v9221_v1  ;;  %v3886_v1 = vld [vmem:[%s10671_s15 + $0x70] sm:$0xff] }
 0x67d   : > { %3930 = vmatpush1.msra.mxu1 %v3886_v1 }
 0x67e   : > { %v3325_v41 = vpop.permute.xlu0 %3324  ;;  %v3386_v62 = vld [vmem:[#allocation3 + $0xe0] sm:$0xff]  ;;  %3931 = vmatprep.subr.mxu1 %v7132_v0 }
 0x67f   : > { %3341 = vst.msk [vmem:[#allocation3 + $0x130] sm:$0xff] %vm702_vm3, %v3325_v41  ;;  %3695 = vmatprep.mubr.f32.mxu1 %v3386_v62  ;;  %v3390_v6 = vld [vmem:[#allocation3 + $0x100] sm:$0xff]  ;;  %3932 = vmatpush1.msra.mxu1 %v3885_v27 }
 0x680   : > { %3696 = vmatmul.mubr.f32.gmra.mxu1 %v3385_v23  ;;  %3933 = vmatprep.subr.mxu1 %v7132_v0 }
 0x681   : > { %3934 = vmatpush1.msra.mxu1 %v3884_v55 }
 0x682   : > { %v3391_v29 = vld [vmem:[#allocation3 + $0x108] sm:$0xff]  ;;  %3935 = vmatprep.subr.mxu1 %v7132_v0 }
 0x683   : > { %3700 = vmatprep.mubr.f32.mxu1 %v3391_v29  ;;  %v3395_v30 = vld [vmem:[#allocation3 + $0x128] sm:$0xff]  ;;  %3936 = vmatpush1.msra.mxu1 %v3883_v56 }
 0x684   : > { %3701 = vmatmul.mubr.f32.gmra.mxu1 %v3390_v6  ;;  %3937 = vmatprep.subr.mxu1 %v7132_v0 }
 0x685   : > { %3938 = vmatpush1.msra.mxu1 %v3882_v50  ;;  %v9416_v50 = vld [vmem:[%s10664_s8] ss:$0 sm:$0xff] }
 0x686   : > { %v3396_v35 = vld [vmem:[#allocation3 + $0x130] sm:$0xff]  ;;  %3939 = vmatprep.subr.mxu1 %v7132_v0 }
 0x687   : > { %3705 = vmatprep.mubr.f32.mxu1 %v3396_v35  ;;  %3940 = vmatpush1.msra.mxu1 %v3881_v60 }
 0x688   : > { %3706 = vmatmul.mubr.f32.gmra.mxu1 %v3395_v30  ;;  %3941 = vmatprep.subr.mxu1 %v7132_v0 }
 0x689   : > { %3942 = vmatpush1.msra.mxu1 %v3880_v46 }
 0x68a   : > { %3943 = vmatprep.subr.mxu1 %v7132_v0 }
 0x68b   : > { %3944 = vmatpush1.msra.mxu1 %v3879_v38 }
 0x68c   : > { %3945 = vmatprep.subr.mxu1 %v7132_v0 }
 0x68d   : > { %3946 = vmatpush1.msra.mxu1 %v3878_v51 }
 0x68e   : > { %3947 = vmatprep.subr.mxu1 %v7132_v0 }
 0x68f   : > { %3948 = vmatpush1.msra.mxu1 %v3877_v47 }
 0x690   : > { %3949 = vmatprep.subr.mxu1 %v7132_v0 }
 0x691   : > { %3950 = vmatpush1.msra.mxu1 %v3876_v44 }
 0x692   : > { %3951 = vmatprep.subr.mxu1 %v7132_v0 }
 0x693   : > { %3952 = vmatpush1.msra.mxu1 %v3875_v34 }
 0x694   : > { %3953 = vmatprep.subr.mxu1 %v7132_v0 }
 0x695   : > { %3954 = vmatpush1.msra.mxu1 %v3874_v39 }
 0x696   : > { %3955 = vmatprep.subr.mxu1 %v7132_v0 }
 0x697   : > { %3956 = vmatpush1.msra.mxu1 %v3873_v3 }
 0x698   : > { %3957 = vmatprep.subr.mxu1 %v7132_v0 }
 0x699   : > { %3958 = vmatpush1.msra.mxu1 %v3872_v4 }
 0x69a   : > { %3975 = vmatprep.subr.mxu1 %v7132_v0 }
 0x69b   : > { %3976 = vmatpush2.msra.mxu1 %v3895_v36 }
 0x69c   : > { %3977 = vmatprep.subr.mxu1 %v7132_v0 }
 0x69d   : > { %3978 = vmatpush2.msra.mxu1 %v3894_v31 }
 0x69e   : > { %3979 = vmatprep.subr.mxu1 %v7132_v0 }
 0x69f   : > { %3980 = vmatpush2.msra.mxu1 %v3893_v61 }
 0x6a0   : > { %3981 = vmatprep.subr.mxu1 %v7132_v0 }
 0x6a1   : > { %3982 = vmatpush2.msra.mxu1 %v3892_v58 }
 0x6a2   : > { %3983 = vmatprep.subr.mxu1 %v7132_v0 }
 0x6a3   : > { %3984 = vmatpush2.msra.mxu1 %v3891_v17 }
 0x6a4   : > { %3985 = vmatprep.subr.mxu1 %v7132_v0 }
 0x6a5   : > { %3986 = vmatpush2.msra.mxu1 %v3890_v42 }
 0x6a6   : > { %3987 = vmatprep.subr.mxu1 %v7132_v0 }
 0x6a7   : > { %3988 = vmatpush2.msra.mxu1 %v3889_v25 }
 0x6a8   : > { %3989 = vmatprep.subr.mxu1 %v7132_v0 }
 0x6a9   : > { %3990 = vmatpush2.msra.mxu1 %v3888_v57 }
 0x710   : > { %v6375_v21 = vpop.f32.mrf.mxu0 }
 0x712   : > { %v6376_v49 = vpop.f32.mrf.mxu0 }
 0x713   : > { %v6377_v56 = vadd.f32 %v6376_v49, %v6375_v21 }
 0x714   : > { %v6378_v37 = vpop.f32.mrf.mxu0 }
 0x715   : > { %v3568_v51 = vadd.f32 %v6377_v56, %v9416_v50 }
 0x716   : > { %v6379_v43 = vpop.f32.mrf.mxu0 }
 0x717   : > { %v6380_v47 = vadd.f32 %v6379_v43, %v6378_v37 }
 0x718   : > { %v6381_v41 = vpop.f32.mrf.mxu0 }
 0x719   : > { %v3573_v31 = vadd.f32 %v6380_v47, %v9416_v50 }
 0x71a   : > { %v6382_v62 = vpop.f32.mrf.mxu0 }
 0x71b   : > { %v6383_v3 = vadd.f32 %v6382_v62, %v6381_v41 }
 0x71c   : > { %v6384_v23 = vpop.f32.mrf.mxu0 }
 0x71d   : > { %v3578_v57 = vadd.f32 %v6383_v3, %v9416_v50 }
 0x71e   : > { %v6385_v29 = vpop.f32.mrf.mxu0 }
 0x71f   : > { %v6386_v37 = vadd.f32 %v6385_v29, %v6384_v23 }
 0x720   : > { %v6387_v6 = vpop.f32.mrf.mxu0 }
 0x722   : > { %v6388_v35 = vpop.f32.mrf.mxu0 }
 0x724   : > { %v6390_v30 = vpop.f32.mrf.mxu0 }
 0x726   : > { %v6391_v63 = vpop.f32.mrf.mxu0 }
 0x728   : > { %v6431_v1 = vpop.f32.mrf.mxu1  ;;  %v6393_v27 = vpop.f32.mrf.mxu0 }
 0x72a   : > { %v6432_v0 = vpop.f32.mrf.mxu1  ;;  %v6394_v55 = vpop.f32.mrf.mxu0 }
 0x72b   : > { %v6433_v46 = vadd.f32 %v6432_v0, %v6431_v1 }
 0x72c   : > { %v9418_v60 = vpop.f32.mrf.mxu0 }
 0x72d   : > { %v3673_v39 = vadd.f32 %v6433_v46, %v3568_v51  ;;  %v3583_v51 = vadd.f32 %v6386_v37, %v9416_v50 }
 0x72e   : > { %v9420_v38 = vpop.f32.mrf.mxu0 }
 0x730   : > { %v6434_v44 = vpop.f32.mrf.mxu1  ;;  %v6929_v34 = vpop.f32.mrf.mxu0 }
 0x732   : > { %v6435_v4 = vpop.f32.mrf.mxu1  ;;  %v3777_v36 = vpop.f32.mrf.mxu0 }
 0x733   : > { %v6436_v61 = vadd.f32 %v6435_v4, %v6434_v44  ;;  %v3778_v58 = vadd.f32 %v3777_v36, %v3673_v39  ;;  %v6392_v39 = vadd.f32 %v6391_v63, %v6390_v30 }
 0x734   : > { %v6437_v17 = vpop.f32.mrf.mxu1  ;;  %v6932_v21 = vpop.f32.mrf.mxu0 }
 0x735   : > { %v3678_v42 = vadd.f32 %v6436_v61, %v3573_v31  ;;  %v9426_v25 = vadd.f32 %v3778_v58, %v2324_v48  ;;  %v6389_v48 = vadd.f32 %v6388_v35, %v6387_v6  ;;  %v3856_v58 = vld [vmem:[#allocation3] sm:$0xff] }
 0x736   : > { %v6438_v49 = vpop.f32.mrf.mxu1  ;;  %v3787_v56 = vpop.f32.mrf.mxu0 }
 0x737   : > { %v3783_v43 = vadd.f32 %v6929_v34, %v3678_v42  ;;  %v10706_v41 = vmax.f32 %v9426_v25, 0.0  ;;  %v6439_v62 = vadd.f32 %v6438_v49, %v6437_v17  ;;  %v3588_v6 = vadd.f32 %v6389_v48, %v9416_v50 }
 0x738   : > { %v6440_v1 = vpop.f32.mrf.mxu1  ;;  %v6935_v35 = vpop.f32.mrf.mxu0  ;;  %v6395_v17 = vadd.f32 %v6394_v55, %v6393_v27  ;;  %v3593_v42 = vadd.f32 %v6392_v39, %v9416_v50  ;;  %v3858_v55 = vld [vmem:[#allocation3 + $0x28] sm:$0xff]  ;;  %v6398_v48 = vadd.f32 %v9420_v38, %v9418_v60 }
 0x739   : > { %v9432_v0 = vadd.f32 %v3783_v43, %v2325_v7  ;;  %3848 = vst.msk [vmem:[#allocation3 + $0x8] sm:$0xff] %vm601_vm0, %v10706_v41  ;;  %v3683_v8 = vadd.f32 %v6439_v62, %v3578_v57 }
 0x73a   : > { %v6441_v46 = vpop.f32.mrf.mxu1  ;;  %v3797_v30 = vpop.f32.mrf.mxu0  ;;  %v3598_v62 = vadd.f32 %v6395_v17, %v9416_v50  ;;  %v3603_v38 = vadd.f32 %v6398_v48, %v9416_v50  ;;  %v4389_v48 = vld [vmem:[%s10665_s9 + $0xe8] sm:$0xff] }
 0x73b   : > { %v10707_v23 = vmax.f32 %v9432_v0, 0.0  ;;  %v3788_v29 = vadd.f32 %v3787_v56, %v3683_v8  ;;  %v6442_v47 = vadd.f32 %v6441_v46, %v6440_v1 }
 0x73c   : > { %v6443_v44 = vpop.f32.mrf.mxu1  ;;  %v6938_v8 = vpop.f32.mrf.mxu0 }
 0x73d   : > { %3849 = vst.msk [vmem:[#allocation3 + $0x30] sm:$0xff] %vm601_vm0, %v10707_v23  ;;  %v9444_v5 = vadd.f32 %v3788_v29, %v2326_v52  ;;  %v3688_v7 = vadd.f32 %v6442_v47, %v3583_v51  ;;  %v10733_v47 = vmax.f32 %v8590_v2, 0.0  ;;  %v10734_v2 = vmax.f32 %v8667_v33, 0.0  ;;  %v3864_v33 = vld [vmem:[#allocation3 + $0xa0] sm:$0xff] }
 0x73e   : > { %v6444_v34 = vpop.f32.mrf.mxu1 }
 0x73f   : > { %v10704_v3 = vmax.f32 %v9444_v5, 0.0  ;;  %v3793_v4 = vadd.f32 %v6932_v21, %v3688_v7  ;;  %v6445_v36 = vadd.f32 %v6444_v34, %v6443_v44  ;;  %v3807_v34 = vpop.f32.mrf.mxu0 }
 0x740   : > { %v6446_v31 = vpop.f32.mrf.mxu1  ;;  %v3857_v61 = vld [vmem:[#allocation3 + $0x8] sm:$0xff] }
 0x741   : > { %3850 = vst.msk [vmem:[#allocation3 + $0x58] sm:$0xff] %vm601_vm0, %v10704_v3  ;;  %v9453_v59 = vadd.f32 %v3793_v4, %v2327_v54  ;;  %v3693_v52 = vadd.f32 %v6445_v36, %v3588_v6  ;;  %5901 = vmatprep.mubr.msk.f32.mxu1 %vm601_vm0, %v3857_v61  ;;  %v3860_v6 = vld [vmem:[#allocation3 + $0x50] sm:$0xff] }
 0x742   : > { %v6447_v63 = vpop.f32.mrf.mxu1  ;;  %3992 = vmatmul.mubr.f32.vlgmr.msra.gmra.mxu1 %v3856_v58 }
 0x743   : > { %v10705_v57 = vmax.f32 %v9453_v59, 0.0  ;;  %v3798_v21 = vadd.f32 %v3797_v30, %v3693_v52  ;;  %v6448_v49 = vadd.f32 %v6447_v63, %v6446_v31  ;;  %v3862_v52 = vld [vmem:[#allocation3 + $0x78] sm:$0xff]  ;;  %v10735_v30 = vmax.f32 %v8657_v53, 0.0  ;;  %v3868_v53 = vld [vmem:[#allocation3 + $0xf0] sm:$0xff] }
 0x744   : > { %v6449_v37 = vpop.f32.mrf.mxu1  ;;  %v3859_v43 = vld [vmem:[#allocation3 + $0x30] sm:$0xff] }
 0x745   : > { %3851 = vst.msk [vmem:[#allocation3 + $0x80] sm:$0xff] %vm601_vm0, %v10705_v57  ;;  %v9463_v54 = vadd.f32 %v3798_v21, %v10732_v32  ;;  %v3698_v27 = vadd.f32 %v6448_v49, %v3593_v42  ;;  %5902 = vmatprep.mubr.msk.f32.mxu1 %vm601_vm0, %v3859_v43  ;;  %v3866_v49 = vld [vmem:[#allocation3 + $0xc8] sm:$0xff]  ;;  %v3870_v32 = vld [vmem:[#allocation3 + $0x118] sm:$0xff] }
 0x746   : > { %v6450_v1 = vpop.f32.mrf.mxu1  ;;  %3997 = vmatmul.mubr.f32.gmra.mxu1 %v3858_v55  ;;  %v4391_v55 = vld [vmem:[%s10665_s9 + $0xf8] sm:$0xff] }
 0x747   : > { %v10702_v56 = vmax.f32 %v9463_v54, 0.0  ;;  %v3803_v46 = vadd.f32 %v6935_v35, %v3698_v27  ;;  %v6451_v51 = vadd.f32 %v6450_v1, %v6449_v37  ;;  %v9504_v27 = vld [vmem:[#allocation2 + $0x1] sm:$0xff]  ;;  %6471 = vmatprep.subr.mxu0 %v4391_v55  ;;  %v4390_v1 = vld [vmem:[%s10665_s9 + $0xf0] sm:$0xff] }
 0x748   : > { %v6452_v29 = vpop.f32.mrf.mxu1  ;;  %v3861_v9 = vld [vmem:[#allocation3 + $0x58] sm:$0xff]  ;;  %4080 = vrot.lane.b32.xlu1 %v9504_v27, %s7133_s1 }
 0x749   : > { %3852 = vst.msk [vmem:[#allocation3 + $0xa8] sm:$0xff] %vm601_vm0, %v10702_v56  ;;  %v9475_v44 = vadd.f32 %v3803_v46, %v10733_v47  ;;  %v3703_v7 = vadd.f32 %v6451_v51, %v3598_v62  ;;  %5903 = vmatprep.mubr.msk.f32.mxu1 %vm601_vm0, %v3861_v9  ;;  %v4375_v62 = vld [vmem:[%s10665_s9 + $0x78] sm:$0xff]  ;;  %v4373_v46 = vld [vmem:[%s10665_s9 + $0x68] sm:$0xff]  ;;  %v4388_v51 = vld [vmem:[%s10665_s9 + $0xe0] sm:$0xff] }
 0x74a   : > { %v6453_v60 = vpop.f32.mrf.mxu1  ;;  %4002 = vmatmul.mubr.f32.gmra.mxu1 %v3860_v6  ;;  %6472 = vmatpush3.msra.mxu0 %v4375_v62  ;;  %v4387_v9 = vld [vmem:[%s10665_s9 + $0xd8] sm:$0xff]  ;;  %v9535_v47 = vld [vmem:[#allocation2] sm:$0xff]  ;;  %v4386_v6 = vld [vmem:[%s10665_s9 + $0xd0] sm:$0xff] }
 0x74b   : > { %v10703_v35 = vmax.f32 %v9475_v44, 0.0  ;;  %v3808_v39 = vadd.f32 %v3807_v34, %v3703_v7  ;;  %v6454_v4 = vadd.f32 %v6453_v60, %v6452_v29  ;;  %6473 = vmatprep.subr.mxu0 %v4390_v1  ;;  %v4372_v29 = vld [vmem:[%s10665_s9 + $0x60] sm:$0xff]  ;;  %v4371_v7 = vld [vmem:[%s10665_s9 + $0x58] sm:$0xff]  ;;  %4056 = vst.msk [vmem:[#allocation3] sm:$0xff] %vm601_vm0, %v9535_v47  ;;  %v4370_v60 = vld [vmem:[%s10665_s9 + $0x50] sm:$0xff] }
 0x74c   : > { %v3863_v36 = vld [vmem:[#allocation3 + $0x80] sm:$0xff]  ;;  %v4378_v62 = vld [vmem:[%s10665_s9 + $0x90] sm:$0xff] }
 0x74d   : > { %3853 = vst.msk [vmem:[#allocation3 + $0xd0] sm:$0xff] %vm601_vm0, %v10703_v35  ;;  %v9485_v31 = vadd.f32 %v3808_v39, %v10734_v2  ;;  %v3708_v61 = vadd.f32 %v6454_v4, %v3603_v38  ;;  %5904 = vmatprep.mubr.msk.f32.mxu1 %vm601_vm0, %v3863_v36  ;;  %v4112_v34 = vld [vmem:[#allocation2 + $0x2] sm:$0xff]  ;;  %v4383_v2 = vld [vmem:[%s10665_s9 + $0xb8] sm:$0xff] }
 0x74e   : > { %4007 = vmatmul.mubr.f32.gmra.mxu1 %v3862_v52  ;;  %4120 = vst.msk [vmem:[#allocation3 + $0x8] sm:$0xff] %vm601_vm0, %v4112_v34  ;;  %v4385_v38 = vld [vmem:[%s10665_s9 + $0xc8] sm:$0xff]  ;;  %v4384_v4 = vld [vmem:[%s10665_s9 + $0xc0] sm:$0xff]  ;;  %v4382_v52 = vld [vmem:[%s10665_s9 + $0xb0] sm:$0xff] }
 0x74f   : > { %v10700_v50 = vmax.f32 %v9485_v31, 0.0  ;;  %v3813_v58 = vadd.f32 %v6938_v8, %v3708_v61  ;;  %v4374_v8 = vld [vmem:[%s10665_s9 + $0x70] sm:$0xff]  ;;  %v4369_v39 = vld [vmem:[%s10665_s9 + $0x48] sm:$0xff]  ;;  %v4368_v36 = vld [vmem:[%s10665_s9 + $0x40] sm:$0xff] }
 0x750   : > { %v3865_v17 = vld [vmem:[#allocation3 + $0xa8] sm:$0xff]  ;;  %6474 = vmatpush3.msra.mxu0 %v4374_v8  ;;  %v4367_v61 = vld [vmem:[%s10665_s9 + $0x38] sm:$0xff]  ;;  %v4422_v34 = vld [vmem:[%s10665_s9 + $0x1f0] sm:$0xff] }
 0x751   : > { %3854 = vst.msk [vmem:[#allocation3 + $0xf8] sm:$0xff] %vm601_vm0, %v10700_v50  ;;  %v9494_v63 = vadd.f32 %v3813_v58, %v10735_v30  ;;  %5905 = vmatprep.mubr.msk.f32.mxu1 %vm601_vm0, %v3865_v17  ;;  %6475 = vmatprep.subr.mxu0 %v4389_v48  ;;  %v4366_v58 = vld [vmem:[%s10665_s9 + $0x30] sm:$0xff]  ;;  %v4381_v17 = vld [vmem:[%s10665_s9 + $0xa8] sm:$0xff] }
 0x752   : > { %4012 = vmatmul.mubr.f32.gmra.mxu1 %v3864_v33  ;;  %6476 = vmatpush3.msra.mxu0 %v4373_v46  ;;  %v4365_v30 = vld [vmem:[%s10665_s9 + $0x28] sm:$0xff]  ;;  %v4380_v33 = vld [vmem:[%s10665_s9 + $0xa0] sm:$0xff]  ;;  %v4362_v46 = vld [vmem:[%s10665_s9 + $0x10] sm:$0xff] }
 0x753   : > { %v10701_v42 = vmax.f32 %v9494_v63, 0.0  ;;  %6477 = vmatprep.subr.mxu0 %v4388_v51  ;;  %v4423_v51 = vld [vmem:[%s10665_s9 + $0x1f8] sm:$0xff] }
 0x754   : > { %v3867_v21 = vld [vmem:[#allocation3 + $0xd0] sm:$0xff]  ;;  %6478 = vmatpush3.msra.mxu0 %v4372_v29  ;;  %v4377_v29 = vld [vmem:[%s10665_s9 + $0x88] sm:$0xff]  ;;  %6527 = vmatprep.subr.mxu1 %v4423_v51 }
 0x755   : > { %3855 = vst.msk [vmem:[#allocation3 + $0x120] sm:$0xff] %vm601_vm0, %v10701_v42  ;;  %5906 = vmatprep.mubr.msk.f32.mxu1 %vm601_vm0, %v3867_v21  ;;  %6479 = vmatprep.subr.mxu0 %v4387_v9  ;;  %v4418_v51 = vld [vmem:[%s10665_s9 + $0x1d0] sm:$0xff] }
 0x756   : > { %4017 = vmatmul.mubr.f32.gmra.mxu1 %v3866_v49  ;;  %6480 = vmatpush3.msra.mxu0 %v4371_v7  ;;  %v9585_v49 = vld [vmem:[%s10672_s16] ss:$0 sm:$0xff]  ;;  %v4407_v7 = vld [vmem:[%s10665_s9 + $0x178] sm:$0xff] }
 0x757   : > { %6481 = vmatprep.subr.mxu0 %v4386_v6  ;;  %v4361_v6 = vld [vmem:[%s10665_s9 + $0x8] sm:$0xff]  ;;  %6528 = vmatpush3.msra.mxu1 %v4407_v7  ;;  %v4402_v7 = vld [vmem:[%s10665_s9 + $0x150] sm:$0xff] }
 0x758   : > { %v3869_v37 = vld [vmem:[#allocation3 + $0xf8] sm:$0xff]  ;;  %6482 = vmatpush3.msra.mxu0 %v4370_v60  ;;  %6529 = vmatprep.subr.mxu1 %v4422_v34 }
 0x759   : > { %5907 = vmatprep.mubr.msk.f32.mxu1 %vm601_vm0, %v3869_v37  ;;  %6483 = vmatprep.subr.mxu0 %v4385_v38  ;;  %v4376_v38 = vld [vmem:[%s10665_s9 + $0x80] sm:$0xff] }
 0x75a   : > { %4022 = vmatmul.mubr.f32.gmra.mxu1 %v3868_v53  ;;  %6484 = vmatpush3.msra.mxu0 %v4369_v39  ;;  %v4364_v53 = vld [vmem:[%s10665_s9 + $0x20] sm:$0xff]  ;;  %v4406_v39 = vld [vmem:[%s10665_s9 + $0x170] sm:$0xff] }
 0x75b   : > { %6485 = vmatprep.subr.mxu0 %v4384_v4  ;;  %6530 = vmatpush3.msra.mxu1 %v4406_v39 }
 0x75c   : > { %v3871_v43 = vld [vmem:[#allocation3 + $0x120] sm:$0xff]  ;;  %6486 = vmatpush3.msra.mxu0 %v4368_v36 }
 0x75d   : > { %5908 = vmatprep.mubr.msk.f32.mxu1 %vm601_vm0, %v3871_v43  ;;  %6487 = vmatprep.subr.mxu0 %v4383_v2  ;;  %v4379_v43 = vld [vmem:[%s10665_s9 + $0x98] sm:$0xff]  ;;  %v4360_v2 = vld [vmem:[%s10665_s9] sm:$0xff] }
 0x75e   : > { %4027 = vmatmul.mubr.f32.gmra.mxu1 %v3870_v32  ;;  %6488 = vmatpush3.msra.mxu0 %v4367_v61  ;;  %v4363_v32 = vld [vmem:[%s10665_s9 + $0x18] sm:$0xff]  ;;  %v4421_v61 = vld [vmem:[%s10665_s9 + $0x1e8] sm:$0xff] }
 0x75f   : > { %6489 = vmatprep.subr.mxu0 %v4382_v52  ;;  %6531 = vmatprep.subr.mxu1 %v4421_v61 }
 0x760   : > { %6490 = vmatpush3.msra.mxu0 %v4366_v58 }
 0x761   : > { %6491 = vmatprep.subr.mxu0 %v4381_v17  ;;  %v4405_v17 = vld [vmem:[%s10665_s9 + $0x168] sm:$0xff] }
 0x762   : > { %6492 = vmatpush3.msra.mxu0 %v4365_v30  ;;  %v4420_v30 = vld [vmem:[%s10665_s9 + $0x1e0] sm:$0xff]  ;;  %6532 = vmatpush3.msra.mxu1 %v4405_v17  ;;  %v9714_v17 = vld [vmem:[%s10665_s9 + $0x238] sm:$0xff] }
 0x763   : > { %6493 = vmatprep.subr.mxu0 %v4380_v33  ;;  %v4404_v33 = vld [vmem:[%s10665_s9 + $0x160] sm:$0xff]  ;;  %6533 = vmatprep.subr.mxu1 %v4420_v30 }
 0x764   : > { %6494 = vmatpush3.msra.mxu0 %v4364_v53  ;;  %6534 = vmatpush3.msra.mxu1 %v4404_v33  ;;  %v4416_v33 = vld [vmem:[%s10665_s9 + $0x1c0] sm:$0xff] }
 0x765   : > { %6495 = vmatprep.subr.mxu0 %v4379_v43 }
 0x766   : > { %6496 = vmatpush3.msra.mxu0 %v4363_v32 }
 0x767   : > { %6497 = vmatprep.subr.mxu0 %v4378_v62 }
 0x768   : > { %6498 = vmatpush3.msra.mxu0 %v4362_v46 }
 0x769   : > { %6499 = vmatprep.subr.mxu0 %v4377_v29 }
 0x76a   : > { %6500 = vmatpush3.msra.mxu0 %v4361_v6 }
 0x76b   : > { %6501 = vmatprep.subr.mxu0 %v4376_v38 }
 0x76c   : > { %6502 = vmatpush3.msra.mxu0 %v4360_v2  ;;  %v4401_v2 = vld [vmem:[%s10665_s9 + $0x148] sm:$0xff] }
 0x76d   : > { %6939 = vmatprep.subr.mxu0 %v9714_v17 }
 0x7ba   : > { %v4081_v21 = vpop.permute.xlu1 %4080 }
 0x7bb   : > { %4104 = vst.msk [vmem:[#allocation3] sm:$0xff] %vm702_vm3, %v4081_v21 }
 0x7c2   : > { %v9641_v52 = vld [vmem:[#allocation3] sm:$0xff] }
 0x7c3   : > { %4802 = vst.msk [vmem:[#allocation3] sm:$0xff] %vm601_vm0, %v9535_v47  ;;  %v4419_v47 = vld [vmem:[%s10665_s9 + $0x1d8] sm:$0xff] }
 0x7c4   : > { %6535 = vmatprep.subr.mxu1 %v4419_v47 }
 0x802   : > { %v3993_v37 = vpop.f32.mrf.mxu1 }
 0x803   : > { %v9598_v55 = vadd.f32 %v9585_v49, %v3993_v37 }
 0x804   : > { %v3995_v1 = vpop.f32.mrf.mxu1 }
 0x805   : > { %v10698_v8 = vmax.f32 %v9598_v55, 0.0 }
 0x806   : > { %v3998_v48 = vpop.f32.mrf.mxu1 }
 0x807   : > { %4040 = vst.msk [vmem:[#allocation2 + $0x11] sm:$0xff] %vm601_vm0, %v10698_v8  ;;  %v9617_v9 = vadd.f32 %v9585_v49, %v3998_v48  ;;  %v4403_v48 = vld [vmem:[%s10665_s9 + $0x158] sm:$0xff] }
 0x808   : > { %v4000_v60 = vpop.f32.mrf.mxu1  ;;  %6536 = vmatpush3.msra.mxu1 %v4403_v48 }
 0x809   : > { %v10699_v4 = vmax.f32 %v9617_v9, 0.0  ;;  %6537 = vmatprep.subr.mxu1 %v4418_v51 }
 0x80a   : > { %v4003_v36 = vpop.f32.mrf.mxu1  ;;  %6538 = vmatpush3.msra.mxu1 %v4402_v7 }
 0x80b   : > { %4041 = vst.msk [vmem:[#allocation2 + $0x21] sm:$0xff] %vm601_vm0, %v10699_v4  ;;  %v9647_v58 = vadd.f32 %v9585_v49, %v4003_v36  ;;  %v4417_v36 = vld [vmem:[%s10665_s9 + $0x1c8] sm:$0xff] }
 0x80c   : > { %v4005_v21 = vpop.f32.mrf.mxu1  ;;  %6539 = vmatprep.subr.mxu1 %v4417_v36 }
 0x80d   : > { %v10695_v37 = vmax.f32 %v9647_v58, 0.0  ;;  %v4400_v21 = vld [vmem:[%s10665_s9 + $0x140] sm:$0xff]  ;;  %6540 = vmatpush3.msra.mxu1 %v4401_v2 }
 0x80e   : > { %v4008_v53 = vpop.f32.mrf.mxu1  ;;  %v4128_v43 = vld [vmem:[#allocation2 + $0x10] sm:$0xff]  ;;  %6541 = vmatprep.subr.mxu1 %v4416_v33 }
 0x80f   : > { %v4065_v32 = vld [vmem:[#allocation2 + $0x11] sm:$0xff]  ;;  %4042 = vst.msk [vmem:[#allocation2 + $0x31] sm:$0xff] %vm601_vm0, %v10695_v37  ;;  %v9667_v1 = vadd.f32 %v9585_v49, %v4008_v53  ;;  %4144 = vrot.lane.b32.xlu0 %v4128_v43, %s7133_s1  ;;  %4057 = vst.msk [vmem:[#allocation3 + $0x28] sm:$0xff] %vm601_vm0, %v4128_v43  ;;  %6542 = vmatpush3.msra.mxu1 %v4400_v21 }
 0x810   : > { %v9661_v62 = vld [vmem:[#allocation2 + $0x12] sm:$0xff]  ;;  %4082 = vrot.lane.b32.xlu1 %v4065_v32, %s7133_s1  ;;  %4184 = vst.msk [vmem:[#allocation3 + $0x10] sm:$0xff] %vm601_vm0, %v4065_v32  ;;  %v4010_v46 = vpop.f32.mrf.mxu1 }
 0x811   : > { %4121 = vst.msk [vmem:[#allocation3 + $0x30] sm:$0xff] %vm601_vm0, %v9661_v62  ;;  %v10696_v29 = vmax.f32 %v9667_v1, 0.0  ;;  %v4415_v46 = vld [vmem:[%s10665_s9 + $0x1b8] sm:$0xff]  ;;  %v4398_v21 = vld [vmem:[%s10665_s9 + $0x130] sm:$0xff] }
 0x812   : > { %v4013_v6 = vpop.f32.mrf.mxu1  ;;  %v4129_v34 = vld [vmem:[#allocation2 + $0x20] sm:$0xff]  ;;  %6543 = vmatprep.subr.mxu1 %v4415_v46  ;;  %v4413_v46 = vld [vmem:[%s10665_s9 + $0x1a8] sm:$0xff] }
 0x813   : > { %v4066_v60 = vld [vmem:[#allocation2 + $0x21] sm:$0xff]  ;;  %4043 = vst.msk [vmem:[#allocation2 + $0x41] sm:$0xff] %vm601_vm0, %v10696_v29  ;;  %v9694_v39 = vadd.f32 %v9585_v49, %v4013_v6  ;;  %4146 = vrot.lane.b32.xlu0 %v4129_v34, %s7133_s1  ;;  %4058 = vst.msk [vmem:[#allocation3 + $0x50] sm:$0xff] %vm601_vm0, %v4129_v34  ;;  %v4399_v6 = vld [vmem:[%s10665_s9 + $0x138] sm:$0xff] }
 0x814   : > { %v9688_v38 = vld [vmem:[#allocation2 + $0x22] sm:$0xff]  ;;  %4084 = vrot.lane.b32.xlu1 %v4066_v60, %s7133_s1  ;;  %4248 = vst.msk [vmem:[#allocation3 + $0x18] sm:$0xff] %vm601_vm0, %v4129_v34  ;;  %4185 = vst.msk [vmem:[#allocation3 + $0x38] sm:$0xff] %vm601_vm0, %v4066_v60  ;;  %v4015_v61 = vpop.f32.mrf.mxu1  ;;  %v4414_v34 = vld [vmem:[%s10665_s9 + $0x1b0] sm:$0xff]  ;;  %6544 = vmatpush3.msra.mxu1 %v4399_v6 }
 0x815   : > { %4122 = vst.msk [vmem:[#allocation3 + $0x58] sm:$0xff] %vm601_vm0, %v9688_v38  ;;  %4312 = vst.msk [vmem:[#allocation3 + $0x20] sm:$0xff] %vm601_vm0, %v9688_v38  ;;  %v10693_v30 = vmax.f32 %v9694_v39, 0.0  ;;  %6545 = vmatprep.subr.mxu1 %v4414_v34  ;;  %v4412_v34 = vld [vmem:[%s10665_s9 + $0x1a0] sm:$0xff] }
 0x816   : > { %v4018_v53 = vpop.f32.mrf.mxu1  ;;  %v4130_v43 = vld [vmem:[#allocation2 + $0x30] sm:$0xff]  ;;  %6546 = vmatpush3.msra.mxu1 %v4398_v21 }
 0x817   : > { %v9724_v32 = vld [vmem:[#allocation2 + $0x31] sm:$0xff]  ;;  %4044 = vst.msk [vmem:[#allocation2 + $0x51] sm:$0xff] %vm601_vm0, %v10693_v30  ;;  %v9732_v48 = vadd.f32 %v9585_v49, %v4018_v53  ;;  %4148 = vrot.lane.b32.xlu0 %v4130_v43, %s7133_s1  ;;  %4059 = vst.msk [vmem:[#allocation3 + $0x78] sm:$0xff] %vm601_vm0, %v4130_v43  ;;  %6547 = vmatprep.subr.mxu1 %v4413_v46 }
 0x818   : > { %v9726_v47 = vld [vmem:[#allocation2 + $0x32] sm:$0xff]  ;;  %4272 = vrot.lane.b32.xlu1 %v4066_v60, %s7133_s1  ;;  %4186 = vst.msk [vmem:[#allocation3 + $0x60] sm:$0xff] %vm601_vm0, %v9724_v32  ;;  %4249 = vst.msk [vmem:[#allocation3 + $0x40] sm:$0xff] %vm601_vm0, %v4130_v43  ;;  %v4020_v51 = vpop.f32.mrf.mxu1 }
 0x819   : > { %4123 = vst.msk [vmem:[#allocation3 + $0x80] sm:$0xff] %vm601_vm0, %v9726_v47  ;;  %4313 = vst.msk [vmem:[#allocation3 + $0x48] sm:$0xff] %vm601_vm0, %v9726_v47  ;;  %v10692_v7 = vmax.f32 %v9732_v48, 0.0  ;;  %v4397_v51 = vld [vmem:[%s10665_s9 + $0x128] sm:$0xff]  ;;  %v4410_v46 = vld [vmem:[%s10665_s9 + $0x190] sm:$0xff] }
 0x81a   : > { %v4023_v60 = vpop.f32.mrf.mxu1  ;;  %v4131_v36 = vld [vmem:[#allocation2 + $0x40] sm:$0xff]  ;;  %6548 = vmatpush3.msra.mxu1 %v4397_v51  ;;  %v4394_v51 = vld [vmem:[%s10665_s9 + $0x110] sm:$0xff] }
 0x81b   : > { %v9754_v2 = vld [vmem:[#allocation2 + $0x41] sm:$0xff]  ;;  %4045 = vst.msk [vmem:[#allocation2 + $0x61] sm:$0xff] %vm601_vm0, %v10692_v7  ;;  %v9762_v33 = vadd.f32 %v9585_v49, %v4023_v60  ;;  %4150 = vrot.lane.b32.xlu0 %v4131_v36, %s7133_s1  ;;  %4060 = vst.msk [vmem:[#allocation3 + $0xa0] sm:$0xff] %vm601_vm0, %v4131_v36  ;;  %6549 = vmatprep.subr.mxu1 %v4412_v34 }
 0x81c   : > { %v9756_v61 = vld [vmem:[#allocation2 + $0x42] sm:$0xff]  ;;  %4086 = vrot.lane.b32.xlu1 %v9724_v32, %s7133_s1  ;;  %4187 = vst.msk [vmem:[#allocation3 + $0x88] sm:$0xff] %vm601_vm0, %v9754_v2  ;;  %4250 = vst.msk [vmem:[#allocation3 + $0x68] sm:$0xff] %vm601_vm0, %v4131_v36  ;;  %v4025_v53 = vpop.f32.mrf.mxu1 }
 0x81d   : > { %4124 = vst.msk [vmem:[#allocation3 + $0xa8] sm:$0xff] %vm601_vm0, %v9756_v61  ;;  %4314 = vst.msk [vmem:[#allocation3 + $0x70] sm:$0xff] %vm601_vm0, %v9756_v61  ;;  %v10694_v43 = vmax.f32 %v9762_v33, 0.0  ;;  %v4396_v53 = vld [vmem:[%s10665_s9 + $0x120] sm:$0xff] }
 0x81e   : > { %v4028_v60 = vpop.f32.mrf.mxu1  ;;  %v4132_v7 = vld [vmem:[#allocation2 + $0x50] sm:$0xff]  ;;  %6550 = vmatpush3.msra.mxu1 %v4396_v53  ;;  %v4393_v53 = vld [vmem:[%s10665_s9 + $0x108] sm:$0xff] }
 0x81f   : > { %v9785_v30 = vld [vmem:[#allocation2 + $0x51] sm:$0xff]  ;;  %4046 = vst.msk [vmem:[#allocation2 + $0x71] sm:$0xff] %vm601_vm0, %v10694_v43  ;;  %v9793_v6 = vadd.f32 %v9585_v49, %v4028_v60  ;;  %4152 = vrot.lane.b32.xlu0 %v4132_v7, %s7133_s1  ;;  %4061 = vst.msk [vmem:[#allocation3 + $0xc8] sm:$0xff] %vm601_vm0, %v4132_v7 }
 0x820   : > { %v9787_v36 = vld [vmem:[#allocation2 + $0x52] sm:$0xff]  ;;  %4088 = vrot.lane.b32.xlu1 %v9754_v2, %s7133_s1  ;;  %4188 = vst.msk [vmem:[#allocation3 + $0xb0] sm:$0xff] %vm601_vm0, %v9785_v30  ;;  %4251 = vst.msk [vmem:[#allocation3 + $0x90] sm:$0xff] %vm601_vm0, %v4132_v7  ;;  %v4030_v49 = vpop.f32.mrf.mxu1 }
 0x821   : > { %10736 = vst [vmem:[#allocation15_spill] sm:$0xff] %v9793_v6  ;;  %4125 = vst.msk [vmem:[#allocation3 + $0xd0] sm:$0xff] %vm601_vm0, %v9787_v36  ;;  %v10697_v21 = vmax.f32 %v9793_v6, 0.0  ;;  %v4411_v60 = vld [vmem:[%s10665_s9 + $0x198] sm:$0xff] }
 0x822   : > { %4315 = vst.msk [vmem:[#allocation3 + $0x98] sm:$0xff] %vm601_vm0, %v9787_v36  ;;  %v4133_v43 = vld [vmem:[#allocation2 + $0x60] sm:$0xff]  ;;  %v4395_v7 = vld [vmem:[%s10665_s9 + $0x118] sm:$0xff]  ;;  %6551 = vmatprep.subr.mxu1 %v4411_v60 }
 0x823   : > { %v4070_v37 = vld [vmem:[#allocation2 + $0x61] sm:$0xff]  ;;  %4047 = vst.msk [vmem:[#allocation2 + $0x81] sm:$0xff] %vm601_vm0, %v10697_v21  ;;  %4154 = vrot.lane.b32.xlu0 %v4133_v43, %s7133_s1  ;;  %4062 = vst.msk [vmem:[#allocation3 + $0xf0] sm:$0xff] %vm601_vm0, %v4133_v43  ;;  %6552 = vmatpush3.msra.mxu1 %v4395_v7 }
 0x824   : > { %v4197_v29 = vld [vmem:[#allocation2 + $0x62] sm:$0xff]  ;;  %4090 = vrot.lane.b32.xlu1 %v9785_v30, %s7133_s1  ;;  %4189 = vst.msk [vmem:[#allocation3 + $0xd8] sm:$0xff] %vm601_vm0, %v4070_v37  ;;  %4252 = vst.msk [vmem:[#allocation3 + $0xb8] sm:$0xff] %vm601_vm0, %v4133_v43  ;;  %6553 = vmatprep.subr.mxu1 %v4410_v46 }
 0x825   : > { %4126 = vst.msk [vmem:[#allocation3 + $0xf8] sm:$0xff] %vm601_vm0, %v4197_v29  ;;  %4316 = vst.msk [vmem:[#allocation3 + $0xc0] sm:$0xff] %vm601_vm0, %v4197_v29  ;;  %v4409_v43 = vld [vmem:[%s10665_s9 + $0x188] sm:$0xff]  ;;  %6554 = vmatpush3.msra.mxu1 %v4394_v51  ;;  %v4408_v60 = vld [vmem:[%s10665_s9 + $0x180] sm:$0xff] }
 0x826   : > { %v4134_v34 = vld [vmem:[#allocation2 + $0x70] sm:$0xff]  ;;  %6555 = vmatprep.subr.mxu1 %v4409_v43  ;;  %v4392_v46 = vld [vmem:[%s10665_s9 + $0x100] sm:$0xff] }
 0x827   : > { %v4071_v49 = vld [vmem:[#allocation2 + $0x71] sm:$0xff]  ;;  %4156 = vrot.lane.b32.xlu0 %v4134_v34, %s7133_s1  ;;  %4063 = vst.msk [vmem:[#allocation3 + $0x118] sm:$0xff] %vm601_vm0, %v4134_v34  ;;  %4253 = vst.msk [vmem:[#allocation3 + $0xe0] sm:$0xff] %vm601_vm0, %v4134_v34  ;;  %6556 = vmatpush3.msra.mxu1 %v4393_v53 }
 0x828   : > { %v4198_v21 = vld [vmem:[#allocation2 + $0x72] sm:$0xff]  ;;  %4092 = vrot.lane.b32.xlu1 %v4070_v37, %s7133_s1  ;;  %4190 = vst.msk [vmem:[#allocation3 + $0x100] sm:$0xff] %vm601_vm0, %v4071_v49  ;;  %6557 = vmatprep.subr.mxu1 %v4408_v60 }
 0x829   : > { %4127 = vst.msk [vmem:[#allocation3 + $0x120] sm:$0xff] %vm601_vm0, %v4198_v21  ;;  %4317 = vst.msk [vmem:[#allocation3 + $0xe8] sm:$0xff] %vm601_vm0, %v4198_v21  ;;  %6558 = vmatpush3.msra.mxu1 %v4392_v46  ;;  %v4427_v46 = vld [vmem:[%s10665_s9 + $0x218] sm:$0xff] }
 0x82a   : > { %v4135_v7 = vld [vmem:[#allocation2 + $0x80] sm:$0xff] }
 0x82b   : > { %v4199_v8 = vld [vmem:[#allocation2 + $0x82] sm:$0xff]  ;;  %4094 = vrot.lane.b32.xlu0 %v4071_v49, %s7133_s1  ;;  %4254 = vst.msk [vmem:[#allocation3 + $0x108] sm:$0xff] %vm601_vm0, %v4135_v7 }
 0x82c   : > { %v4262_v4 = vld [vmem:[#allocation2 + $0x81] sm:$0xff]  ;;  %4208 = vrot.lane.b32.xlu1 %v9661_v62, %s7133_s1  ;;  %4318 = vst.msk [vmem:[#allocation3 + $0x110] sm:$0xff] %vm601_vm0, %v4199_v8  ;;  %v4247_v62 = vld [vmem:[#allocation2 + $0x90] sm:$0xff] }
 0x82d   : > { %4191 = vst.msk [vmem:[#allocation3 + $0x128] sm:$0xff] %vm601_vm0, %v4262_v4  ;;  %4255 = vst.msk [vmem:[#allocation3 + $0x130] sm:$0xff] %vm601_vm0, %v4247_v62  ;;  %v4426_v62 = vld [vmem:[%s10665_s9 + $0x210] sm:$0xff] }
 0x82f   : > { %4158 = vrot.lane.b32.xlu0 %v4135_v7, %s7133_s1 }
 0x830   : > { %4210 = vrot.lane.b32.xlu1 %v9688_v38, %s7133_s1  ;;  %v9883_v38 = vld [vmem:[#allocation3 + $0x138] sm:$0xff] }
 0x833   : > { %4274 = vrot.lane.b32.xlu0 %v9724_v32, %s7133_s1  ;;  %v5057_v32 = vld [vmem:[#allocation2 + $0x92] sm:$0xff] }
 0x834   : > { %4212 = vrot.lane.b32.xlu1 %v9726_v47, %s7133_s1  ;;  %v4263_v47 = vld [vmem:[#allocation2 + $0x91] sm:$0xff]  ;;  %5065 = vst.msk [vmem:[#allocation3 + $0x138] sm:$0xff] %vm601_vm0, %v5057_v32 }
 0x837   : > { %4276 = vrot.lane.b32.xlu0 %v9754_v2, %s7133_s1 }
 0x838   : > { %4214 = vrot.lane.b32.xlu1 %v9756_v61, %s7133_s1 }
 0x83b   : > { %4278 = vrot.lane.b32.xlu0 %v9785_v30, %s7133_s1 }
 0x83c   : > { %4216 = vrot.lane.b32.xlu1 %v9787_v36, %s7133_s1  ;;  %v4429_v36 = vld [vmem:[%s10665_s9 + $0x228] sm:$0xff] }
 0x83f   : > { %4280 = vrot.lane.b32.xlu0 %v4070_v37, %s7133_s1 }
 0x840   : > { %4218 = vrot.lane.b32.xlu1 %v4197_v29, %s7133_s1 }
 0x843   : > { %4282 = vrot.lane.b32.xlu0 %v4071_v49, %s7133_s1 }
 0x844   : > { %4220 = vrot.lane.b32.xlu1 %v4198_v21, %s7133_s1 }
 0x847   : > { %4284 = vrot.lane.b32.xlu0 %v4262_v4, %s7133_s1 }
 0x848   : > { %4222 = vrot.lane.b32.xlu1 %v4199_v8, %s7133_s1 }
 0x84b   : > { %4286 = vrot.lane.b32.xlu0 %v4263_v47, %s7133_s1 }
 0x84c   : > { %4826 = vrot.lane.b32.xlu1 %v9504_v27, %s7133_s1  ;;  %v4430_v27 = vld [vmem:[%s10665_s9 + $0x230] sm:$0xff] }
 0x881   : > { %v4145_v37 = vpop.permute.xlu0 %4144 }
 0x882   : > { %v4083_v29 = vpop.permute.xlu1 %4082  ;;  %4168 = vst.msk [vmem:[#allocation3 + $0x8] sm:$0xff] %vm702_vm3, %v4145_v37 }
 0x883   : > { %4105 = vst.msk [vmem:[#allocation3 + $0x28] sm:$0xff] %vm702_vm3, %v4083_v29 }
 0x885   : > { %v4147_v8 = vpop.permute.xlu0 %4146 }
 0x886   : > { %v4085_v30 = vpop.permute.xlu1 %4084  ;;  %4169 = vst.msk [vmem:[#allocation3 + $0x30] sm:$0xff] %vm702_vm3, %v4147_v8  ;;  %v4425_v8 = vld [vmem:[%s10665_s9 + $0x208] sm:$0xff] }
 0x887   : > { %4106 = vst.msk [vmem:[#allocation3 + $0x50] sm:$0xff] %vm702_vm3, %v4085_v30  ;;  %v4424_v30 = vld [vmem:[%s10665_s9 + $0x200] sm:$0xff] }
 0x889   : > { %v4149_v4 = vpop.permute.xlu0 %4148  ;;  %v4321_v61 = vld [vmem:[#allocation3 + $0x8] sm:$0xff] }
 0x88a   : > { %v4273_v2 = vpop.permute.xlu1 %4272  ;;  %4170 = vst.msk [vmem:[#allocation3 + $0x58] sm:$0xff] %vm702_vm3, %v4149_v4  ;;  %4527 = vmatprep.mubr.f32.mxu0 %v4321_v61  ;;  %v4325_v49 = vld [vmem:[#allocation3 + $0x28] sm:$0xff] }
 0x88b   : > { %4296 = vst.msk [vmem:[#allocation3 + $0x18] sm:$0xff] %vm702_vm3, %v4273_v2  ;;  %4528 = vmatmul.mubr.f32.vlgmr.msra.gmra.mxu0 %v9641_v52  ;;  %v4428_v52 = vld [vmem:[%s10665_s9 + $0x220] sm:$0xff] }
 0x88c   : > { %6940 = vmatpush3.msra.mxu0 %v9714_v17 }
 0x88d   : > { %v4151_v21 = vpop.permute.xlu0 %4150  ;;  %v4326_v34 = vld [vmem:[#allocation3 + $0x30] sm:$0xff]  ;;  %6941 = vmatprep.subr.mxu0 %v4430_v27 }
 0x88e   : > { %v4087_v51 = vpop.permute.xlu1 %4086  ;;  %4171 = vst.msk [vmem:[#allocation3 + $0x80] sm:$0xff] %vm702_vm3, %v4151_v21  ;;  %4532 = vmatprep.mubr.f32.mxu0 %v4326_v34  ;;  %6942 = vmatpush3.msra.mxu0 %v4430_v27  ;;  %v4330_v7 = vld [vmem:[#allocation3 + $0x50] sm:$0xff] }
 0x88f   : > { %4107 = vst.msk [vmem:[#allocation3 + $0x78] sm:$0xff] %vm702_vm3, %v4087_v51  ;;  %4533 = vmatmul.mubr.f32.gmra.mxu0 %v4325_v49  ;;  %6943 = vmatprep.subr.mxu0 %v4429_v36 }
 0x890   : > { %6944 = vmatpush3.msra.mxu0 %v4429_v36 }
 0x891   : > { %v4153_v17 = vpop.permute.xlu0 %4152  ;;  %v4331_v53 = vld [vmem:[#allocation3 + $0x58] sm:$0xff]  ;;  %6945 = vmatprep.subr.mxu0 %v4428_v52 }
 0x892   : > { %v4089_v43 = vpop.permute.xlu1 %4088  ;;  %v4323_v60 = vld [vmem:[#allocation3 + $0x18] sm:$0xff]  ;;  %4172 = vst.msk [vmem:[#allocation3 + $0xa8] sm:$0xff] %vm702_vm3, %v4153_v17  ;;  %4537 = vmatprep.mubr.f32.mxu0 %v4331_v53  ;;  %6946 = vmatpush3.msra.mxu0 %v4428_v52 }
 0x893   : > { %4108 = vst.msk [vmem:[#allocation3 + $0xa0] sm:$0xff] %vm702_vm3, %v4089_v43  ;;  %4632 = vmatprep.mubr.f32.mxu1 %v4323_v60  ;;  %4538 = vmatmul.mubr.f32.gmra.mxu0 %v4330_v7 }
 0x894   : > { %6947 = vmatprep.subr.mxu0 %v4427_v46 }
 0x895   : > { %v4155_v32 = vpop.permute.xlu0 %4154  ;;  %v4336_v37 = vld [vmem:[#allocation3 + $0x80] sm:$0xff]  ;;  %6948 = vmatpush3.msra.mxu0 %v4427_v46 }
 0x896   : > { %v4091_v47 = vpop.permute.xlu1 %4090  ;;  %v4335_v29 = vld [vmem:[#allocation3 + $0x78] sm:$0xff]  ;;  %4173 = vst.msk [vmem:[#allocation3 + $0xd0] sm:$0xff] %vm702_vm3, %v4155_v32  ;;  %4542 = vmatprep.mubr.f32.mxu0 %v4336_v37  ;;  %6949 = vmatprep.subr.mxu0 %v4426_v62  ;;  %v4324_v37 = vld [vmem:[#allocation3 + $0x20] sm:$0xff] }
 0x897   : > { %4109 = vst.msk [vmem:[#allocation3 + $0xc8] sm:$0xff] %vm702_vm3, %v4091_v47  ;;  %4543 = vmatmul.mubr.f32.gmra.mxu0 %v4335_v29 }
 0x898   : > { %6950 = vmatpush3.msra.mxu0 %v4426_v62 }
 0x899   : > { %v4157_v4 = vpop.permute.xlu0 %4156  ;;  %v4341_v61 = vld [vmem:[#allocation3 + $0xa8] sm:$0xff]  ;;  %6951 = vmatprep.subr.mxu0 %v4425_v8 }
 0x89a   : > { %v4093_v2 = vpop.permute.xlu1 %4092  ;;  %v4340_v27 = vld [vmem:[#allocation3 + $0xa0] sm:$0xff]  ;;  %4174 = vst.msk [vmem:[#allocation3 + $0xf8] sm:$0xff] %vm702_vm3, %v4157_v4  ;;  %4547 = vmatprep.mubr.f32.mxu0 %v4341_v61  ;;  %6952 = vmatpush3.msra.mxu0 %v4425_v8  ;;  %v4334_v61 = vld [vmem:[#allocation3 + $0x70] sm:$0xff] }
 0x89b   : > { %4110 = vst.msk [vmem:[#allocation3 + $0xf0] sm:$0xff] %vm702_vm3, %v4093_v2  ;;  %4548 = vmatmul.mubr.f32.gmra.mxu0 %v4340_v27  ;;  %6953 = vmatprep.subr.mxu0 %v4424_v30  ;;  %v4329_v2 = vld [vmem:[#allocation3 + $0x48] sm:$0xff] }
 0x89c   : > { %6954 = vmatpush3.msra.mxu0 %v4424_v30 }
 0x89d   : > { %v4095_v36 = vpop.permute.xlu0 %4094  ;;  %v4346_v51 = vld [vmem:[#allocation3 + $0xd0] sm:$0xff] }
 0x89e   : > { %v4209_v21 = vpop.permute.xlu1 %4208  ;;  %v4345_v34 = vld [vmem:[#allocation3 + $0xc8] sm:$0xff]  ;;  %4111 = vst.msk [vmem:[#allocation3 + $0x118] sm:$0xff] %vm702_vm3, %v4095_v36  ;;  %4552 = vmatprep.mubr.f32.mxu0 %v4346_v51 }
 0x89f   : > { %4232 = vst.msk [vmem:[#allocation3 + $0x10] sm:$0xff] %vm702_vm3, %v4209_v21  ;;  %4553 = vmatmul.mubr.f32.gmra.mxu0 %v4345_v34  ;;  %v4339_v34 = vld [vmem:[#allocation3 + $0x98] sm:$0xff] }
 0x8a1   : > { %v4159_v52 = vpop.permute.xlu0 %4158  ;;  %v4351_v17 = vld [vmem:[#allocation3 + $0xf8] sm:$0xff] }
 0x8a2   : > { %v4211_v49 = vpop.permute.xlu1 %4210  ;;  %v4350_v43 = vld [vmem:[#allocation3 + $0xf0] sm:$0xff]  ;;  %4175 = vst.msk [vmem:[#allocation3 + $0x120] sm:$0xff] %vm702_vm3, %v4159_v52  ;;  %4557 = vmatprep.mubr.f32.mxu0 %v4351_v17 }
 0x8a3   : > { %4233 = vst.msk [vmem:[#allocation3 + $0x38] sm:$0xff] %vm702_vm3, %v4211_v49  ;;  %4558 = vmatmul.mubr.f32.gmra.mxu0 %v4350_v43  ;;  %v4344_v49 = vld [vmem:[#allocation3 + $0xc0] sm:$0xff] }
 0x8a5   : > { %v4275_v60 = vpop.permute.xlu0 %4274  ;;  %v4355_v47 = vld [vmem:[#allocation3 + $0x118] sm:$0xff] }
 0x8a6   : > { %v4213_v53 = vpop.permute.xlu1 %4212  ;;  %v4322_v7 = vld [vmem:[#allocation3 + $0x10] sm:$0xff]  ;;  %4297 = vst.msk [vmem:[#allocation3 + $0x40] sm:$0xff] %vm702_vm3, %v4275_v60  ;;  %v4349_v60 = vld [vmem:[#allocation3 + $0xe8] sm:$0xff] }
 0x8a7   : > { %4234 = vst.msk [vmem:[#allocation3 + $0x60] sm:$0xff] %vm702_vm3, %v4213_v53  ;;  %4633 = vmatmul.mubr.f32.vlgmr.msra.gmra.mxu1 %v4322_v7  ;;  %v4354_v7 = vld [vmem:[#allocation3 + $0x110] sm:$0xff] }
 0x8a9   : > { %v4277_v62 = vpop.permute.xlu0 %4276  ;;  %v4356_v32 = vld [vmem:[#allocation3 + $0x120] sm:$0xff] }
 0x8aa   : > { %v4215_v46 = vpop.permute.xlu1 %4214  ;;  %4298 = vst.msk [vmem:[#allocation3 + $0x68] sm:$0xff] %vm702_vm3, %v4277_v62  ;;  %4562 = vmatprep.mubr.f32.mxu0 %v4356_v32  ;;  %v4327_v4 = vld [vmem:[#allocation3 + $0x38] sm:$0xff] }
 0x8ab   : > { %4235 = vst.msk [vmem:[#allocation3 + $0x88] sm:$0xff] %vm702_vm3, %v4215_v46  ;;  %4563 = vmatmul.mubr.f32.gmra.mxu0 %v4355_v47 }
 0x8ac   : > { %6955 = vmatprep.mubr.msk.f32.mxu0 %vm601_vm0, %v4324_v37 }
 0x8ad   : > { %v4279_v8 = vpop.permute.xlu0 %4278  ;;  %v4328_v30 = vld [vmem:[#allocation3 + $0x40] sm:$0xff] }
 0x8ae   : > { %v4217_v29 = vpop.permute.xlu1 %4216  ;;  %4299 = vst.msk [vmem:[#allocation3 + $0x90] sm:$0xff] %vm702_vm3, %v4279_v8  ;;  %4637 = vmatprep.mubr.f32.mxu1 %v4328_v30  ;;  %v4332_v51 = vld [vmem:[#allocation3 + $0x60] sm:$0xff] }
 0x8af   : > { %4236 = vst.msk [vmem:[#allocation3 + $0xb0] sm:$0xff] %vm702_vm3, %v4217_v29  ;;  %4638 = vmatmul.mubr.f32.gmra.mxu1 %v4327_v4  ;;  %6956 = vmatmul.mubr.msk.f32.vlgmr.msra.gmra.mxu0 %vm601_vm0, %v4329_v2 }
 0x8b0   : > { %6958 = vmatprep.mubr.msk.f32.mxu0 %vm601_vm0, %v4334_v61 }
 0x8b1   : > { %v4281_v36 = vpop.permute.xlu0 %4280  ;;  %v4333_v21 = vld [vmem:[#allocation3 + $0x68] sm:$0xff] }
 0x8b2   : > { %v4219_v27 = vpop.permute.xlu1 %4218  ;;  %4300 = vst.msk [vmem:[#allocation3 + $0xb8] sm:$0xff] %vm702_vm3, %v4281_v36  ;;  %4642 = vmatprep.mubr.f32.mxu1 %v4333_v21  ;;  %v4337_v53 = vld [vmem:[#allocation3 + $0x88] sm:$0xff]  ;;  %v5137_v36 = vld [vmem:[%s10667_s11 + $0xf8] sm:$0xff] }
 0x8b3   : > { %4237 = vst.msk [vmem:[#allocation3 + $0xd8] sm:$0xff] %vm702_vm3, %v4219_v27  ;;  %4643 = vmatmul.mubr.f32.gmra.mxu1 %v4332_v51  ;;  %6959 = vmatmul.mubr.msk.f32.gmra.mxu0 %vm601_vm0, %v4339_v34  ;;  %v5121_v21 = vld [vmem:[%s10667_s11 + $0x78] sm:$0xff]  ;;  %v5136_v51 = vld [vmem:[%s10667_s11 + $0xf0] sm:$0xff] }
 0x8b4   : > { %6961 = vmatprep.mubr.msk.f32.mxu0 %vm601_vm0, %v4344_v49  ;;  %6599 = vmatprep.subr.mxu1 %v5137_v36  ;;  %v5169_v34 = vld [vmem:[%s10667_s11 + $0x1f8] sm:$0xff]  ;;  %v5119_v49 = vld [vmem:[%s10667_s11 + $0x68] sm:$0xff]  ;;  %v5148_v36 = vld [vmem:[%s10667_s11 + $0x150] sm:$0xff] }
 0x8b5   : > { %v4283_v17 = vpop.permute.xlu0 %4282  ;;  %v4338_v43 = vld [vmem:[#allocation3 + $0x90] sm:$0xff]  ;;  %6600 = vmatpush3.msra.mxu1 %v5121_v21  ;;  %6655 = vmatprep.subr.mxu0 %v5169_v34  ;;  %v5130_v21 = vld [vmem:[%s10667_s11 + $0xc0] sm:$0xff] }
 0x8b6   : > { %v4221_v52 = vpop.permute.xlu1 %4220  ;;  %4301 = vst.msk [vmem:[#allocation3 + $0xe0] sm:$0xff] %vm702_vm3, %v4283_v17  ;;  %4647 = vmatprep.mubr.f32.mxu1 %v4338_v43  ;;  %v4342_v47 = vld [vmem:[#allocation3 + $0xb0] sm:$0xff]  ;;  %6601 = vmatprep.subr.mxu1 %v5136_v51  ;;  %v5134_v17 = vld [vmem:[%s10667_s11 + $0xe0] sm:$0xff] }
 0x8b7   : > { %4238 = vst.msk [vmem:[#allocation3 + $0x100] sm:$0xff] %vm702_vm3, %v4221_v52  ;;  %4648 = vmatmul.mubr.f32.gmra.mxu1 %v4337_v53  ;;  %6962 = vmatmul.mubr.msk.f32.gmra.mxu0 %vm601_vm0, %v4349_v60  ;;  %v5153_v52 = vld [vmem:[%s10667_s11 + $0x178] sm:$0xff]  ;;  %v5168_v43 = vld [vmem:[%s10667_s11 + $0x1f0] sm:$0xff]  ;;  %v5118_v60 = vld [vmem:[%s10667_s11 + $0x60] sm:$0xff] }
 0x8b8   : > { %6964 = vmatprep.mubr.msk.f32.mxu0 %vm601_vm0, %v4354_v7  ;;  %6656 = vmatpush3.msra.mxu0 %v5153_v52  ;;  %v5152_v53 = vld [vmem:[%s10667_s11 + $0x170] sm:$0xff]  ;;  %v5167_v7 = vld [vmem:[%s10667_s11 + $0x1e8] sm:$0xff] }
 0x8b9   : > { %v4285_v62 = vpop.permute.xlu0 %4284  ;;  %v4343_v32 = vld [vmem:[#allocation3 + $0xb8] sm:$0xff]  ;;  %6657 = vmatprep.subr.mxu0 %v5168_v43  ;;  %v5128_v52 = vld [vmem:[%s10667_s11 + $0xb0] sm:$0xff] }
 0x8ba   : > { %v4223_v46 = vpop.permute.xlu1 %4222  ;;  %4302 = vst.msk [vmem:[#allocation3 + $0x108] sm:$0xff] %vm702_vm3, %v4285_v62  ;;  %4652 = vmatprep.mubr.f32.mxu1 %v4343_v32  ;;  %v4347_v30 = vld [vmem:[#allocation3 + $0xd8] sm:$0xff]  ;;  %6658 = vmatpush3.msra.mxu0 %v5152_v53  ;;  %v5151_v62 = vld [vmem:[%s10667_s11 + $0x168] sm:$0xff]  ;;  %v5166_v32 = vld [vmem:[%s10667_s11 + $0x1e0] sm:$0xff] }
 0x8bb   : > { %4239 = vst.msk [vmem:[#allocation3 + $0x128] sm:$0xff] %vm702_vm3, %v4223_v46  ;;  %4653 = vmatmul.mubr.f32.gmra.mxu1 %v4342_v47  ;;  %6965 = vmatmul.mubr.msk.f32.gmra.mxu0 %vm601_vm0, %v9883_v38  ;;  %v5133_v46 = vld [vmem:[%s10667_s11 + $0xd8] sm:$0xff] }
 0x8bc   : > { %v5117_v47 = vld [vmem:[%s10667_s11 + $0x58] sm:$0xff]  ;;  %6659 = vmatprep.subr.mxu0 %v5167_v7 }
 0x8bd   : > { %v4287_v29 = vpop.permute.xlu0 %4286  ;;  %v4348_v8 = vld [vmem:[#allocation3 + $0xe0] sm:$0xff]  ;;  %6660 = vmatpush3.msra.mxu0 %v5151_v62 }
 0x8be   : > { %v4827_v37 = vpop.permute.xlu1 %4826  ;;  %4303 = vst.msk [vmem:[#allocation3 + $0x130] sm:$0xff] %vm702_vm3, %v4287_v29  ;;  %4657 = vmatprep.mubr.f32.mxu1 %v4348_v8  ;;  %v4352_v2 = vld [vmem:[#allocation3 + $0x100] sm:$0xff]  ;;  %v5132_v29 = vld [vmem:[%s10667_s11 + $0xd0] sm:$0xff]  ;;  %v5165_v8 = vld [vmem:[%s10667_s11 + $0x1d8] sm:$0xff]  ;;  %6661 = vmatprep.subr.mxu0 %v5166_v32 }
 0x8bf   : > { %4850 = vst.msk [vmem:[#allocation3] sm:$0xff] %vm702_vm3, %v4827_v37  ;;  %4658 = vmatmul.mubr.f32.gmra.mxu1 %v4347_v30  ;;  %v5150_v37 = vld [vmem:[%s10667_s11 + $0x160] sm:$0xff]  ;;  %v5116_v30 = vld [vmem:[%s10667_s11 + $0x50] sm:$0xff] }
 0x8c0   : > { %6662 = vmatpush3.msra.mxu0 %v5150_v37 }
 0x8c1   : > { %v4353_v4 = vld [vmem:[#allocation3 + $0x108] sm:$0xff]  ;;  %6663 = vmatprep.subr.mxu0 %v5165_v8 }
 0x8c2   : > { %4662 = vmatprep.mubr.f32.mxu1 %v4353_v4  ;;  %v4357_v38 = vld [vmem:[#allocation3 + $0x128] sm:$0xff]  ;;  %v5149_v4 = vld [vmem:[%s10667_s11 + $0x158] sm:$0xff] }
 0x8c3   : > { %4663 = vmatmul.mubr.f32.gmra.mxu1 %v4352_v2  ;;  %v5131_v2 = vld [vmem:[%s10667_s11 + $0xc8] sm:$0xff]  ;;  %6664 = vmatpush3.msra.mxu0 %v5149_v4 }
 0x8c5   : > { %v4358_v27 = vld [vmem:[#allocation3 + $0x130] sm:$0xff] }
 0x8c6   : > { %v9953_v61 = vld [vmem:[#allocation3] sm:$0xff]  ;;  %4667 = vmatprep.mubr.f32.mxu1 %v4358_v27  ;;  %v5164_v27 = vld [vmem:[%s10667_s11 + $0x1d0] sm:$0xff] }
 0x8c7   : > { %5540 = vst.msk [vmem:[#allocation3] sm:$0xff] %vm601_vm0, %v7367_v11  ;;  %4668 = vmatmul.mubr.f32.gmra.mxu1 %v4357_v38  ;;  %v5120_v11 = vld [vmem:[%s10667_s11 + $0x70] sm:$0xff]  ;;  %v5115_v38 = vld [vmem:[%s10667_s11 + $0x48] sm:$0xff]  ;;  %6665 = vmatprep.subr.mxu0 %v5164_v27  ;;  %v10063_v27 = vld [vmem:[%s10666_s10] ss:$0 sm:$0xff] }
 0x8c8   : > { %5548 = vst.msk [vmem:[#allocation3] sm:$0xff] %vm702_vm3, %v8357_v20  ;;  %v5135_v20 = vld [vmem:[%s10667_s11 + $0xe8] sm:$0xff]  ;;  %6602 = vmatpush3.msra.mxu1 %v5120_v11  ;;  %v5114_v11 = vld [vmem:[%s10667_s11 + $0x40] sm:$0xff]  ;;  %6666 = vmatpush3.msra.mxu0 %v5148_v36 }
 0x8c9   : > { %6603 = vmatprep.subr.mxu1 %v5135_v20  ;;  %v5129_v20 = vld [vmem:[%s10667_s11 + $0xb8] sm:$0xff] }
 0x8ca   : > { %6604 = vmatpush3.msra.mxu1 %v5119_v49  ;;  %v5113_v49 = vld [vmem:[%s10667_s11 + $0x38] sm:$0xff] }
 0x8cb   : > { %6605 = vmatprep.subr.mxu1 %v5134_v17 }
 0x8cc   : > { %6606 = vmatpush3.msra.mxu1 %v5118_v60 }
 0x8cd   : > { %6607 = vmatprep.subr.mxu1 %v5133_v46 }
 0x8ce   : > { %6608 = vmatpush3.msra.mxu1 %v5117_v47 }
 0x8cf   : > { %6609 = vmatprep.subr.mxu1 %v5132_v29 }
 0x8d0   : > { %6610 = vmatpush3.msra.mxu1 %v5116_v30 }
 0x8d1   : > { %6611 = vmatprep.subr.mxu1 %v5131_v2 }
 0x8d2   : > { %6612 = vmatpush3.msra.mxu1 %v5115_v38 }
 0x8d3   : > { %6613 = vmatprep.subr.mxu1 %v5130_v21 }
 0x8d4   : > { %6614 = vmatpush3.msra.mxu1 %v5114_v11 }
 0x8d5   : > { %6615 = vmatprep.subr.mxu1 %v5129_v20 }
 0x8d6   : > { %6616 = vmatpush3.msra.mxu1 %v5113_v49 }
 0x8d7   : > { %6617 = vmatprep.subr.mxu1 %v5128_v52 }
 0x94b   : > { %v6503_v51 = vpop.f32.mrf.mxu0 }
 0x94d   : > { %v6504_v34 = vpop.f32.mrf.mxu0 }
 0x94e   : > { %v6505_v2 = vadd.f32 %v6504_v34, %v6503_v51 }
 0x94f   : > { %v6506_v17 = vpop.f32.mrf.mxu0 }
 0x950   : > { %v4530_v11 = vadd.f32 %v6505_v2, %v10063_v27 }
 0x951   : > { %v6507_v43 = vpop.f32.mrf.mxu0 }
 0x952   : > { %v6508_v20 = vadd.f32 %v6507_v43, %v6506_v17  ;;  %v5112_v17 = vld [vmem:[%s10667_s11 + $0x30] sm:$0xff]  ;;  %v5163_v43 = vld [vmem:[%s10667_s11 + $0x1c8] sm:$0xff] }
 0x953   : > { %v6509_v53 = vpop.f32.mrf.mxu0  ;;  %6618 = vmatpush3.msra.mxu1 %v5112_v17  ;;  %6667 = vmatprep.subr.mxu0 %v5163_v43  ;;  %v5145_v17 = vld [vmem:[%s10667_s11 + $0x138] sm:$0xff]  ;;  %v5160_v43 = vld [vmem:[%s10667_s11 + $0x1b0] sm:$0xff] }
 0x954   : > { %v4535_v51 = vadd.f32 %v6508_v20, %v10063_v27  ;;  %v4858_v20 = vld [vmem:[#allocation2 + $0x2] sm:$0xff] }
 0x955   : > { %v6510_v60 = vpop.f32.mrf.mxu0  ;;  %4866 = vst.msk [vmem:[#allocation3 + $0x8] sm:$0xff] %vm601_vm0, %v4858_v20  ;;  %v5107_v20 = vld [vmem:[%s10667_s11 + $0x8] sm:$0xff] }
 0x956   : > { %v6511_v34 = vadd.f32 %v6510_v60, %v6509_v53  ;;  %v5127_v53 = vld [vmem:[%s10667_s11 + $0xa8] sm:$0xff]  ;;  %v5162_v60 = vld [vmem:[%s10667_s11 + $0x1c0] sm:$0xff] }
 0x957   : > { %v6512_v7 = vpop.f32.mrf.mxu0  ;;  %6619 = vmatprep.subr.mxu1 %v5127_v53  ;;  %v5124_v53 = vld [vmem:[%s10667_s11 + $0x90] sm:$0xff] }
 0x959   : > { %v6513_v46 = vpop.f32.mrf.mxu0 }
 0x95a   : > { %v6514_v6 = vadd.f32 %v6513_v46, %v6512_v7 }
 0x95b   : > { %v6515_v62 = vpop.f32.mrf.mxu0 }
 0x95c   : > { %v4545_v2 = vadd.f32 %v6514_v6, %v10063_v27  ;;  %v5125_v6 = vld [vmem:[%s10667_s11 + $0x98] sm:$0xff] }
 0x95d   : > { %v6516_v32 = vpop.f32.mrf.mxu0 }
 0x95f   : > { %v10052_v47 = vpop.f32.mrf.mxu0 }
 0x961   : > { %v10054_v37 = vpop.f32.mrf.mxu0 }
 0x963   : > { %v10056_v29 = vpop.f32.mrf.mxu0 }
 0x965   : > { %v10058_v30 = vpop.f32.mrf.mxu0 }
 0x967   : > { %v6559_v8 = vpop.f32.mrf.mxu1 }
 0x969   : > { %v6560_v4 = vpop.f32.mrf.mxu1 }
 0x96a   : > { %v6561_v36 = vadd.f32 %v6560_v4, %v6559_v8 }
 0x96b   : > { %v10065_v38 = vpop.f32.mrf.mxu0 }
 0x96c   : > { %v4635_v50 = vadd.f32 %v6561_v36, %v4530_v11 }
 0x96d   : > { %v10067_v21 = vpop.f32.mrf.mxu0 }
 0x96f   : > { %v6562_v49 = vpop.f32.mrf.mxu1  ;;  %v6957_v52 = vpop.f32.mrf.mxu0 }
 0x971   : > { %v6563_v42 = vpop.f32.mrf.mxu1  ;;  %v4739_v56 = vpop.f32.mrf.mxu0 }
 0x972   : > { %v6564_v35 = vadd.f32 %v6563_v42, %v6562_v49  ;;  %v4740_v3 = vadd.f32 %v4739_v56, %v4635_v50  ;;  %v4540_v56 = vadd.f32 %v6511_v34, %v10063_v27  ;;  %v5111_v42 = vld [vmem:[%s10667_s11 + $0x28] sm:$0xff]  ;;  %v5110_v49 = vld [vmem:[%s10667_s11 + $0x20] sm:$0xff] }
 0x973   : > { %v6565_v57 = vpop.f32.mrf.mxu1  ;;  %v6960_v8 = vpop.f32.mrf.mxu0  ;;  %6620 = vmatpush3.msra.mxu1 %v5111_v42 }
 0x974   : > { %v4640_v41 = vadd.f32 %v6564_v35, %v4535_v51  ;;  %v4778_v23 = vmax.f32 %v4740_v3, 0.0  ;;  %v5147_v35 = vld [vmem:[%s10667_s11 + $0x148] sm:$0xff]  ;;  %v6517_v51 = vadd.f32 %v6516_v32, %v6515_v62  ;;  %v5109_v62 = vld [vmem:[%s10667_s11 + $0x18] sm:$0xff] }
 0x975   : > { %v6566_v4 = vpop.f32.mrf.mxu1  ;;  %6668 = vmatpush3.msra.mxu0 %v5147_v35  ;;  %v4749_v36 = vpop.f32.mrf.mxu0 }
 0x976   : > { %v4745_v50 = vadd.f32 %v6957_v52, %v4640_v41  ;;  %4786 = vst.msk [vmem:[#allocation2 + $0x11] sm:$0xff] %vm601_vm0, %v4778_v23  ;;  %v6567_v3 = vadd.f32 %v6566_v4, %v6565_v57  ;;  %v5126_v41 = vld [vmem:[%s10667_s11 + $0xa0] sm:$0xff]  ;;  %6669 = vmatprep.subr.mxu0 %v5162_v60  ;;  %v5161_v52 = vld [vmem:[%s10667_s11 + $0x1b8] sm:$0xff] }
 0x977   : > { %v6568_v7 = vpop.f32.mrf.mxu1  ;;  %v5146_v23 = vld [vmem:[%s10667_s11 + $0x140] sm:$0xff]  ;;  %6621 = vmatprep.subr.mxu1 %v5126_v41  ;;  %v10124_v35 = vpop.f32.mrf.mxu0 }
 0x978   : > { %v4779_v57 = vmax.f32 %v4745_v50, 0.0  ;;  %v4645_v46 = vadd.f32 %v6567_v3, %v4540_v56  ;;  %6670 = vmatpush3.msra.mxu0 %v5146_v23  ;;  %6622 = vmatpush3.msra.mxu1 %v5110_v49  ;;  %v5144_v56 = vld [vmem:[%s10667_s11 + $0x130] sm:$0xff]  ;;  %v4550_v23 = vadd.f32 %v6517_v51, %v10063_v27  ;;  %v5158_v49 = vld [vmem:[%s10667_s11 + $0x1a0] sm:$0xff] }
 0x979   : > { %v6569_v11 = vpop.f32.mrf.mxu1  ;;  %6671 = vmatprep.subr.mxu0 %v5161_v52  ;;  %6623 = vmatprep.subr.mxu1 %v5125_v6  ;;  %v6523_v6 = vadd.f32 %v10058_v30, %v10056_v29  ;;  %v5106_v29 = vld [vmem:[%s10667_s11] sm:$0xff]  ;;  %v5157_v30 = vld [vmem:[%s10667_s11 + $0x198] sm:$0xff] }
 0x97a   : > { %4787 = vst.msk [vmem:[#allocation2 + $0x21] sm:$0xff] %vm601_vm0, %v4779_v57  ;;  %v4750_v34 = vadd.f32 %v4749_v36, %v4645_v46  ;;  %v6570_v4 = vadd.f32 %v6569_v11, %v6568_v7  ;;  %6672 = vmatpush3.msra.mxu0 %v5145_v17  ;;  %6624 = vmatpush3.msra.mxu1 %v5109_v62  ;;  %v5108_v36 = vld [vmem:[%s10667_s11 + $0x10] sm:$0xff]  ;;  %v5159_v11 = vld [vmem:[%s10667_s11 + $0x1a8] sm:$0xff]  ;;  %v4759_v17 = vpop.f32.mrf.mxu0 }
 0x97b   : > { %v6571_v32 = vpop.f32.mrf.mxu1  ;;  %6673 = vmatprep.subr.mxu0 %v5160_v43  ;;  %6625 = vmatprep.subr.mxu1 %v5124_v53  ;;  %v6520_v57 = vadd.f32 %v10054_v37, %v10052_v47  ;;  %v5123_v47 = vld [vmem:[%s10667_s11 + $0x88] sm:$0xff] }
 0x97c   : > { %v4780_v50 = vmax.f32 %v4750_v34, 0.0  ;;  %v4650_v3 = vadd.f32 %v6570_v4, %v4545_v2  ;;  %6674 = vmatpush3.msra.mxu0 %v5144_v56  ;;  %6626 = vmatpush3.msra.mxu1 %v5108_v36  ;;  %v5122_v34 = vld [vmem:[%s10667_s11 + $0x80] sm:$0xff]  ;;  %v5156_v36 = vld [vmem:[%s10667_s11 + $0x190] sm:$0xff] }
 0x97d   : > { %v6572_v42 = vpop.f32.mrf.mxu1  ;;  %v10126_v60 = vld [vmem:[#allocation2 + $0x10] sm:$0xff]  ;;  %6675 = vmatprep.subr.mxu0 %v5159_v11  ;;  %6627 = vmatprep.subr.mxu1 %v5123_v47  ;;  %v5142_v4 = vld [vmem:[%s10667_s11 + $0x120] sm:$0xff]  ;;  %v4555_v56 = vadd.f32 %v6520_v57, %v10063_v27  ;;  %v5141_v57 = vld [vmem:[%s10667_s11 + $0x118] sm:$0xff]  ;;  %v4560_v47 = vadd.f32 %v6523_v6, %v10063_v27 }
 0x97e   : > { %v10128_v7 = vld [vmem:[#allocation2 + $0x11] sm:$0xff]  ;;  %4788 = vst.msk [vmem:[#allocation2 + $0x31] sm:$0xff] %vm601_vm0, %v4780_v50  ;;  %v4755_v46 = vadd.f32 %v6960_v8, %v4650_v3  ;;  %v6573_v2 = vadd.f32 %v6572_v42, %v6571_v32  ;;  %4803 = vst.msk [vmem:[#allocation3 + $0x28] sm:$0xff] %vm601_vm0, %v10126_v60  ;;  %v5143_v8 = vld [vmem:[%s10667_s11 + $0x128] sm:$0xff]  ;;  %6628 = vmatpush3.msra.mxu1 %v5107_v20 }
 0x97f   : > { %v10130_v41 = vld [vmem:[#allocation2 + $0x12] sm:$0xff]  ;;  %4930 = vst.msk [vmem:[#allocation3 + $0x10] sm:$0xff] %vm601_vm0, %v10128_v7  ;;  %v6574_v37 = vpop.f32.mrf.mxu1  ;;  %6676 = vmatpush3.msra.mxu0 %v5143_v8  ;;  %6629 = vmatprep.subr.mxu1 %v5122_v34  ;;  %v5139_v6 = vld [vmem:[%s10667_s11 + $0x108] sm:$0xff] }
 0x980   : > { %4867 = vst.msk [vmem:[#allocation3 + $0x30] sm:$0xff] %vm601_vm0, %v10130_v41  ;;  %v4781_v52 = vmax.f32 %v4755_v46, 0.0  ;;  %v4655_v51 = vadd.f32 %v6573_v2, %v4550_v23  ;;  %6677 = vmatprep.subr.mxu0 %v5158_v49  ;;  %v10187_v23 = vpop.f32.mrf.mxu0  ;;  %6630 = vmatpush3.msra.mxu1 %v5106_v29  ;;  %v5140_v11 = vld [vmem:[%s10667_s11 + $0x110] sm:$0xff] }
 0x981   : > { %v6575_v62 = vpop.f32.mrf.mxu1  ;;  %v4875_v32 = vld [vmem:[#allocation2 + $0x20] sm:$0xff]  ;;  %6678 = vmatpush3.msra.mxu0 %v5142_v4  ;;  %v5155_v4 = vld [vmem:[%s10667_s11 + $0x188] sm:$0xff] }
 0x982   : > { %v4812_v43 = vld [vmem:[#allocation2 + $0x21] sm:$0xff]  ;;  %4789 = vst.msk [vmem:[#allocation2 + $0x41] sm:$0xff] %vm601_vm0, %v4781_v52  ;;  %v4760_v50 = vadd.f32 %v4759_v17, %v4655_v51  ;;  %v6576_v3 = vadd.f32 %v6575_v62, %v6574_v37  ;;  %4892 = vrot.lane.b32.xlu0 %v4875_v32, %s7133_s1  ;;  %4804 = vst.msk [vmem:[#allocation3 + $0x50] sm:$0xff] %vm601_vm0, %v4875_v32  ;;  %6679 = vmatprep.subr.mxu0 %v5157_v30 }
 0x983   : > { %v10168_v53 = vld [vmem:[#allocation2 + $0x22] sm:$0xff]  ;;  %4830 = vrot.lane.b32.xlu1 %v4812_v43, %s7133_s1  ;;  %4994 = vst.msk [vmem:[#allocation3 + $0x18] sm:$0xff] %vm601_vm0, %v4875_v32  ;;  %4931 = vst.msk [vmem:[#allocation3 + $0x38] sm:$0xff] %vm601_vm0, %v4812_v43  ;;  %v6577_v42 = vpop.f32.mrf.mxu1  ;;  %6680 = vmatpush3.msra.mxu0 %v5141_v57  ;;  %v6526_v52 = vadd.f32 %v10067_v21, %v10065_v38  ;;  %v4769_v21 = vpop.f32.mrf.mxu0 }
 0x984   : > { %4868 = vst.msk [vmem:[#allocation3 + $0x58] sm:$0xff] %vm601_vm0, %v10168_v53  ;;  %5058 = vst.msk [vmem:[#allocation3 + $0x20] sm:$0xff] %vm601_vm0, %v10168_v53  ;;  %v4782_v46 = vmax.f32 %v4760_v50, 0.0  ;;  %v4660_v2 = vadd.f32 %v6576_v3, %v4555_v56  ;;  %6681 = vmatprep.subr.mxu0 %v5156_v36  ;;  %v5154_v17 = vld [vmem:[%s10667_s11 + $0x180] sm:$0xff] }
 0x985   : > { %v6578_v37 = vpop.f32.mrf.mxu1  ;;  %v4876_v8 = vld [vmem:[#allocation2 + $0x30] sm:$0xff]  ;;  %6682 = vmatpush3.msra.mxu0 %v5140_v11  ;;  %v4565_v50 = vadd.f32 %v6526_v52, %v10063_v27  ;;  %v5138_v30 = vld [vmem:[%s10667_s11 + $0x100] sm:$0xff] }
 0x986   : > { %v10199_v20 = vld [vmem:[#allocation2 + $0x31] sm:$0xff]  ;;  %4790 = vst.msk [vmem:[#allocation2 + $0x51] sm:$0xff] %vm601_vm0, %v4782_v46  ;;  %v4765_v51 = vadd.f32 %v10124_v35, %v4660_v2  ;;  %v6579_v34 = vadd.f32 %v6578_v37, %v6577_v42  ;;  %4890 = vrot.lane.b32.xlu0 %v10126_v60, %s7133_s1  ;;  %4805 = vst.msk [vmem:[#allocation3 + $0x78] sm:$0xff] %vm601_vm0, %v4876_v8  ;;  %6683 = vmatprep.subr.mxu0 %v5155_v4 }
 0x987   : > { %v10201_v49 = vld [vmem:[#allocation2 + $0x32] sm:$0xff]  ;;  %5018 = vrot.lane.b32.xlu1 %v4812_v43, %s7133_s1  ;;  %4995 = vst.msk [vmem:[#allocation3 + $0x40] sm:$0xff] %vm601_vm0, %v4876_v8  ;;  %4932 = vst.msk [vmem:[#allocation3 + $0x60] sm:$0xff] %vm601_vm0, %v10199_v20  ;;  %v6580_v38 = vpop.f32.mrf.mxu1  ;;  %6684 = vmatpush3.msra.mxu0 %v5139_v6 }
 0x988   : > { %4869 = vst.msk [vmem:[#allocation3 + $0x80] sm:$0xff] %vm601_vm0, %v10201_v49  ;;  %5059 = vst.msk [vmem:[#allocation3 + $0x48] sm:$0xff] %vm601_vm0, %v10201_v49  ;;  %v4783_v35 = vmax.f32 %v4765_v51, 0.0  ;;  %v4665_v60 = vadd.f32 %v6579_v34, %v4560_v47  ;;  %v10243_v42 = vld [vmem:[%s10667_s11 + $0x238] sm:$0xff]  ;;  %6685 = vmatprep.subr.mxu0 %v5154_v17 }
 0x989   : > { %v6581_v62 = vpop.f32.mrf.mxu1  ;;  %v4877_v32 = vld [vmem:[#allocation2 + $0x40] sm:$0xff]  ;;  %6967 = vmatprep.subr.mxu1 %v10243_v42  ;;  %6686 = vmatpush3.msra.mxu0 %v5138_v30 }
 0x98a   : > { %v10227_v43 = vld [vmem:[#allocation2 + $0x41] sm:$0xff]  ;;  %4791 = vst.msk [vmem:[#allocation2 + $0x61] sm:$0xff] %vm601_vm0, %v4783_v35  ;;  %v6582_v3 = vadd.f32 %v6581_v62, %v6580_v38  ;;  %v4770_v29 = vadd.f32 %v4769_v21, %v4665_v60  ;;  %4896 = vrot.lane.b32.xlu0 %v4877_v32, %s7133_s1  ;;  %4806 = vst.msk [vmem:[#allocation3 + $0xa0] sm:$0xff] %vm601_vm0, %v4877_v32 }
 0x98b   : > { %v10229_v56 = vld [vmem:[#allocation2 + $0x42] sm:$0xff]  ;;  %4828 = vrot.lane.b32.xlu1 %v10128_v7, %s7133_s1  ;;  %4996 = vst.msk [vmem:[#allocation3 + $0x68] sm:$0xff] %vm601_vm0, %v4877_v32  ;;  %4933 = vst.msk [vmem:[#allocation3 + $0x88] sm:$0xff] %vm601_vm0, %v10227_v43  ;;  %v10737_v32 = vmax.f32 %v9432_v0, 0.0 }
 0x98c   : > { %4870 = vst.msk [vmem:[#allocation3 + $0xa8] sm:$0xff] %vm601_vm0, %v10229_v56  ;;  %5060 = vst.msk [vmem:[#allocation3 + $0x70] sm:$0xff] %vm601_vm0, %v10229_v56  ;;  %v4670_v27 = vadd.f32 %v6582_v3, %v4565_v50  ;;  %v4784_v7 = vmax.f32 %v4770_v29, 0.0  ;;  %v10738_v29 = vmax.f32 %v9426_v25, 0.0 }
 0x98d   : > { %v4878_v57 = vld [vmem:[#allocation2 + $0x50] sm:$0xff] }
 0x98e   : > { %v4815_v46 = vld [vmem:[#allocation2 + $0x51] sm:$0xff]  ;;  %v4775_v36 = vadd.f32 %v10187_v23, %v4670_v27  ;;  %4792 = vst.msk [vmem:[#allocation2 + $0x71] sm:$0xff] %vm601_vm0, %v4784_v7  ;;  %4894 = vrot.lane.b32.xlu0 %v4876_v8, %s7133_s1  ;;  %4807 = vst.msk [vmem:[#allocation3 + $0xc8] sm:$0xff] %vm601_vm0, %v4878_v57 }
 0x98f   : > { %v4942_v2 = vld [vmem:[#allocation2 + $0x52] sm:$0xff]  ;;  %4954 = vrot.lane.b32.xlu1 %v10130_v41, %s7133_s1  ;;  %4934 = vst.msk [vmem:[#allocation3 + $0xb0] sm:$0xff] %vm601_vm0, %v4815_v46  ;;  %4997 = vst.msk [vmem:[#allocation3 + $0x90] sm:$0xff] %vm601_vm0, %v4878_v57 }
 0x990   : > { %4871 = vst.msk [vmem:[#allocation3 + $0xd0] sm:$0xff] %vm601_vm0, %v4942_v2  ;;  %5061 = vst.msk [vmem:[#allocation3 + $0x98] sm:$0xff] %vm601_vm0, %v4942_v2  ;;  %v4785_v11 = vmax.f32 %v4775_v36, 0.0 }
 0x991   : > { %v4879_v47 = vld [vmem:[#allocation2 + $0x60] sm:$0xff] }
 0x992   : > { %v4816_v23 = vld [vmem:[#allocation2 + $0x61] sm:$0xff]  ;;  %4793 = vst.msk [vmem:[#allocation2 + $0x81] sm:$0xff] %vm601_vm0, %v4785_v11  ;;  %4900 = vrot.lane.b32.xlu0 %v4879_v47, %s7133_s1  ;;  %4808 = vst.msk [vmem:[#allocation3 + $0xf0] sm:$0xff] %vm601_vm0, %v4879_v47 }
 0x993   : > { %v4943_v37 = vld [vmem:[#allocation2 + $0x62] sm:$0xff]  ;;  %4834 = vrot.lane.b32.xlu1 %v10227_v43, %s7133_s1  ;;  %4935 = vst.msk [vmem:[#allocation3 + $0xd8] sm:$0xff] %vm601_vm0, %v4816_v23  ;;  %4998 = vst.msk [vmem:[#allocation3 + $0xb8] sm:$0xff] %vm601_vm0, %v4879_v47 }
 0x994   : > { %4872 = vst.msk [vmem:[#allocation3 + $0xf8] sm:$0xff] %vm601_vm0, %v4943_v37  ;;  %5062 = vst.msk [vmem:[#allocation3 + $0xc0] sm:$0xff] %vm601_vm0, %v4943_v37 }
 0x995   : > { %v4880_v41 = vld [vmem:[#allocation2 + $0x70] sm:$0xff] }
 0x996   : > { %v4817_v8 = vld [vmem:[#allocation2 + $0x71] sm:$0xff]  ;;  %4838 = vrot.lane.b32.xlu0 %v4816_v23, %s7133_s1  ;;  %4809 = vst.msk [vmem:[#allocation3 + $0x118] sm:$0xff] %vm601_vm0, %v4880_v41  ;;  %4999 = vst.msk [vmem:[#allocation3 + $0xe0] sm:$0xff] %vm601_vm0, %v4880_v41 }
 0x997   : > { %v4944_v52 = vld [vmem:[#allocation2 + $0x72] sm:$0xff]  ;;  %4832 = vrot.lane.b32.xlu1 %v10199_v20, %s7133_s1  ;;  %4936 = vst.msk [vmem:[#allocation3 + $0x100] sm:$0xff] %vm601_vm0, %v4817_v8 }
 0x998   : > { %4873 = vst.msk [vmem:[#allocation3 + $0x120] sm:$0xff] %vm601_vm0, %v4944_v52  ;;  %5063 = vst.msk [vmem:[#allocation3 + $0xe8] sm:$0xff] %vm601_vm0, %v4944_v52 }
 0x999   : > { %v4881_v51 = vld [vmem:[#allocation2 + $0x80] sm:$0xff] }
 0x99a   : > { %v4945_v34 = vld [vmem:[#allocation2 + $0x82] sm:$0xff]  ;;  %4898 = vrot.lane.b32.xlu0 %v4878_v57, %s7133_s1  ;;  %5000 = vst.msk [vmem:[#allocation3 + $0x108] sm:$0xff] %vm601_vm0, %v4881_v51 }
 0x99b   : > { %v5008_v4 = vld [vmem:[#allocation2 + $0x81] sm:$0xff]  ;;  %4956 = vrot.lane.b32.xlu1 %v10168_v53, %s7133_s1  ;;  %5064 = vst.msk [vmem:[#allocation3 + $0x110] sm:$0xff] %vm601_vm0, %v4945_v34  ;;  %v4993_v53 = vld [vmem:[#allocation2 + $0x90] sm:$0xff] }
 0x99c   : > { %4937 = vst.msk [vmem:[#allocation3 + $0x128] sm:$0xff] %vm601_vm0, %v5008_v4  ;;  %5001 = vst.msk [vmem:[#allocation3 + $0x130] sm:$0xff] %vm601_vm0, %v4993_v53 }
 0x99e   : > { %4836 = vrot.lane.b32.xlu0 %v4815_v46, %s7133_s1 }
 0x99f   : > { %5020 = vrot.lane.b32.xlu1 %v10199_v20, %s7133_s1  ;;  %v5009_v20 = vld [vmem:[#allocation2 + $0x91] sm:$0xff] }
 0x9a2   : > { %4904 = vrot.lane.b32.xlu0 %v4881_v51, %s7133_s1 }
 0x9a3   : > { %5022 = vrot.lane.b32.xlu1 %v10227_v43, %s7133_s1 }
 0x9a6   : > { %4902 = vrot.lane.b32.xlu0 %v4880_v41, %s7133_s1 }
 0x9a7   : > { %4958 = vrot.lane.b32.xlu1 %v10201_v49, %s7133_s1 }
 0x9aa   : > { %4840 = vrot.lane.b32.xlu0 %v4817_v8, %s7133_s1 }
 0x9ab   : > { %4960 = vrot.lane.b32.xlu1 %v10229_v56, %s7133_s1 }
 0x9ae   : > { %5024 = vrot.lane.b32.xlu0 %v4815_v46, %s7133_s1 }
 0x9af   : > { %4962 = vrot.lane.b32.xlu1 %v4942_v2, %s7133_s1 }
 0x9b2   : > { %5026 = vrot.lane.b32.xlu0 %v4816_v23, %s7133_s1 }
 0x9b3   : > { %4964 = vrot.lane.b32.xlu1 %v4943_v37, %s7133_s1  ;;  %v5171_v37 = vld [vmem:[%s10667_s11 + $0x208] sm:$0xff] }
 0x9b6   : > { %5028 = vrot.lane.b32.xlu0 %v4817_v8, %s7133_s1 }
 0x9b7   : > { %4966 = vrot.lane.b32.xlu1 %v4944_v52, %s7133_s1 }
 0x9ba   : > { %5030 = vrot.lane.b32.xlu0 %v5008_v4, %s7133_s1 }
 0x9bb   : > { %4968 = vrot.lane.b32.xlu1 %v4945_v34, %s7133_s1 }
 0x9be   : > { %5032 = vrot.lane.b32.xlu0 %v5009_v20, %s7133_s1 }
 0x9f4   : > { %v4893_v38 = vpop.permute.xlu0 %4892 }
 0x9f5   : > { %v4831_v49 = vpop.permute.xlu1 %4830  ;;  %4915 = vst.msk [vmem:[#allocation3 + $0x30] sm:$0xff] %vm702_vm3, %v4893_v38 }
 0x9f6   : > { %4852 = vst.msk [vmem:[#allocation3 + $0x50] sm:$0xff] %vm702_vm3, %v4831_v49 }
 0x9f8   : > { %v4891_v35 = vpop.permute.xlu0 %4890 }
 0x9f9   : > { %v5019_v21 = vpop.permute.xlu1 %5018  ;;  %4914 = vst.msk [vmem:[#allocation3 + $0x8] sm:$0xff] %vm702_vm3, %v4891_v35 }
 0x9fa   : > { %5042 = vst.msk [vmem:[#allocation3 + $0x18] sm:$0xff] %vm702_vm3, %v5019_v21  ;;  %v10743_v21 = vmax.f32 %v9494_v63, 0.0 }
 0x9fc   : > { %v4897_v6 = vpop.permute.xlu0 %4896  ;;  %v5072_v17 = vld [vmem:[#allocation3 + $0x30] sm:$0xff] }
 0x9fd   : > { %v4829_v60 = vpop.permute.xlu1 %4828  ;;  %v5076_v62 = vld [vmem:[#allocation3 + $0x50] sm:$0xff]  ;;  %4917 = vst.msk [vmem:[#allocation3 + $0x80] sm:$0xff] %vm702_vm3, %v4897_v6 }
 0x9fe   : > { %4851 = vst.msk [vmem:[#allocation3 + $0x28] sm:$0xff] %vm702_vm3, %v4829_v60 }
 0x9ff   : > { %5557 = vst.msk [vmem:[#allocation3 + $0x30] sm:$0xff] %vm601_vm0, %v10737_v32  ;;  %5542 = vst.msk [vmem:[#allocation3 + $0x50] sm:$0xff] %vm601_vm0, %v7369_v12  ;;  %v5176_v12 = vld [vmem:[%s10667_s11 + $0x230] sm:$0xff] }
 0xa00   : > { %5550 = vst.msk [vmem:[#allocation3 + $0x50] sm:$0xff] %vm702_vm3, %v8365_v45  ;;  %v4895_v56 = vpop.permute.xlu0 %4894  ;;  %v5067_v50 = vld [vmem:[#allocation3 + $0x8] sm:$0xff] }
 0xa01   : > { %v4955_v43 = vpop.permute.xlu1 %4954  ;;  %v5069_v3 = vld [vmem:[#allocation3 + $0x18] sm:$0xff]  ;;  %4916 = vst.msk [vmem:[#allocation3 + $0x58] sm:$0xff] %vm702_vm3, %v4895_v56  ;;  %5273 = vmatprep.mubr.f32.mxu1 %v5067_v50  ;;  %v5175_v45 = vld [vmem:[%s10667_s11 + $0x228] sm:$0xff] }
 0xa02   : > { %4978 = vst.msk [vmem:[#allocation3 + $0x10] sm:$0xff] %vm702_vm3, %v4955_v43  ;;  %5378 = vmatprep.mubr.f32.mxu0 %v5069_v3  ;;  %5274 = vmatmul.mubr.f32.vlgmr.msra.gmra.mxu1 %v9953_v61  ;;  %v10739_v61 = vmax.f32 %v9453_v59, 0.0  ;;  %v5172_v59 = vld [vmem:[%s10667_s11 + $0x210] sm:$0xff]  ;;  %v5075_v3 = vld [vmem:[#allocation3 + $0x48] sm:$0xff] }
 0xa03   : > { %5556 = vst.msk [vmem:[#allocation3 + $0x8] sm:$0xff] %vm601_vm0, %v10738_v29  ;;  %5278 = vmatprep.mubr.f32.mxu1 %v5072_v17  ;;  %6968 = vmatpush3.msra.mxu1 %v10243_v42  ;;  %v5174_v42 = vld [vmem:[%s10667_s11 + $0x220] sm:$0xff] }
 0xa04   : > { %v4901_v30 = vpop.permute.xlu0 %4900  ;;  %v5082_v25 = vld [vmem:[#allocation3 + $0x80] sm:$0xff]  ;;  %6969 = vmatprep.subr.mxu1 %v5176_v12 }
 0xa05   : > { %v4835_v0 = vpop.permute.xlu1 %4834  ;;  %v5071_v27 = vld [vmem:[#allocation3 + $0x28] sm:$0xff]  ;;  %4919 = vst.msk [vmem:[#allocation3 + $0xd0] sm:$0xff] %vm702_vm3, %v4901_v30  ;;  %6970 = vmatpush3.msra.mxu1 %v5176_v12  ;;  %v5090_v30 = vld [vmem:[#allocation3 + $0xc0] sm:$0xff] }
 0xa06   : > { %4854 = vst.msk [vmem:[#allocation3 + $0xa0] sm:$0xff] %vm702_vm3, %v4835_v0  ;;  %5279 = vmatmul.mubr.f32.gmra.mxu1 %v5071_v27  ;;  %6971 = vmatprep.subr.mxu1 %v5175_v45  ;;  %v5085_v0 = vld [vmem:[#allocation3 + $0x98] sm:$0xff] }
 0xa07   : > { %5541 = vst.msk [vmem:[#allocation3 + $0x28] sm:$0xff] %vm601_vm0, %v7365_v10  ;;  %5559 = vst.msk [vmem:[#allocation3 + $0x80] sm:$0xff] %vm601_vm0, %v10739_v61  ;;  %6972 = vmatpush3.msra.mxu1 %v5175_v45  ;;  %v10740_v10 = vmax.f32 %v9444_v5, 0.0  ;;  %v10741_v5 = vmax.f32 %v9475_v44, 0.0 }
 0xa08   : > { %5549 = vst.msk [vmem:[#allocation3 + $0x28] sm:$0xff] %vm702_vm3, %v8361_v40  ;;  %v4839_v57 = vpop.permute.xlu0 %4838  ;;  %v5077_v46 = vld [vmem:[#allocation3 + $0x58] sm:$0xff]  ;;  %6973 = vmatprep.subr.mxu1 %v5174_v42 }
 0xa09   : > { %v4833_v7 = vpop.permute.xlu1 %4832  ;;  %v5068_v2 = vld [vmem:[#allocation3 + $0x10] sm:$0xff]  ;;  %4856 = vst.msk [vmem:[#allocation3 + $0xf0] sm:$0xff] %vm702_vm3, %v4839_v57  ;;  %5283 = vmatprep.mubr.f32.mxu1 %v5077_v46  ;;  %v5173_v40 = vld [vmem:[%s10667_s11 + $0x218] sm:$0xff]  ;;  %6974 = vmatpush3.msra.mxu1 %v5174_v42  ;;  %v5095_v42 = vld [vmem:[#allocation3 + $0xe8] sm:$0xff] }
 0xa0a   : > { %4853 = vst.msk [vmem:[#allocation3 + $0x78] sm:$0xff] %vm702_vm3, %v4833_v7  ;;  %5379 = vmatmul.mubr.f32.vlgmr.msra.gmra.mxu0 %v5068_v2  ;;  %5284 = vmatmul.mubr.f32.gmra.mxu1 %v5076_v62  ;;  %v5100_v7 = vld [vmem:[#allocation3 + $0x110] sm:$0xff]  ;;  %v5105_v57 = vld [vmem:[#allocation3 + $0x138] sm:$0xff] }
 0xa0b   : > { %5558 = vst.msk [vmem:[#allocation3 + $0x58] sm:$0xff] %vm601_vm0, %v10740_v10  ;;  %5288 = vmatprep.mubr.f32.mxu1 %v5082_v25  ;;  %6975 = vmatprep.subr.mxu1 %v5173_v40 }
 0xa0c   : > { %v4899_v11 = vpop.permute.xlu0 %4898  ;;  %v5092_v23 = vld [vmem:[#allocation3 + $0xd0] sm:$0xff]  ;;  %6976 = vmatpush3.msra.mxu1 %v5173_v40 }
 0xa0d   : > { %v4957_v36 = vpop.permute.xlu1 %4956  ;;  %v5086_v47 = vld [vmem:[#allocation3 + $0xa0] sm:$0xff]  ;;  %4918 = vst.msk [vmem:[#allocation3 + $0xa8] sm:$0xff] %vm702_vm3, %v4899_v11  ;;  %6977 = vmatprep.subr.mxu1 %v5172_v59  ;;  %v5650_v11 = vld [vmem:[%s10673_s17 + $0xf0] sm:$0xff] }
 0xa0e   : > { %4979 = vst.msk [vmem:[#allocation3 + $0x38] sm:$0xff] %vm702_vm3, %v4957_v36  ;;  %6978 = vmatpush3.msra.mxu1 %v5172_v59  ;;  %v5651_v59 = vld [vmem:[%s10673_s17 + $0xf8] sm:$0xff] }
 0xa0f   : > { %5544 = vst.msk [vmem:[#allocation3 + $0xa0] sm:$0xff] %vm601_vm0, %v7382_v15  ;;  %5561 = vst.msk [vmem:[#allocation3 + $0xd0] sm:$0xff] %vm601_vm0, %v10741_v5  ;;  %6979 = vmatprep.subr.mxu1 %v5171_v37  ;;  %v5170_v15 = vld [vmem:[%s10667_s11 + $0x200] sm:$0xff]  ;;  %v5635_v36 = vld [vmem:[%s10673_s17 + $0x78] sm:$0xff]  ;;  %6727 = vmatprep.subr.mxu0 %v5651_v59 }
 0xa10   : > { %5552 = vst.msk [vmem:[#allocation3 + $0xa0] sm:$0xff] %vm702_vm3, %v8373_v22  ;;  %v4837_v8 = vpop.permute.xlu0 %4836  ;;  %v5096_v51 = vld [vmem:[#allocation3 + $0xf0] sm:$0xff]  ;;  %6980 = vmatpush3.msra.mxu1 %v5171_v37  ;;  %6728 = vmatpush3.msra.mxu0 %v5635_v36  ;;  %v5633_v5 = vld [vmem:[%s10673_s17 + $0x68] sm:$0xff]  ;;  %v5648_v37 = vld [vmem:[%s10673_s17 + $0xe0] sm:$0xff] }
 0xa11   : > { %v5021_v41 = vpop.permute.xlu1 %5020  ;;  %v5081_v52 = vld [vmem:[#allocation3 + $0x78] sm:$0xff]  ;;  %4855 = vst.msk [vmem:[#allocation3 + $0xc8] sm:$0xff] %vm702_vm3, %v4837_v8  ;;  %6981 = vmatprep.subr.mxu1 %v5170_v15  ;;  %6729 = vmatprep.subr.mxu0 %v5650_v11 }
 0xa12   : > { %5043 = vst.msk [vmem:[#allocation3 + $0x40] sm:$0xff] %vm702_vm3, %v5021_v41  ;;  %5289 = vmatmul.mubr.f32.gmra.mxu1 %v5081_v52  ;;  %v5632_v41 = vld [vmem:[%s10673_s17 + $0x60] sm:$0xff]  ;;  %v5647_v8 = vld [vmem:[%s10673_s17 + $0xd8] sm:$0xff] }
 0xa13   : > { %5543 = vst.msk [vmem:[#allocation3 + $0x78] sm:$0xff] %vm601_vm0, %v7380_v14  ;;  %5546 = vst.msk [vmem:[#allocation3 + $0xf0] sm:$0xff] %vm601_vm0, %v7392_v18  ;;  %6982 = vmatpush3.msra.mxu1 %v5170_v15  ;;  %v10742_v14 = vmax.f32 %v9463_v54, 0.0  ;;  %v5631_v52 = vld [vmem:[%s10673_s17 + $0x58] sm:$0xff]  ;;  %v5630_v15 = vld [vmem:[%s10673_s17 + $0x50] sm:$0xff] }
 0xa14   : > { %5551 = vst.msk [vmem:[#allocation3 + $0x78] sm:$0xff] %vm702_vm3, %v8369_v13  ;;  %5554 = vst.msk [vmem:[#allocation3 + $0xf0] sm:$0xff] %vm702_vm3, %v8381_v26  ;;  %v4905_v44 = vpop.permute.xlu0 %4904  ;;  %v5087_v34 = vld [vmem:[#allocation3 + $0xa8] sm:$0xff]  ;;  %6995 = vmatprep.subr.mxu1 %v5651_v59 }
 0xa15   : > { %v5023_v22 = vpop.permute.xlu1 %5022  ;;  %4921 = vst.msk [vmem:[#allocation3 + $0x120] sm:$0xff] %vm702_vm3, %v4905_v44  ;;  %5293 = vmatprep.mubr.f32.mxu1 %v5087_v34  ;;  %v5073_v53 = vld [vmem:[#allocation3 + $0x38] sm:$0xff]  ;;  %v5629_v44 = vld [vmem:[%s10673_s17 + $0x48] sm:$0xff]  ;;  %v5644_v34 = vld [vmem:[%s10673_s17 + $0xc0] sm:$0xff] }
 0xa16   : > { %5044 = vst.msk [vmem:[#allocation3 + $0x68] sm:$0xff] %vm702_vm3, %v5023_v22  ;;  %5294 = vmatmul.mubr.f32.gmra.mxu1 %v5086_v47  ;;  %v5634_v47 = vld [vmem:[%s10673_s17 + $0x70] sm:$0xff]  ;;  %v5645_v22 = vld [vmem:[%s10673_s17 + $0xc8] sm:$0xff] }
 0xa17   : > { %5560 = vst.msk [vmem:[#allocation3 + $0xa8] sm:$0xff] %vm601_vm0, %v10742_v14  ;;  %5298 = vmatprep.mubr.f32.mxu1 %v5092_v23  ;;  %v5649_v23 = vld [vmem:[%s10673_s17 + $0xe8] sm:$0xff]  ;;  %6730 = vmatpush3.msra.mxu0 %v5634_v47  ;;  %v5628_v14 = vld [vmem:[%s10673_s17 + $0x40] sm:$0xff] }
 0xa18   : > { %v4903_v13 = vpop.permute.xlu0 %4902  ;;  %v5091_v4 = vld [vmem:[#allocation3 + $0xc8] sm:$0xff]  ;;  %6731 = vmatprep.subr.mxu0 %v5649_v23 }
 0xa19   : > { %v4959_v18 = vpop.permute.xlu1 %4958  ;;  %v5074_v26 = vld [vmem:[#allocation3 + $0x40] sm:$0xff]  ;;  %4920 = vst.msk [vmem:[#allocation3 + $0xf8] sm:$0xff] %vm702_vm3, %v4903_v13  ;;  %6732 = vmatpush3.msra.mxu0 %v5633_v5  ;;  %v5627_v13 = vld [vmem:[%s10673_s17 + $0x38] sm:$0xff] }
 0xa1a   : > { %4980 = vst.msk [vmem:[#allocation3 + $0x60] sm:$0xff] %vm702_vm3, %v4959_v18  ;;  %5383 = vmatprep.mubr.f32.mxu0 %v5074_v26  ;;  %5299 = vmatmul.mubr.f32.gmra.mxu1 %v5091_v4  ;;  %v5643_v18 = vld [vmem:[%s10673_s17 + $0xb8] sm:$0xff]  ;;  %v5642_v26 = vld [vmem:[%s10673_s17 + $0xb0] sm:$0xff] }
 0xa1b   : > { %5545 = vst.msk [vmem:[#allocation3 + $0xc8] sm:$0xff] %vm601_vm0, %v7384_v16  ;;  %5384 = vmatmul.mubr.f32.gmra.mxu0 %v5073_v53  ;;  %6733 = vmatprep.subr.mxu0 %v5648_v37  ;;  %v5626_v4 = vld [vmem:[%s10673_s17 + $0x30] sm:$0xff]  ;;  %v5641_v53 = vld [vmem:[%s10673_s17 + $0xa8] sm:$0xff] }
 0xa1c   : > { %5553 = vst.msk [vmem:[#allocation3 + $0xc8] sm:$0xff] %vm702_vm3, %v8377_v24  ;;  %v4841_v20 = vpop.permute.xlu0 %4840  ;;  %v5102_v38 = vld [vmem:[#allocation3 + $0x120] sm:$0xff]  ;;  %v10744_v24 = vmax.f32 %v9485_v31, 0.0  ;;  %6734 = vmatpush3.msra.mxu0 %v5632_v41 }
 0xa1d   : > { %v4961_v54 = vpop.permute.xlu1 %4960  ;;  %v5079_v49 = vld [vmem:[#allocation3 + $0x68] sm:$0xff]  ;;  %4857 = vst.msk [vmem:[#allocation3 + $0x118] sm:$0xff] %vm702_vm3, %v4841_v20  ;;  %v5070_v31 = vld [vmem:[#allocation3 + $0x20] sm:$0xff]  ;;  %6735 = vmatprep.subr.mxu0 %v5647_v8 }
 0xa1e   : > { %4981 = vst.msk [vmem:[#allocation3 + $0x88] sm:$0xff] %vm702_vm3, %v4961_v54  ;;  %5388 = vmatprep.mubr.f32.mxu0 %v5079_v49  ;;  %6736 = vmatpush3.msra.mxu0 %v5631_v52  ;;  %v5625_v54 = vld [vmem:[%s10673_s17 + $0x28] sm:$0xff] }
 0xa1f   : > { %5563 = vst.msk [vmem:[#allocation3 + $0x120] sm:$0xff] %vm601_vm0, %v10743_v21 }
 0xa20   : > { %v5025_v35 = vpop.permute.xlu0 %5024  ;;  %v5097_v60 = vld [vmem:[#allocation3 + $0xf8] sm:$0xff] }
 0xa21   : > { %v4963_v16 = vpop.permute.xlu1 %4962  ;;  %v5078_v6 = vld [vmem:[#allocation3 + $0x60] sm:$0xff]  ;;  %5045 = vst.msk [vmem:[#allocation3 + $0x90] sm:$0xff] %vm702_vm3, %v5025_v35  ;;  %5303 = vmatprep.mubr.f32.mxu1 %v5097_v60 }
 0xa22   : > { %4982 = vst.msk [vmem:[#allocation3 + $0xb0] sm:$0xff] %vm702_vm3, %v4963_v16  ;;  %5389 = vmatmul.mubr.f32.gmra.mxu0 %v5078_v6  ;;  %5304 = vmatmul.mubr.f32.gmra.mxu1 %v5096_v51  ;;  %v5646_v51 = vld [vmem:[%s10673_s17 + $0xd0] sm:$0xff] }
 0xa23   : > { %5562 = vst.msk [vmem:[#allocation3 + $0xf8] sm:$0xff] %vm601_vm0, %v10744_v24  ;;  %5308 = vmatprep.mubr.f32.mxu1 %v5102_v38  ;;  %6737 = vmatprep.subr.mxu0 %v5646_v51 }
 0xa24   : > { %v5027_v63 = vpop.permute.xlu0 %5026  ;;  %v5101_v62 = vld [vmem:[#allocation3 + $0x118] sm:$0xff]  ;;  %6738 = vmatpush3.msra.mxu0 %v5630_v15 }
 0xa25   : > { %v4965_v17 = vpop.permute.xlu1 %4964  ;;  %5046 = vst.msk [vmem:[#allocation3 + $0xb8] sm:$0xff] %vm702_vm3, %v5027_v63  ;;  %v5083_v50 = vld [vmem:[#allocation3 + $0x88] sm:$0xff]  ;;  %6739 = vmatprep.subr.mxu0 %v5645_v22 }
 0xa26   : > { %4983 = vst.msk [vmem:[#allocation3 + $0xd8] sm:$0xff] %vm702_vm3, %v4965_v17  ;;  %5309 = vmatmul.mubr.f32.gmra.mxu1 %v5101_v62  ;;  %6740 = vmatpush3.msra.mxu0 %v5629_v44 }
 0xa27   : > { %5547 = vst.msk [vmem:[#allocation3 + $0x118] sm:$0xff] %vm601_vm0, %v7394_v19  ;;  %6983 = vmatprep.mubr.msk.f32.mxu1 %vm601_vm0, %v5070_v31  ;;  %v5080_v19 = vld [vmem:[#allocation3 + $0x70] sm:$0xff]  ;;  %6741 = vmatprep.subr.mxu0 %v5644_v34 }
 0xa28   : > { %5555 = vst.msk [vmem:[#allocation3 + $0x118] sm:$0xff] %vm702_vm3, %v8385_v28  ;;  %v5029_v43 = vpop.permute.xlu0 %5028  ;;  %v5084_v56 = vld [vmem:[#allocation3 + $0x90] sm:$0xff]  ;;  %6742 = vmatpush3.msra.mxu0 %v5628_v14 }
 0xa29   : > { %v4967_v32 = vpop.permute.xlu1 %4966  ;;  %5047 = vst.msk [vmem:[#allocation3 + $0xe0] sm:$0xff] %vm702_vm3, %v5029_v43  ;;  %5393 = vmatprep.mubr.f32.mxu0 %v5084_v56  ;;  %v5088_v45 = vld [vmem:[#allocation3 + $0xb0] sm:$0xff]  ;;  %6743 = vmatprep.subr.mxu0 %v5643_v18 }
 0xa2a   : > { %4984 = vst.msk [vmem:[#allocation3 + $0x100] sm:$0xff] %vm702_vm3, %v4967_v32  ;;  %5394 = vmatmul.mubr.f32.gmra.mxu0 %v5083_v50  ;;  %6984 = vmatmul.mubr.msk.f32.vlgmr.msra.gmra.mxu1 %vm601_vm0, %v5075_v3 }
 0xa2b   : > { %6986 = vmatprep.mubr.msk.f32.mxu1 %vm601_vm0, %v5080_v19  ;;  %7011 = vmatpush3.msra.mxu1 %v5635_v36 }
 0xa2c   : > { %v5031_v29 = vpop.permute.xlu0 %5030  ;;  %v5089_v12 = vld [vmem:[#allocation3 + $0xb8] sm:$0xff]  ;;  %6996 = vmatprep.subr.mxu1 %v5650_v11  ;;  %6744 = vmatpush3.msra.mxu0 %v5627_v13 }
 0xa2d   : > { %v4969_v28 = vpop.permute.xlu1 %4968  ;;  %5048 = vst.msk [vmem:[#allocation3 + $0x108] sm:$0xff] %vm702_vm3, %v5031_v29  ;;  %5398 = vmatprep.mubr.f32.mxu0 %v5089_v12  ;;  %v5093_v61 = vld [vmem:[#allocation3 + $0xd8] sm:$0xff]  ;;  %7012 = vmatpush3.msra.mxu1 %v5634_v47  ;;  %v5640_v29 = vld [vmem:[%s10673_s17 + $0xa0] sm:$0xff] }
 0xa2e   : > { %4985 = vst.msk [vmem:[#allocation3 + $0x128] sm:$0xff] %vm702_vm3, %v4969_v28  ;;  %5399 = vmatmul.mubr.f32.gmra.mxu0 %v5088_v45  ;;  %6987 = vmatmul.mubr.msk.f32.gmra.mxu1 %vm601_vm0, %v5085_v0  ;;  %v5624_v12 = vld [vmem:[%s10673_s17 + $0x20] sm:$0xff] }
 0xa2f   : > { %6989 = vmatprep.mubr.msk.f32.mxu1 %vm601_vm0, %v5090_v30  ;;  %6997 = vmatprep.subr.mxu1 %v5649_v23  ;;  %v10505_v45 = vld [vmem:[%s10668_s12] ss:$0 sm:$0xff] }
 0xa30   : > { %v5033_v27 = vpop.permute.xlu0 %5032  ;;  %v5094_v25 = vld [vmem:[#allocation3 + $0xe0] sm:$0xff]  ;;  %7013 = vmatpush3.msra.mxu1 %v5633_v5  ;;  %6745 = vmatprep.subr.mxu0 %v5642_v26  ;;  %v5637_v5 = vld [vmem:[%s10673_s17 + $0x88] sm:$0xff] }
 0xa31   : > { %5049 = vst.msk [vmem:[#allocation3 + $0x130] sm:$0xff] %vm702_vm3, %v5033_v27  ;;  %5403 = vmatprep.mubr.f32.mxu0 %v5094_v25  ;;  %v5098_v2 = vld [vmem:[#allocation3 + $0x100] sm:$0xff]  ;;  %6998 = vmatprep.subr.mxu1 %v5648_v37  ;;  %v5639_v25 = vld [vmem:[%s10673_s17 + $0x98] sm:$0xff]  ;;  %v5621_v37 = vld [vmem:[%s10673_s17 + $0x8] sm:$0xff] }
 0xa32   : > { %5404 = vmatmul.mubr.f32.gmra.mxu0 %v5093_v61  ;;  %6990 = vmatmul.mubr.msk.f32.gmra.mxu1 %vm601_vm0, %v5095_v42  ;;  %v5623_v61 = vld [vmem:[%s10673_s17 + $0x18] sm:$0xff]  ;;  %v5638_v42 = vld [vmem:[%s10673_s17 + $0x90] sm:$0xff] }
 0xa33   : > { %6992 = vmatprep.mubr.msk.f32.mxu1 %vm601_vm0, %v5100_v7  ;;  %7014 = vmatpush3.msra.mxu1 %v5632_v41  ;;  %v5636_v41 = vld [vmem:[%s10673_s17 + $0x80] sm:$0xff] }
 0xa34   : > { %v5099_v46 = vld [vmem:[#allocation3 + $0x108] sm:$0xff]  ;;  %6999 = vmatprep.subr.mxu1 %v5647_v8  ;;  %6746 = vmatpush3.msra.mxu0 %v5626_v4 }
 0xa35   : > { %5408 = vmatprep.mubr.f32.mxu0 %v5099_v46  ;;  %v5103_v40 = vld [vmem:[#allocation3 + $0x128] sm:$0xff]  ;;  %7015 = vmatpush3.msra.mxu1 %v5631_v52  ;;  %v5622_v46 = vld [vmem:[%s10673_s17 + $0x10] sm:$0xff] }
 0xa36   : > { %5409 = vmatmul.mubr.f32.gmra.mxu0 %v5098_v2  ;;  %6993 = vmatmul.mubr.msk.f32.gmra.mxu1 %vm601_vm0, %v5105_v57 }
 0xa37   : > { %7000 = vmatprep.subr.mxu1 %v5646_v51  ;;  %6747 = vmatprep.subr.mxu0 %v5641_v53 }
 0xa38   : > { %v5104_v10 = vld [vmem:[#allocation3 + $0x130] sm:$0xff]  ;;  %7016 = vmatpush3.msra.mxu1 %v5630_v15  ;;  %6748 = vmatpush3.msra.mxu0 %v5625_v54  ;;  %v5620_v15 = vld [vmem:[%s10673_s17] sm:$0xff] }
 0xa39   : > { %5413 = vmatprep.mubr.f32.mxu0 %v5104_v10  ;;  %7001 = vmatprep.subr.mxu1 %v5645_v22 }
 0xa3a   : > { %5414 = vmatmul.mubr.f32.gmra.mxu0 %v5103_v40  ;;  %7017 = vmatpush3.msra.mxu1 %v5629_v44 }
 0xa3b   : > { %7002 = vmatprep.subr.mxu1 %v5644_v34  ;;  %6749 = vmatprep.subr.mxu0 %v5640_v29 }
 0xa3c   : > { %7018 = vmatpush3.msra.mxu1 %v5628_v14  ;;  %6750 = vmatpush3.msra.mxu0 %v5624_v12 }
 0xa3d   : > { %7003 = vmatprep.subr.mxu1 %v5643_v18  ;;  %6751 = vmatprep.subr.mxu0 %v5639_v25 }
 0xa3e   : > { %7019 = vmatpush3.msra.mxu1 %v5627_v13  ;;  %6752 = vmatpush3.msra.mxu0 %v5623_v61  ;;  %v10745_v13 = vmax.f32 %v9617_v9, 0.0 }
 0xa3f   : > { %7004 = vmatprep.subr.mxu1 %v5642_v26  ;;  %6753 = vmatprep.subr.mxu0 %v5638_v42 }
 0xa40   : > { %7020 = vmatpush3.msra.mxu1 %v5626_v4  ;;  %6754 = vmatpush3.msra.mxu0 %v5622_v46 }
 0xa41   : > { %7005 = vmatprep.subr.mxu1 %v5641_v53  ;;  %6755 = vmatprep.subr.mxu0 %v5637_v5 }
 0xa42   : > { %7021 = vmatpush3.msra.mxu1 %v5625_v54  ;;  %6756 = vmatpush3.msra.mxu0 %v5621_v37 }
 0xa43   : > { %7006 = vmatprep.subr.mxu1 %v5640_v29  ;;  %6757 = vmatprep.subr.mxu0 %v5636_v41  ;;  %v10748_v29 = vmax.f32 %v9647_v58, 0.0 }
 0xa44   : > { %7022 = vmatpush3.msra.mxu1 %v5624_v12  ;;  %6758 = vmatpush3.msra.mxu0 %v5620_v15 }
 0xa45   : > { %7007 = vmatprep.subr.mxu1 %v5639_v25 }
 0xa46   : > { %7023 = vmatpush3.msra.mxu1 %v5623_v61 }
 0xa47   : > { %7008 = vmatprep.subr.mxu1 %v5638_v42 }
 0xa48   : > { %7024 = vmatpush3.msra.mxu1 %v5622_v46 }
 0xa49   : > { %7009 = vmatprep.subr.mxu1 %v5637_v5  ;;  %v10750_v5 = vmax.f32 %v9732_v48, 0.0  ;;  %v10752_v48 = vld [vmem:[#allocation15_spill] sm:$0xff] }
 0xa4a   : > { %7025 = vmatpush3.msra.mxu1 %v5621_v37 }
 0xa4b   : > { %7010 = vmatprep.subr.mxu1 %v5636_v41 }
 0xa4c   : > { %7026 = vmatpush3.msra.mxu1 %v5620_v15 }
 0xac2   : > { %v6631_v20 = vpop.f32.mrf.mxu1 }
 0xac4   : > { %v6632_v49 = vpop.f32.mrf.mxu1 }
 0xac5   : > { %v6633_v0 = vadd.f32 %v6632_v49, %v6631_v20 }
 0xac6   : > { %v6634_v38 = vpop.f32.mrf.mxu1 }
 0xac7   : > { %v5276_v36 = vadd.f32 %v6633_v0, %v10505_v45 }
 0xac8   : > { %v6635_v21 = vpop.f32.mrf.mxu1 }
 0xac9   : > { %v6636_v3 = vadd.f32 %v6635_v21, %v6634_v38  ;;  %v10746_v38 = vmax.f32 %v9598_v55, 0.0  ;;  %v10747_v55 = vmax.f32 %v9667_v1, 0.0 }
 0xaca   : > { %v6637_v16 = vpop.f32.mrf.mxu1  ;;  %v6687_v17 = vpop.f32.mrf.mxu0 }
 0xacb   : > { %v5281_v7 = vadd.f32 %v6636_v3, %v10505_v45 }
 0xacc   : > { %v6638_v35 = vpop.f32.mrf.mxu1  ;;  %v6688_v62 = vpop.f32.mrf.mxu0 }
 0xacd   : > { %v6689_v57 = vadd.f32 %v6688_v62, %v6687_v17  ;;  %v6639_v2 = vadd.f32 %v6638_v35, %v6637_v16 }
 0xacf   : > { %v5381_v51 = vadd.f32 %v6689_v57, %v5276_v36  ;;  %v5286_v22 = vadd.f32 %v6639_v2, %v10505_v45  ;;  %v10749_v2 = vmax.f32 %v9694_v39, 0.0 }
 0xad2   : > { %v6640_v60 = vpop.f32.mrf.mxu1 }
 0xad4   : > { %v6641_v6 = vpop.f32.mrf.mxu1 }
 0xad5   : > { %v6642_v10 = vadd.f32 %v6641_v6, %v6640_v60 }
 0xad6   : > { %v6643_v24 = vpop.f32.mrf.mxu1 }
 0xad7   : > { %v5291_v44 = vadd.f32 %v6642_v10, %v10505_v45 }
 0xad8   : > { %v6644_v63 = vpop.f32.mrf.mxu1 }
 0xad9   : > { %v6645_v34 = vadd.f32 %v6644_v63, %v6643_v24 }
 0xada   : > { %v10488_v31 = vpop.f32.mrf.mxu1 }
 0xadb   : > { %v6690_v32 = vpop.f32.mrf.mxu0  ;;  %v5296_v60 = vadd.f32 %v6645_v34, %v10505_v45 }
 0xadc   : > { %v10490_v43 = vpop.f32.mrf.mxu1 }
 0xadd   : > { %v6691_v56 = vpop.f32.mrf.mxu0  ;;  %v6648_v9 = vadd.f32 %v10490_v43, %v10488_v31 }
 0xade   : > { %v6692_v30 = vadd.f32 %v6691_v56, %v6690_v32 }
 0xadf   : > { %v5301_v31 = vadd.f32 %v6648_v9, %v10505_v45  ;;  %v5608_v9 = vld [vmem:[#allocation3 + $0x50] sm:$0xff] }
 0xae0   : > { %v5386_v11 = vadd.f32 %v6692_v30, %v5281_v7 }
 0xae2   : > { %v10492_v50 = vpop.f32.mrf.mxu1  ;;  %v6693_v19 = vpop.f32.mrf.mxu0 }
 0xae4   : > { %v10494_v28 = vpop.f32.mrf.mxu1  ;;  %v6694_v40 = vpop.f32.mrf.mxu0 }
 0xae5   : > { %v6695_v8 = vadd.f32 %v6694_v40, %v6693_v19  ;;  %v6651_v43 = vadd.f32 %v10494_v28, %v10492_v50 }
 0xae6   : > { %v10507_v27 = vpop.f32.mrf.mxu1 }
 0xae7   : > { %v5391_v35 = vadd.f32 %v6695_v8, %v5286_v22  ;;  %v5306_v10 = vadd.f32 %v6651_v43, %v10505_v45 }
 0xae8   : > { %v10522_v59 = vpop.f32.mrf.mxu1 }
 0xae9   : > { %v6654_v50 = vadd.f32 %v10522_v59, %v10507_v27 }
 0xaea   : > { %v6696_v47 = vpop.f32.mrf.mxu0  ;;  %v6985_v23 = vpop.f32.mrf.mxu1 }
 0xaeb   : > { %v5491_v52 = vadd.f32 %v6985_v23, %v5386_v11 }
 0xaec   : > { %v6697_v14 = vpop.f32.mrf.mxu0  ;;  %v5485_v18 = vpop.f32.mrf.mxu1 }
 0xaed   : > { %v5525_v26 = vadd.f32 %v5491_v52, %v10745_v13  ;;  %v6698_v4 = vadd.f32 %v6697_v14, %v6696_v47  ;;  %v5486_v53 = vadd.f32 %v5485_v18, %v5381_v51  ;;  %v5311_v52 = vadd.f32 %v6654_v50, %v10505_v45 }
 0xaee   : > { %v6699_v54 = vpop.f32.mrf.mxu0  ;;  %v6988_v20 = vpop.f32.mrf.mxu1  ;;  %v10753_v18 = vmax.f32 %v10752_v48, 0.0 }
 0xaef   : > { %v5533_v49 = vmax.f32 %v5525_v26, 0.0  ;;  %v5524_v21 = vadd.f32 %v5486_v53, %v10746_v38  ;;  %v5396_v16 = vadd.f32 %v6698_v4, %v5291_v44  ;;  %v10751_v44 = vmax.f32 %v9762_v33, 0.0 }
 0xaf0   : > { %v6700_v6 = vpop.f32.mrf.mxu0  ;;  %v5495_v24 = vpop.f32.mrf.mxu1 }
 0xaf1   : > { %v5532_v17 = vmax.f32 %v5524_v21, 0.0  ;;  %v5501_v63 = vadd.f32 %v6988_v20, %v5396_v16  ;;  %v6701_v62 = vadd.f32 %v6700_v6, %v6699_v54  ;;  %v5496_v32 = vadd.f32 %v5495_v24, %v5391_v35  ;;  %5574 = vrot.lane.b32.xlu1 %v5533_v49, %s7133_s1  ;;  %v5604_v49 = vld [vmem:[#allocation3] sm:$0xff]  ;;  %v5606_v16 = vld [vmem:[#allocation3 + $0x28] sm:$0xff] }
 0xaf2   : > { %v6702_v56 = vpop.f32.mrf.mxu0  ;;  %v6991_v3 = vpop.f32.mrf.mxu1 }
 0xaf3   : > { %v5527_v19 = vadd.f32 %v5501_v63, %v10747_v55  ;;  %v5526_v12 = vadd.f32 %v5496_v32, %v10748_v29  ;;  %5572 = vrot.lane.b32.xlu0 %v5532_v17, %s7133_s1  ;;  %v5401_v0 = vadd.f32 %v6701_v62, %v5296_v60  ;;  %v5610_v17 = vld [vmem:[#allocation3 + $0x78] sm:$0xff]  ;;  %v5612_v32 = vld [vmem:[#allocation3 + $0xa0] sm:$0xff] }
 0xaf4   : > { %v6703_v30 = vpop.f32.mrf.mxu0  ;;  %v5505_v25 = vpop.f32.mrf.mxu1  ;;  %v5618_v29 = vld [vmem:[#allocation3 + $0x118] sm:$0xff] }
 0xaf5   : > { %v5535_v61 = vmax.f32 %v5527_v19, 0.0  ;;  %v5534_v42 = vmax.f32 %v5526_v12, 0.0  ;;  %v6704_v7 = vadd.f32 %v6703_v30, %v6702_v56  ;;  %v5506_v57 = vadd.f32 %v5505_v25, %v5401_v0  ;;  %v5616_v56 = vld [vmem:[#allocation3 + $0xf0] sm:$0xff]  ;;  %v5614_v19 = vld [vmem:[#allocation3 + $0xc8] sm:$0xff]  ;;  %v5927_v0 = vld [vmem:[%s10674_s18] ss:$0 sm:$0xff] }
 0xaf6   : > { %v6705_v46 = vpop.f32.mrf.mxu0  ;;  %v6994_v36 = vpop.f32.mrf.mxu1 }
 0xaf7   : > { %v5406_v1 = vadd.f32 %v6704_v7, %v5301_v31  ;;  %v5528_v58 = vadd.f32 %v5506_v57, %v10749_v2  ;;  %5576 = vrot.lane.b32.xlu0 %v5534_v42, %s7133_s1  ;;  %5578 = vrot.lane.b32.xlu1 %v5535_v61, %s7133_s1 }
 0xaf8   : > { %v6706_v40 = vpop.f32.mrf.mxu0  ;;  %v5515_v41 = vpop.f32.mrf.mxu1 }
 0xaf9   : > { %v5511_v28 = vadd.f32 %v6991_v3, %v5406_v1  ;;  %v5536_v11 = vmax.f32 %v5528_v58, 0.0  ;;  %v6707_v47 = vadd.f32 %v6706_v40, %v6705_v46 }
 0xafa   : > { %v6708_v23 = vpop.f32.mrf.mxu0 }
 0xafb   : > { %v5529_v37 = vadd.f32 %v5511_v28, %v10750_v5  ;;  %v5411_v39 = vadd.f32 %v6707_v47, %v5306_v10  ;;  %5580 = vrot.lane.b32.xlu0 %v5536_v11, %s7133_s1 }
 0xafc   : > { %v6709_v8 = vpop.f32.mrf.mxu0 }
 0xafd   : > { %v5537_v51 = vmax.f32 %v5529_v37, 0.0  ;;  %v5516_v15 = vadd.f32 %v5515_v41, %v5411_v39  ;;  %v6710_v22 = vadd.f32 %v6709_v8, %v6708_v23 }
 0xaff   : > { %v5530_v27 = vadd.f32 %v5516_v15, %v10751_v44  ;;  %v5416_v59 = vadd.f32 %v6710_v22, %v5311_v52  ;;  %5582 = vrot.lane.b32.xlu0 %v5537_v51, %s7133_s1 }
 0xb01   : > { %v5538_v34 = vmax.f32 %v5530_v27, 0.0  ;;  %v5521_v14 = vadd.f32 %v6994_v36, %v5416_v59 }
 0xb03   : > { %v5531_v13 = vadd.f32 %v5521_v14, %v10753_v18  ;;  %5584 = vrot.lane.b32.xlu1 %v5538_v34, %s7133_s1 }
 0xb05   : > { %v5539_v26 = vmax.f32 %v5531_v13, 0.0 }
 0xb07   : > { %5586 = vrot.lane.b32.xlu1 %v5539_v26, %s7133_s1  ;;  %s593_s1 = sand.u32 1, %s7122_s30  }
 0xb08   : > { %s5860_s26 = sshll.u32 %s593_s1, 6  ;;  %s10616_s3 = scalar_lea.sflag [#allocation5], %s593_s1 }
 0xb09   : > { %s10587_s22 = scalar_lea.vmem [#allocation4], %s5860_s26 }
 0xb0a   : > { %s5794_s27 = sshll.u32 %s10587_s22, 4  ;;  %s10608_s27 = int_to_ptr.vmem [resolvable:$true] %s5794_s27 }
 0xb0b   : > { %s7070_s26 = scalar_lea.vmem %s10608_s27, 1024  ;;  %p7077_p0 = scmp.lt.s32.totalorder %s10608_s27, %s7075_s24 }
 0xb0c   : > { %p7071_p11 = scmp.ne.s32.totalorder %s10608_s27, %s7070_s26  ;;  %p7078_p1 = scmp.lt.s32.totalorder %s7076_s28, %s7070_s26 }
 0xb0e   : > { %p7072_p12 = pnand %p7071_p11, %p7275_p5  ;;  %p7079_p2 = por %p7078_p1, %p7077_p0 }
 0xb10   : > { %p7073_p13 = pneg %p7072_p12 }
 0xb12   : > { %p7080_p3 = pnand %p7079_p2, %p7073_p13 }
 0xb63   : > { %v5575_v45 = vpop.permute.xlu1 %5574 }
 0xb64   : > { %5597 = vst.msk [vmem:[#allocation3 + $0x30] sm:$0xff] %vm702_vm3, %v5575_v45 }
 0xb65   : > { %v5573_v4 = vpop.permute.xlu0 %5572 }
 0xb66   : > { %5596 = vst.msk [vmem:[#allocation3 + $0x8] sm:$0xff] %vm702_vm3, %v5573_v4 }
 0xb69   : > { %v5579_v33 = vpop.permute.xlu1 %5578  ;;  %v5577_v53 = vpop.permute.xlu0 %5576 }
 0xb6a   : > { %5599 = vst.msk [vmem:[#allocation3 + $0x80] sm:$0xff] %vm702_vm3, %v5579_v33  ;;  %5598 = vst.msk [vmem:[#allocation3 + $0x58] sm:$0xff] %vm702_vm3, %v5577_v53 }
 0xb6b   : > { %v5607_v38 = vld [vmem:[#allocation3 + $0x30] sm:$0xff] }
 0xb6d   : > { %v5581_v54 = vpop.permute.xlu0 %5580  ;;  %v5605_v20 = vld [vmem:[#allocation3 + $0x8] sm:$0xff] }
 0xb6e   : > { %5600 = vst.msk [vmem:[#allocation3 + $0xa8] sm:$0xff] %vm702_vm3, %v5581_v54  ;;  %5723 = vmatprep.mubr.f32.mxu0 %v5605_v20 }
 0xb6f   : > { %5724 = vmatmul.mubr.f32.vlgmr.msra.gmra.mxu0 %v5604_v49 }
 0xb70   : > { %5728 = vmatprep.mubr.f32.mxu0 %v5607_v38 }
 0xb71   : > { %v5583_v21 = vpop.permute.xlu0 %5582  ;;  %v5609_v35 = vld [vmem:[#allocation3 + $0x58] sm:$0xff]  ;;  %v5611_v6 = vld [vmem:[#allocation3 + $0x80] sm:$0xff] }
 0xb72   : > { %5601 = vst.msk [vmem:[#allocation3 + $0xd0] sm:$0xff] %vm702_vm3, %v5583_v21 }
 0xb73   : > { %5729 = vmatmul.mubr.f32.gmra.mxu0 %v5606_v16 }
 0xb74   : > { %5733 = vmatprep.mubr.f32.mxu0 %v5609_v35 }
 0xb75   : > { %v5585_v60 = vpop.permute.xlu1 %5584  ;;  %v5613_v63 = vld [vmem:[#allocation3 + $0xa8] sm:$0xff] }
 0xb76   : > { %5602 = vst.msk [vmem:[#allocation3 + $0xf8] sm:$0xff] %vm702_vm3, %v5585_v60 }
 0xb77   : > { %5734 = vmatmul.mubr.f32.gmra.mxu0 %v5608_v9 }
 0xb78   : > { %5738 = vmatprep.mubr.f32.mxu0 %v5611_v6 }
 0xb79   : > { %v5587_v24 = vpop.permute.xlu1 %5586  ;;  %v5615_v3 = vld [vmem:[#allocation3 + $0xd0] sm:$0xff] }
 0xb7a   : > { %5603 = vst.msk [vmem:[#allocation3 + $0x120] sm:$0xff] %vm702_vm3, %v5587_v24 }
 0xb7b   : > { %5739 = vmatmul.mubr.f32.gmra.mxu0 %v5610_v17 }
 0xb7c   : > { %5743 = vmatprep.mubr.f32.mxu0 %v5613_v63 }
 0xb7d   : > { %v5617_v62 = vld [vmem:[#allocation3 + $0xf8] sm:$0xff] }
 0xb7e   : > { %5753 = vmatprep.mubr.f32.mxu1 %v5617_v62 }
 0xb7f   : > { %5744 = vmatmul.mubr.f32.gmra.mxu0 %v5612_v32  ;;  %5754 = vmatmul.mubr.f32.vlgmr.msra.gmra.mxu1 %v5616_v56 }
 0xb80   : > { %5748 = vmatprep.mubr.f32.mxu0 %v5615_v3 }
 0xb81   : > { %v5619_v55 = vld [vmem:[#allocation3 + $0x120] sm:$0xff] }
 0xb82   : > { %5758 = vmatprep.mubr.f32.mxu1 %v5619_v55 }
 0xb83   : > { %5749 = vmatmul.mubr.f32.gmra.mxu0 %v5614_v19  ;;  %5759 = vmatmul.mubr.f32.gmra.mxu1 %v5618_v29 }
 0xc2f   : > { %v6759_v12 = vpop.f32.mrf.mxu0 }
 0xc31   : > { %v6760_v31 = vpop.f32.mrf.mxu0 }
 0xc32   : > { %v6761_v43 = vadd.f32 %v6760_v31, %v6759_v12 }
 0xc33   : > { %v6762_v30 = vpop.f32.mrf.mxu0 }
 0xc34   : > { %v5726_v25 = vadd.f32 %v6761_v43, %v5927_v0 }
 0xc35   : > { %v6763_v61 = vpop.f32.mrf.mxu0 }
 0xc36   : > { %v5764_v42 = vmax.f32 %v5726_v25, 0.0  ;;  %v6764_v7 = vadd.f32 %v6763_v61, %v6762_v30 }
 0xc37   : > { %v6765_v57 = vpop.f32.mrf.mxu0 }
 0xc38   : > { %5772 = vst.msk [vmem:[%s10587_s22] sm:$0xff] %vm601_vm0, %v5764_v42  ;;  %v5731_v46 = vadd.f32 %v6764_v7, %v5927_v0 }
 0xc39   : > { %v6766_v1 = vpop.f32.mrf.mxu0 }
 0xc3a   : > { %v5765_v2 = vmax.f32 %v5731_v46, 0.0  ;;  %v6767_v58 = vadd.f32 %v6766_v1, %v6765_v57 }
 0xc3b   : > { %v6768_v10 = vpop.f32.mrf.mxu0 }
 0xc3c   : > { %5773 = vst.msk [vmem:[%s10587_s22 + $0x8] sm:$0xff] %vm601_vm0, %v5765_v2  ;;  %v5736_v40 = vadd.f32 %v6767_v58, %v5927_v0 }
 0xc3d   : > { %v6769_v36 = vpop.f32.mrf.mxu0 }
 0xc3e   : > { %v5766_v50 = vmax.f32 %v5736_v40, 0.0  ;;  %v6770_v28 = vadd.f32 %v6769_v36, %v6768_v10 }
 0xc3f   : > { %v6771_v11 = vpop.f32.mrf.mxu0  ;;  %v6777_v47 = vpop.f32.mrf.mxu1 }
 0xc40   : > { %5774 = vst.msk [vmem:[%s10587_s22 + $0x10] sm:$0xff] %vm601_vm0, %v5766_v50  ;;  %v5741_v23 = vadd.f32 %v6770_v28, %v5927_v0 }
 0xc41   : > { %v6772_v5 = vpop.f32.mrf.mxu0  ;;  %v6778_v37 = vpop.f32.mrf.mxu1 }
 0xc42   : > { %v5767_v39 = vmax.f32 %v5741_v23, 0.0  ;;  %v6773_v41 = vadd.f32 %v6772_v5, %v6771_v11  ;;  %v6779_v8 = vadd.f32 %v6778_v37, %v6777_v47 }
 0xc43   : > { %v6774_v52 = vpop.f32.mrf.mxu0  ;;  %v6780_v51 = vpop.f32.mrf.mxu1 }
 0xc44   : > { %5775 = vst.msk [vmem:[%s10587_s22 + $0x18] sm:$0xff] %vm601_vm0, %v5767_v39  ;;  %v5746_v15 = vadd.f32 %v6773_v41, %v5927_v0  ;;  %v5756_v22 = vadd.f32 %v6779_v8, %v5927_v0 }
 0xc45   : > { %v6775_v44 = vpop.f32.mrf.mxu0  ;;  %v6781_v27 = vpop.f32.mrf.mxu1 }
 0xc46   : > { %v5768_v59 = vmax.f32 %v5746_v15, 0.0  ;;  %v5770_v34 = vmax.f32 %v5756_v22, 0.0  ;;  %v6776_v14 = vadd.f32 %v6775_v44, %v6774_v52  ;;  %v6782_v48 = vadd.f32 %v6781_v27, %v6780_v51 }
 0xc48   : > { %5776 = vst.msk [vmem:[%s10587_s22 + $0x20] sm:$0xff] %vm601_vm0, %v5768_v59  ;;  %5778 = vst.msk [vmem:[%s10587_s22 + $0x30] sm:$0xff] %vm601_vm0, %v5770_v34  ;;  %v5751_v18 = vadd.f32 %v6776_v14, %v5927_v0  ;;  %v5761_v13 = vadd.f32 %v6782_v48, %v5927_v0 }
 0xc4a   : > { %v5769_v26 = vmax.f32 %v5751_v18, 0.0  ;;  %v5771_v45 = vmax.f32 %v5761_v13, 0.0 }
 0xc4c   : > { %5777 = vst.msk [vmem:[%s10587_s22 + $0x28] sm:$0xff] %vm601_vm0, %v5769_v26  ;;  %5779 = vst.msk [vmem:[%s10587_s22 + $0x38] sm:$0xff] %vm601_vm0, %v5771_v45 }
 0xc4d   : > { %7083 = shalt.err (!%p7080_p3)
}
 0xc4e   : > { %s7084_s1 = scalar_lea.hbm %s10606_s21, 1024  ;;  %s7088_s0 = scalar_lea.hbm %s10757_s2, 2048 }
 0xc4f   : > { %p7085_p4 = scmp.ne.s32.totalorder %s10606_s21, %s7084_s1  ;;  %p7089_p9 = scmp.lt.s32.totalorder %s10606_s21, %s10757_s2 }
 0xc50   : > { %p7090_p10 = scmp.lt.s32.totalorder %s7088_s0, %s7084_s1 }
 0xc51   : > { %p7086_p7 = pnand %p7085_p4, %p7275_p5 }
 0xc52   : > { %p7091_p11 = por %p7090_p10, %p7089_p9 }
 0xc53   : > { %p7087_p8 = pneg %p7086_p7 }
 0xc55   : > { %p7092_p12 = pnand %p7091_p11, %p7087_p8 }
 0xc57   : > { %7095 = shalt.err (!%p7092_p12)
}
 0xc58   : > { %s7135_s26 = smov 128   ;;  %s7136_s24 = smov 8  }
 0xc59   : > { %7027 = dma.vmem_to_hbm [thread:$0]  (%p7275_p5), %s10608_s27, 1024, %s10606_s21, %s10616_s3, %s7135_s26, %s7135_s26, %s7136_s24  }
 0xc5a PF: > { %s10758_s28 = sld [smem:[#allocation9_spill]] }
 0xc5b   : > { %s10759_s22 = sld [smem:[#allocation7_spill]] }
 0xc60   : > { %p7033_p13 = scmp.ge.s32.totalorder %s10758_s28, 2 }
 0xc61   : > { %s5809_s5 = sand.u32 1, %s10759_s22  }
 0xc62   : > { %p7030_p0 = pnand %p7033_p13, %p7279_p6  ;;  %s5810_s4 = scalar_lea.sflag [#allocation5], %s5809_s5 }
 0xc64   : > { %p7031_p1 = pneg %p7030_p0 }
 0xc66   : > { %7113 = dma.done.wait (%p7031_p1), %s5810_s4, 1024  }
 0xc67   : > { %7115 = vsyncadd (%p7031_p1), %s5810_s4, 4294966272  ;;  %s10761_s21 = sld [smem:[#allocation11_spill]]  ;;  %s10764_s0 = smov %s7122_s30 }
 0xc68   : > { %s10762_s1 = sld [smem:[#allocation8_spill]] }
 0xc69   : > { %s10763_s20 = sld [smem:[#allocation12_spill]] }
 0xc6d   : > { %p29_p2 = scmp.ge.s32.totalorder %s10761_s21, 4  }
 0xc6e   : > { %s10765_s30 = smov %s10762_s1 }
 0xc6f   :  { %31 = sbr.rel (!%p29_p2) target bundleno = 11 (0xb), region = 134 }
 0xc74   :  { %5815 = vsyncpa [#allocation5], 1 }
 0xc75   :  { %5817 = vsyncpa [#allocation5 + $0x1], 1 }

</bundles_post_ra>
